<compile_context>
chip_gen: v7x
topology: tpu7x:2x2x1
jax: 0.10.0
libtpu: 0.0.40
codegen_flags: <defaults>
</compile_context>

<pallas_src>
import functools

import numpy as np
import jax
import jax.numpy as jnp
from jax import lax
from jax.experimental import pallas as pl
from jax.experimental.pallas import tpu as pltpu

# TODO(synk): PyTorch nn.GroupNorm defaults to eps=1e-5; the original GPEMSR blocks use
# 1e-6-style VQGAN GroupNorm.  Kernel and reference both use this constant.
_GN_EPS = 1e-6


# ---------------------------------------------------------------------------
# Host-side constants / packing
# ---------------------------------------------------------------------------

def _group_proj_host(C, groups):
    """(C, C) 0/1 matrix: proj[i, j] = 1 iff channels i, j share a GroupNorm group.

    Built with numpy at trace time and passed as a tiny constant input (hoisted out of
    the kernel per the review).
    """
    g = np.arange(C) // (C // groups)
    return jnp.asarray((g[:, None] == g[None, :]).astype(np.float32))


def _pack_resblocks(res_list, C):
    """Pack per-block params into flat arrays for the fused kernel.

    gn: (4R, C) rows [gn1_g, gn1_b, gn2_g, gn2_b] per block,
    w : (2R, 9C, C) im2col-packed conv weights (conv1 then conv2 per block),
    b : (2R, C) conv biases.
    """
    if not res_list:
        return (jnp.zeros((4, C), jnp.float32),
                jnp.zeros((2, 9 * C, C), jnp.float32),
                jnp.zeros((2, C), jnp.float32))
    gn_rows, w_list, b_rows = [], [], []
    for p in res_list:
        gn_rows += [p['gn1_g'], p['gn1_b'], p['gn2_g'], p['gn2_b']]
        w_list += [p['conv1_w'].reshape(9 * C, C), p['conv2_w'].reshape(9 * C, C)]
        b_rows += [p['conv1_b'], p['conv2_b']]
    return jnp.stack(gn_rows), jnp.stack(w_list), jnp.stack(b_rows)


# ---------------------------------------------------------------------------
# In-kernel helpers (values + VMEM scratch refs; everything stays VMEM-resident)
# ---------------------------------------------------------------------------

def _zero_border(pad_ref):
    """Zero only the 1-pixel border strips of a pad scratch (interior is always
    fully overwritten by every conv)."""
    Hp, Wp, C = pad_ref.shape
    pad_ref[0:1, :, :] = jnp.zeros((1, Wp, C), jnp.float32)
    pad_ref[Hp - 1:Hp, :, :] = jnp.zeros((1, Wp, C), jnp.float32)
    pad_ref[:, 0:1, :] = jnp.zeros((Hp, 1, C), jnp.float32)
    pad_ref[:, Wp - 1:Wp, :] = jnp.zeros((Hp, 1, C), jnp.float32)


def _gn_swish(x2d, gamma, beta, proj, group_size):
    """Vectorized GroupNorm + Swish on an (HW, C) tile.

    One (2, C) sum / sum-of-squares block, folded to per-group stats via a single
    matmul against the (C, C) one-hot projection, broadcast back, one full-lane
    normalize + Swish.  Variance clamped at 0 before rsqrt.
    """
    s = jnp.concatenate([jnp.sum(x2d, axis=0, keepdims=True),
                         jnp.sum(x2d * x2d, axis=0, keepdims=True)], axis=0)  # (2, C)
    st = jnp.dot(s, proj, preferred_element_type=jnp.float32) * (1.0 / float(group_size))
    mean = st[0:1, :]
    var = jnp.maximum(st[1:2, :] - mean * mean, 0.0)
    inv = lax.rsqrt(var + _GN_EPS)
    y = (x2d - mean) * inv * gamma + beta
    return y * jax.nn.sigmoid(y)


def _conv3x3_im2col(h3, pad_ref, w, b):
    """3x3 / stride 1 / pad 1 conv on a VMEM-resident (H, W, Cin) tile as ONE matmul.

    Zero padding lives in `pad_ref` (border pre-zeroed); the 9 tap windows are
    concatenated into an (H*W, 9*Cin) patch and multiplied once against the
    host-packed (9*Cin, Cout) weight.  Returns (H*W, Cout) f32.
    """
    H, W, Cin = h3.shape
    pad_ref[1:H + 1, 1:W + 1, :] = h3
    cols = [pad_ref[dy:dy + H, dx:dx + W, :].reshape(H * W, Cin)
            for dy in range(3) for dx in range(3)]
    patch = jnp.concatenate(cols, axis=-1)                       # (HW, 9*Cin)
    return jnp.dot(patch, w, preferred_element_type=jnp.float32) + b


def _res_block(h2d, pad_ref, gn_ref, w_ref, b_ref, r, proj, group_size, H, W, C):
    """GN->Swish->Conv3x3->GN->Swish->Conv3x3 + skip, fully VMEM-resident."""
    g1 = gn_ref[4 * r + 0:4 * r + 1, :]
    b1 = gn_ref[4 * r + 1:4 * r + 2, :]
    g2 = gn_ref[4 * r + 2:4 * r + 3, :]
    b2 = gn_ref[4 * r + 3:4 * r + 4, :]
    t = _gn_swish(h2d, g1, b1, proj, group_size)
    t = _conv3x3_im2col(t.reshape(H, W, C), pad_ref, w_ref[2 * r + 0],
                        b_ref[2 * r + 0:2 * r + 1, :])
    t = _gn_swish(t, g2, b2, proj, group_size)
    t = _conv3x3_im2col(t.reshape(H, W, C), pad_ref, w_ref[2 * r + 1],
                        b_ref[2 * r + 1:2 * r + 2, :])
    return h2d + t


# ---------------------------------------------------------------------------
# Fused whole-decoder kernel
# ---------------------------------------------------------------------------

def _decoder_kernel(*refs, groups, n_in_res, stage_cfg, in_pad, out_pad, n_inputs):
    o_ref = refs[n_inputs]
    pads = refs[n_inputs + 1:]
    it = iter(refs[:n_inputs])

    # Border strips only (cheap); interiors are fully overwritten by every conv.
    for p in pads:
        _zero_border(p)

    # ---- input_layer: 1x1 conv (per-pixel matmul) + input residual blocks ----
    x_ref = next(it)
    inw_ref = next(it); inb_ref = next(it)
    proj0_ref = next(it); gn0_ref = next(it); w0_ref = next(it); b0_ref = next(it)

    _, H, W, L = x_ref.shape
    C = inw_ref.shape[1]
    x2d = x_ref[0].reshape(H * W, L).astype(jnp.float32)
    h = jnp.dot(x2d, inw_ref[...], preferred_element_type=jnp.float32) + inb_ref[...]

    proj = proj0_ref[...]
    gsz = H * W * (C // groups)
    for r in range(n_in_res):
        h = _res_block(h, pads[in_pad], gn0_ref, w0_ref, b0_ref, r, proj, gsz, H, W, C)

    # ---- feat_extract: per scale, residual blocks + nearest-2x upsample + 3x3 conv ----
    # TODO(synk): NonLocalBlock (use_non_local=True) has no kernel here; this config
    # sets use_non_local=False so the PyTorch module never instantiates it either.
    for cfg in stage_cfg:
        proj_ref = next(it); gn_ref = next(it); w_ref = next(it); b_ref = next(it)
        upw_ref = next(it); upb_ref = next(it)
        Cin = C
        Cout = upw_ref.shape[1]
        proj = proj_ref[...]
        gsz = H * W * (Cin // groups)
        for r in range(cfg['n_res']):
            h = _res_block(h, pads[cfg['res_pad']], gn_ref, w_ref, b_ref, r,
                           proj, gsz, H, W, Cin)
        # Nearest-neighbour 2x upsample built directly in VMEM (no HBM round trip).
        # TODO(synk): for large tiles, fold into the conv as a 4-phase sub-pixel conv.
        h3 = h.reshape(H, W, Cin)
        H2, W2 = 2 * H, 2 * W
        v = jnp.broadcast_to(h3[:, None, :, :], (H, 2, W, Cin)).reshape(H2, W, Cin)
        u = jnp.broadcast_to(v[:, :, None, :], (H2, W, 2, Cin)).reshape(H2, W2, Cin)
        h = _conv3x3_im2col(u, pads[cfg['up_pad']], upw_ref[...], upb_ref[...])
        H, W, C = H2, W2, Cout

    # ---- output_layer: Conv2d(C_last -> im_channel, 3, 1, 1), NCHW direct store ----
    # im_channel is tiny (1-3): accumulate all 9 taps in (H, W, C) and do ONE lane
    # reduction per output channel; the store's lane dim is W (lane-dense for real
    # widths) instead of im_channel (worst-case 1/128 lanes).
    ow_ref = next(it); ob_ref = next(it)
    Cim = o_ref.shape[1]
    pad = pads[out_pad]
    pad[1:H + 1, 1:W + 1, :] = h.reshape(H, W, C)
    for c in range(Cim):
        acc3 = None
        for tap in range(9):
            dy, dx = tap // 3, tap % 3
            contrib = pad[dy:dy + H, dx:dx + W, :] * ow_ref[tap, c:c + 1, :]
            acc3 = contrib if acc3 is None else acc3 + contrib
        o_ref[0, c] = (jnp.sum(acc3, axis=-1) + ob_ref[0:1, c:c + 1]).astype(o_ref.dtype)


# ---------------------------------------------------------------------------
# Host-side wrapper: one pallas_call for the whole decoder
# ---------------------------------------------------------------------------

def decoder_forward(params, x_nchw, args):
    groups = args['gn_groups']
    x = jnp.transpose(x_nchw, (0, 2, 3, 1)).astype(jnp.float32)  # NCHW -> NHWC once
    N, H0, W0, L = x.shape
    cl = args['channel_list']
    C0 = cl[0]

    operands = [x]
    in_specs = [pl.BlockSpec((1, H0, W0, L), lambda n: (n, 0, 0, 0))]

    def add_const(a):
        a = jnp.asarray(a, jnp.float32)
        operands.append(a)
        nd = a.ndim
        in_specs.append(pl.BlockSpec(a.shape, lambda n, _nd=nd: (0,) * _nd))

    # Pad-scratch plan: one VMEM buffer per distinct (H+2, W+2, C), deduped.
    pad_shapes = []

    def pad_idx(h, w, c):
        s = (h + 2, w + 2, c)
        if s not in pad_shapes:
            pad_shapes.append(s)
        return pad_shapes.index(s)

    # ---- input layer operands ----
    add_const(params['in_conv']['w'])                    # (L, C0)
    add_const(params['in_conv']['b'].reshape(1, -1))     # (1, C0)
    add_const(_group_proj_host(C0, groups))              # (C0, C0)
    gn0, w0, b0 = _pack_resblocks(params['in_res'], C0)
    add_const(gn0); add_const(w0); add_const(b0)

    H, W = H0, W0
    in_pad = pad_idx(H, W, C0)

    # ---- per-stage operands ----
    stage_cfg = []
    for stage in params['stages']:
        uw = stage['up']['w']                            # (3, 3, Cin, Cout)
        Cin, Cout = uw.shape[2], uw.shape[3]
        add_const(_group_proj_host(Cin, groups))
        gn, w, b = _pack_resblocks(stage['res'], Cin)
        add_const(gn); add_const(w); add_const(b)
        add_const(uw.reshape(9 * Cin, Cout))             # im2col-packed up-conv weight
        add_const(stage['up']['b'].reshape(1, Cout))
        stage_cfg.append(dict(n_res=len(stage['res']),
                              res_pad=pad_idx(H, W, Cin),
                              up_pad=pad_idx(2 * H, 2 * W, Cin)))
        H, W = 2 * H, 2 * W

    # ---- output conv operands ----
    ow = params['out_conv']['w']                         # (3, 3, C_last, im_channel)
    Cl, Cim = ow.shape[2], ow.shape[3]
    add_const(jnp.transpose(ow, (0, 1, 3, 2)).reshape(9, Cim, Cl))
    add_const(params['out_conv']['b'].reshape(1, Cim))
    out_pad = pad_idx(H, W, Cl)

    kern = functools.partial(
        _decoder_kernel, groups=groups, n_in_res=len(params['in_res']),
        stage_cfg=tuple(stage_cfg), in_pad=in_pad, out_pad=out_pad,
        n_inputs=len(operands))

    # TODO(synk): at realistic resolutions set vmem_limit_bytes and split per stage
    # with an H-tiled grid; at this toy size the whole decoder fits trivially.
    return pl.pallas_call(
        kern,
        out_shape=jax.ShapeDtypeStruct((N, Cim, H, W), jnp.float32),
        grid=(N,),
        in_specs=in_specs,
        out_specs=pl.BlockSpec((1, Cim, H, W), lambda n: (n, 0, 0, 0)),
        scratch_shapes=[pltpu.VMEM(s, jnp.float32) for s in pad_shapes],
        compiler_params=pltpu.CompilerParams(dimension_semantics=("parallel",)),
    )(*operands)


# ---------------------------------------------------------------------------
# Params init
# ---------------------------------------------------------------------------

def init_params(key, args):
    cl = args['channel_list']
    ld = args['latent_dim']
    keys = iter(jax.random.split(key, 256))

    def nrm(shape, scale=0.1):
        return scale * jax.random.normal(next(keys), shape, jnp.float32)

    def conv3_p(cin, cout):
        return {'w': nrm((3, 3, cin, cout)), 'b': nrm((cout,))}

    def res_p(c):
        return {
            'gn1_g': jnp.ones((c,), jnp.float32), 'gn1_b': jnp.zeros((c,), jnp.float32),
            'conv1_w': nrm((3, 3, c, c)), 'conv1_b': nrm((c,)),
            'gn2_g': jnp.ones((c,), jnp.float32), 'gn2_b': jnp.zeros((c,), jnp.float32),
            'conv2_w': nrm((3, 3, c, c)), 'conv2_b': nrm((c,)),
        }

    return {
        'in_conv': {'w': nrm((ld, cl[0])), 'b': nrm((cl[0],))},
        'in_res': [res_p(cl[0]) for _ in range(args['num_input_resblck'])],
        'stages': [
            {'res': [res_p(cl[i]) for _ in range(args['num_resblock_per_scale'])],
             'up': conv3_p(cl[i], cl[i + 1])}
            for i in range(len(cl) - 1)
        ],
        'out_conv': conv3_p(cl[-1], args['im_channel']),
    }


# ---------------------------------------------------------------------------
# Pure-JAX reference
# ---------------------------------------------------------------------------

def _ref_conv(x, w, b, pad):
    return lax.conv_general_dilated(
        x, w, (1, 1), ((pad, pad), (pad, pad)),
        dimension_numbers=('NHWC', 'HWIO', 'NHWC')) + b


def _ref_gn_swish(x, gamma, beta, groups, eps=_GN_EPS, swish=True):
    N, H, W, C = x.shape
    xg = x.reshape(N, H, W, groups, C // groups)
    mean = xg.mean(axis=(1, 2, 4), keepdims=True)
    var = ((xg - mean) ** 2).mean(axis=(1, 2, 4), keepdims=True)
    xn = ((xg - mean) * lax.rsqrt(var + eps)).reshape(N, H, W, C)
    y = xn * gamma + beta
    return y * jax.nn.sigmoid(y) if swish else y


def ref_decoder(params, x_nchw, args):
    x = jnp.transpose(x_nchw, (0, 2, 3, 1))
    g = args['gn_groups']

    def res(x, p):
        h = _ref_gn_swish(x, p['gn1_g'], p['gn1_b'], g)
        h = _ref_conv(h, p['conv1_w'], p['conv1_b'], 1)
        h = _ref_gn_swish(h, p['gn2_g'], p['gn2_b'], g)
        h = _ref_conv(h, p['conv2_w'], p['conv2_b'], 1)
        return x + h

    cin = params['in_conv']
    x = _ref_conv(x, cin['w'].reshape(1, 1, *cin['w'].shape), cin['b'], 0)
    for p in params['in_res']:
        x = res(x, p)
    for stage in params['stages']:
        for p in stage['res']:
            x = res(x, p)
        x = jnp.repeat(jnp.repeat(x, 2, axis=1), 2, axis=2)
        x = _ref_conv(x, stage['up']['w'], stage['up']['b'], 1)
    x = _ref_conv(x, params['out_conv']['w'], params['out_conv']['b'], 1)
    return jnp.transpose(x, (0, 3, 1, 2))


# ---------------------------------------------------------------------------
# main
# ---------------------------------------------------------------------------

if __name__ == "__main__":
    args = {
        'channel_list': [32, 16],
        'num_resblock_per_scale': 1,
        'num_input_resblck': 1,
        'latent_dim': 8,
        'use_non_local': False,
        'im_channel': 1,
        'gn_groups': 4,
    }
    key = jax.random.PRNGKey(0)
    kp, kx = jax.random.split(key)
    params = init_params(kp, args)

    # x in PyTorch NCHW convention: (batch, latent_dim, H, W)
    x = jax.random.normal(kx, (2, args['latent_dim'], 8, 8), jnp.float32)

    fwd = jax.jit(lambda p, inp: decoder_forward(p, inp, args))
    out = jax.block_until_ready(fwd(params, x))

    ref = ref_decoder(params, x, args)
    assert out.shape == (2, args['im_channel'], 16, 16), out.shape
    err = float(jnp.max(jnp.abs(out - ref)))
    assert jnp.allclose(out, ref, atol=2e-3, rtol=2e-3), f"max abs err {err}"

    print("KERNEL_OK")
</pallas_src>

<mosaic_0001>
module attributes {stable_mosaic.version = 11 : i64} {
  func.func @_decoder_kernel(%arg0: i32, %arg1: memref<1x8x8x8xf32, #tpu.memory_space<vmem>>, %arg2: memref<8x32xf32, #tpu.memory_space<vmem>>, %arg3: memref<1x32xf32, #tpu.memory_space<vmem>>, %arg4: memref<32x32xf32, #tpu.memory_space<vmem>>, %arg5: memref<4x32xf32, #tpu.memory_space<vmem>>, %arg6: memref<2x288x32xf32, #tpu.memory_space<vmem>>, %arg7: memref<2x32xf32, #tpu.memory_space<vmem>>, %arg8: memref<32x32xf32, #tpu.memory_space<vmem>>, %arg9: memref<4x32xf32, #tpu.memory_space<vmem>>, %arg10: memref<2x288x32xf32, #tpu.memory_space<vmem>>, %arg11: memref<2x32xf32, #tpu.memory_space<vmem>>, %arg12: memref<288x16xf32, #tpu.memory_space<vmem>>, %arg13: memref<1x16xf32, #tpu.memory_space<vmem>>, %arg14: memref<9x1x16xf32, #tpu.memory_space<vmem>>, %arg15: memref<1x1xf32, #tpu.memory_space<vmem>>, %arg16: memref<1x1x16x16xf32, #tpu.memory_space<vmem>>, %arg17: memref<10x10x32xf32, #tpu.memory_space<vmem>>, %arg18: memref<18x18x32xf32, #tpu.memory_space<vmem>>, %arg19: memref<18x18x16xf32, #tpu.memory_space<vmem>>) attributes {dimension_semantics = [#tpu.dimension_semantics<parallel>], iteration_bounds = array<i64: 2>, scalar_prefetch = 0 : i64, scratch_operands = 3 : i64, tpu.core_type = #tpu.core_type<tc>, window_params = [{transform_indices = @transform_0, window_bounds = array<i64: 1, 8, 8, 8>}, {pipeline_mode = #tpu.pipeline_mode<synchronous>, transform_indices = @transform_1, window_bounds = array<i64: 8, 32>}, {pipeline_mode = #tpu.pipeline_mode<synchronous>, transform_indices = @transform_2, window_bounds = array<i64: 1, 32>}, {pipeline_mode = #tpu.pipeline_mode<synchronous>, transform_indices = @transform_3, window_bounds = array<i64: 32, 32>}, {pipeline_mode = #tpu.pipeline_mode<synchronous>, transform_indices = @transform_4, window_bounds = array<i64: 4, 32>}, {pipeline_mode = #tpu.pipeline_mode<synchronous>, transform_indices = @transform_5, window_bounds = array<i64: 2, 288, 32>}, {pipeline_mode = #tpu.pipeline_mode<synchronous>, transform_indices = @transform_6, window_bounds = array<i64: 2, 32>}, {pipeline_mode = #tpu.pipeline_mode<synchronous>, transform_indices = @transform_7, window_bounds = array<i64: 32, 32>}, {pipeline_mode = #tpu.pipeline_mode<synchronous>, transform_indices = @transform_8, window_bounds = array<i64: 4, 32>}, {pipeline_mode = #tpu.pipeline_mode<synchronous>, transform_indices = @transform_9, window_bounds = array<i64: 2, 288, 32>}, {pipeline_mode = #tpu.pipeline_mode<synchronous>, transform_indices = @transform_10, window_bounds = array<i64: 2, 32>}, {pipeline_mode = #tpu.pipeline_mode<synchronous>, transform_indices = @transform_11, window_bounds = array<i64: 288, 16>}, {pipeline_mode = #tpu.pipeline_mode<synchronous>, transform_indices = @transform_12, window_bounds = array<i64: 1, 16>}, {pipeline_mode = #tpu.pipeline_mode<synchronous>, transform_indices = @transform_13, window_bounds = array<i64: 9, 1, 16>}, {pipeline_mode = #tpu.pipeline_mode<synchronous>, transform_indices = @transform_14, window_bounds = array<i64: 1, 1>}, {transform_indices = @transform_15, window_bounds = array<i64: 1, 1, 16, 16>}]} {
    %cst = arith.constant 0.000000e+00 : f32
    %0 = vector.broadcast %cst : f32 to vector<1x10x32xf32>
    %c0 = arith.constant 0 : index
    %c0_0 = arith.constant 0 : index
    %c0_1 = arith.constant 0 : index
    %1 = vector.load %arg17[%c0, %c0_0, %c0_1] : memref<10x10x32xf32, #tpu.memory_space<vmem>>, vector<1x10x32xf32>
    tpu.vector_store %arg17[%c0, %c0_0, %c0_1], %0 {strides = array<i32>} : memref<10x10x32xf32, #tpu.memory_space<vmem>>, vector<1x10x32xf32>,
    %cst_2 = arith.constant 0.000000e+00 : f32
    %2 = vector.broadcast %cst_2 : f32 to vector<1x10x32xf32>
    %c9 = arith.constant 9 : index
    %c0_3 = arith.constant 0 : index
    %c0_4 = arith.constant 0 : index
    %3 = vector.load %arg17[%c9, %c0_3, %c0_4] : memref<10x10x32xf32, #tpu.memory_space<vmem>>, vector<1x10x32xf32>
    tpu.vector_store %arg17[%c9, %c0_3, %c0_4], %2 {strides = array<i32>} : memref<10x10x32xf32, #tpu.memory_space<vmem>>, vector<1x10x32xf32>,
    %cst_5 = arith.constant 0.000000e+00 : f32
    %4 = vector.broadcast %cst_5 : f32 to vector<10x1x32xf32>
    %c0_6 = arith.constant 0 : index
    %c0_7 = arith.constant 0 : index
    %c0_8 = arith.constant 0 : index
    %5 = vector.load %arg17[%c0_6, %c0_7, %c0_8] : memref<10x10x32xf32, #tpu.memory_space<vmem>>, vector<10x1x32xf32>
    tpu.vector_store %arg17[%c0_6, %c0_7, %c0_8], %4 {strides = array<i32>} : memref<10x10x32xf32, #tpu.memory_space<vmem>>, vector<10x1x32xf32>,
    %cst_9 = arith.constant 0.000000e+00 : f32
    %6 = vector.broadcast %cst_9 : f32 to vector<10x1x32xf32>
    %c0_10 = arith.constant 0 : index
    %c9_11 = arith.constant 9 : index
    %c0_12 = arith.constant 0 : index
    %7 = vector.load %arg17[%c0_10, %c9_11, %c0_12] : memref<10x10x32xf32, #tpu.memory_space<vmem>>, vector<10x1x32xf32>
    tpu.vector_store %arg17[%c0_10, %c9_11, %c0_12], %6 {strides = array<i32>} : memref<10x10x32xf32, #tpu.memory_space<vmem>>, vector<10x1x32xf32>,
    %cst_13 = arith.constant 0.000000e+00 : f32
    %8 = vector.broadcast %cst_13 : f32 to vector<1x18x32xf32>
    %c0_14 = arith.constant 0 : index
    %c0_15 = arith.constant 0 : index
    %c0_16 = arith.constant 0 : index
    %9 = vector.load %arg18[%c0_14, %c0_15, %c0_16] : memref<18x18x32xf32, #tpu.memory_space<vmem>>, vector<1x18x32xf32>
    tpu.vector_store %arg18[%c0_14, %c0_15, %c0_16], %8 {strides = array<i32>} : memref<18x18x32xf32, #tpu.memory_space<vmem>>, vector<1x18x32xf32>,
    %cst_17 = arith.constant 0.000000e+00 : f32
    %10 = vector.broadcast %cst_17 : f32 to vector<1x18x32xf32>
    %c17 = arith.constant 17 : index
    %c0_18 = arith.constant 0 : index
    %c0_19 = arith.constant 0 : index
    %11 = vector.load %arg18[%c17, %c0_18, %c0_19] : memref<18x18x32xf32, #tpu.memory_space<vmem>>, vector<1x18x32xf32>
    tpu.vector_store %arg18[%c17, %c0_18, %c0_19], %10 {strides = array<i32>} : memref<18x18x32xf32, #tpu.memory_space<vmem>>, vector<1x18x32xf32>,
    %cst_20 = arith.constant 0.000000e+00 : f32
    %12 = vector.broadcast %cst_20 : f32 to vector<18x1x32xf32>
    %c0_21 = arith.constant 0 : index
    %c0_22 = arith.constant 0 : index
    %c0_23 = arith.constant 0 : index
    %13 = vector.load %arg18[%c0_21, %c0_22, %c0_23] : memref<18x18x32xf32, #tpu.memory_space<vmem>>, vector<18x1x32xf32>
    tpu.vector_store %arg18[%c0_21, %c0_22, %c0_23], %12 {strides = array<i32>} : memref<18x18x32xf32, #tpu.memory_space<vmem>>, vector<18x1x32xf32>,
    %cst_24 = arith.constant 0.000000e+00 : f32
    %14 = vector.broadcast %cst_24 : f32 to vector<18x1x32xf32>
    %c0_25 = arith.constant 0 : index
    %c17_26 = arith.constant 17 : index
    %c0_27 = arith.constant 0 : index
    %15 = vector.load %arg18[%c0_25, %c17_26, %c0_27] : memref<18x18x32xf32, #tpu.memory_space<vmem>>, vector<18x1x32xf32>
    tpu.vector_store %arg18[%c0_25, %c17_26, %c0_27], %14 {strides = array<i32>} : memref<18x18x32xf32, #tpu.memory_space<vmem>>, vector<18x1x32xf32>,
    %cst_28 = arith.constant 0.000000e+00 : f32
    %16 = vector.broadcast %cst_28 : f32 to vector<1x18x16xf32>
    %c0_29 = arith.constant 0 : index
    %c0_30 = arith.constant 0 : index
    %c0_31 = arith.constant 0 : index
    %17 = vector.load %arg19[%c0_29, %c0_30, %c0_31] : memref<18x18x16xf32, #tpu.memory_space<vmem>>, vector<1x18x16xf32>
    tpu.vector_store %arg19[%c0_29, %c0_30, %c0_31], %16 {strides = array<i32>} : memref<18x18x16xf32, #tpu.memory_space<vmem>>, vector<1x18x16xf32>,
    %cst_32 = arith.constant 0.000000e+00 : f32
    %18 = vector.broadcast %cst_32 : f32 to vector<1x18x16xf32>
    %c17_33 = arith.constant 17 : index
    %c0_34 = arith.constant 0 : index
    %c0_35 = arith.constant 0 : index
    %19 = vector.load %arg19[%c17_33, %c0_34, %c0_35] : memref<18x18x16xf32, #tpu.memory_space<vmem>>, vector<1x18x16xf32>
    tpu.vector_store %arg19[%c17_33, %c0_34, %c0_35], %18 {strides = array<i32>} : memref<18x18x16xf32, #tpu.memory_space<vmem>>, vector<1x18x16xf32>,
    %cst_36 = arith.constant 0.000000e+00 : f32
    %20 = vector.broadcast %cst_36 : f32 to vector<18x1x16xf32>
    %c0_37 = arith.constant 0 : index
    %c0_38 = arith.constant 0 : index
    %c0_39 = arith.constant 0 : index
    %21 = vector.load %arg19[%c0_37, %c0_38, %c0_39] : memref<18x18x16xf32, #tpu.memory_space<vmem>>, vector<18x1x16xf32>
    tpu.vector_store %arg19[%c0_37, %c0_38, %c0_39], %20 {strides = array<i32>} : memref<18x18x16xf32, #tpu.memory_space<vmem>>, vector<18x1x16xf32>,
    %cst_40 = arith.constant 0.000000e+00 : f32
    %22 = vector.broadcast %cst_40 : f32 to vector<18x1x16xf32>
    %c0_41 = arith.constant 0 : index
    %c17_42 = arith.constant 17 : index
    %c0_43 = arith.constant 0 : index
    %23 = vector.load %arg19[%c0_41, %c17_42, %c0_43] : memref<18x18x16xf32, #tpu.memory_space<vmem>>, vector<18x1x16xf32>
    tpu.vector_store %arg19[%c0_41, %c17_42, %c0_43], %22 {strides = array<i32>} : memref<18x18x16xf32, #tpu.memory_space<vmem>>, vector<18x1x16xf32>,
    %c0_44 = arith.constant 0 : index
    %c0_45 = arith.constant 0 : index
    %c0_46 = arith.constant 0 : index
    %c0_47 = arith.constant 0 : index
    %24 = vector.load %arg1[%c0_44, %c0_45, %c0_46, %c0_47] : memref<1x8x8x8xf32, #tpu.memory_space<vmem>>, vector<1x8x8x8xf32>
    %25 = vector.shape_cast %24 : vector<1x8x8x8xf32> to vector<8x8x8xf32>
    %26 = vector.shape_cast %25 : vector<8x8x8xf32> to vector<64x8xf32>
    %c0_48 = arith.constant 0 : index
    %c0_49 = arith.constant 0 : index
    %27 = vector.load %arg2[%c0_48, %c0_49] : memref<8x32xf32, #tpu.memory_space<vmem>>, vector<8x32xf32>
    %cst_50 = arith.constant dense<0.000000e+00> : vector<64x32xf32>
    %28 = tpu.matmul %26, %27, %cst_50 {dimension_numbers = #tpu.dot_dimension_numbers<[1], [0], [0], [1], [0, 0, 1, 1], [], []>} : vector<64x8xf32>, vector<8x32xf32>, vector<64x32xf32> -> vector<64x32xf32>
    %c0_51 = arith.constant 0 : index
    %c0_52 = arith.constant 0 : index
    %29 = vector.load %arg3[%c0_51, %c0_52] : memref<1x32xf32, #tpu.memory_space<vmem>>, vector<1x32xf32>
    %30 = vector.broadcast %29 : vector<1x32xf32> to vector<64x32xf32>
    %31 = arith.addf %28, %30 : vector<64x32xf32>
    %c0_53 = arith.constant 0 : index
    %c0_54 = arith.constant 0 : index
    %32 = vector.load %arg4[%c0_53, %c0_54] : memref<32x32xf32, #tpu.memory_space<vmem>>, vector<32x32xf32>
    %c0_55 = arith.constant 0 : index
    %c0_56 = arith.constant 0 : index
    %33 = vector.load %arg5[%c0_55, %c0_56] : memref<4x32xf32, #tpu.memory_space<vmem>>, vector<1x32xf32>
    %c1 = arith.constant 1 : index
    %c0_57 = arith.constant 0 : index
    %34 = vector.load %arg5[%c1, %c0_57] : memref<4x32xf32, #tpu.memory_space<vmem>>, vector<1x32xf32>
    %c2 = arith.constant 2 : index
    %c0_58 = arith.constant 0 : index
    %35 = vector.load %arg5[%c2, %c0_58] : memref<4x32xf32, #tpu.memory_space<vmem>>, vector<1x32xf32>
    %c3 = arith.constant 3 : index
    %c0_59 = arith.constant 0 : index
    %36 = vector.load %arg5[%c3, %c0_59] : memref<4x32xf32, #tpu.memory_space<vmem>>, vector<1x32xf32>
    %cst_60 = arith.constant dense<0.000000e+00> : vector<32xf32>
    %37 = vector.multi_reduction <add>, %31, %cst_60 [0] : vector<64x32xf32> to vector<32xf32>
    %38 = vector.shape_cast %37 : vector<32xf32> to vector<1x32xf32>
    %39 = arith.mulf %31, %31 : vector<64x32xf32>
    %cst_61 = arith.constant dense<0.000000e+00> : vector<32xf32>
    %40 = vector.multi_reduction <add>, %39, %cst_61 [0] : vector<64x32xf32> to vector<32xf32>
    %41 = vector.shape_cast %40 : vector<32xf32> to vector<1x32xf32>
    %42 = tpu.concatenate %38, %41 in 0 : vector<1x32xf32>, vector<1x32xf32> -> vector<2x32xf32>
    %cst_62 = arith.constant dense<0.000000e+00> : vector<2x32xf32>
    %43 = tpu.matmul %42, %32, %cst_62 {dimension_numbers = #tpu.dot_dimension_numbers<[1], [0], [0], [1], [0, 0, 1, 1], [], []>} : vector<2x32xf32>, vector<32x32xf32>, vector<2x32xf32> -> vector<2x32xf32>
    %cst_63 = arith.constant 0.001953125 : f32
    %44 = vector.broadcast %cst_63 : f32 to vector<2x32xf32>
    %45 = arith.mulf %43, %44 : vector<2x32xf32>
    %46 = vector.extract_strided_slice %45 {offsets = [0, 0], sizes = [1, 32], strides = [1, 1]} : vector<2x32xf32> to vector<1x32xf32>
    %47 = vector.extract_strided_slice %45 {offsets = [1, 0], sizes = [1, 32], strides = [1, 1]} : vector<2x32xf32> to vector<1x32xf32>
    %48 = arith.mulf %46, %46 : vector<1x32xf32>
    %49 = arith.subf %47, %48 : vector<1x32xf32>
    %cst_64 = arith.constant 0.000000e+00 : f32
    %50 = vector.broadcast %cst_64 : f32 to vector<1x32xf32>
    %51 = arith.maximumf %49, %50 : vector<1x32xf32>
    %cst_65 = arith.constant 9.99999997E-7 : f32
    %52 = vector.broadcast %cst_65 : f32 to vector<1x32xf32>
    %53 = arith.addf %51, %52 : vector<1x32xf32>
    %54 = math.rsqrt %53 : vector<1x32xf32>
    %55 = vector.broadcast %46 : vector<1x32xf32> to vector<64x32xf32>
    %56 = arith.subf %31, %55 : vector<64x32xf32>
    %57 = vector.broadcast %54 : vector<1x32xf32> to vector<64x32xf32>
    %58 = arith.mulf %56, %57 : vector<64x32xf32>
    %59 = vector.broadcast %33 : vector<1x32xf32> to vector<64x32xf32>
    %60 = arith.mulf %58, %59 : vector<64x32xf32>
    %61 = vector.broadcast %34 : vector<1x32xf32> to vector<64x32xf32>
    %62 = arith.addf %60, %61 : vector<64x32xf32>
    %63 = arith.negf %62 : vector<64x32xf32>
    %64 = math.exp %63 : vector<64x32xf32>
    %cst_66 = arith.constant 1.000000e+00 : f32
    %65 = vector.broadcast %cst_66 : f32 to vector<64x32xf32>
    %66 = arith.addf %65, %64 : vector<64x32xf32>
    %67 = arith.divf %65, %66 : vector<64x32xf32>
    %68 = arith.mulf %62, %67 : vector<64x32xf32>
    %69 = vector.shape_cast %68 : vector<64x32xf32> to vector<8x8x32xf32>
    %c0_67 = arith.constant 0 : index
    %c0_68 = arith.constant 0 : index
    %c0_69 = arith.constant 0 : index
    %70 = vector.load %arg6[%c0_67, %c0_68, %c0_69] : memref<2x288x32xf32, #tpu.memory_space<vmem>>, vector<1x288x32xf32>
    %71 = vector.shape_cast %70 : vector<1x288x32xf32> to vector<288x32xf32>
    %c0_70 = arith.constant 0 : index
    %c0_71 = arith.constant 0 : index
    %72 = vector.load %arg7[%c0_70, %c0_71] : memref<2x32xf32, #tpu.memory_space<vmem>>, vector<1x32xf32>
    %c1_72 = arith.constant 1 : index
    %c1_73 = arith.constant 1 : index
    %c0_74 = arith.constant 0 : index
    %73 = vector.load %arg17[%c1_72, %c1_73, %c0_74] : memref<10x10x32xf32, #tpu.memory_space<vmem>>, vector<8x8x32xf32>
    tpu.vector_store %arg17[%c1_72, %c1_73, %c0_74], %69 {strides = array<i32>} : memref<10x10x32xf32, #tpu.memory_space<vmem>>, vector<8x8x32xf32>,
    %c0_75 = arith.constant 0 : index
    %c0_76 = arith.constant 0 : index
    %c0_77 = arith.constant 0 : index
    %74 = vector.load %arg17[%c0_75, %c0_76, %c0_77] : memref<10x10x32xf32, #tpu.memory_space<vmem>>, vector<8x8x32xf32>
    %75 = vector.shape_cast %74 : vector<8x8x32xf32> to vector<64x32xf32>
    %c0_78 = arith.constant 0 : index
    %c1_79 = arith.constant 1 : index
    %c0_80 = arith.constant 0 : index
    %76 = vector.load %arg17[%c0_78, %c1_79, %c0_80] : memref<10x10x32xf32, #tpu.memory_space<vmem>>, vector<8x8x32xf32>
    %77 = vector.shape_cast %76 : vector<8x8x32xf32> to vector<64x32xf32>
    %c0_81 = arith.constant 0 : index
    %c2_82 = arith.constant 2 : index
    %c0_83 = arith.constant 0 : index
    %78 = vector.load %arg17[%c0_81, %c2_82, %c0_83] : memref<10x10x32xf32, #tpu.memory_space<vmem>>, vector<8x8x32xf32>
    %79 = vector.shape_cast %78 : vector<8x8x32xf32> to vector<64x32xf32>
    %c1_84 = arith.constant 1 : index
    %c0_85 = arith.constant 0 : index
    %c0_86 = arith.constant 0 : index
    %80 = vector.load %arg17[%c1_84, %c0_85, %c0_86] : memref<10x10x32xf32, #tpu.memory_space<vmem>>, vector<8x8x32xf32>
    %81 = vector.shape_cast %80 : vector<8x8x32xf32> to vector<64x32xf32>
    %c1_87 = arith.constant 1 : index
    %c1_88 = arith.constant 1 : index
    %c0_89 = arith.constant 0 : index
    %82 = vector.load %arg17[%c1_87, %c1_88, %c0_89] : memref<10x10x32xf32, #tpu.memory_space<vmem>>, vector<8x8x32xf32>
    %83 = vector.shape_cast %82 : vector<8x8x32xf32> to vector<64x32xf32>
    %c1_90 = arith.constant 1 : index
    %c2_91 = arith.constant 2 : index
    %c0_92 = arith.constant 0 : index
    %84 = vector.load %arg17[%c1_90, %c2_91, %c0_92] : memref<10x10x32xf32, #tpu.memory_space<vmem>>, vector<8x8x32xf32>
    %85 = vector.shape_cast %84 : vector<8x8x32xf32> to vector<64x32xf32>
    %c2_93 = arith.constant 2 : index
    %c0_94 = arith.constant 0 : index
    %c0_95 = arith.constant 0 : index
    %86 = vector.load %arg17[%c2_93, %c0_94, %c0_95] : memref<10x10x32xf32, #tpu.memory_space<vmem>>, vector<8x8x32xf32>
    %87 = vector.shape_cast %86 : vector<8x8x32xf32> to vector<64x32xf32>
    %c2_96 = arith.constant 2 : index
    %c1_97 = arith.constant 1 : index
    %c0_98 = arith.constant 0 : index
    %88 = vector.load %arg17[%c2_96, %c1_97, %c0_98] : memref<10x10x32xf32, #tpu.memory_space<vmem>>, vector<8x8x32xf32>
    %89 = vector.shape_cast %88 : vector<8x8x32xf32> to vector<64x32xf32>
    %c2_99 = arith.constant 2 : index
    %c2_100 = arith.constant 2 : index
    %c0_101 = arith.constant 0 : index
    %90 = vector.load %arg17[%c2_99, %c2_100, %c0_101] : memref<10x10x32xf32, #tpu.memory_space<vmem>>, vector<8x8x32xf32>
    %91 = vector.shape_cast %90 : vector<8x8x32xf32> to vector<64x32xf32>
    %92 = tpu.concatenate %75, %77, %79, %81, %83, %85, %87, %89, %91 in 1 : vector<64x32xf32>, vector<64x32xf32>, vector<64x32xf32>, vector<64x32xf32>, vector<64x32xf32>, vector<64x32xf32>, vector<64x32xf32>, vector<64x32xf32>, vector<64x32xf32> -> vector<64x288xf32>
    %cst_102 = arith.constant dense<0.000000e+00> : vector<64x32xf32>
    %93 = tpu.matmul %92, %71, %cst_102 {dimension_numbers = #tpu.dot_dimension_numbers<[1], [0], [0], [1], [0, 0, 1, 1], [], []>} : vector<64x288xf32>, vector<288x32xf32>, vector<64x32xf32> -> vector<64x32xf32>
    %94 = vector.broadcast %72 : vector<1x32xf32> to vector<64x32xf32>
    %95 = arith.addf %93, %94 : vector<64x32xf32>
    %cst_103 = arith.constant dense<0.000000e+00> : vector<32xf32>
    %96 = vector.multi_reduction <add>, %95, %cst_103 [0] : vector<64x32xf32> to vector<32xf32>
    %97 = vector.shape_cast %96 : vector<32xf32> to vector<1x32xf32>
    %98 = arith.mulf %95, %95 : vector<64x32xf32>
    %cst_104 = arith.constant dense<0.000000e+00> : vector<32xf32>
    %99 = vector.multi_reduction <add>, %98, %cst_104 [0] : vector<64x32xf32> to vector<32xf32>
    %100 = vector.shape_cast %99 : vector<32xf32> to vector<1x32xf32>
    %101 = tpu.concatenate %97, %100 in 0 : vector<1x32xf32>, vector<1x32xf32> -> vector<2x32xf32>
    %cst_105 = arith.constant dense<0.000000e+00> : vector<2x32xf32>
    %102 = tpu.matmul %101, %32, %cst_105 {dimension_numbers = #tpu.dot_dimension_numbers<[1], [0], [0], [1], [0, 0, 1, 1], [], []>} : vector<2x32xf32>, vector<32x32xf32>, vector<2x32xf32> -> vector<2x32xf32>
    %cst_106 = arith.constant 0.001953125 : f32
    %103 = vector.broadcast %cst_106 : f32 to vector<2x32xf32>
    %104 = arith.mulf %102, %103 : vector<2x32xf32>
    %105 = vector.extract_strided_slice %104 {offsets = [0, 0], sizes = [1, 32], strides = [1, 1]} : vector<2x32xf32> to vector<1x32xf32>
    %106 = vector.extract_strided_slice %104 {offsets = [1, 0], sizes = [1, 32], strides = [1, 1]} : vector<2x32xf32> to vector<1x32xf32>
    %107 = arith.mulf %105, %105 : vector<1x32xf32>
    %108 = arith.subf %106, %107 : vector<1x32xf32>
    %cst_107 = arith.constant 0.000000e+00 : f32
    %109 = vector.broadcast %cst_107 : f32 to vector<1x32xf32>
    %110 = arith.maximumf %108, %109 : vector<1x32xf32>
    %cst_108 = arith.constant 9.99999997E-7 : f32
    %111 = vector.broadcast %cst_108 : f32 to vector<1x32xf32>
    %112 = arith.addf %110, %111 : vector<1x32xf32>
    %113 = math.rsqrt %112 : vector<1x32xf32>
    %114 = vector.broadcast %105 : vector<1x32xf32> to vector<64x32xf32>
    %115 = arith.subf %95, %114 : vector<64x32xf32>
    %116 = vector.broadcast %113 : vector<1x32xf32> to vector<64x32xf32>
    %117 = arith.mulf %115, %116 : vector<64x32xf32>
    %118 = vector.broadcast %35 : vector<1x32xf32> to vector<64x32xf32>
    %119 = arith.mulf %117, %118 : vector<64x32xf32>
    %120 = vector.broadcast %36 : vector<1x32xf32> to vector<64x32xf32>
    %121 = arith.addf %119, %120 : vector<64x32xf32>
    %122 = arith.negf %121 : vector<64x32xf32>
    %123 = math.exp %122 : vector<64x32xf32>
    %cst_109 = arith.constant 1.000000e+00 : f32
    %124 = vector.broadcast %cst_109 : f32 to vector<64x32xf32>
    %125 = arith.addf %124, %123 : vector<64x32xf32>
    %126 = arith.divf %124, %125 : vector<64x32xf32>
    %127 = arith.mulf %121, %126 : vector<64x32xf32>
    %128 = vector.shape_cast %127 : vector<64x32xf32> to vector<8x8x32xf32>
    %c1_110 = arith.constant 1 : index
    %c0_111 = arith.constant 0 : index
    %c0_112 = arith.constant 0 : index
    %129 = vector.load %arg6[%c1_110, %c0_111, %c0_112] : memref<2x288x32xf32, #tpu.memory_space<vmem>>, vector<1x288x32xf32>
    %130 = vector.shape_cast %129 : vector<1x288x32xf32> to vector<288x32xf32>
    %c1_113 = arith.constant 1 : index
    %c0_114 = arith.constant 0 : index
    %131 = vector.load %arg7[%c1_113, %c0_114] : memref<2x32xf32, #tpu.memory_space<vmem>>, vector<1x32xf32>
    %c1_115 = arith.constant 1 : index
    %c1_116 = arith.constant 1 : index
    %c0_117 = arith.constant 0 : index
    %132 = vector.load %arg17[%c1_115, %c1_116, %c0_117] : memref<10x10x32xf32, #tpu.memory_space<vmem>>, vector<8x8x32xf32>
    tpu.vector_store %arg17[%c1_115, %c1_116, %c0_117], %128 {strides = array<i32>} : memref<10x10x32xf32, #tpu.memory_space<vmem>>, vector<8x8x32xf32>,
    %c0_118 = arith.constant 0 : index
    %c0_119 = arith.constant 0 : index
    %c0_120 = arith.constant 0 : index
    %133 = vector.load %arg17[%c0_118, %c0_119, %c0_120] : memref<10x10x32xf32, #tpu.memory_space<vmem>>, vector<8x8x32xf32>
    %134 = vector.shape_cast %133 : vector<8x8x32xf32> to vector<64x32xf32>
    %c0_121 = arith.constant 0 : index
    %c1_122 = arith.constant 1 : index
    %c0_123 = arith.constant 0 : index
    %135 = vector.load %arg17[%c0_121, %c1_122, %c0_123] : memref<10x10x32xf32, #tpu.memory_space<vmem>>, vector<8x8x32xf32>
    %136 = vector.shape_cast %135 : vector<8x8x32xf32> to vector<64x32xf32>
    %c0_124 = arith.constant 0 : index
    %c2_125 = arith.constant 2 : index
    %c0_126 = arith.constant 0 : index
    %137 = vector.load %arg17[%c0_124, %c2_125, %c0_126] : memref<10x10x32xf32, #tpu.memory_space<vmem>>, vector<8x8x32xf32>
    %138 = vector.shape_cast %137 : vector<8x8x32xf32> to vector<64x32xf32>
    %c1_127 = arith.constant 1 : index
    %c0_128 = arith.constant 0 : index
    %c0_129 = arith.constant 0 : index
    %139 = vector.load %arg17[%c1_127, %c0_128, %c0_129] : memref<10x10x32xf32, #tpu.memory_space<vmem>>, vector<8x8x32xf32>
    %140 = vector.shape_cast %139 : vector<8x8x32xf32> to vector<64x32xf32>
    %c1_130 = arith.constant 1 : index
    %c1_131 = arith.constant 1 : index
    %c0_132 = arith.constant 0 : index
    %141 = vector.load %arg17[%c1_130, %c1_131, %c0_132] : memref<10x10x32xf32, #tpu.memory_space<vmem>>, vector<8x8x32xf32>
    %142 = vector.shape_cast %141 : vector<8x8x32xf32> to vector<64x32xf32>
    %c1_133 = arith.constant 1 : index
    %c2_134 = arith.constant 2 : index
    %c0_135 = arith.constant 0 : index
    %143 = vector.load %arg17[%c1_133, %c2_134, %c0_135] : memref<10x10x32xf32, #tpu.memory_space<vmem>>, vector<8x8x32xf32>
    %144 = vector.shape_cast %143 : vector<8x8x32xf32> to vector<64x32xf32>
    %c2_136 = arith.constant 2 : index
    %c0_137 = arith.constant 0 : index
    %c0_138 = arith.constant 0 : index
    %145 = vector.load %arg17[%c2_136, %c0_137, %c0_138] : memref<10x10x32xf32, #tpu.memory_space<vmem>>, vector<8x8x32xf32>
    %146 = vector.shape_cast %145 : vector<8x8x32xf32> to vector<64x32xf32>
    %c2_139 = arith.constant 2 : index
    %c1_140 = arith.constant 1 : index
    %c0_141 = arith.constant 0 : index
    %147 = vector.load %arg17[%c2_139, %c1_140, %c0_141] : memref<10x10x32xf32, #tpu.memory_space<vmem>>, vector<8x8x32xf32>
    %148 = vector.shape_cast %147 : vector<8x8x32xf32> to vector<64x32xf32>
    %c2_142 = arith.constant 2 : index
    %c2_143 = arith.constant 2 : index
    %c0_144 = arith.constant 0 : index
    %149 = vector.load %arg17[%c2_142, %c2_143, %c0_144] : memref<10x10x32xf32, #tpu.memory_space<vmem>>, vector<8x8x32xf32>
    %150 = vector.shape_cast %149 : vector<8x8x32xf32> to vector<64x32xf32>
    %151 = tpu.concatenate %134, %136, %138, %140, %142, %144, %146, %148, %150 in 1 : vector<64x32xf32>, vector<64x32xf32>, vector<64x32xf32>, vector<64x32xf32>, vector<64x32xf32>, vector<64x32xf32>, vector<64x32xf32>, vector<64x32xf32>, vector<64x32xf32> -> vector<64x288xf32>
    %cst_145 = arith.constant dense<0.000000e+00> : vector<64x32xf32>
    %152 = tpu.matmul %151, %130, %cst_145 {dimension_numbers = #tpu.dot_dimension_numbers<[1], [0], [0], [1], [0, 0, 1, 1], [], []>} : vector<64x288xf32>, vector<288x32xf32>, vector<64x32xf32> -> vector<64x32xf32>
    %153 = vector.broadcast %131 : vector<1x32xf32> to vector<64x32xf32>
    %154 = arith.addf %152, %153 : vector<64x32xf32>
    %155 = arith.addf %31, %154 : vector<64x32xf32>
    %c0_146 = arith.constant 0 : index
    %c0_147 = arith.constant 0 : index
    %156 = vector.load %arg8[%c0_146, %c0_147] : memref<32x32xf32, #tpu.memory_space<vmem>>, vector<32x32xf32>
    %c0_148 = arith.constant 0 : index
    %c0_149 = arith.constant 0 : index
    %157 = vector.load %arg9[%c0_148, %c0_149] : memref<4x32xf32, #tpu.memory_space<vmem>>, vector<1x32xf32>
    %c1_150 = arith.constant 1 : index
    %c0_151 = arith.constant 0 : index
    %158 = vector.load %arg9[%c1_150, %c0_151] : memref<4x32xf32, #tpu.memory_space<vmem>>, vector<1x32xf32>
    %c2_152 = arith.constant 2 : index
    %c0_153 = arith.constant 0 : index
    %159 = vector.load %arg9[%c2_152, %c0_153] : memref<4x32xf32, #tpu.memory_space<vmem>>, vector<1x32xf32>
    %c3_154 = arith.constant 3 : index
    %c0_155 = arith.constant 0 : index
    %160 = vector.load %arg9[%c3_154, %c0_155] : memref<4x32xf32, #tpu.memory_space<vmem>>, vector<1x32xf32>
    %cst_156 = arith.constant dense<0.000000e+00> : vector<32xf32>
    %161 = vector.multi_reduction <add>, %155, %cst_156 [0] : vector<64x32xf32> to vector<32xf32>
    %162 = vector.shape_cast %161 : vector<32xf32> to vector<1x32xf32>
    %163 = arith.mulf %155, %155 : vector<64x32xf32>
    %cst_157 = arith.constant dense<0.000000e+00> : vector<32xf32>
    %164 = vector.multi_reduction <add>, %163, %cst_157 [0] : vector<64x32xf32> to vector<32xf32>
    %165 = vector.shape_cast %164 : vector<32xf32> to vector<1x32xf32>
    %166 = tpu.concatenate %162, %165 in 0 : vector<1x32xf32>, vector<1x32xf32> -> vector<2x32xf32>
    %cst_158 = arith.constant dense<0.000000e+00> : vector<2x32xf32>
    %167 = tpu.matmul %166, %156, %cst_158 {dimension_numbers = #tpu.dot_dimension_numbers<[1], [0], [0], [1], [0, 0, 1, 1], [], []>} : vector<2x32xf32>, vector<32x32xf32>, vector<2x32xf32> -> vector<2x32xf32>
    %cst_159 = arith.constant 0.001953125 : f32
    %168 = vector.broadcast %cst_159 : f32 to vector<2x32xf32>
    %169 = arith.mulf %167, %168 : vector<2x32xf32>
    %170 = vector.extract_strided_slice %169 {offsets = [0, 0], sizes = [1, 32], strides = [1, 1]} : vector<2x32xf32> to vector<1x32xf32>
    %171 = vector.extract_strided_slice %169 {offsets = [1, 0], sizes = [1, 32], strides = [1, 1]} : vector<2x32xf32> to vector<1x32xf32>
    %172 = arith.mulf %170, %170 : vector<1x32xf32>
    %173 = arith.subf %171, %172 : vector<1x32xf32>
    %cst_160 = arith.constant 0.000000e+00 : f32
    %174 = vector.broadcast %cst_160 : f32 to vector<1x32xf32>
    %175 = arith.maximumf %173, %174 : vector<1x32xf32>
    %cst_161 = arith.constant 9.99999997E-7 : f32
    %176 = vector.broadcast %cst_161 : f32 to vector<1x32xf32>
    %177 = arith.addf %175, %176 : vector<1x32xf32>
    %178 = math.rsqrt %177 : vector<1x32xf32>
    %179 = vector.broadcast %170 : vector<1x32xf32> to vector<64x32xf32>
    %180 = arith.subf %155, %179 : vector<64x32xf32>
    %181 = vector.broadcast %178 : vector<1x32xf32> to vector<64x32xf32>
    %182 = arith.mulf %180, %181 : vector<64x32xf32>
    %183 = vector.broadcast %157 : vector<1x32xf32> to vector<64x32xf32>
    %184 = arith.mulf %182, %183 : vector<64x32xf32>
    %185 = vector.broadcast %158 : vector<1x32xf32> to vector<64x32xf32>
    %186 = arith.addf %184, %185 : vector<64x32xf32>
    %187 = arith.negf %186 : vector<64x32xf32>
    %188 = math.exp %187 : vector<64x32xf32>
    %cst_162 = arith.constant 1.000000e+00 : f32
    %189 = vector.broadcast %cst_162 : f32 to vector<64x32xf32>
    %190 = arith.addf %189, %188 : vector<64x32xf32>
    %191 = arith.divf %189, %190 : vector<64x32xf32>
    %192 = arith.mulf %186, %191 : vector<64x32xf32>
    %193 = vector.shape_cast %192 : vector<64x32xf32> to vector<8x8x32xf32>
    %c0_163 = arith.constant 0 : index
    %c0_164 = arith.constant 0 : index
    %c0_165 = arith.constant 0 : index
    %194 = vector.load %arg10[%c0_163, %c0_164, %c0_165] : memref<2x288x32xf32, #tpu.memory_space<vmem>>, vector<1x288x32xf32>
    %195 = vector.shape_cast %194 : vector<1x288x32xf32> to vector<288x32xf32>
    %c0_166 = arith.constant 0 : index
    %c0_167 = arith.constant 0 : index
    %196 = vector.load %arg11[%c0_166, %c0_167] : memref<2x32xf32, #tpu.memory_space<vmem>>, vector<1x32xf32>
    %c1_168 = arith.constant 1 : index
    %c1_169 = arith.constant 1 : index
    %c0_170 = arith.constant 0 : index
    %197 = vector.load %arg17[%c1_168, %c1_169, %c0_170] : memref<10x10x32xf32, #tpu.memory_space<vmem>>, vector<8x8x32xf32>
    tpu.vector_store %arg17[%c1_168, %c1_169, %c0_170], %193 {strides = array<i32>} : memref<10x10x32xf32, #tpu.memory_space<vmem>>, vector<8x8x32xf32>,
    %c0_171 = arith.constant 0 : index
    %c0_172 = arith.constant 0 : index
    %c0_173 = arith.constant 0 : index
    %198 = vector.load %arg17[%c0_171, %c0_172, %c0_173] : memref<10x10x32xf32, #tpu.memory_space<vmem>>, vector<8x8x32xf32>
    %199 = vector.shape_cast %198 : vector<8x8x32xf32> to vector<64x32xf32>
    %c0_174 = arith.constant 0 : index
    %c1_175 = arith.constant 1 : index
    %c0_176 = arith.constant 0 : index
    %200 = vector.load %arg17[%c0_174, %c1_175, %c0_176] : memref<10x10x32xf32, #tpu.memory_space<vmem>>, vector<8x8x32xf32>
    %201 = vector.shape_cast %200 : vector<8x8x32xf32> to vector<64x32xf32>
    %c0_177 = arith.constant 0 : index
    %c2_178 = arith.constant 2 : index
    %c0_179 = arith.constant 0 : index
    %202 = vector.load %arg17[%c0_177, %c2_178, %c0_179] : memref<10x10x32xf32, #tpu.memory_space<vmem>>, vector<8x8x32xf32>
    %203 = vector.shape_cast %202 : vector<8x8x32xf32> to vector<64x32xf32>
    %c1_180 = arith.constant 1 : index
    %c0_181 = arith.constant 0 : index
    %c0_182 = arith.constant 0 : index
    %204 = vector.load %arg17[%c1_180, %c0_181, %c0_182] : memref<10x10x32xf32, #tpu.memory_space<vmem>>, vector<8x8x32xf32>
    %205 = vector.shape_cast %204 : vector<8x8x32xf32> to vector<64x32xf32>
    %c1_183 = arith.constant 1 : index
    %c1_184 = arith.constant 1 : index
    %c0_185 = arith.constant 0 : index
    %206 = vector.load %arg17[%c1_183, %c1_184, %c0_185] : memref<10x10x32xf32, #tpu.memory_space<vmem>>, vector<8x8x32xf32>
    %207 = vector.shape_cast %206 : vector<8x8x32xf32> to vector<64x32xf32>
    %c1_186 = arith.constant 1 : index
    %c2_187 = arith.constant 2 : index
    %c0_188 = arith.constant 0 : index
    %208 = vector.load %arg17[%c1_186, %c2_187, %c0_188] : memref<10x10x32xf32, #tpu.memory_space<vmem>>, vector<8x8x32xf32>
    %209 = vector.shape_cast %208 : vector<8x8x32xf32> to vector<64x32xf32>
    %c2_189 = arith.constant 2 : index
    %c0_190 = arith.constant 0 : index
    %c0_191 = arith.constant 0 : index
    %210 = vector.load %arg17[%c2_189, %c0_190, %c0_191] : memref<10x10x32xf32, #tpu.memory_space<vmem>>, vector<8x8x32xf32>
    %211 = vector.shape_cast %210 : vector<8x8x32xf32> to vector<64x32xf32>
    %c2_192 = arith.constant 2 : index
    %c1_193 = arith.constant 1 : index
    %c0_194 = arith.constant 0 : index
    %212 = vector.load %arg17[%c2_192, %c1_193, %c0_194] : memref<10x10x32xf32, #tpu.memory_space<vmem>>, vector<8x8x32xf32>
    %213 = vector.shape_cast %212 : vector<8x8x32xf32> to vector<64x32xf32>
    %c2_195 = arith.constant 2 : index
    %c2_196 = arith.constant 2 : index
    %c0_197 = arith.constant 0 : index
    %214 = vector.load %arg17[%c2_195, %c2_196, %c0_197] : memref<10x10x32xf32, #tpu.memory_space<vmem>>, vector<8x8x32xf32>
    %215 = vector.shape_cast %214 : vector<8x8x32xf32> to vector<64x32xf32>
    %216 = tpu.concatenate %199, %201, %203, %205, %207, %209, %211, %213, %215 in 1 : vector<64x32xf32>, vector<64x32xf32>, vector<64x32xf32>, vector<64x32xf32>, vector<64x32xf32>, vector<64x32xf32>, vector<64x32xf32>, vector<64x32xf32>, vector<64x32xf32> -> vector<64x288xf32>
    %cst_198 = arith.constant dense<0.000000e+00> : vector<64x32xf32>
    %217 = tpu.matmul %216, %195, %cst_198 {dimension_numbers = #tpu.dot_dimension_numbers<[1], [0], [0], [1], [0, 0, 1, 1], [], []>} : vector<64x288xf32>, vector<288x32xf32>, vector<64x32xf32> -> vector<64x32xf32>
    %218 = vector.broadcast %196 : vector<1x32xf32> to vector<64x32xf32>
    %219 = arith.addf %217, %218 : vector<64x32xf32>
    %cst_199 = arith.constant dense<0.000000e+00> : vector<32xf32>
    %220 = vector.multi_reduction <add>, %219, %cst_199 [0] : vector<64x32xf32> to vector<32xf32>
    %221 = vector.shape_cast %220 : vector<32xf32> to vector<1x32xf32>
    %222 = arith.mulf %219, %219 : vector<64x32xf32>
    %cst_200 = arith.constant dense<0.000000e+00> : vector<32xf32>
    %223 = vector.multi_reduction <add>, %222, %cst_200 [0] : vector<64x32xf32> to vector<32xf32>
    %224 = vector.shape_cast %223 : vector<32xf32> to vector<1x32xf32>
    %225 = tpu.concatenate %221, %224 in 0 : vector<1x32xf32>, vector<1x32xf32> -> vector<2x32xf32>
    %cst_201 = arith.constant dense<0.000000e+00> : vector<2x32xf32>
    %226 = tpu.matmul %225, %156, %cst_201 {dimension_numbers = #tpu.dot_dimension_numbers<[1], [0], [0], [1], [0, 0, 1, 1], [], []>} : vector<2x32xf32>, vector<32x32xf32>, vector<2x32xf32> -> vector<2x32xf32>
    %cst_202 = arith.constant 0.001953125 : f32
    %227 = vector.broadcast %cst_202 : f32 to vector<2x32xf32>
    %228 = arith.mulf %226, %227 : vector<2x32xf32>
    %229 = vector.extract_strided_slice %228 {offsets = [0, 0], sizes = [1, 32], strides = [1, 1]} : vector<2x32xf32> to vector<1x32xf32>
    %230 = vector.extract_strided_slice %228 {offsets = [1, 0], sizes = [1, 32], strides = [1, 1]} : vector<2x32xf32> to vector<1x32xf32>
    %231 = arith.mulf %229, %229 : vector<1x32xf32>
    %232 = arith.subf %230, %231 : vector<1x32xf32>
    %cst_203 = arith.constant 0.000000e+00 : f32
    %233 = vector.broadcast %cst_203 : f32 to vector<1x32xf32>
    %234 = arith.maximumf %232, %233 : vector<1x32xf32>
    %cst_204 = arith.constant 9.99999997E-7 : f32
    %235 = vector.broadcast %cst_204 : f32 to vector<1x32xf32>
    %236 = arith.addf %234, %235 : vector<1x32xf32>
    %237 = math.rsqrt %236 : vector<1x32xf32>
    %238 = vector.broadcast %229 : vector<1x32xf32> to vector<64x32xf32>
    %239 = arith.subf %219, %238 : vector<64x32xf32>
    %240 = vector.broadcast %237 : vector<1x32xf32> to vector<64x32xf32>
    %241 = arith.mulf %239, %240 : vector<64x32xf32>
    %242 = vector.broadcast %159 : vector<1x32xf32> to vector<64x32xf32>
    %243 = arith.mulf %241, %242 : vector<64x32xf32>
    %244 = vector.broadcast %160 : vector<1x32xf32> to vector<64x32xf32>
    %245 = arith.addf %243, %244 : vector<64x32xf32>
    %246 = arith.negf %245 : vector<64x32xf32>
    %247 = math.exp %246 : vector<64x32xf32>
    %cst_205 = arith.constant 1.000000e+00 : f32
    %248 = vector.broadcast %cst_205 : f32 to vector<64x32xf32>
    %249 = arith.addf %248, %247 : vector<64x32xf32>
    %250 = arith.divf %248, %249 : vector<64x32xf32>
    %251 = arith.mulf %245, %250 : vector<64x32xf32>
    %252 = vector.shape_cast %251 : vector<64x32xf32> to vector<8x8x32xf32>
    %c1_206 = arith.constant 1 : index
    %c0_207 = arith.constant 0 : index
    %c0_208 = arith.constant 0 : index
    %253 = vector.load %arg10[%c1_206, %c0_207, %c0_208] : memref<2x288x32xf32, #tpu.memory_space<vmem>>, vector<1x288x32xf32>
    %254 = vector.shape_cast %253 : vector<1x288x32xf32> to vector<288x32xf32>
    %c1_209 = arith.constant 1 : index
    %c0_210 = arith.constant 0 : index
    %255 = vector.load %arg11[%c1_209, %c0_210] : memref<2x32xf32, #tpu.memory_space<vmem>>, vector<1x32xf32>
    %c1_211 = arith.constant 1 : index
    %c1_212 = arith.constant 1 : index
    %c0_213 = arith.constant 0 : index
    %256 = vector.load %arg17[%c1_211, %c1_212, %c0_213] : memref<10x10x32xf32, #tpu.memory_space<vmem>>, vector<8x8x32xf32>
    tpu.vector_store %arg17[%c1_211, %c1_212, %c0_213], %252 {strides = array<i32>} : memref<10x10x32xf32, #tpu.memory_space<vmem>>, vector<8x8x32xf32>,
    %c0_214 = arith.constant 0 : index
    %c0_215 = arith.constant 0 : index
    %c0_216 = arith.constant 0 : index
    %257 = vector.load %arg17[%c0_214, %c0_215, %c0_216] : memref<10x10x32xf32, #tpu.memory_space<vmem>>, vector<8x8x32xf32>
    %258 = vector.shape_cast %257 : vector<8x8x32xf32> to vector<64x32xf32>
    %c0_217 = arith.constant 0 : index
    %c1_218 = arith.constant 1 : index
    %c0_219 = arith.constant 0 : index
    %259 = vector.load %arg17[%c0_217, %c1_218, %c0_219] : memref<10x10x32xf32, #tpu.memory_space<vmem>>, vector<8x8x32xf32>
    %260 = vector.shape_cast %259 : vector<8x8x32xf32> to vector<64x32xf32>
    %c0_220 = arith.constant 0 : index
    %c2_221 = arith.constant 2 : index
    %c0_222 = arith.constant 0 : index
    %261 = vector.load %arg17[%c0_220, %c2_221, %c0_222] : memref<10x10x32xf32, #tpu.memory_space<vmem>>, vector<8x8x32xf32>
    %262 = vector.shape_cast %261 : vector<8x8x32xf32> to vector<64x32xf32>
    %c1_223 = arith.constant 1 : index
    %c0_224 = arith.constant 0 : index
    %c0_225 = arith.constant 0 : index
    %263 = vector.load %arg17[%c1_223, %c0_224, %c0_225] : memref<10x10x32xf32, #tpu.memory_space<vmem>>, vector<8x8x32xf32>
    %264 = vector.shape_cast %263 : vector<8x8x32xf32> to vector<64x32xf32>
    %c1_226 = arith.constant 1 : index
    %c1_227 = arith.constant 1 : index
    %c0_228 = arith.constant 0 : index
    %265 = vector.load %arg17[%c1_226, %c1_227, %c0_228] : memref<10x10x32xf32, #tpu.memory_space<vmem>>, vector<8x8x32xf32>
    %266 = vector.shape_cast %265 : vector<8x8x32xf32> to vector<64x32xf32>
    %c1_229 = arith.constant 1 : index
    %c2_230 = arith.constant 2 : index
    %c0_231 = arith.constant 0 : index
    %267 = vector.load %arg17[%c1_229, %c2_230, %c0_231] : memref<10x10x32xf32, #tpu.memory_space<vmem>>, vector<8x8x32xf32>
    %268 = vector.shape_cast %267 : vector<8x8x32xf32> to vector<64x32xf32>
    %c2_232 = arith.constant 2 : index
    %c0_233 = arith.constant 0 : index
    %c0_234 = arith.constant 0 : index
    %269 = vector.load %arg17[%c2_232, %c0_233, %c0_234] : memref<10x10x32xf32, #tpu.memory_space<vmem>>, vector<8x8x32xf32>
    %270 = vector.shape_cast %269 : vector<8x8x32xf32> to vector<64x32xf32>
    %c2_235 = arith.constant 2 : index
    %c1_236 = arith.constant 1 : index
    %c0_237 = arith.constant 0 : index
    %271 = vector.load %arg17[%c2_235, %c1_236, %c0_237] : memref<10x10x32xf32, #tpu.memory_space<vmem>>, vector<8x8x32xf32>
    %272 = vector.shape_cast %271 : vector<8x8x32xf32> to vector<64x32xf32>
    %c2_238 = arith.constant 2 : index
    %c2_239 = arith.constant 2 : index
    %c0_240 = arith.constant 0 : index
    %273 = vector.load %arg17[%c2_238, %c2_239, %c0_240] : memref<10x10x32xf32, #tpu.memory_space<vmem>>, vector<8x8x32xf32>
    %274 = vector.shape_cast %273 : vector<8x8x32xf32> to vector<64x32xf32>
    %275 = tpu.concatenate %258, %260, %262, %264, %266, %268, %270, %272, %274 in 1 : vector<64x32xf32>, vector<64x32xf32>, vector<64x32xf32>, vector<64x32xf32>, vector<64x32xf32>, vector<64x32xf32>, vector<64x32xf32>, vector<64x32xf32>, vector<64x32xf32> -> vector<64x288xf32>
    %cst_241 = arith.constant dense<0.000000e+00> : vector<64x32xf32>
    %276 = tpu.matmul %275, %254, %cst_241 {dimension_numbers = #tpu.dot_dimension_numbers<[1], [0], [0], [1], [0, 0, 1, 1], [], []>} : vector<64x288xf32>, vector<288x32xf32>, vector<64x32xf32> -> vector<64x32xf32>
    %277 = vector.broadcast %255 : vector<1x32xf32> to vector<64x32xf32>
    %278 = arith.addf %276, %277 : vector<64x32xf32>
    %279 = arith.addf %155, %278 : vector<64x32xf32>
    %280 = vector.shape_cast %279 : vector<64x32xf32> to vector<8x8x32xf32>
    %281 = vector.shape_cast %280 : vector<8x8x32xf32> to vector<8x1x8x32xf32>
    %282 = vector.shape_cast %281 : vector<8x1x8x32xf32> to vector<8x1x8x32xf32>
    %283 = vector.broadcast %282 : vector<8x1x8x32xf32> to vector<8x2x8x32xf32>
    %284 = vector.shape_cast %283 : vector<8x2x8x32xf32> to vector<16x8x32xf32>
    %285 = vector.shape_cast %284 : vector<16x8x32xf32> to vector<16x8x1x32xf32>
    %286 = vector.shape_cast %285 : vector<16x8x1x32xf32> to vector<16x8x1x32xf32>
    %287 = vector.broadcast %286 : vector<16x8x1x32xf32> to vector<16x8x2x32xf32>
    %288 = vector.shape_cast %287 : vector<16x8x2x32xf32> to vector<16x16x32xf32>
    %c0_242 = arith.constant 0 : index
    %c0_243 = arith.constant 0 : index
    %289 = vector.load %arg12[%c0_242, %c0_243] : memref<288x16xf32, #tpu.memory_space<vmem>>, vector<288x16xf32>
    %c0_244 = arith.constant 0 : index
    %c0_245 = arith.constant 0 : index
    %290 = vector.load %arg13[%c0_244, %c0_245] : memref<1x16xf32, #tpu.memory_space<vmem>>, vector<1x16xf32>
    %c1_246 = arith.constant 1 : index
    %c1_247 = arith.constant 1 : index
    %c0_248 = arith.constant 0 : index
    %291 = vector.load %arg18[%c1_246, %c1_247, %c0_248] : memref<18x18x32xf32, #tpu.memory_space<vmem>>, vector<16x16x32xf32>
    tpu.vector_store %arg18[%c1_246, %c1_247, %c0_248], %288 {strides = array<i32>} : memref<18x18x32xf32, #tpu.memory_space<vmem>>, vector<16x16x32xf32>,
    %c0_249 = arith.constant 0 : index
    %c0_250 = arith.constant 0 : index
    %c0_251 = arith.constant 0 : index
    %292 = vector.load %arg18[%c0_249, %c0_250, %c0_251] : memref<18x18x32xf32, #tpu.memory_space<vmem>>, vector<16x16x32xf32>
    %293 = vector.shape_cast %292 : vector<16x16x32xf32> to vector<256x32xf32>
    %c0_252 = arith.constant 0 : index
    %c1_253 = arith.constant 1 : index
    %c0_254 = arith.constant 0 : index
    %294 = vector.load %arg18[%c0_252, %c1_253, %c0_254] : memref<18x18x32xf32, #tpu.memory_space<vmem>>, vector<16x16x32xf32>
    %295 = vector.shape_cast %294 : vector<16x16x32xf32> to vector<256x32xf32>
    %c0_255 = arith.constant 0 : index
    %c2_256 = arith.constant 2 : index
    %c0_257 = arith.constant 0 : index
    %296 = vector.load %arg18[%c0_255, %c2_256, %c0_257] : memref<18x18x32xf32, #tpu.memory_space<vmem>>, vector<16x16x32xf32>
    %297 = vector.shape_cast %296 : vector<16x16x32xf32> to vector<256x32xf32>
    %c1_258 = arith.constant 1 : index
    %c0_259 = arith.constant 0 : index
    %c0_260 = arith.constant 0 : index
    %298 = vector.load %arg18[%c1_258, %c0_259, %c0_260] : memref<18x18x32xf32, #tpu.memory_space<vmem>>, vector<16x16x32xf32>
    %299 = vector.shape_cast %298 : vector<16x16x32xf32> to vector<256x32xf32>
    %c1_261 = arith.constant 1 : index
    %c1_262 = arith.constant 1 : index
    %c0_263 = arith.constant 0 : index
    %300 = vector.load %arg18[%c1_261, %c1_262, %c0_263] : memref<18x18x32xf32, #tpu.memory_space<vmem>>, vector<16x16x32xf32>
    %301 = vector.shape_cast %300 : vector<16x16x32xf32> to vector<256x32xf32>
    %c1_264 = arith.constant 1 : index
    %c2_265 = arith.constant 2 : index
    %c0_266 = arith.constant 0 : index
    %302 = vector.load %arg18[%c1_264, %c2_265, %c0_266] : memref<18x18x32xf32, #tpu.memory_space<vmem>>, vector<16x16x32xf32>
    %303 = vector.shape_cast %302 : vector<16x16x32xf32> to vector<256x32xf32>
    %c2_267 = arith.constant 2 : index
    %c0_268 = arith.constant 0 : index
    %c0_269 = arith.constant 0 : index
    %304 = vector.load %arg18[%c2_267, %c0_268, %c0_269] : memref<18x18x32xf32, #tpu.memory_space<vmem>>, vector<16x16x32xf32>
    %305 = vector.shape_cast %304 : vector<16x16x32xf32> to vector<256x32xf32>
    %c2_270 = arith.constant 2 : index
    %c1_271 = arith.constant 1 : index
    %c0_272 = arith.constant 0 : index
    %306 = vector.load %arg18[%c2_270, %c1_271, %c0_272] : memref<18x18x32xf32, #tpu.memory_space<vmem>>, vector<16x16x32xf32>
    %307 = vector.shape_cast %306 : vector<16x16x32xf32> to vector<256x32xf32>
    %c2_273 = arith.constant 2 : index
    %c2_274 = arith.constant 2 : index
    %c0_275 = arith.constant 0 : index
    %308 = vector.load %arg18[%c2_273, %c2_274, %c0_275] : memref<18x18x32xf32, #tpu.memory_space<vmem>>, vector<16x16x32xf32>
    %309 = vector.shape_cast %308 : vector<16x16x32xf32> to vector<256x32xf32>
    %310 = tpu.concatenate %293, %295, %297, %299, %301, %303, %305, %307, %309 in 1 : vector<256x32xf32>, vector<256x32xf32>, vector<256x32xf32>, vector<256x32xf32>, vector<256x32xf32>, vector<256x32xf32>, vector<256x32xf32>, vector<256x32xf32>, vector<256x32xf32> -> vector<256x288xf32>
    %cst_276 = arith.constant dense<0.000000e+00> : vector<256x16xf32>
    %311 = tpu.matmul %310, %289, %cst_276 {dimension_numbers = #tpu.dot_dimension_numbers<[1], [0], [0], [1], [0, 0, 1, 1], [], []>} : vector<256x288xf32>, vector<288x16xf32>, vector<256x16xf32> -> vector<256x16xf32>
    %312 = vector.broadcast %290 : vector<1x16xf32> to vector<256x16xf32>
    %313 = arith.addf %311, %312 : vector<256x16xf32>
    %314 = vector.shape_cast %313 : vector<256x16xf32> to vector<16x16x16xf32>
    %c1_277 = arith.constant 1 : index
    %c1_278 = arith.constant 1 : index
    %c0_279 = arith.constant 0 : index
    %315 = vector.load %arg19[%c1_277, %c1_278, %c0_279] : memref<18x18x16xf32, #tpu.memory_space<vmem>>, vector<16x16x16xf32>
    tpu.vector_store %arg19[%c1_277, %c1_278, %c0_279], %314 {strides = array<i32>} : memref<18x18x16xf32, #tpu.memory_space<vmem>>, vector<16x16x16xf32>,
    %c0_280 = arith.constant 0 : index
    %c0_281 = arith.constant 0 : index
    %c0_282 = arith.constant 0 : index
    %316 = vector.load %arg19[%c0_280, %c0_281, %c0_282] : memref<18x18x16xf32, #tpu.memory_space<vmem>>, vector<16x16x16xf32>
    %c0_283 = arith.constant 0 : index
    %c0_284 = arith.constant 0 : index
    %c0_285 = arith.constant 0 : index
    %317 = vector.load %arg14[%c0_283, %c0_284, %c0_285] : memref<9x1x16xf32, #tpu.memory_space<vmem>>, vector<1x1x16xf32>
    %318 = vector.shape_cast %317 : vector<1x1x16xf32> to vector<1x16xf32>
    %319 = vector.shape_cast %318 : vector<1x16xf32> to vector<1x1x16xf32>
    %320 = vector.broadcast %319 : vector<1x1x16xf32> to vector<16x16x16xf32>
    %321 = arith.mulf %316, %320 : vector<16x16x16xf32>
    %c0_286 = arith.constant 0 : index
    %c1_287 = arith.constant 1 : index
    %c0_288 = arith.constant 0 : index
    %322 = vector.load %arg19[%c0_286, %c1_287, %c0_288] : memref<18x18x16xf32, #tpu.memory_space<vmem>>, vector<16x16x16xf32>
    %c1_289 = arith.constant 1 : index
    %c0_290 = arith.constant 0 : index
    %c0_291 = arith.constant 0 : index
    %323 = vector.load %arg14[%c1_289, %c0_290, %c0_291] : memref<9x1x16xf32, #tpu.memory_space<vmem>>, vector<1x1x16xf32>
    %324 = vector.shape_cast %323 : vector<1x1x16xf32> to vector<1x16xf32>
    %325 = vector.shape_cast %324 : vector<1x16xf32> to vector<1x1x16xf32>
    %326 = vector.broadcast %325 : vector<1x1x16xf32> to vector<16x16x16xf32>
    %327 = arith.mulf %322, %326 : vector<16x16x16xf32>
    %328 = arith.addf %321, %327 : vector<16x16x16xf32>
    %c0_292 = arith.constant 0 : index
    %c2_293 = arith.constant 2 : index
    %c0_294 = arith.constant 0 : index
    %329 = vector.load %arg19[%c0_292, %c2_293, %c0_294] : memref<18x18x16xf32, #tpu.memory_space<vmem>>, vector<16x16x16xf32>
    %c2_295 = arith.constant 2 : index
    %c0_296 = arith.constant 0 : index
    %c0_297 = arith.constant 0 : index
    %330 = vector.load %arg14[%c2_295, %c0_296, %c0_297] : memref<9x1x16xf32, #tpu.memory_space<vmem>>, vector<1x1x16xf32>
    %331 = vector.shape_cast %330 : vector<1x1x16xf32> to vector<1x16xf32>
    %332 = vector.shape_cast %331 : vector<1x16xf32> to vector<1x1x16xf32>
    %333 = vector.broadcast %332 : vector<1x1x16xf32> to vector<16x16x16xf32>
    %334 = arith.mulf %329, %333 : vector<16x16x16xf32>
    %335 = arith.addf %328, %334 : vector<16x16x16xf32>
    %c1_298 = arith.constant 1 : index
    %c0_299 = arith.constant 0 : index
    %c0_300 = arith.constant 0 : index
    %336 = vector.load %arg19[%c1_298, %c0_299, %c0_300] : memref<18x18x16xf32, #tpu.memory_space<vmem>>, vector<16x16x16xf32>
    %c3_301 = arith.constant 3 : index
    %c0_302 = arith.constant 0 : index
    %c0_303 = arith.constant 0 : index
    %337 = vector.load %arg14[%c3_301, %c0_302, %c0_303] : memref<9x1x16xf32, #tpu.memory_space<vmem>>, vector<1x1x16xf32>
    %338 = vector.shape_cast %337 : vector<1x1x16xf32> to vector<1x16xf32>
    %339 = vector.shape_cast %338 : vector<1x16xf32> to vector<1x1x16xf32>
    %340 = vector.broadcast %339 : vector<1x1x16xf32> to vector<16x16x16xf32>
    %341 = arith.mulf %336, %340 : vector<16x16x16xf32>
    %342 = arith.addf %335, %341 : vector<16x16x16xf32>
    %c1_304 = arith.constant 1 : index
    %c1_305 = arith.constant 1 : index
    %c0_306 = arith.constant 0 : index
    %343 = vector.load %arg19[%c1_304, %c1_305, %c0_306] : memref<18x18x16xf32, #tpu.memory_space<vmem>>, vector<16x16x16xf32>
    %c4 = arith.constant 4 : index
    %c0_307 = arith.constant 0 : index
    %c0_308 = arith.constant 0 : index
    %344 = vector.load %arg14[%c4, %c0_307, %c0_308] : memref<9x1x16xf32, #tpu.memory_space<vmem>>, vector<1x1x16xf32>
    %345 = vector.shape_cast %344 : vector<1x1x16xf32> to vector<1x16xf32>
    %346 = vector.shape_cast %345 : vector<1x16xf32> to vector<1x1x16xf32>
    %347 = vector.broadcast %346 : vector<1x1x16xf32> to vector<16x16x16xf32>
    %348 = arith.mulf %343, %347 : vector<16x16x16xf32>
    %349 = arith.addf %342, %348 : vector<16x16x16xf32>
    %c1_309 = arith.constant 1 : index
    %c2_310 = arith.constant 2 : index
    %c0_311 = arith.constant 0 : index
    %350 = vector.load %arg19[%c1_309, %c2_310, %c0_311] : memref<18x18x16xf32, #tpu.memory_space<vmem>>, vector<16x16x16xf32>
    %c5 = arith.constant 5 : index
    %c0_312 = arith.constant 0 : index
    %c0_313 = arith.constant 0 : index
    %351 = vector.load %arg14[%c5, %c0_312, %c0_313] : memref<9x1x16xf32, #tpu.memory_space<vmem>>, vector<1x1x16xf32>
    %352 = vector.shape_cast %351 : vector<1x1x16xf32> to vector<1x16xf32>
    %353 = vector.shape_cast %352 : vector<1x16xf32> to vector<1x1x16xf32>
    %354 = vector.broadcast %353 : vector<1x1x16xf32> to vector<16x16x16xf32>
    %355 = arith.mulf %350, %354 : vector<16x16x16xf32>
    %356 = arith.addf %349, %355 : vector<16x16x16xf32>
    %c2_314 = arith.constant 2 : index
    %c0_315 = arith.constant 0 : index
    %c0_316 = arith.constant 0 : index
    %357 = vector.load %arg19[%c2_314, %c0_315, %c0_316] : memref<18x18x16xf32, #tpu.memory_space<vmem>>, vector<16x16x16xf32>
    %c6 = arith.constant 6 : index
    %c0_317 = arith.constant 0 : index
    %c0_318 = arith.constant 0 : index
    %358 = vector.load %arg14[%c6, %c0_317, %c0_318] : memref<9x1x16xf32, #tpu.memory_space<vmem>>, vector<1x1x16xf32>
    %359 = vector.shape_cast %358 : vector<1x1x16xf32> to vector<1x16xf32>
    %360 = vector.shape_cast %359 : vector<1x16xf32> to vector<1x1x16xf32>
    %361 = vector.broadcast %360 : vector<1x1x16xf32> to vector<16x16x16xf32>
    %362 = arith.mulf %357, %361 : vector<16x16x16xf32>
    %363 = arith.addf %356, %362 : vector<16x16x16xf32>
    %c2_319 = arith.constant 2 : index
    %c1_320 = arith.constant 1 : index
    %c0_321 = arith.constant 0 : index
    %364 = vector.load %arg19[%c2_319, %c1_320, %c0_321] : memref<18x18x16xf32, #tpu.memory_space<vmem>>, vector<16x16x16xf32>
    %c7 = arith.constant 7 : index
    %c0_322 = arith.constant 0 : index
    %c0_323 = arith.constant 0 : index
    %365 = vector.load %arg14[%c7, %c0_322, %c0_323] : memref<9x1x16xf32, #tpu.memory_space<vmem>>, vector<1x1x16xf32>
    %366 = vector.shape_cast %365 : vector<1x1x16xf32> to vector<1x16xf32>
    %367 = vector.shape_cast %366 : vector<1x16xf32> to vector<1x1x16xf32>
    %368 = vector.broadcast %367 : vector<1x1x16xf32> to vector<16x16x16xf32>
    %369 = arith.mulf %364, %368 : vector<16x16x16xf32>
    %370 = arith.addf %363, %369 : vector<16x16x16xf32>
    %c2_324 = arith.constant 2 : index
    %c2_325 = arith.constant 2 : index
    %c0_326 = arith.constant 0 : index
    %371 = vector.load %arg19[%c2_324, %c2_325, %c0_326] : memref<18x18x16xf32, #tpu.memory_space<vmem>>, vector<16x16x16xf32>
    %c8 = arith.constant 8 : index
    %c0_327 = arith.constant 0 : index
    %c0_328 = arith.constant 0 : index
    %372 = vector.load %arg14[%c8, %c0_327, %c0_328] : memref<9x1x16xf32, #tpu.memory_space<vmem>>, vector<1x1x16xf32>
    %373 = vector.shape_cast %372 : vector<1x1x16xf32> to vector<1x16xf32>
    %374 = vector.shape_cast %373 : vector<1x16xf32> to vector<1x1x16xf32>
    %375 = vector.broadcast %374 : vector<1x1x16xf32> to vector<16x16x16xf32>
    %376 = arith.mulf %371, %375 : vector<16x16x16xf32>
    %377 = arith.addf %370, %376 : vector<16x16x16xf32>
    %cst_329 = arith.constant dense<0.000000e+00> : vector<16x16xf32>
    %378 = vector.multi_reduction <add>, %377, %cst_329 [2] : vector<16x16x16xf32> to vector<16x16xf32>
    %c0_330 = arith.constant 0 : index
    %c0_331 = arith.constant 0 : index
    %379 = vector.load %arg15[%c0_330, %c0_331] : memref<1x1xf32, #tpu.memory_space<vmem>>, vector<1x1xf32>
    %380 = vector.broadcast %379 : vector<1x1xf32> to vector<16x16xf32>
    %381 = arith.addf %378, %380 : vector<16x16xf32>
    %c0_332 = arith.constant 0 : index
    %c0_333 = arith.constant 0 : index
    %c0_334 = arith.constant 0 : index
    %c0_335 = arith.constant 0 : index
    %382 = vector.load %arg16[%c0_332, %c0_333, %c0_334, %c0_335] : memref<1x1x16x16xf32, #tpu.memory_space<vmem>>, vector<1x1x16x16xf32>
    %383 = vector.shape_cast %382 : vector<1x1x16x16xf32> to vector<16x16xf32>
    %384 = vector.shape_cast %381 : vector<16x16xf32> to vector<1x1x16x16xf32>
    tpu.vector_store %arg16[%c0_332, %c0_333, %c0_334, %c0_335], %384 {strides = array<i32>} : memref<1x1x16x16xf32, #tpu.memory_space<vmem>>, vector<1x1x16x16xf32>,
    return
  }
  func.func @transform_0(%arg0: i32) -> (i32, i32, i32, i32) {
    %c0_i32 = arith.constant 0 : i32
    %c0_i32_0 = arith.constant 0 : i32
    %c0_i32_1 = arith.constant 0 : i32
    %c0_i32_2 = arith.constant 0 : i32
    return %arg0, %c0_i32, %c0_i32_0, %c0_i32_1 : i32, i32, i32, i32
  }
  func.func @transform_1(%arg0: i32) -> (i32, i32) {
    %c0_i32 = arith.constant 0 : i32
    %c0_i32_0 = arith.constant 0 : i32
    %c0_i32_1 = arith.constant 0 : i32
    return %c0_i32, %c0_i32_0 : i32, i32
  }
  func.func @transform_2(%arg0: i32) -> (i32, i32) {
    %c0_i32 = arith.constant 0 : i32
    %c0_i32_0 = arith.constant 0 : i32
    %c0_i32_1 = arith.constant 0 : i32
    return %c0_i32, %c0_i32_0 : i32, i32
  }
  func.func @transform_3(%arg0: i32) -> (i32, i32) {
    %c0_i32 = arith.constant 0 : i32
    %c0_i32_0 = arith.constant 0 : i32
    %c0_i32_1 = arith.constant 0 : i32
    return %c0_i32, %c0_i32_0 : i32, i32
  }
  func.func @transform_4(%arg0: i32) -> (i32, i32) {
    %c0_i32 = arith.constant 0 : i32
    %c0_i32_0 = arith.constant 0 : i32
    %c0_i32_1 = arith.constant 0 : i32
    return %c0_i32, %c0_i32_0 : i32, i32
  }
  func.func @transform_5(%arg0: i32) -> (i32, i32, i32) {
    %c0_i32 = arith.constant 0 : i32
    %c0_i32_0 = arith.constant 0 : i32
    %c0_i32_1 = arith.constant 0 : i32
    %c0_i32_2 = arith.constant 0 : i32
    return %c0_i32, %c0_i32_0, %c0_i32_1 : i32, i32, i32
  }
  func.func @transform_6(%arg0: i32) -> (i32, i32) {
    %c0_i32 = arith.constant 0 : i32
    %c0_i32_0 = arith.constant 0 : i32
    %c0_i32_1 = arith.constant 0 : i32
    return %c0_i32, %c0_i32_0 : i32, i32
  }
  func.func @transform_7(%arg0: i32) -> (i32, i32) {
    %c0_i32 = arith.constant 0 : i32
    %c0_i32_0 = arith.constant 0 : i32
    %c0_i32_1 = arith.constant 0 : i32
    return %c0_i32, %c0_i32_0 : i32, i32
  }
  func.func @transform_8(%arg0: i32) -> (i32, i32) {
    %c0_i32 = arith.constant 0 : i32
    %c0_i32_0 = arith.constant 0 : i32
    %c0_i32_1 = arith.constant 0 : i32
    return %c0_i32, %c0_i32_0 : i32, i32
  }
  func.func @transform_9(%arg0: i32) -> (i32, i32, i32) {
    %c0_i32 = arith.constant 0 : i32
    %c0_i32_0 = arith.constant 0 : i32
    %c0_i32_1 = arith.constant 0 : i32
    %c0_i32_2 = arith.constant 0 : i32
    return %c0_i32, %c0_i32_0, %c0_i32_1 : i32, i32, i32
  }
  func.func @transform_10(%arg0: i32) -> (i32, i32) {
    %c0_i32 = arith.constant 0 : i32
    %c0_i32_0 = arith.constant 0 : i32
    %c0_i32_1 = arith.constant 0 : i32
    return %c0_i32, %c0_i32_0 : i32, i32
  }
  func.func @transform_11(%arg0: i32) -> (i32, i32) {
    %c0_i32 = arith.constant 0 : i32
    %c0_i32_0 = arith.constant 0 : i32
    %c0_i32_1 = arith.constant 0 : i32
    return %c0_i32, %c0_i32_0 : i32, i32
  }
  func.func @transform_12(%arg0: i32) -> (i32, i32) {
    %c0_i32 = arith.constant 0 : i32
    %c0_i32_0 = arith.constant 0 : i32
    %c0_i32_1 = arith.constant 0 : i32
    return %c0_i32, %c0_i32_0 : i32, i32
  }
  func.func @transform_13(%arg0: i32) -> (i32, i32, i32) {
    %c0_i32 = arith.constant 0 : i32
    %c0_i32_0 = arith.constant 0 : i32
    %c0_i32_1 = arith.constant 0 : i32
    %c0_i32_2 = arith.constant 0 : i32
    return %c0_i32, %c0_i32_0, %c0_i32_1 : i32, i32, i32
  }
  func.func @transform_14(%arg0: i32) -> (i32, i32) {
    %c0_i32 = arith.constant 0 : i32
    %c0_i32_0 = arith.constant 0 : i32
    %c0_i32_1 = arith.constant 0 : i32
    return %c0_i32, %c0_i32_0 : i32, i32
  }
  func.func @transform_15(%arg0: i32) -> (i32, i32, i32, i32) {
    %c0_i32 = arith.constant 0 : i32
    %c0_i32_0 = arith.constant 0 : i32
    %c0_i32_1 = arith.constant 0 : i32
    %c0_i32_2 = arith.constant 0 : i32
    return %arg0, %c0_i32, %c0_i32_0, %c0_i32_1 : i32, i32, i32, i32
  }
}

</mosaic_0001>

<bundles_post_ra>
// kernel: _lambda_.1
= control target key start
LH: loop header
LB: loop body
LE: loop exit
PB: predicated region body
PF: predicated region fallthrough
CT: control target
= control target key end

     0   :  { %s14205_s0 = inlined_call_operand.vmem [shape: f32[2,8,8,8], index: 0, kind: input, shape index: {}]   ;;  %s14206_s1 = inlined_call_operand.vmem [shape: f32[8,32], index: 1, kind: input, shape index: {}]   ;;  %s14207_s2 = inlined_call_operand.vmem [shape: f32[1,32], index: 2, kind: input, shape index: {}]   ;;  %s14208_s3 = inlined_call_operand.vmem [shape: f32[32,32], index: 3, kind: input, shape index: {}, may-alias: {3,7}]   ;;  %s14209_s4 = inlined_call_operand.vmem [shape: f32[4,32], index: 4, kind: input, shape index: {}]   ;;  %s14210_s5 = inlined_call_operand.vmem [shape: f32[2,288,32], index: 5, kind: input, shape index: {}]   ;;  %s14211_s6 = inlined_call_operand.vmem [shape: f32[2,32], index: 6, kind: input, shape index: {}]   ;;  %s14212_s7 = inlined_call_operand.vmem [shape: f32[32,32], index: 7, kind: input, shape index: {}, may-alias: {3,7}]   ;;  %s14213_s8 = inlined_call_operand.vmem [shape: f32[4,32], index: 8, kind: input, shape index: {}]   ;;  %s14214_s9 = inlined_call_operand.vmem [shape: f32[2,288,32], index: 9, kind: input, shape index: {}]   ;;  %s14215_s10 = inlined_call_operand.vmem [shape: f32[2,32], index: 10, kind: input, shape index: {}]   ;;  %s14216_s11 = inlined_call_operand.vmem [shape: f32[288,16], index: 11, kind: input, shape index: {}]   ;;  %s14217_s12 = inlined_call_operand.vmem [shape: f32[1,16], index: 12, kind: input, shape index: {}]   ;;  %s14218_s13 = inlined_call_operand.vmem [shape: f32[9,1,16], index: 13, kind: input, shape index: {}]   ;;  %s14219_s14 = inlined_call_operand.<no memory space> [shape: f32[1,1], index: 14, kind: input, shape index: {}]   ;;  %s14220_s15 = inlined_call_operand.hbm [shape: f32[2,1,16,16], index: 15, kind: output, shape index: {}]  }
   0x1   :  { %14228 = sst [smem:[#allocation10_spill]] %s14205_s0  ;;  %v20_v0 = vstv %s14219_s14 }
   0x2   :  { %14229 = sst [smem:[#allocation11_spill]] %s14206_s1  ;;  %21 = vst [vmem:[#allocation5] sm:$0x1] %v20_v0 }
   0x3   :  { %14230 = sst [smem:[#allocation12_spill]] %s14207_s2 }
   0x4   :  { %14231 = sst [smem:[#allocation13_spill]] %s14208_s3 }
   0x5   :  { %14232 = sst [smem:[#allocation14_spill]] %s14209_s4 }
   0x6   :  { %14233 = sst [smem:[#allocation15_spill]] %s14210_s5 }
   0x7   :  { %14234 = sst [smem:[#allocation16_spill]] %s14211_s6 }
   0x8   :  { %22 = vsyncpa [#allocation7], 0 }
   0x9   :  { %24 = vsyncpa [#allocation7 + $0x1], 0  ;;  %s10613_s20 = smov 0   ;;  %s10615_s21 = smov 0  }
   0xa   :  { %s10617_s22 = smov 0   ;;  %s10619_s23 = smov 0  }
   0xb LB: > { %s10634_s14 = sadd.s32 4294967295, %s10516_s23   ;;  %s8296_s24 = sadd.s32 4294967294, %s10516_s23   ;;  %s10516_s23 = sphi %s10619_s23, %s14252_s23   ;;  %s10512_s22 = sphi %s10617_s22, %s14251_s22   ;;  %s10508_s21 = sphi %s10615_s21, %s14250_s21   ;;  %s10504_s20 = sphi %s10613_s20, %s14249_s20  }
   0xc   : > { %s10638_s25 = sadd.s32 1, %s10516_s23   ;;  %s357_s26 = sadd.s32 1, %s10512_s22 }
   0xd   : > { %s354_s27 = ssub.s32 %s10516_s23, %s10638_s25  ;;  %p367_p0 = scmp.ne.s32.totalorder %s10512_s22, %s10508_s21 }
   0xe   : > { %p355_p1 = scmp.eq.s32.totalorder %s354_s27, 0  ;;  %p368_p2 = scmp.eq.s32.totalorder %s10634_s14, 1 }
   0xf   : > { %p373_p3 = scmp.ne.s32.totalorder %s10508_s21, %s10504_s20  ;;  %p374_p4 = scmp.eq.s32.totalorder %s8296_s24, 1 }
  0x10   : > { %s10649_s28 = scalar_select %p355_p1, %s10512_s22, %s357_s26  }
  0x11   : > { %p10651_p5 = por %p368_p2, %p367_p0  ;;  %p10655_p6 = por %p374_p4, %p373_p3 }
  0x12   : > { %p8299_p7 = scmp.ge.s32.totalorder %s10516_s23, 1  ;;  %p442_p8 = scmp.lt.s32.totalorder %s10516_s23, 3 }
  0x14   : > { %p443_p9 = pnand %p8299_p7, %p442_p8 }
  0x16   : > { %446 = sbr.rel (%p443_p9) target bundleno = 3764 (0xeb4), region = 80 }
  0x1d   : > { %s14237_s1 = sld [smem:[#allocation11_spill]]  ;;  %p490_p10 = scmp.lt.s32.totalorder %s10634_s14, 1  ;;  %vm628_vm0 = vcmask 64512   ;;  %vm495_vm1 = vcmask 261120   ;;  %v10518_v13 = vmov 0.0|0.0   ;;  %vm10519_vm2 = vmmov 0  }
  0x1e   : > { %s14238_s0 = sld [smem:[#allocation10_spill]]  ;;  %s14239_s3 = sld [smem:[#allocation13_spill]]  ;;  %9053 = vmatprep.subr.bf16.mxu1 %v10518_v13  ;;  %v10520_v16 = vmov 0.0   ;;  %vm816_vm3 = vcmask 1040384   ;;  %vm497_vm4 = vcmask 254976   ;;  %vm502_vm5 = vcmask 253952  }
  0x1f   : > { %s491_s18 = scalar_select %p490_p10, %s10634_s14, 1  ;;  %8881 = vmatprep.mubr.msk.f32.mxu1 %vm10519_vm2, %v10520_v16  ;;  %496 = vst.msk [vmem:[#allocation2] sm:$0xff] %vm495_vm1, %v10520_v16  ;;  %500 = vst.msk [vmem:[#allocation2 + $0x90] sm:$0xff] %vm495_vm1, %v10520_v16  ;;  %vm1323_vm6 = vcmask 523264   ;;  %vm1332_vm7 = vcmask 785408   ;;  %vm566_vm8 = vcmask 130048  }
  0x20   : > { %523 = vst.msk [vmem:[#allocation3] sm:$0xff] %vm495_vm1, %v10520_v16  ;;  %524 = vst.msk [vmem:[#allocation3 + $0x8] sm:$0xff] %vm495_vm1, %v10520_v16  ;;  %s14240_s2 = sld [smem:[#allocation12_spill]]  ;;  %s14242_s5 = sld [smem:[#allocation15_spill]]  ;;  %vm575_vm9 = vcmask 122880   ;;  %vm569_vm10 = vcmask 123904  }
  0x21   : > { %s8520_s19 = sshll.u32 %s491_s18, 6  ;;  %527 = vst.msk [vmem:[#allocation3 + $0x198] sm:$0xff] %vm495_vm1, %v10520_v16  ;;  %528 = vst.msk [vmem:[#allocation3 + $0x1a0] sm:$0xff] %vm495_vm1, %v10520_v16  ;;  %s14243_s4 = sld [smem:[#allocation14_spill]]  ;;  %vm8058_vm11 = vcmask 130112   ;;  %vm8195_vm12 = vcmask 1041409  }
  0x22   : > { %498 = vst.msk [vmem:[#allocation2 + $0x8] sm:$0x3] %vm497_vm4, %v10520_v16  ;;  %501 = vst.msk [vmem:[#allocation2 + $0x98] sm:$0x3] %vm497_vm4, %v10520_v16  ;;  %s14225_s17 = smov 32   ;;  %s14221_s24 = smov 96  }
  0x23   : > { %v620_v1 = vld [vmem:[%s14237_s1] sm:$0xff]  ;;  %525 = vst.msk [vmem:[#allocation3 + $0x10] sm:$0x3] %vm497_vm4, %v10520_v16  ;;  %529 = vst.msk [vmem:[#allocation3 + $0x1a8] sm:$0x3] %vm497_vm4, %v10520_v16  ;;  %s14223_s26 = smov 64  }
  0x24   : > { %8859 = vmatprep.subr.mxu0 %v620_v1  ;;  %s494_s27 = scalar_lea.vmem %s14238_s0, %s8520_s19  ;;  %v758_v10 = vld [vmem:[%s14239_s3] sm:$0xff]  ;;  %v759_v11 = vld [vmem:[%s14239_s3 + $0x8] sm:$0xff]  ;;  %v760_v12 = vld [vmem:[%s14239_s3 + $0x10] sm:$0xff]  ;;  %514 = vst.msk [vmem:[#allocation2 + $0x19] sm:$0x1] %vm502_vm5, %v10520_v16  ;;  %s14244_s6 = sld [smem:[#allocation16_spill]] }
  0x25   : > { %8860 = vmatpush3.msra.mxu0 %v620_v1  ;;  %v612_v2 = vld [vmem:[%s494_s27] sm:$0xff]  ;;  %v613_v3 = vld [vmem:[%s494_s27 + $0x8] sm:$0xff]  ;;  %v614_v4 = vld [vmem:[%s494_s27 + $0x10] sm:$0xff]  ;;  %v9054_v14 = vpack.c.bf16 %v759_v11, %v758_v10  ;;  %503 = vst.msk [vmem:[#allocation2] sm:$0x1] %vm502_vm5, %v10520_v16  ;;  %s14246_s16 = smov 64  }
  0x26   : > { %8861 = vmatprep.mubr.msk.f32.mxu0 %vm628_vm0, %v612_v2  ;;  %v615_v5 = vld [vmem:[%s494_s27 + $0x18] sm:$0xff]  ;;  %v616_v6 = vld [vmem:[%s494_s27 + $0x20] sm:$0xff]  ;;  %v617_v7 = vld [vmem:[%s494_s27 + $0x28] sm:$0xff]  ;;  %9099 = vmatprep.subr.bf16.mxu0 %v10518_v13  ;;  %504 = vst.msk [vmem:[#allocation2 + $0x10] sm:$0x1] %vm502_vm5, %v10520_v16  ;;  %s14247_s18 = smov 96  }
  0x27   : > { %8862 = vmatmul.mubr.msk.f32.vlgmr.msra.gmra.mrb[0].mxu0 %vm628_vm0, %v613_v3  ;;  %v618_v8 = vld [vmem:[%s494_s27 + $0x30] sm:$0xff]  ;;  %v619_v9 = vld [vmem:[%s494_s27 + $0x38] sm:$0xff]  ;;  %9055 = vmatpush3.bf16.msra.mxu1 %v9054_v14  ;;  %v8303_v18 = vld [vmem:[%s14240_s2] ss:$0 sm:$0xff]  ;;  %505 = vst.msk [vmem:[#allocation2 + $0x20] sm:$0x1] %vm502_vm5, %v10520_v16 }
  0x28   : > { %8864 = vmatprep.mubr.msk.f32.mxu0 %vm628_vm0, %v614_v4  ;;  %v761_v15 = vld [vmem:[%s14239_s3 + $0x18] sm:$0xff]  ;;  %9101 = vmatpush3.bf16.msra.mxu0 %v9054_v14  ;;  %506 = vst.msk [vmem:[#allocation2 + $0x30] sm:$0x1] %vm502_vm5, %v10520_v16  ;;  %507 = vst.msk [vmem:[#allocation2 + $0x40] sm:$0x1] %vm502_vm5, %v10520_v16  ;;  %s14245_s3 = smov 32  }
  0x29   : > { %v9057_v17 = vpack.c.bf16 %v761_v15, %v760_v12  ;;  %9056 = vmatprep.subr.bf16.mxu1 %v10518_v13  ;;  %9102 = vmatprep.subr.bf16.mxu0 %v10518_v13  ;;  %508 = vst.msk [vmem:[#allocation2 + $0x50] sm:$0x1] %vm502_vm5, %v10520_v16  ;;  %509 = vst.msk [vmem:[#allocation2 + $0x60] sm:$0x1] %vm502_vm5, %v10520_v16  ;;  %vm8197_vm13 = vcmask 1042434   ;;  %vm8199_vm14 = vcmask 1043459  }
  0x2a   : > { %510 = vst.msk [vmem:[#allocation2 + $0x70] sm:$0x1] %vm502_vm5, %v10520_v16  ;;  %511 = vst.msk [vmem:[#allocation2 + $0x80] sm:$0x1] %vm502_vm5, %v10520_v16  ;;  %vm8201_vm15 = vcmask 1044484   ;;  %s10527_s1 = smov [#allocation6]  }
  0x2b   : > { %8865 = vmatmul.mubr.msk.f32.gmra.mrb[2].mxu0 %vm628_vm0, %v615_v5  ;;  %9058 = vmatpush3.bf16.msra.mxu1 %v9057_v17  ;;  %512 = vst.msk [vmem:[#allocation2 + $0x90] sm:$0x1] %vm502_vm5, %v10520_v16  ;;  %513 = vst.msk [vmem:[#allocation2 + $0x9] sm:$0x1] %vm502_vm5, %v10520_v16  ;;  %s10458_s2 = sshll.u32 %s10527_s1, 4  ;;  %s10459_s2 = int_to_ptr.vmem [resolvable:$false] %s10458_s2 }
  0x2c   : > { %8867 = vmatprep.mubr.msk.f32.mxu0 %vm628_vm0, %v616_v6  ;;  %9104 = vmatpush3.bf16.msra.mxu0 %v9057_v17  ;;  %515 = vst.msk [vmem:[#allocation2 + $0x29] sm:$0x1] %vm502_vm5, %v10520_v16  ;;  %516 = vst.msk [vmem:[#allocation2 + $0x39] sm:$0x1] %vm502_vm5, %v10520_v16  ;;  %s10460_s19 = scalar_lea.vmem %s10459_s2, 512 }
  0x2d   : > { %517 = vst.msk [vmem:[#allocation2 + $0x49] sm:$0x1] %vm502_vm5, %v10520_v16  ;;  %518 = vst.msk [vmem:[#allocation2 + $0x59] sm:$0x1] %vm502_vm5, %v10520_v16 }
  0x2e   : > { %519 = vst.msk [vmem:[#allocation2 + $0x69] sm:$0x1] %vm502_vm5, %v10520_v16  ;;  %520 = vst.msk [vmem:[#allocation2 + $0x79] sm:$0x1] %vm502_vm5, %v10520_v16 }
  0x2f   : > { %8868 = vmatmul.mubr.msk.f32.gmra.mrb[4].mxu0 %vm628_vm0, %v617_v7  ;;  %521 = vst.msk [vmem:[#allocation2 + $0x89] sm:$0x1] %vm502_vm5, %v10520_v16  ;;  %530 = vst.msk [vmem:[#allocation3] sm:$0x1] %vm502_vm5, %v10520_v16 }
  0x30   : > { %8870 = vmatprep.mubr.msk.f32.mxu0 %vm628_vm0, %v618_v8  ;;  %531 = vst.msk [vmem:[#allocation3 + $0x18] sm:$0x1] %vm502_vm5, %v10520_v16  ;;  %532 = vst.msk [vmem:[#allocation3 + $0x30] sm:$0x1] %vm502_vm5, %v10520_v16 }
  0x31   : > { %533 = vst.msk [vmem:[#allocation3 + $0x48] sm:$0x1] %vm502_vm5, %v10520_v16  ;;  %534 = vst.msk [vmem:[#allocation3 + $0x60] sm:$0x1] %vm502_vm5, %v10520_v16 }
  0x32   : > { %535 = vst.msk [vmem:[#allocation3 + $0x78] sm:$0x1] %vm502_vm5, %v10520_v16  ;;  %536 = vst.msk [vmem:[#allocation3 + $0x90] sm:$0x1] %vm502_vm5, %v10520_v16 }
  0x33   : > { %8871 = vmatmul.mubr.msk.f32.gmra.mrb[6].mxu0 %vm628_vm0, %v619_v9  ;;  %537 = vst.msk [vmem:[#allocation3 + $0xa8] sm:$0x1] %vm502_vm5, %v10520_v16  ;;  %538 = vst.msk [vmem:[#allocation3 + $0xc0] sm:$0x1] %vm502_vm5, %v10520_v16  ;;  %vm8203_vm0 = vcmask 1045509  }
  0x34   : > { %8912 = vmatprep.mubr.msk.f32.mxu0 %vm10519_vm2, %v10520_v16  ;;  %539 = vst.msk [vmem:[#allocation3 + $0xd8] sm:$0x1] %vm502_vm5, %v10520_v16  ;;  %540 = vst.msk [vmem:[#allocation3 + $0xf0] sm:$0x1] %vm502_vm5, %v10520_v16 }
  0x35   : > { %541 = vst.msk [vmem:[#allocation3 + $0x108] sm:$0x1] %vm502_vm5, %v10520_v16  ;;  %542 = vst.msk [vmem:[#allocation3 + $0x120] sm:$0x1] %vm502_vm5, %v10520_v16 }
  0x36   : > { %543 = vst.msk [vmem:[#allocation3 + $0x138] sm:$0x1] %vm502_vm5, %v10520_v16  ;;  %544 = vst.msk [vmem:[#allocation3 + $0x150] sm:$0x1] %vm502_vm5, %v10520_v16 }
  0x37   : > { %545 = vst.msk [vmem:[#allocation3 + $0x168] sm:$0x1] %vm502_vm5, %v10520_v16  ;;  %546 = vst.msk [vmem:[#allocation3 + $0x180] sm:$0x1] %vm502_vm5, %v10520_v16 }
  0x38   : > { %547 = vst.msk [vmem:[#allocation3 + $0x198] sm:$0x1] %vm502_vm5, %v10520_v16  ;;  %549 = vst.msk [vmem:[#allocation3 + $0x29] sm:$0x1] %vm502_vm5, %v10520_v16 }
  0x39   : > { %550 = vst.msk [vmem:[#allocation3 + $0x41] sm:$0x1] %vm502_vm5, %v10520_v16  ;;  %551 = vst.msk [vmem:[#allocation3 + $0x59] sm:$0x1] %vm502_vm5, %v10520_v16 }
  0x3a   : > { %552 = vst.msk [vmem:[#allocation3 + $0x71] sm:$0x1] %vm502_vm5, %v10520_v16  ;;  %553 = vst.msk [vmem:[#allocation3 + $0x89] sm:$0x1] %vm502_vm5, %v10520_v16 }
  0x3b   : > { %554 = vst.msk [vmem:[#allocation3 + $0xa1] sm:$0x1] %vm502_vm5, %v10520_v16  ;;  %555 = vst.msk [vmem:[#allocation3 + $0xb9] sm:$0x1] %vm502_vm5, %v10520_v16 }
  0x3c   : > { %556 = vst.msk [vmem:[#allocation3 + $0xd1] sm:$0x1] %vm502_vm5, %v10520_v16  ;;  %557 = vst.msk [vmem:[#allocation3 + $0xe9] sm:$0x1] %vm502_vm5, %v10520_v16 }
  0x3d   : > { %558 = vst.msk [vmem:[#allocation3 + $0x101] sm:$0x1] %vm502_vm5, %v10520_v16  ;;  %559 = vst.msk [vmem:[#allocation3 + $0x119] sm:$0x1] %vm502_vm5, %v10520_v16 }
  0x3e   : > { %560 = vst.msk [vmem:[#allocation3 + $0x131] sm:$0x1] %vm502_vm5, %v10520_v16  ;;  %561 = vst.msk [vmem:[#allocation3 + $0x149] sm:$0x1] %vm502_vm5, %v10520_v16 }
  0x3f   : > { %562 = vst.msk [vmem:[#allocation3 + $0x161] sm:$0x1] %vm502_vm5, %v10520_v16  ;;  %563 = vst.msk [vmem:[#allocation3 + $0x179] sm:$0x1] %vm502_vm5, %v10520_v16 }
  0x40   : > { %564 = vst.msk [vmem:[#allocation3 + $0x191] sm:$0x1] %vm502_vm5, %v10520_v16  ;;  %522 = vst.msk [vmem:[#allocation2 + $0x99] sm:$0x1] %vm502_vm5, %v10520_v16 }
  0x41   : > { %548 = vst.msk [vmem:[#allocation3 + $0x11] sm:$0x1] %vm502_vm5, %v10520_v16  ;;  %565 = vst.msk [vmem:[#allocation3 + $0x1a9] sm:$0x1] %vm502_vm5, %v10520_v16 }
  0x42   : > { %567 = vst.msk [vmem:[#allocation4] sm:$0xff] %vm566_vm8, %v10520_v16  ;;  %568 = vst.msk [vmem:[#allocation4 + $0x8] sm:$0xff] %vm566_vm8, %v10520_v16 }
  0x43   : > { %572 = vst.msk [vmem:[#allocation4 + $0x198] sm:$0xff] %vm566_vm8, %v10520_v16  ;;  %573 = vst.msk [vmem:[#allocation4 + $0x1a0] sm:$0xff] %vm566_vm8, %v10520_v16 }
  0x44   : > { %576 = vst.msk [vmem:[#allocation4] sm:$0x1] %vm575_vm9, %v10520_v16  ;;  %577 = vst.msk [vmem:[#allocation4 + $0x18] sm:$0x1] %vm575_vm9, %v10520_v16 }
  0x45   : > { %578 = vst.msk [vmem:[#allocation4 + $0x30] sm:$0x1] %vm575_vm9, %v10520_v16  ;;  %579 = vst.msk [vmem:[#allocation4 + $0x48] sm:$0x1] %vm575_vm9, %v10520_v16 }
  0x46   : > { %580 = vst.msk [vmem:[#allocation4 + $0x60] sm:$0x1] %vm575_vm9, %v10520_v16  ;;  %581 = vst.msk [vmem:[#allocation4 + $0x78] sm:$0x1] %vm575_vm9, %v10520_v16 }
  0x47   : > { %582 = vst.msk [vmem:[#allocation4 + $0x90] sm:$0x1] %vm575_vm9, %v10520_v16  ;;  %583 = vst.msk [vmem:[#allocation4 + $0xa8] sm:$0x1] %vm575_vm9, %v10520_v16 }
  0x48   : > { %584 = vst.msk [vmem:[#allocation4 + $0xc0] sm:$0x1] %vm575_vm9, %v10520_v16  ;;  %585 = vst.msk [vmem:[#allocation4 + $0xd8] sm:$0x1] %vm575_vm9, %v10520_v16 }
  0x49   : > { %586 = vst.msk [vmem:[#allocation4 + $0xf0] sm:$0x1] %vm575_vm9, %v10520_v16  ;;  %587 = vst.msk [vmem:[#allocation4 + $0x108] sm:$0x1] %vm575_vm9, %v10520_v16 }
  0x4a   : > { %588 = vst.msk [vmem:[#allocation4 + $0x120] sm:$0x1] %vm575_vm9, %v10520_v16  ;;  %589 = vst.msk [vmem:[#allocation4 + $0x138] sm:$0x1] %vm575_vm9, %v10520_v16 }
  0x4b   : > { %590 = vst.msk [vmem:[#allocation4 + $0x150] sm:$0x1] %vm575_vm9, %v10520_v16  ;;  %591 = vst.msk [vmem:[#allocation4 + $0x168] sm:$0x1] %vm575_vm9, %v10520_v16 }
  0x4c   : > { %592 = vst.msk [vmem:[#allocation4 + $0x180] sm:$0x1] %vm575_vm9, %v10520_v16  ;;  %593 = vst.msk [vmem:[#allocation4 + $0x198] sm:$0x1] %vm575_vm9, %v10520_v16 }
  0x4d   : > { %595 = vst.msk [vmem:[#allocation4 + $0x29] sm:$0x1] %vm575_vm9, %v10520_v16  ;;  %596 = vst.msk [vmem:[#allocation4 + $0x41] sm:$0x1] %vm575_vm9, %v10520_v16 }
  0x4e   : > { %597 = vst.msk [vmem:[#allocation4 + $0x59] sm:$0x1] %vm575_vm9, %v10520_v16  ;;  %598 = vst.msk [vmem:[#allocation4 + $0x71] sm:$0x1] %vm575_vm9, %v10520_v16 }
  0x4f   : > { %599 = vst.msk [vmem:[#allocation4 + $0x89] sm:$0x1] %vm575_vm9, %v10520_v16  ;;  %600 = vst.msk [vmem:[#allocation4 + $0xa1] sm:$0x1] %vm575_vm9, %v10520_v16 }
  0x50   : > { %601 = vst.msk [vmem:[#allocation4 + $0xb9] sm:$0x1] %vm575_vm9, %v10520_v16  ;;  %602 = vst.msk [vmem:[#allocation4 + $0xd1] sm:$0x1] %vm575_vm9, %v10520_v16 }
  0x51   : > { %603 = vst.msk [vmem:[#allocation4 + $0xe9] sm:$0x1] %vm575_vm9, %v10520_v16  ;;  %604 = vst.msk [vmem:[#allocation4 + $0x101] sm:$0x1] %vm575_vm9, %v10520_v16 }
  0x52   : > { %605 = vst.msk [vmem:[#allocation4 + $0x119] sm:$0x1] %vm575_vm9, %v10520_v16  ;;  %606 = vst.msk [vmem:[#allocation4 + $0x131] sm:$0x1] %vm575_vm9, %v10520_v16 }
  0x53   : > { %607 = vst.msk [vmem:[#allocation4 + $0x149] sm:$0x1] %vm575_vm9, %v10520_v16  ;;  %608 = vst.msk [vmem:[#allocation4 + $0x161] sm:$0x1] %vm575_vm9, %v10520_v16 }
  0x54   : > { %609 = vst.msk [vmem:[#allocation4 + $0x179] sm:$0x1] %vm575_vm9, %v10520_v16  ;;  %610 = vst.msk [vmem:[#allocation4 + $0x191] sm:$0x1] %vm575_vm9, %v10520_v16 }
  0x55   : > { %570 = vst.msk [vmem:[#allocation4 + $0x10] sm:$0x3] %vm569_vm10, %v10520_v16  ;;  %574 = vst.msk [vmem:[#allocation4 + $0x1a8] sm:$0x3] %vm569_vm10, %v10520_v16 }
  0x56   : > { %594 = vst.msk [vmem:[#allocation4 + $0x11] sm:$0x1] %vm575_vm9, %v10520_v16  ;;  %611 = vst.msk [vmem:[#allocation4 + $0x1a9] sm:$0x1] %vm575_vm9, %v10520_v16 }
  0xfa   : > { %v8863_v19 = vpop.f32.mrb[0].mxu0 }
  0xfb   : > { %v10712_v20 = vadd.f32 %v8863_v19, %v8303_v18  ;;  %v719_v21 = vpop.f32.mrb[1].mxu0 }
  0xfc   : > { %v10714_v22 = vadd.f32 %v8303_v18, %v719_v21 }
  0xfd   : > { %v788_v23 = vmul.f32 %v10712_v20, %v10712_v20  ;;  %v767_v24 = vsel %vm495_vm1, %v10712_v20, 0.0 }
  0xfe   : > { %v766_v25 = vsel %vm495_vm1, %v10714_v22, 0.0  ;;  %v787_v26 = vmul.f32 %v10714_v22, %v10714_v22  ;;  %v8866_v27 = vpop.f32.mrb[2].mxu0 }
  0xff   : > { %v10724_v28 = vadd.f32 %v8866_v27, %v8303_v18  ;;  %v729_v29 = vpop.f32.mrb[3].mxu0  ;;  %v796_v30 = vsel %vm495_vm1, %v788_v23, 0.0  ;;  %v768_v33 = vadd.f32 %v767_v24, %v766_v25 }
 0x100   : > { %v795_v31 = vsel %vm495_vm1, %v787_v26, 0.0  ;;  %v10728_v32 = vadd.f32 %v8303_v18, %v729_v29  ;;  %v900_v26 = vlaneseq }
 0x101   : > { %v790_v34 = vmul.f32 %v10724_v28, %v10724_v28  ;;  %v797_v38 = vadd.f32 %v796_v30, %v795_v31  ;;  %v771_v42 = vsel %vm495_vm1, %v10724_v28, 0.0 }
 0x102   : > { %v769_v35 = vsel %vm495_vm1, %v10728_v32, 0.0  ;;  %v789_v36 = vmul.f32 %v10728_v32, %v10728_v32  ;;  %v8869_v37 = vpop.f32.mrb[4].mxu0  ;;  %v10770_v27 = vshrl.u32 %v900_v26, 7  ;;  %v8048_v29 = vand.u32 127, %v900_v26 }
 0x103   : > { %v770_v39 = vadd.f32 %v769_v35, %v768_v33  ;;  %v10736_v40 = vadd.f32 %v8869_v37, %v8303_v18  ;;  %v739_v41 = vpop.f32.mrb[5].mxu0  ;;  %v800_v47 = vsel %vm495_vm1, %v790_v34, 0.0  ;;  %v1020_v34 = vld [vmem:[%s14242_s5 + $0x80] sm:$0xff]  ;;  %v1021_v35 = vld [vmem:[%s14242_s5 + $0x88] sm:$0xff] }
 0x104   : > { %v798_v43 = vsel %vm495_vm1, %v789_v36, 0.0  ;;  %v10741_v44 = vadd.f32 %v8303_v18, %v739_v41  ;;  %v10777_v30 = vsub.s32 %v8048_v29, %v10770_v27  ;;  %v8053_v31 = vadd.s32 4294967288, %v8048_v29  ;;  %v1004_v36 = vld [vmem:[%s14242_s5] sm:$0xff]  ;;  %v1023_v41 = vld [vmem:[%s14242_s5 + $0x98] sm:$0xff] }
 0x105   : > { %v799_v45 = vadd.f32 %v798_v43, %v797_v38  ;;  %v772_v46 = vadd.f32 %v771_v42, %v770_v39  ;;  %v792_v48 = vmul.f32 %v10736_v40, %v10736_v40  ;;  %v775_v56 = vsel %vm495_vm1, %v10736_v40, 0.0  ;;  %v1005_v38 = vld [vmem:[%s14242_s5 + $0x8] sm:$0xff]  ;;  %v1022_v39 = vld [vmem:[%s14242_s5 + $0x90] sm:$0xff] }
 0x106   : > { %v773_v49 = vsel %vm495_vm1, %v10741_v44, 0.0  ;;  %v791_v50 = vmul.f32 %v10741_v44, %v10741_v44  ;;  %v8872_v51 = vpop.f32.mrb[6].mxu0  ;;  %v10892_v33 = vsub.s32 %v8053_v31, %v10770_v27  ;;  %v9059_v37 = vpack.c.bf16 %v1021_v35, %v1020_v34 }
 0x107   : > { %v774_v52 = vadd.f32 %v773_v49, %v772_v46  ;;  %v801_v53 = vadd.f32 %v800_v47, %v799_v45  ;;  %v10750_v54 = vadd.f32 %v8872_v51, %v8303_v18  ;;  %v749_v55 = vpop.f32.mrb[7].mxu0  ;;  %v804_v61 = vsel %vm495_vm1, %v792_v48, 0.0  ;;  %v1006_v45 = vld [vmem:[%s14242_s5 + $0x10] sm:$0xff]  ;;  %v1007_v46 = vld [vmem:[%s14242_s5 + $0x18] sm:$0xff]  ;;  %v1024_v47 = vld [vmem:[%s14242_s5 + $0xa0] sm:$0xff] }
 0x108   : > { %v802_v57 = vsel %vm495_vm1, %v791_v50, 0.0  ;;  %v10755_v58 = vadd.f32 %v8303_v18, %v749_v55  ;;  %14241 = vst [vmem:[#allocation9_spill] sm:$0xff] %v10892_v33  ;;  %v9061_v42 = vpack.c.bf16 %v1005_v38, %v1004_v36  ;;  %v9063_v43 = vpack.c.bf16 %v1023_v41, %v1022_v39  ;;  %9060 = vmatprep.subr.bf16.mxu1 %v9059_v37  ;;  %v1025_v48 = vld [vmem:[%s14242_s5 + $0xa8] sm:$0xff]  ;;  %v1008_v51 = vld [vmem:[%s14242_s5 + $0x20] sm:$0xff]  ;;  %v1027_v55 = vld [vmem:[%s14242_s5 + $0xb8] sm:$0xff] }
 0x109   : > { %v803_v59 = vadd.f32 %v802_v57, %v801_v53  ;;  %v776_v60 = vadd.f32 %v775_v56, %v774_v52  ;;  %v794_v62 = vmul.f32 %v10750_v54, %v10750_v54  ;;  %v779_v3 = vsel %vm495_vm1, %v10750_v54, 0.0  ;;  %v1009_v52 = vld [vmem:[%s14242_s5 + $0x28] sm:$0xff]  ;;  %v1026_v53 = vld [vmem:[%s14242_s5 + $0xb0] sm:$0xff]  ;;  %v8313_v36 = vld [vmem:[%s14243_s4] ss:$0 sm:$0xff] }
 0x10a   : > { %v777_v63 = vsel %vm495_vm1, %v10755_v58, 0.0  ;;  %v793_v0 = vmul.f32 %v10755_v58, %v10755_v58  ;;  %v9065_v49 = vpack.c.bf16 %v1007_v46, %v1006_v45  ;;  %v9067_v50 = vpack.c.bf16 %v1025_v48, %v1024_v47  ;;  %v8314_v47 = vld [vmem:[%s14243_s4 + $0x1] ss:$0 sm:$0xff] }
 0x10b   : > { %v778_v1 = vadd.f32 %v777_v63, %v776_v60  ;;  %v805_v2 = vadd.f32 %v804_v61, %v803_v59  ;;  %v808_v7 = vsel %vm495_vm1, %v794_v62, 0.0  ;;  %v9069_v60 = vpack.c.bf16 %v1009_v52, %v1008_v51  ;;  %v1010_v62 = vld [vmem:[%s14242_s5 + $0x30] sm:$0xff]  ;;  %v1011_v63 = vld [vmem:[%s14242_s5 + $0x38] sm:$0xff] }
 0x10c   : > { %v806_v4 = vsel %vm495_vm1, %v793_v0, 0.0  ;;  %v9071_v61 = vpack.c.bf16 %v1027_v55, %v1026_v53 }
 0x10d   : > { %v780_v5 = vadd.f32 %v779_v3, %v778_v1  ;;  %v807_v6 = vadd.f32 %v806_v4, %v805_v2  ;;  %v1028_v1 = vld [vmem:[%s14242_s5 + $0xc0] sm:$0xff]  ;;  %v1029_v2 = vld [vmem:[%s14242_s5 + $0xc8] sm:$0xff]  ;;  %v9073_v4 = vpack.c.bf16 %v1011_v63, %v1010_v62 }
 0x10f   : > { %v781_v8 = vrot.slane %v780_v5, 4  ;;  %v809_v9 = vadd.f32 %v808_v7, %v807_v6  ;;  %v1012_v6 = vld [vmem:[%s14242_s5 + $0x40] sm:$0xff]  ;;  %v1013_v7 = vld [vmem:[%s14242_s5 + $0x48] sm:$0xff] }
 0x111   : > { %v782_v10 = vadd.f32 %v781_v8, %v780_v5  ;;  %v810_v11 = vrot.slane %v809_v9, 4  ;;  %v9075_v5 = vpack.c.bf16 %v1029_v2, %v1028_v1 }
 0x113   : > { %v783_v12 = vrot.slane %v782_v10, 2  ;;  %v811_v14 = vadd.f32 %v810_v11, %v809_v9  ;;  %v1030_v9 = vld [vmem:[%s14242_s5 + $0xd0] sm:$0xff] }
 0x115   : > { %v784_v15 = vadd.f32 %v783_v12, %v782_v10  ;;  %v812_v17 = vrot.slane %v811_v14, 2  ;;  %v1031_v10 = vld [vmem:[%s14242_s5 + $0xd8] sm:$0xff]  ;;  %v9077_v12 = vpack.c.bf16 %v1013_v7, %v1012_v6 }
 0x117   : > { %v785_v18 = vrot.slane %v784_v15, 1  ;;  %v813_v19 = vadd.f32 %v812_v17, %v811_v14  ;;  %v9079_v14 = vpack.c.bf16 %v1031_v10, %v1030_v9  ;;  %v1015_v17 = vld [vmem:[%s14242_s5 + $0x58] sm:$0xff] }
 0x119   : > { %v814_v21 = vrot.slane %v813_v19, 1  ;;  %v786_v23 = vadd.f32 %v785_v18, %v784_v15  ;;  %v1014_v15 = vld [vmem:[%s14242_s5 + $0x50] sm:$0xff] }
 0x11b   : > { %v815_v24 = vadd.f32 %v814_v21, %v813_v19  ;;  %v9081_v19 = vpack.c.bf16 %v1015_v17, %v1014_v15  ;;  %v10967_v21 = vsub.s32 0, %v10770_v27 }
 0x11d   : > { %v817_v25 = vsel %vm816_vm3, %v786_v23, %v815_v24  ;;  %v10971_v24 = vsub.s32 1, %v10770_v27 }
 0x11e   : > { %8882 = vmatmul.mubr.msk.f32.vlgmr.msra.gmra.mrb[0].mxu1 %vm495_vm1, %v817_v25 }
 0x11f   : > { %9062 = vmatpush3.bf16.msra.mxu1 %v9061_v42 }
 0x120   : > { %9064 = vmatprep.subr.bf16.mxu1 %v9063_v43 }
 0x123   : > { %9066 = vmatpush3.bf16.msra.mxu1 %v9065_v49 }
 0x124   : > { %9068 = vmatprep.subr.bf16.mxu1 %v9067_v50 }
 0x127   : > { %9070 = vmatpush3.bf16.msra.mxu1 %v9069_v60 }
 0x128   : > { %9072 = vmatprep.subr.bf16.mxu1 %v9071_v61 }
 0x12b   : > { %9074 = vmatpush3.bf16.msra.mxu1 %v9073_v4 }
 0x12c   : > { %9076 = vmatprep.subr.bf16.mxu1 %v9075_v5 }
 0x12f   : > { %9078 = vmatpush3.bf16.msra.mxu1 %v9077_v12 }
 0x130   : > { %9080 = vmatprep.subr.bf16.mxu1 %v9079_v14 }
 0x133   : > { %9082 = vmatpush3.bf16.msra.mxu1 %v9081_v19 }
 0x1f1   : > { %v887_v56 = vpop.f32.mrb[0].mxu1 }
 0x1f2   : > { %v891_v57 = vmul.f32 0.001953125, %v887_v56  ;;  %v8883_v59 = vpop.f32.mrb[1].mxu1 }
 0x1f4   : > { %v892_v0 = vmul.f32 %v891_v57, %v891_v57  ;;  %v903_v23 = vrot.slane %v891_v57, %v10967_v21 }
 0x1f6   : > { %v894_v3 = vrot.slane %v892_v0, 7  ;;  %v904_v26 = vsub.f32 %v10714_v22, %v903_v23  ;;  %v905_v29 = vsub.f32 %v10712_v20, %v903_v23  ;;  %v906_v31 = vsub.f32 %v10728_v32, %v903_v23 }
 0x1f7   : > { %v907_v34 = vsub.f32 %v10724_v28, %v903_v23  ;;  %v908_v37 = vsub.f32 %v10741_v44, %v903_v23  ;;  %v909_v38 = vsub.f32 %v10736_v40, %v903_v23  ;;  %v910_v39 = vsub.f32 %v10755_v58, %v903_v23 }
 0x1f8   : > { %v896_v8 = vsub.f32 %v891_v57, %v894_v3  ;;  %v911_v41 = vsub.f32 %v10750_v54, %v903_v23 }
 0x1fa   : > { %v897_v11 = vmax.f32 %v896_v8, 0.0 }
 0x1fc   : > { %v898_v18 = vadd.f32 1e-06, %v897_v11 }
 0x1fe   : > { %10305 = vrsqrt.f32 %v898_v18 }
 0x208   : > { %v10306_v25 = vpop.eup %10305 }
 0x209   : > { %v915_v35 = vrot.slane %v10306_v25, %v10971_v24 }
 0x20b   : > { %v916_v42 = vmul.f32 %v915_v35, %v904_v26  ;;  %v917_v43 = vmul.f32 %v915_v35, %v905_v29  ;;  %v918_v45 = vmul.f32 %v915_v35, %v906_v31  ;;  %v919_v46 = vmul.f32 %v915_v35, %v907_v34 }
 0x20c   : > { %v920_v48 = vmul.f32 %v915_v35, %v908_v37  ;;  %v921_v49 = vmul.f32 %v915_v35, %v909_v38  ;;  %v922_v50 = vmul.f32 %v915_v35, %v910_v39  ;;  %v923_v51 = vmul.f32 %v915_v35, %v911_v41 }
 0x20d   : > { %v928_v52 = vmul.f32 %v8313_v36, %v916_v42  ;;  %v930_v53 = vmul.f32 %v8313_v36, %v918_v45  ;;  %v931_v55 = vmul.f32 %v8313_v36, %v919_v46  ;;  %v929_v56 = vmul.f32 %v8313_v36, %v917_v43 }
 0x20e   : > { %v932_v57 = vmul.f32 %v8313_v36, %v920_v48  ;;  %v933_v59 = vmul.f32 %v8313_v36, %v921_v49  ;;  %v934_v60 = vmul.f32 %v8313_v36, %v922_v50  ;;  %v935_v61 = vmul.f32 %v8313_v36, %v923_v51 }
 0x20f   : > { %v942_v62 = vadd.f32 %v8314_v47, %v930_v53  ;;  %v943_v63 = vadd.f32 %v8314_v47, %v931_v55  ;;  %v940_v6 = vadd.f32 %v8314_v47, %v928_v52  ;;  %v941_v9 = vadd.f32 %v8314_v47, %v929_v56 }
 0x210   : > { %v944_v0 = vadd.f32 %v8314_v47, %v932_v57  ;;  %v945_v1 = vadd.f32 %v8314_v47, %v933_v59  ;;  %v946_v2 = vadd.f32 %v8314_v47, %v934_v60  ;;  %v947_v3 = vadd.f32 %v8314_v47, %v935_v61  ;;  %v1032_v57 = vld [vmem:[%s14242_s5 + $0xe0] sm:$0xff]  ;;  %v1033_v59 = vld [vmem:[%s14242_s5 + $0xe8] sm:$0xff] }
 0x211   : > { %v8317_v4 = vmul.f32 -1.442695, %v942_v62  ;;  %v8318_v5 = vmul.f32 -1.442695, %v943_v63  ;;  %v8315_v12 = vmul.f32 -1.442695, %v940_v6 }
 0x212   : > { %v8319_v7 = vmul.f32 -1.442695, %v944_v0  ;;  %v8320_v8 = vmul.f32 -1.442695, %v945_v1  ;;  %v8321_v10 = vmul.f32 -1.442695, %v946_v2 }
 0x213   : > { %10307 = vpow2.f32 %v8317_v4  ;;  %v8322_v11 = vmul.f32 -1.442695, %v947_v3  ;;  %v8316_v14 = vmul.f32 -1.442695, %v941_v9 }
 0x214   : > { %10309 = vpow2.f32 %v8318_v5 }
 0x215   : > { %10311 = vpow2.f32 %v8319_v7 }
 0x216   : > { %10313 = vpow2.f32 %v8320_v8  ;;  %v1066_v8 = vld [vmem:[#allocation2 + $0x2] sm:$0xff] }
 0x217   : > { %10315 = vpow2.f32 %v8321_v10 }
 0x218   : > { %10317 = vpow2.f32 %v8322_v11  ;;  %v1034_v11 = vld [vmem:[%s14242_s5 + $0xf0] sm:$0xff] }
 0x219   : > { %10319 = vpow2.f32 %v8315_v12  ;;  %v1035_v12 = vld [vmem:[%s14242_s5 + $0xf8] sm:$0xff] }
 0x21a   : > { %10321 = vpow2.f32 %v8316_v14  ;;  %v1018_v14 = vld [vmem:[%s14242_s5 + $0x70] sm:$0xff] }
 0x21d   : > { %v10308_v15 = vpop.eup %10307 }
 0x21e   : > { %v10310_v17 = vpop.eup %10309  ;;  %v974_v18 = vadd.f32 1.0, %v10308_v15 }
 0x21f   : > { %v10312_v19 = vpop.eup %10311  ;;  %v975_v23 = vadd.f32 1.0, %v10310_v17 }
 0x220   : > { %v10314_v25 = vpop.eup %10313  ;;  %v976_v26 = vadd.f32 1.0, %v10312_v19  ;;  %10323 = vrcp.f32 %v974_v18  ;;  %v9087_v18 = vpack.c.bf16 %v1035_v12, %v1034_v11  ;;  %v1019_v19 = vld [vmem:[%s14242_s5 + $0x78] sm:$0xff] }
 0x221   : > { %v10316_v29 = vpop.eup %10315  ;;  %v977_v31 = vadd.f32 1.0, %v10314_v25  ;;  %10325 = vrcp.f32 %v975_v23  ;;  %v9089_v23 = vpack.c.bf16 %v1019_v19, %v1018_v14  ;;  %v1114_v19 = vld [vmem:[#allocation2 + $0x91] sm:$0xff] }
 0x222   : > { %v10318_v34 = vpop.eup %10317  ;;  %v978_v35 = vadd.f32 1.0, %v10316_v29  ;;  %10327 = vrcp.f32 %v976_v26 }
 0x223   : > { %v10320_v36 = vpop.eup %10319  ;;  %v979_v37 = vadd.f32 1.0, %v10318_v34  ;;  %10329 = vrcp.f32 %v977_v31 }
 0x224   : > { %v10322_v38 = vpop.eup %10321  ;;  %10331 = vrcp.f32 %v978_v35  ;;  %v972_v39 = vadd.f32 1.0, %v10320_v36 }
 0x225   : > { %10333 = vrcp.f32 %v979_v37  ;;  %v973_v41 = vadd.f32 1.0, %v10322_v38  ;;  %v1036_v38 = vld [vmem:[%s14242_s5 + $0x100] sm:$0xff] }
 0x226   : > { %10335 = vrcp.f32 %v972_v39  ;;  %v1037_v39 = vld [vmem:[%s14242_s5 + $0x108] sm:$0xff] }
 0x227   : > { %10337 = vrcp.f32 %v973_v41  ;;  %v11058_v41 = vpack.c.bf16 %v1037_v39, %v1036_v38  ;;  %v1050_v39 = vld [vmem:[#allocation2] sm:$0xff] }
 0x22a   : > { %v10324_v42 = vpop.eup %10323 }
 0x22b   : > { %v10326_v43 = vpop.eup %10325  ;;  %v998_v45 = vmul.f32 %v10324_v42, %v942_v62  ;;  %v9083_v62 = vpack.c.bf16 %v1033_v59, %v1032_v57 }
 0x22c   : > { %v10328_v46 = vpop.eup %10327  ;;  %v999_v47 = vmul.f32 %v10326_v43, %v943_v63  ;;  %v1016_v63 = vld [vmem:[%s14242_s5 + $0x60] sm:$0xff] }
 0x22d   : > { %v10330_v48 = vpop.eup %10329  ;;  %1044 = vst.msk [vmem:[#allocation2 + $0x31] sm:$0xff] %vm495_vm1, %v998_v45  ;;  %v1000_v49 = vmul.f32 %v10328_v46, %v944_v0  ;;  %v1017_v0 = vld [vmem:[%s14242_s5 + $0x68] sm:$0xff]  ;;  %9084 = vmatprep.subr.bf16.mxu1 %v9083_v62 }
 0x22e   : > { %v10332_v50 = vpop.eup %10331  ;;  %1045 = vst.msk [vmem:[#allocation2 + $0x41] sm:$0xff] %vm495_vm1, %v999_v47  ;;  %v1001_v51 = vmul.f32 %v10330_v48, %v945_v1 }
 0x22f   : > { %v10334_v52 = vpop.eup %10333  ;;  %1046 = vst.msk [vmem:[#allocation2 + $0x51] sm:$0xff] %vm495_vm1, %v1000_v49  ;;  %v1002_v53 = vmul.f32 %v10332_v50, %v946_v2  ;;  %v9085_v2 = vpack.c.bf16 %v1017_v0, %v1016_v63 }
 0x230   : > { %v10336_v55 = vpop.eup %10335  ;;  %1047 = vst.msk [vmem:[#allocation2 + $0x61] sm:$0xff] %vm495_vm1, %v1001_v51  ;;  %v1003_v56 = vmul.f32 %v10334_v52, %v947_v3  ;;  %v1058_v3 = vld [vmem:[#allocation2 + $0x1] sm:$0xff] }
 0x231   : > { %v10338_v60 = vpop.eup %10337  ;;  %v996_v61 = vmul.f32 %v10336_v55, %v940_v6  ;;  %1048 = vst.msk [vmem:[#allocation2 + $0x71] sm:$0xff] %vm495_vm1, %v1002_v53  ;;  %9086 = vmatpush3.bf16.msra.mxu1 %v9085_v2 }
 0x232   : > { %v997_v1 = vmul.f32 %v10338_v60, %v941_v9  ;;  %1049 = vst.msk [vmem:[#allocation2 + $0x81] sm:$0xff] %vm495_vm1, %v1003_v56  ;;  %9088 = vmatprep.subr.bf16.mxu1 %v9087_v18  ;;  %v1106_v18 = vld [vmem:[#allocation2 + $0x90] sm:$0xff] }
 0x233   : > { %1042 = vst.msk [vmem:[#allocation2 + $0x11] sm:$0xff] %vm495_vm1, %v996_v61 }
 0x234   : > { %1043 = vst.msk [vmem:[#allocation2 + $0x21] sm:$0xff] %vm495_vm1, %v997_v1  ;;  %v11037_v29 = vld [vmem:[#allocation2 + $0x30] sm:$0xff] }
 0x235   : > { %9090 = vmatpush3.bf16.msra.mxu1 %v9089_v23  ;;  %v11040_v31 = vld [vmem:[#allocation2 + $0x31] sm:$0xff]  ;;  %v11049_v37 = vld [vmem:[#allocation2 + $0x40] sm:$0xff] }
 0x236   : > { %v11046_v36 = vld [vmem:[#allocation2 + $0x32] sm:$0xff]  ;;  %v11064_v45 = vld [vmem:[#allocation2 + $0x41] sm:$0xff]  ;;  %9092 = vmatprep.subr.bf16.mxu1 %v11058_v41 }
 0x237   : > { %v11068_v46 = vld [vmem:[#allocation2 + $0x42] sm:$0xff]  ;;  %v9383_v47 = vpack.i.bf16 %v11037_v29, %v11064_v45  ;;  %v11075_v49 = vld [vmem:[#allocation2 + $0x50] sm:$0xff] }
 0x238   : > { %v9388_v48 = vpack.i.bf16 %v11040_v31, %v11068_v46  ;;  %v11078_v50 = vld [vmem:[#allocation2 + $0x51] sm:$0xff]  ;;  %v9393_v51 = vpack.i.bf16 %v11046_v36, %v11075_v49  ;;  %v11088_v55 = vld [vmem:[#allocation2 + $0x60] sm:$0xff] }
 0x239   : > { %v9398_v52 = vpack.i.bf16 %v11049_v37, %v11078_v50  ;;  %v11085_v53 = vld [vmem:[#allocation2 + $0x52] sm:$0xff]  ;;  %v9408_v57 = vpack.i.bf16 %v11068_v46, %v11088_v55  ;;  %v11095_v59 = vld [vmem:[#allocation2 + $0x61] sm:$0xff] }
 0x23a   : > { %v1090_v4 = vld [vmem:[#allocation2 + $0x12] sm:$0xff]  ;;  %v9403_v56 = vpack.i.bf16 %v11064_v45, %v11085_v53  ;;  %v11098_v60 = vld [vmem:[#allocation2 + $0x62] sm:$0xff]  ;;  %v9413_v61 = vpack.i.bf16 %v11075_v49, %v11095_v59 }
 0x23b   : > { %v11008_v5 = vld [vmem:[#allocation2 + $0x10] sm:$0xff]  ;;  %v9343_v6 = vpack.i.bf16 %v1058_v3, %v1090_v4  ;;  %v11010_v7 = vld [vmem:[#allocation2 + $0x21] sm:$0xff]  ;;  %v9363_v34 = vpack.i.bf16 %v1090_v4, %v11037_v29  ;;  %v9418_v62 = vpack.i.bf16 %v11078_v50, %v11098_v60 }
 0x23c   : > { %v11012_v10 = vld [vmem:[#allocation2 + $0x20] sm:$0xff]  ;;  %v9353_v9 = vpack.i.bf16 %v11008_v5, %v11010_v7  ;;  %v11026_v15 = vld [vmem:[#allocation2 + $0x11] sm:$0xff]  ;;  %v9373_v42 = vpack.i.bf16 %v11010_v7, %v11046_v36 }
 0x23d   : > { %9344 = vrot.lane.b32.xlu0 %v9343_v6, %s14225_s17  ;;  %v11028_v17 = vld [vmem:[#allocation2 + $0x22] sm:$0xff]  ;;  %v9348_v25 = vpack.i.bf16 %v1066_v8, %v11012_v10  ;;  %v9368_v35 = vpack.i.bf16 %v11012_v10, %v11040_v31  ;;  %v11105_v63 = vld [vmem:[#allocation2 + $0x70] sm:$0xff] }
 0x23e   : > { %9354 = vrot.lane.b32.xlu1 %v9353_v9, %s14221_s24  ;;  %v9358_v26 = vpack.i.bf16 %v11026_v15, %v11028_v17  ;;  %v9378_v43 = vpack.i.bf16 %v11028_v17, %v11049_v37  ;;  %v11108_v0 = vld [vmem:[#allocation2 + $0x71] sm:$0xff]  ;;  %v9423_v1 = vpack.i.bf16 %v11085_v53, %v11105_v63  ;;  %v1105_v4 = vld [vmem:[#allocation2 + $0x80] sm:$0xff] }
 0x23f   : > { %v9428_v2 = vpack.i.bf16 %v11088_v55, %v11108_v0  ;;  %v11115_v3 = vld [vmem:[#allocation2 + $0x72] sm:$0xff]  ;;  %v9438_v8 = vpack.i.bf16 %v11098_v60, %v1105_v4  ;;  %v11122_v9 = vld [vmem:[#allocation2 + $0x81] sm:$0xff] }
 0x240   : > { %v9433_v6 = vpack.i.bf16 %v11095_v59, %v11115_v3  ;;  %v11125_v11 = vld [vmem:[#allocation2 + $0x82] sm:$0xff]  ;;  %v9443_v12 = vpack.i.bf16 %v11105_v63, %v11122_v9  ;;  %v9453_v23 = vpack.i.bf16 %v11115_v3, %v1106_v18 }
 0x241   : > { %9349 = vrot.lane.b32.xlu0 %v9348_v25, %s14223_s26  ;;  %v9448_v14 = vpack.i.bf16 %v11108_v0, %v11125_v11  ;;  %v9458_v25 = vpack.i.bf16 %v1105_v4, %v1114_v19 }
 0x242   : > { %9359 = vrot.lane.b32.xlu1 %v9358_v26, %s14225_s17 }
 0x245   : > { %9364 = vrot.lane.b32.xlu0 %v9363_v34, %s14223_s26 }
 0x246   : > { %9369 = vrot.lane.b32.xlu1 %v9368_v35, %s14221_s24 }
 0x249   : > { %9374 = vrot.lane.b32.xlu0 %v9373_v42, %s14225_s17 }
 0x24a   : > { %9379 = vrot.lane.b32.xlu1 %v9378_v43, %s14223_s26 }
 0x24d   : > { %9384 = vrot.lane.b32.xlu0 %v9383_v47, %s14221_s24 }
 0x24e   : > { %9389 = vrot.lane.b32.xlu1 %v9388_v48, %s14225_s17 }
 0x251   : > { %9394 = vrot.lane.b32.xlu0 %v9393_v51, %s14223_s26 }
 0x252   : > { %9399 = vrot.lane.b32.xlu1 %v9398_v52, %s14221_s24 }
 0x255   : > { %9404 = vrot.lane.b32.xlu0 %v9403_v56, %s14225_s17  ;;  %v1038_v56 = vld [vmem:[%s14242_s5 + $0x110] sm:$0xff] }
 0x256   : > { %9409 = vrot.lane.b32.xlu1 %v9408_v57, %s14223_s26  ;;  %v1039_v57 = vld [vmem:[%s14242_s5 + $0x118] sm:$0xff] }
 0x257   : > { %v9095_v18 = vpack.c.bf16 %v1039_v57, %v1038_v56 }
 0x259   : > { %9414 = vrot.lane.b32.xlu0 %v9413_v61, %s14221_s24 }
 0x25a   : > { %9419 = vrot.lane.b32.xlu1 %v9418_v62, %s14225_s17 }
 0x25d   : > { %9424 = vrot.lane.b32.xlu0 %v9423_v1, %s14223_s26 }
 0x25e   : > { %9429 = vrot.lane.b32.xlu1 %v9428_v2, %s14221_s24 }
 0x261   : > { %9434 = vrot.lane.b32.xlu0 %v9433_v6, %s14225_s17 }
 0x262   : > { %9439 = vrot.lane.b32.xlu1 %v9438_v8, %s14223_s26 }
 0x265   : > { %9444 = vrot.lane.b32.xlu0 %v9443_v12, %s14221_s24 }
 0x266   : > { %9449 = vrot.lane.b32.xlu1 %v9448_v14, %s14225_s17 }
 0x269   : > { %9454 = vrot.lane.b32.xlu0 %v9453_v23, %s14223_s26 }
 0x26a   : > { %9459 = vrot.lane.b32.xlu1 %v9458_v25, %s14221_s24 }
 0x2af   : > { %v9345_v26 = vpop.permute.xlu0 %9344 }
 0x2b0   : > { %v9355_v34 = vpop.permute.xlu1 %9354  ;;  %v9347_v35 = vunpack.i.h.bf16 %v9345_v26  ;;  %v9346_v38 = vunpack.i.l.bf16 %v9345_v26 }
 0x2b1   : > { %v9357_v43 = vunpack.i.h.bf16 %v9355_v34  ;;  %v9356_v47 = vunpack.i.l.bf16 %v9355_v34 }
 0x2b2   : > { %v1341_v1 = vsel %vm495_vm1, %v11026_v15, %v9346_v38  ;;  %v1315_v2 = vsel %vm495_vm1, %v1050_v39, %v9347_v35 }
 0x2b3   : > { %v9350_v42 = vpop.permute.xlu0 %9349 }
 0x2b4   : > { %v9352_v48 = vunpack.i.h.bf16 %v9350_v42  ;;  %v9351_v51 = vunpack.i.l.bf16 %v9350_v42  ;;  %v9360_v52 = vpop.permute.xlu1 %9359 }
 0x2b5   : > { %v9362_v61 = vunpack.i.h.bf16 %v9360_v52  ;;  %v9361_v62 = vunpack.i.l.bf16 %v9360_v52 }
 0x2b6   : > { %v1349_v4 = vsel %vm1323_vm6, %v1341_v1, %v9351_v51  ;;  %v1324_v6 = vsel %vm1323_vm6, %v1315_v2, %v9352_v48 }
 0x2b7   : > { %v9365_v8 = vpop.permute.xlu0 %9364  ;;  %v1357_v12 = vsel %vm1332_vm7, %v1349_v4, %v9356_v47  ;;  %v1333_v14 = vsel %vm1332_vm7, %v1324_v6, %v9357_v43  ;;  %v1342_v15 = vsel %vm495_vm1, %v11010_v7, %v9361_v62  ;;  %v1316_v35 = vsel %vm495_vm1, %v11008_v5, %v9362_v61 }
 0x2b8   : > { %v9367_v19 = vunpack.i.h.bf16 %v9365_v8  ;;  %v9366_v23 = vunpack.i.l.bf16 %v9365_v8  ;;  %v9370_v25 = vpop.permute.xlu1 %9369  ;;  %1457 = vmatprep.mubr.f32.mxu1 %v1357_v12 }
 0x2b9   : > { %v9372_v26 = vunpack.i.h.bf16 %v9370_v25  ;;  %v9371_v34 = vunpack.i.l.bf16 %v9370_v25  ;;  %1458 = vmatmul.mubr.f32.vlgmr.msra.gmra.mrb[2].mxu1 %v1333_v14 }
 0x2ba   : > { %v1350_v38 = vsel %vm1323_vm6, %v1342_v15, %v9366_v23  ;;  %v1325_v39 = vsel %vm1323_vm6, %v1316_v35, %v9367_v19  ;;  %9094 = vmatpush3.bf16.msra.mxu1 %v11058_v41 }
 0x2bb   : > { %v9375_v42 = vpop.permute.xlu0 %9374  ;;  %v1358_v43 = vsel %vm1332_vm7, %v1350_v38, %v9371_v34  ;;  %v1334_v47 = vsel %vm1332_vm7, %v1325_v39, %v9372_v26  ;;  %9096 = vmatprep.subr.bf16.mxu1 %v9095_v18 }
 0x2bc   : > { %v9377_v48 = vunpack.i.h.bf16 %v9375_v42  ;;  %v9376_v51 = vunpack.i.l.bf16 %v9375_v42  ;;  %v9380_v52 = vpop.permute.xlu1 %9379  ;;  %1462 = vmatprep.mubr.f32.mxu1 %v1358_v43 }
 0x2bd   : > { %v9382_v7 = vunpack.i.h.bf16 %v9380_v52  ;;  %v9381_v56 = vunpack.i.l.bf16 %v9380_v52  ;;  %1463 = vmatmul.mubr.f32.gmra.mrb[4].mxu1 %v1334_v47 }
 0x2be   : > { %v1343_v5 = vsel %vm495_vm1, %v11040_v31, %v9376_v51  ;;  %v1317_v57 = vsel %vm495_vm1, %v11012_v10, %v9377_v48  ;;  %9098 = vmatpush3.bf16.msra.mxu1 %v9095_v18 }
 0x2bf   : > { %v9385_v41 = vpop.permute.xlu0 %9384  ;;  %v1351_v6 = vsel %vm1323_vm6, %v1343_v5, %v9381_v56  ;;  %v1326_v8 = vsel %vm1323_vm6, %v1317_v57, %v9382_v7 }
 0x2c0   : > { %v9387_v61 = vunpack.i.h.bf16 %v9385_v41  ;;  %v9386_v62 = vunpack.i.l.bf16 %v9385_v41  ;;  %v9390_v1 = vpop.permute.xlu1 %9389 }
 0x2c1   : > { %v9392_v2 = vunpack.i.h.bf16 %v9390_v1  ;;  %v9391_v4 = vunpack.i.l.bf16 %v9390_v1 }
 0x2c2   : > { %v1359_v12 = vsel %vm1332_vm7, %v1351_v6, %v9386_v62  ;;  %v1335_v14 = vsel %vm1332_vm7, %v1326_v8, %v9387_v61 }
 0x2c3   : > { %v9395_v19 = vpop.permute.xlu0 %9394  ;;  %1467 = vmatprep.mubr.f32.mxu1 %v1359_v12  ;;  %v1344_v26 = vsel %vm495_vm1, %v11064_v45, %v9391_v4  ;;  %v1318_v34 = vsel %vm495_vm1, %v11037_v29, %v9392_v2 }
 0x2c4   : > { %v9397_v31 = vunpack.i.h.bf16 %v9395_v19  ;;  %v9396_v23 = vunpack.i.l.bf16 %v9395_v19  ;;  %v9400_v10 = vpop.permute.xlu1 %9399  ;;  %1468 = vmatmul.mubr.f32.gmra.mrb[6].mxu1 %v1335_v14 }
 0x2c5   : > { %v9402_v18 = vunpack.i.h.bf16 %v9400_v10  ;;  %v9401_v25 = vunpack.i.l.bf16 %v9400_v10 }
 0x2c6   : > { %v1352_v15 = vsel %vm1323_vm6, %v1344_v26, %v9396_v23  ;;  %v1327_v35 = vsel %vm1323_vm6, %v1318_v34, %v9397_v31 }
 0x2c7   : > { %v9405_v38 = vpop.permute.xlu0 %9404  ;;  %v1360_v39 = vsel %vm1332_vm7, %v1352_v15, %v9401_v25  ;;  %v1336_v42 = vsel %vm1332_vm7, %v1327_v35, %v9402_v18 }
 0x2c8   : > { %v9407_v43 = vunpack.i.h.bf16 %v9405_v38  ;;  %v9406_v47 = vunpack.i.l.bf16 %v9405_v38  ;;  %v9410_v48 = vpop.permute.xlu1 %9409  ;;  %1472 = vmatprep.mubr.f32.mxu1 %v1360_v39 }
 0x2c9   : > { %v9412_v51 = vunpack.i.h.bf16 %v9410_v48  ;;  %v9411_v52 = vunpack.i.l.bf16 %v9410_v48  ;;  %1473 = vmatmul.mubr.f32.gmra.mrb[8].mxu1 %v1336_v42 }
 0x2ca   : > { %v1345_v45 = vsel %vm495_vm1, %v11078_v50, %v9406_v47  ;;  %v1319_v29 = vsel %vm495_vm1, %v11049_v37, %v9407_v43 }
 0x2cb   : > { %v9415_v7 = vpop.permute.xlu0 %9414  ;;  %v1353_v62 = vsel %vm1323_vm6, %v1345_v45, %v9411_v52  ;;  %v1328_v1 = vsel %vm1323_vm6, %v1319_v29, %v9412_v51 }
 0x2cc   : > { %v9417_v56 = vunpack.i.h.bf16 %v9415_v7  ;;  %v9416_v5 = vunpack.i.l.bf16 %v9415_v7  ;;  %v9420_v57 = vpop.permute.xlu1 %9419 }
 0x2cd   : > { %v9422_v41 = vunpack.i.h.bf16 %v9420_v57  ;;  %v9421_v61 = vunpack.i.l.bf16 %v9420_v57 }
 0x2ce   : > { %v1361_v2 = vsel %vm1332_vm7, %v1353_v62, %v9416_v5  ;;  %v1337_v4 = vsel %vm1332_vm7, %v1328_v1, %v9417_v56 }
 0x2cf   : > { %v9425_v6 = vpop.permute.xlu0 %9424  ;;  %1477 = vmatprep.mubr.f32.mxu1 %v1361_v2  ;;  %v1346_v19 = vsel %vm495_vm1, %v11095_v59, %v9421_v61  ;;  %v1320_v31 = vsel %vm495_vm1, %v11075_v49, %v9422_v41 }
 0x2d0   : > { %v9427_v50 = vunpack.i.h.bf16 %v9425_v6  ;;  %v9426_v8 = vunpack.i.l.bf16 %v9425_v6  ;;  %v9430_v12 = vpop.permute.xlu1 %9429  ;;  %1478 = vmatmul.mubr.f32.gmra.mrb[10].mxu1 %v1337_v4 }
 0x2d1   : > { %v9432_v37 = vunpack.i.h.bf16 %v9430_v12  ;;  %v9431_v14 = vunpack.i.l.bf16 %v9430_v12 }
 0x2d2   : > { %v1354_v23 = vsel %vm1323_vm6, %v1346_v19, %v9426_v8  ;;  %v1329_v10 = vsel %vm1323_vm6, %v1320_v31, %v9427_v50 }
 0x2d3   : > { %v9435_v18 = vpop.permute.xlu0 %9434  ;;  %v1362_v25 = vsel %vm1332_vm7, %v1354_v23, %v9431_v14  ;;  %v1338_v26 = vsel %vm1332_vm7, %v1329_v10, %v9432_v37 }
 0x2d4   : > { %v9437_v34 = vunpack.i.h.bf16 %v9435_v18  ;;  %v9436_v15 = vunpack.i.l.bf16 %v9435_v18  ;;  %v9440_v35 = vpop.permute.xlu1 %9439  ;;  %1482 = vmatprep.mubr.f32.mxu1 %v1362_v25 }
 0x2d5   : > { %v9442_v38 = vunpack.i.h.bf16 %v9440_v35  ;;  %v9441_v39 = vunpack.i.l.bf16 %v9440_v35  ;;  %1483 = vmatmul.mubr.f32.gmra.mrb[12].mxu1 %v1338_v26 }
 0x2d6   : > { %v1347_v59 = vsel %vm495_vm1, %v11108_v0, %v9436_v15  ;;  %v1321_v49 = vsel %vm495_vm1, %v11088_v55, %v9437_v34 }
 0x2d7   : > { %v9445_v42 = vpop.permute.xlu0 %9444  ;;  %v1355_v45 = vsel %vm1323_vm6, %v1347_v59, %v9441_v39  ;;  %v1330_v29 = vsel %vm1323_vm6, %v1321_v49, %v9442_v38  ;;  %v8323_v39 = vld [vmem:[%s14244_s6] ss:$0 sm:$0xff] }
 0x2d8   : > { %v9447_v43 = vunpack.i.h.bf16 %v9445_v42  ;;  %v9446_v47 = vunpack.i.l.bf16 %v9445_v42  ;;  %v9450_v48 = vpop.permute.xlu1 %9449 }
 0x2d9   : > { %v9452_v51 = vunpack.i.h.bf16 %v9450_v48  ;;  %v9451_v52 = vunpack.i.l.bf16 %v9450_v48 }
 0x2da   : > { %v1363_v7 = vsel %vm1332_vm7, %v1355_v45, %v9446_v47  ;;  %v1339_v56 = vsel %vm1332_vm7, %v1330_v29, %v9447_v43 }
 0x2db   : > { %v9455_v5 = vpop.permute.xlu0 %9454  ;;  %1487 = vmatprep.mubr.f32.mxu1 %v1363_v7  ;;  %v1348_v62 = vsel %vm495_vm1, %v11122_v9, %v9451_v52  ;;  %v1322_v1 = vsel %vm495_vm1, %v11105_v63, %v9452_v51  ;;  %v1122_v63 = vld [vmem:[#allocation2 + $0x92] sm:$0xff] }
 0x2dc   : > { %v9457_v0 = vunpack.i.h.bf16 %v9455_v5  ;;  %v9456_v57 = vunpack.i.l.bf16 %v9455_v5  ;;  %v9460_v41 = vpop.permute.xlu1 %9459  ;;  %1488 = vmatmul.mubr.f32.gmra.mrb[14].mxu1 %v1339_v56 }
 0x2dd   : > { %v9462_v55 = vunpack.i.h.bf16 %v9460_v41  ;;  %v9461_v61 = vunpack.i.l.bf16 %v9460_v41 }
 0x2de   : > { %v1356_v2 = vsel %vm1323_vm6, %v1348_v62, %v9456_v57  ;;  %v1331_v4 = vsel %vm1323_vm6, %v1322_v1, %v9457_v0 }
 0x2df   : > { %v1364_v6 = vsel %vm1332_vm7, %v1356_v2, %v9461_v61  ;;  %v1340_v50 = vsel %vm1332_vm7, %v1331_v4, %v9462_v55 }
 0x2e0   : > { %1492 = vmatprep.mubr.f32.mxu1 %v1364_v6 }
 0x2e1   : > { %1493 = vmatmul.mubr.f32.gmra.mrb[16].mxu1 %v1340_v50 }
 0x2e2   : > { %8892 = vmatprep.mubr.msk.f32.mxu1 %vm495_vm1, %v11028_v17 }
 0x2e5   : > { %8893 = vmatmul.mubr.msk.f32.vlgmr.msra.gmra.mrb[18].mxu1 %vm495_vm1, %v11046_v36 }
 0x2e6   : > { %8895 = vmatprep.mubr.msk.f32.mxu1 %vm495_vm1, %v11068_v46 }
 0x2e9   : > { %8896 = vmatmul.mubr.msk.f32.gmra.mrb[20].mxu1 %vm495_vm1, %v11085_v53 }
 0x2ea   : > { %8898 = vmatprep.mubr.msk.f32.mxu1 %vm495_vm1, %v11098_v60 }
 0x2ed   : > { %8899 = vmatmul.mubr.msk.f32.gmra.mrb[22].mxu1 %vm495_vm1, %v11115_v3 }
 0x2ee   : > { %8901 = vmatprep.mubr.msk.f32.mxu1 %vm495_vm1, %v11125_v11 }
 0x2f1   : > { %8902 = vmatmul.mubr.msk.f32.gmra.mrb[24].mxu1 %vm495_vm1, %v1122_v63 }
 0x38c   : > { %v8568_v17 = vpop.f32.mrb[2].mxu1 }
 0x38d   : > { %v8569_v36 = vpop.f32.mrb[3].mxu1 }
 0x38e   : > { %v8570_v9 = vadd.f32 %v8569_v36, %v8568_v17 }
 0x390   : > { %v8571_v8 = vpop.f32.mrb[4].mxu1  ;;  %v1460_v43 = vadd.f32 %v8570_v9, %v8323_v39 }
 0x391   : > { %v8572_v46 = vpop.f32.mrb[5].mxu1 }
 0x392   : > { %v8573_v12 = vadd.f32 %v8572_v46, %v8571_v8 }
 0x394   : > { %v1465_v49 = vadd.f32 %v8573_v12, %v8323_v39 }
 0x397   : > { %v8574_v37 = vpop.f32.mrb[6].mxu1 }
 0x398   : > { %v8575_v53 = vpop.f32.mrb[7].mxu1 }
 0x399   : > { %v8576_v14 = vadd.f32 %v8575_v53, %v8574_v37 }
 0x39b   : > { %v1470_v0 = vadd.f32 %v8576_v14, %v8323_v39 }
 0x39c   : > { %v8577_v19 = vpop.f32.mrb[8].mxu1 }
 0x39d   : > { %v8578_v60 = vpop.f32.mrb[9].mxu1 }
 0x39e   : > { %v8579_v31 = vadd.f32 %v8578_v60, %v8577_v19 }
 0x3a0   : > { %v1475_v45 = vadd.f32 %v8579_v31, %v8323_v39 }
 0x3a3   : > { %v8580_v23 = vpop.f32.mrb[10].mxu1 }
 0x3a4   : > { %v8581_v3 = vpop.f32.mrb[11].mxu1 }
 0x3a5   : > { %v8582_v10 = vadd.f32 %v8581_v3, %v8580_v23 }
 0x3a7   : > { %v1480_v17 = vadd.f32 %v8582_v10, %v8323_v39 }
 0x3a8   : > { %v8583_v18 = vpop.f32.mrb[12].mxu1 }
 0x3a9   : > { %v8584_v11 = vpop.f32.mrb[13].mxu1 }
 0x3aa   : > { %v8585_v25 = vadd.f32 %v8584_v11, %v8583_v18 }
 0x3ac   : > { %v1485_v2 = vadd.f32 %v8585_v25, %v8323_v39 }
 0x3af   : > { %v8586_v26 = vpop.f32.mrb[14].mxu1 }
 0x3b0   : > { %v8587_v34 = vpop.f32.mrb[15].mxu1 }
 0x3b1   : > { %v8588_v15 = vadd.f32 %v8587_v34, %v8586_v26 }
 0x3b3   : > { %v1490_v31 = vadd.f32 %v8588_v15, %v8323_v39 }
 0x3b4   : > { %v8589_v35 = vpop.f32.mrb[16].mxu1 }
 0x3b5   : > { %v8590_v38 = vpop.f32.mrb[17].mxu1 }
 0x3b6   : > { %v8591_v59 = vadd.f32 %v8590_v38, %v8589_v35 }
 0x3b8   : > { %v8894_v42 = vpop.f32.mrb[18].mxu1  ;;  %v1495_v60 = vadd.f32 %v8591_v59, %v8323_v39 }
 0x3b9   : > { %v11225_v47 = vadd.f32 %v8894_v42, %v1465_v49  ;;  %v1564_v48 = vpop.f32.mrb[19].mxu1 }
 0x3ba   : > { %v11227_v51 = vadd.f32 %v1564_v48, %v1460_v43 }
 0x3bb   : > { %v1625_v52 = vmul.f32 %v11225_v47, %v11225_v47  ;;  %v1604_v29 = vsel %vm495_vm1, %v11225_v47, 0.0 }
 0x3bc   : > { %v1603_v7 = vsel %vm495_vm1, %v11227_v51, 0.0  ;;  %v1624_v56 = vmul.f32 %v11227_v51, %v11227_v51  ;;  %v8897_v5 = vpop.f32.mrb[20].mxu1 }
 0x3bd   : > { %v11237_v57 = vadd.f32 %v8897_v5, %v1475_v45  ;;  %v1574_v41 = vpop.f32.mrb[21].mxu1  ;;  %v1633_v55 = vsel %vm495_vm1, %v1625_v52, 0.0  ;;  %v1605_v1 = vadd.f32 %v1604_v29, %v1603_v7 }
 0x3be   : > { %v1632_v61 = vsel %vm495_vm1, %v1624_v56, 0.0  ;;  %v11241_v62 = vadd.f32 %v1574_v41, %v1470_v0 }
 0x3bf   : > { %v1627_v4 = vmul.f32 %v11237_v57, %v11237_v57  ;;  %v1634_v36 = vadd.f32 %v1633_v55, %v1632_v61  ;;  %v1608_v12 = vsel %vm495_vm1, %v11237_v57, 0.0 }
 0x3c0   : > { %v1606_v6 = vsel %vm495_vm1, %v11241_v62, 0.0  ;;  %v1626_v50 = vmul.f32 %v11241_v62, %v11241_v62  ;;  %v8900_v63 = vpop.f32.mrb[22].mxu1 }
 0x3c1   : > { %v1607_v9 = vadd.f32 %v1606_v6, %v1605_v1  ;;  %v11249_v8 = vadd.f32 %v8900_v63, %v1485_v2  ;;  %v1584_v46 = vpop.f32.mrb[23].mxu1  ;;  %v1637_v23 = vsel %vm495_vm1, %v1627_v4, 0.0 }
 0x3c2   : > { %v1635_v37 = vsel %vm495_vm1, %v1626_v50, 0.0  ;;  %v11254_v53 = vadd.f32 %v1584_v46, %v1480_v17 }
 0x3c3   : > { %v1636_v14 = vadd.f32 %v1635_v37, %v1634_v36  ;;  %v1609_v19 = vadd.f32 %v1608_v12, %v1607_v9  ;;  %v1629_v3 = vmul.f32 %v11249_v8, %v11249_v8  ;;  %v1612_v15 = vsel %vm495_vm1, %v11249_v8, 0.0 }
 0x3c4   : > { %v1610_v10 = vsel %vm495_vm1, %v11254_v53, 0.0  ;;  %v1628_v18 = vmul.f32 %v11254_v53, %v11254_v53  ;;  %v8903_v11 = vpop.f32.mrb[24].mxu1 }
 0x3c5   : > { %v1611_v25 = vadd.f32 %v1610_v10, %v1609_v19  ;;  %v1638_v26 = vadd.f32 %v1637_v23, %v1636_v14  ;;  %v11263_v34 = vadd.f32 %v8903_v11, %v1495_v60  ;;  %v1594_v35 = vpop.f32.mrb[25].mxu1  ;;  %v1641_v42 = vsel %vm495_vm1, %v1629_v3, 0.0  ;;  %v8375_v14 = vld [vmem:[%s14242_s5 + $0x220] sm:$0xff]  ;;  %v8376_v19 = vld [vmem:[%s14242_s5 + $0x228] sm:$0xff]  ;;  %v8378_v23 = vld [vmem:[%s14242_s5 + $0x238] sm:$0xff] }
 0x3c6   : > { %v1639_v38 = vsel %vm495_vm1, %v1628_v18, 0.0  ;;  %v11268_v39 = vadd.f32 %v1594_v35, %v1490_v31  ;;  %v9137_v60 = vpack.c.bf16 %v8376_v19, %v8375_v14  ;;  %v8377_v31 = vld [vmem:[%s14242_s5 + $0x230] sm:$0xff]  ;;  %v8359_v10 = vld [vmem:[%s14242_s5 + $0x1a0] sm:$0xff]  ;;  %v8360_v18 = vld [vmem:[%s14242_s5 + $0x1a8] sm:$0xff] }
 0x3c7   : > { %v1640_v59 = vadd.f32 %v1639_v38, %v1638_v26  ;;  %v1613_v49 = vadd.f32 %v1612_v15, %v1611_v25  ;;  %v1631_v43 = vmul.f32 %v11263_v34, %v11263_v34  ;;  %v1616_v7 = vsel %vm495_vm1, %v11263_v34, 0.0  ;;  %v8343_v11 = vld [vmem:[%s14242_s5 + $0x120] sm:$0xff]  ;;  %v8344_v26 = vld [vmem:[%s14242_s5 + $0x128] sm:$0xff]  ;;  %v8361_v35 = vld [vmem:[%s14242_s5 + $0x1b0] sm:$0xff] }
 0x3c8   : > { %v1614_v48 = vsel %vm495_vm1, %v11268_v39, 0.0  ;;  %v1630_v52 = vmul.f32 %v11268_v39, %v11268_v39  ;;  %9138 = vmatprep.subr.bf16.mxu0 %v9137_v60  ;;  %v9141_v3 = vpack.c.bf16 %v8378_v23, %v8377_v31  ;;  %v9105_v25 = vpack.c.bf16 %v8360_v18, %v8359_v10  ;;  %v8362_v15 = vld [vmem:[%s14242_s5 + $0x1b8] sm:$0xff] }
 0x3c9   : > { %v1615_v45 = vadd.f32 %v1614_v48, %v1613_v49  ;;  %v1642_v29 = vadd.f32 %v1641_v42, %v1640_v59  ;;  %v1645_v41 = vsel %vm495_vm1, %v1631_v43, 0.0  ;;  %v9107_v38 = vpack.c.bf16 %v8344_v26, %v8343_v11  ;;  %v8345_v49 = vld [vmem:[%s14242_s5 + $0x130] sm:$0xff]  ;;  %v8346_v42 = vld [vmem:[%s14242_s5 + $0x138] sm:$0xff]  ;;  %v8363_v43 = vld [vmem:[%s14242_s5 + $0x1c0] sm:$0xff] }
 0x3ca   : > { %v1643_v56 = vsel %vm495_vm1, %v1630_v52, 0.0  ;;  %v9109_v59 = vpack.c.bf16 %v8362_v15, %v8361_v35  ;;  %9106 = vmatprep.subr.bf16.mxu1 %v9105_v25  ;;  %v8364_v48 = vld [vmem:[%s14242_s5 + $0x1c8] sm:$0xff]  ;;  %v9111_v52 = vpack.c.bf16 %v8346_v42, %v8345_v49  ;;  %v8354_v31 = vld [vmem:[%s14242_s5 + $0x178] sm:$0xff]  ;;  %v8333_v42 = vld [vmem:[%s14243_s4 + $0x2] ss:$0 sm:$0xff] }
 0x3cb   : > { %v1617_v5 = vadd.f32 %v1616_v7, %v1615_v45  ;;  %v1644_v0 = vadd.f32 %v1643_v56, %v1642_v29  ;;  %9108 = vmatpush3.bf16.msra.mxu1 %v9107_v38  ;;  %v9113_v45 = vpack.c.bf16 %v8364_v48, %v8363_v43  ;;  %v8347_v29 = vld [vmem:[%s14242_s5 + $0x140] sm:$0xff]  ;;  %v8348_v7 = vld [vmem:[%s14242_s5 + $0x148] sm:$0xff]  ;;  %v8365_v56 = vld [vmem:[%s14242_s5 + $0x1d0] sm:$0xff] }
 0x3cc   : > { %9110 = vmatprep.subr.bf16.mxu1 %v9109_v59 }
 0x3cd   : > { %v1618_v55 = vrot.slane %v1617_v5, 4  ;;  %v1646_v61 = vadd.f32 %v1645_v41, %v1644_v0  ;;  %v9115_v0 = vpack.c.bf16 %v8348_v7, %v8347_v29 }
 0x3cf   : > { %v1619_v1 = vadd.f32 %v1618_v55, %v1617_v5  ;;  %v1647_v2 = vrot.slane %v1646_v61, 4  ;;  %v8366_v5 = vld [vmem:[%s14242_s5 + $0x1d8] sm:$0xff]  ;;  %9112 = vmatpush3.bf16.msra.mxu1 %v9111_v52  ;;  %v8349_v55 = vld [vmem:[%s14242_s5 + $0x150] sm:$0xff] }
 0x3d0   : > { %9114 = vmatprep.subr.bf16.mxu1 %v9113_v45  ;;  %v9117_v41 = vpack.c.bf16 %v8366_v5, %v8365_v56 }
 0x3d1   : > { %v1620_v4 = vrot.slane %v1619_v1, 2  ;;  %v1648_v6 = vadd.f32 %v1647_v2, %v1646_v61  ;;  %v8350_v61 = vld [vmem:[%s14242_s5 + $0x158] sm:$0xff]  ;;  %v8368_v2 = vld [vmem:[%s14242_s5 + $0x1e8] sm:$0xff] }
 0x3d3   : > { %v1621_v50 = vadd.f32 %v1620_v4, %v1619_v1  ;;  %v1649_v63 = vrot.slane %v1648_v6, 2  ;;  %v8367_v1 = vld [vmem:[%s14242_s5 + $0x1e0] sm:$0xff]  ;;  %9116 = vmatpush3.bf16.msra.mxu1 %v9115_v0  ;;  %v9119_v4 = vpack.c.bf16 %v8350_v61, %v8349_v55 }
 0x3d4   : > { %9118 = vmatprep.subr.bf16.mxu1 %v9117_v41 }
 0x3d5   : > { %v1622_v17 = vrot.slane %v1621_v50, 1  ;;  %v1650_v36 = vadd.f32 %v1649_v63, %v1648_v6  ;;  %v8351_v63 = vld [vmem:[%s14242_s5 + $0x160] sm:$0xff] }
 0x3d7   : > { %v1651_v9 = vrot.slane %v1650_v36, 1  ;;  %v1623_v46 = vadd.f32 %v1622_v17, %v1621_v50  ;;  %v9121_v50 = vpack.c.bf16 %v8368_v2, %v8367_v1  ;;  %v8352_v17 = vld [vmem:[%s14242_s5 + $0x168] sm:$0xff]  ;;  %9120 = vmatpush3.bf16.msra.mxu1 %v9119_v4 }
 0x3d8   : > { %v9123_v14 = vpack.c.bf16 %v8352_v17, %v8351_v63 }
 0x3d9   : > { %v1652_v12 = vadd.f32 %v1651_v9, %v1650_v36  ;;  %9122 = vmatprep.subr.bf16.mxu1 %v9121_v50 }
 0x3db   : > { %v1653_v37 = vsel %vm816_vm3, %v1623_v46, %v1652_v12  ;;  %v8369_v46 = vld [vmem:[%s14242_s5 + $0x1f0] sm:$0xff]  ;;  %v8370_v12 = vld [vmem:[%s14242_s5 + $0x1f8] sm:$0xff]  ;;  %9124 = vmatpush3.bf16.msra.mxu1 %v9123_v14 }
 0x3dc   : > { %8913 = vmatmul.mubr.msk.f32.vlgmr.msra.gmra.mrb[8].mxu0 %vm495_vm1, %v1653_v37  ;;  %v9125_v19 = vpack.c.bf16 %v8370_v12, %v8369_v46 }
 0x3dd   : > { %9140 = vmatpush3.bf16.msra.mxu0 %v9137_v60  ;;  %v8353_v60 = vld [vmem:[%s14242_s5 + $0x170] sm:$0xff] }
 0x3de   : > { %9142 = vmatprep.subr.bf16.mxu0 %v9141_v3  ;;  %v9127_v10 = vpack.c.bf16 %v8354_v31, %v8353_v60  ;;  %9126 = vmatprep.subr.bf16.mxu1 %v9125_v19 }
 0x3e0   : > { %9128 = vmatpush3.bf16.msra.mxu1 %v9127_v10 }
 0x3e1   : > { %9144 = vmatpush3.bf16.msra.mxu0 %v9141_v3 }
 0x3e2   : > { %9145 = vmatprep.subr.bf16.mxu0 %v10518_v13 }
 0x4af   : > { %v1723_v6 = vpop.f32.mrb[8].mxu0 }
 0x4b0   : > { %v1727_v36 = vmul.f32 0.001953125, %v1723_v6  ;;  %v8914_v9 = vpop.f32.mrb[9].mxu0 }
 0x4b2   : > { %v1728_v37 = vmul.f32 %v1727_v36, %v1727_v36  ;;  %v1739_v25 = vrot.slane %v1727_v36, %v10967_v21 }
 0x4b4   : > { %v1730_v23 = vrot.slane %v1728_v37, 7  ;;  %v1740_v35 = vsub.f32 %v11227_v51, %v1739_v25  ;;  %v1741_v15 = vsub.f32 %v11225_v47, %v1739_v25  ;;  %v1742_v38 = vsub.f32 %v11241_v62, %v1739_v25 }
 0x4b5   : > { %v1743_v59 = vsub.f32 %v11237_v57, %v1739_v25  ;;  %v1744_v43 = vsub.f32 %v11254_v53, %v1739_v25  ;;  %v1745_v48 = vsub.f32 %v11249_v8, %v1739_v25  ;;  %v1746_v52 = vsub.f32 %v11268_v39, %v1739_v25  ;;  %v8334_v57 = vld [vmem:[%s14243_s4 + $0x3] ss:$0 sm:$0xff] }
 0x4b6   : > { %v1732_v3 = vsub.f32 %v1727_v36, %v1730_v23  ;;  %v1747_v51 = vsub.f32 %v11263_v34, %v1739_v25 }
 0x4b8   : > { %v1733_v18 = vmax.f32 %v1732_v3, 0.0 }
 0x4ba   : > { %v1734_v11 = vadd.f32 1e-06, %v1733_v18 }
 0x4bc   : > { %10339 = vrsqrt.f32 %v1734_v11 }
 0x4c6   : > { %v10340_v26 = vpop.eup %10339 }
 0x4c7   : > { %v1751_v49 = vrot.slane %v10340_v26, %v10971_v24 }
 0x4c9   : > { %v1752_v45 = vmul.f32 %v1751_v49, %v1740_v35  ;;  %v1753_v47 = vmul.f32 %v1751_v49, %v1741_v15  ;;  %v1754_v29 = vmul.f32 %v1751_v49, %v1742_v38  ;;  %v1755_v62 = vmul.f32 %v1751_v49, %v1743_v59 }
 0x4ca   : > { %v1756_v7 = vmul.f32 %v1751_v49, %v1744_v43  ;;  %v1757_v56 = vmul.f32 %v1751_v49, %v1745_v48  ;;  %v1758_v5 = vmul.f32 %v1751_v49, %v1746_v52  ;;  %v1759_v0 = vmul.f32 %v1751_v49, %v1747_v51 }
 0x4cb   : > { %v1764_v41 = vmul.f32 %v8333_v42, %v1752_v45  ;;  %v1765_v53 = vmul.f32 %v8333_v42, %v1753_v47  ;;  %v1766_v55 = vmul.f32 %v8333_v42, %v1754_v29  ;;  %v1767_v8 = vmul.f32 %v8333_v42, %v1755_v62 }
 0x4cc   : > { %v1768_v61 = vmul.f32 %v8333_v42, %v1756_v7  ;;  %v1769_v39 = vmul.f32 %v8333_v42, %v1757_v56  ;;  %v1770_v1 = vmul.f32 %v8333_v42, %v1758_v5  ;;  %v1771_v34 = vmul.f32 %v8333_v42, %v1759_v0  ;;  %v8371_v7 = vld [vmem:[%s14242_s5 + $0x200] sm:$0xff]  ;;  %v8372_v56 = vld [vmem:[%s14242_s5 + $0x208] sm:$0xff] }
 0x4cd   : > { %v1776_v2 = vadd.f32 %v8334_v57, %v1764_v41  ;;  %v1777_v4 = vadd.f32 %v8334_v57, %v1765_v53  ;;  %v1778_v6 = vadd.f32 %v8334_v57, %v1766_v55  ;;  %v1779_v50 = vadd.f32 %v8334_v57, %v1767_v8  ;;  %v8355_v5 = vld [vmem:[%s14242_s5 + $0x180] sm:$0xff]  ;;  %v8356_v55 = vld [vmem:[%s14242_s5 + $0x188] sm:$0xff] }
 0x4ce   : > { %v1780_v63 = vadd.f32 %v8334_v57, %v1768_v61  ;;  %v11384_v17 = vadd.f32 %v8334_v57, %v1769_v39  ;;  %v11386_v36 = vadd.f32 %v8334_v57, %v1770_v1  ;;  %v11388_v37 = vadd.f32 %v8334_v57, %v1771_v34 }
 0x4cf   : > { %v8335_v9 = vmul.f32 -1.442695, %v1776_v2  ;;  %v8336_v46 = vmul.f32 -1.442695, %v1777_v4  ;;  %v8337_v12 = vmul.f32 -1.442695, %v1778_v6  ;;  %v9129_v53 = vpack.c.bf16 %v8372_v56, %v8371_v7 }
 0x4d0   : > { %v8338_v14 = vmul.f32 -1.442695, %v1779_v50  ;;  %v8339_v19 = vmul.f32 -1.442695, %v1780_v63  ;;  %v8340_v60 = vmul.f32 -1.442695, %v11384_v17  ;;  %v9131_v39 = vpack.c.bf16 %v8356_v55, %v8355_v5 }
 0x4d1   : > { %10341 = vpow2.f32 %v8335_v9  ;;  %v8341_v31 = vmul.f32 -1.442695, %v11386_v36  ;;  %v8342_v23 = vmul.f32 -1.442695, %v11388_v37  ;;  %9130 = vmatprep.subr.bf16.mxu1 %v9129_v53 }
 0x4d2   : > { %10343 = vpow2.f32 %v8336_v46  ;;  %9132 = vmatpush3.bf16.msra.mxu1 %v9131_v39  ;;  %v8358_v46 = vld [vmem:[%s14242_s5 + $0x198] sm:$0xff] }
 0x4d3   : > { %10345 = vpow2.f32 %v8337_v12 }
 0x4d4   : > { %10347 = vpow2.f32 %v8338_v14 }
 0x4d5   : > { %10349 = vpow2.f32 %v8339_v19 }
 0x4d6   : > { %10351 = vpow2.f32 %v8340_v60 }
 0x4d7   : > { %10353 = vpow2.f32 %v8341_v31  ;;  %v1894_v31 = vld [vmem:[#allocation2 + $0x1] sm:$0xff] }
 0x4d8   : > { %10355 = vpow2.f32 %v8342_v23 }
 0x4db   : > { %v10342_v3 = vpop.eup %10341 }
 0x4dc   : > { %v10344_v10 = vpop.eup %10343  ;;  %v1808_v18 = vadd.f32 1.0, %v10342_v3 }
 0x4dd   : > { %v10346_v11 = vpop.eup %10345  ;;  %v1809_v25 = vadd.f32 1.0, %v10344_v10 }
 0x4de   : > { %v10348_v26 = vpop.eup %10347  ;;  %v1810_v35 = vadd.f32 1.0, %v10346_v11  ;;  %10357 = vrcp.f32 %v1808_v18 }
 0x4df   : > { %v10350_v15 = vpop.eup %10349  ;;  %v1811_v38 = vadd.f32 1.0, %v10348_v26  ;;  %10359 = vrcp.f32 %v1809_v25 }
 0x4e0   : > { %v10352_v59 = vpop.eup %10351  ;;  %v1812_v49 = vadd.f32 1.0, %v10350_v15  ;;  %10361 = vrcp.f32 %v1810_v35 }
 0x4e1   : > { %v10354_v42 = vpop.eup %10353  ;;  %v1813_v43 = vadd.f32 1.0, %v10352_v59  ;;  %10363 = vrcp.f32 %v1811_v38 }
 0x4e2   : > { %v10356_v48 = vpop.eup %10355  ;;  %v1814_v52 = vadd.f32 1.0, %v10354_v42  ;;  %10365 = vrcp.f32 %v1812_v49 }
 0x4e3   : > { %v1815_v51 = vadd.f32 1.0, %v10356_v48  ;;  %10367 = vrcp.f32 %v1813_v43 }
 0x4e4   : > { %10369 = vrcp.f32 %v1814_v52 }
 0x4e5   : > { %10371 = vrcp.f32 %v1815_v51 }
 0x4e8   : > { %v10358_v45 = vpop.eup %10357 }
 0x4e9   : > { %v10360_v47 = vpop.eup %10359  ;;  %v1832_v29 = vmul.f32 %v10358_v45, %v1776_v2  ;;  %v8373_v2 = vld [vmem:[%s14242_s5 + $0x210] sm:$0xff] }
 0x4ea   : > { %v10362_v62 = vpop.eup %10361  ;;  %v1833_v57 = vmul.f32 %v10360_v47, %v1777_v4  ;;  %v8374_v4 = vld [vmem:[%s14242_s5 + $0x218] sm:$0xff] }
 0x4eb   : > { %v10364_v0 = vpop.eup %10363  ;;  %v1834_v41 = vmul.f32 %v10362_v62, %v1778_v6  ;;  %1878 = vst.msk [vmem:[#allocation2 + $0x11] sm:$0xff] %vm495_vm1, %v1832_v29  ;;  %v8357_v6 = vld [vmem:[%s14242_s5 + $0x190] sm:$0xff] }
 0x4ec   : > { %v10366_v8 = vpop.eup %10365  ;;  %v1835_v61 = vmul.f32 %v10364_v0, %v1779_v50  ;;  %1879 = vst.msk [vmem:[#allocation2 + $0x21] sm:$0xff] %vm495_vm1, %v1833_v57  ;;  %v9135_v19 = vpack.c.bf16 %v8358_v46, %v8357_v6 }
 0x4ed   : > { %v10368_v1 = vpop.eup %10367  ;;  %v1836_v34 = vmul.f32 %v10366_v8, %v1780_v63  ;;  %1880 = vst.msk [vmem:[#allocation2 + $0x31] sm:$0xff] %vm495_vm1, %v1834_v41  ;;  %v9133_v63 = vpack.c.bf16 %v8374_v4, %v8373_v2 }
 0x4ee   : > { %v10370_v50 = vpop.eup %10369  ;;  %v1837_v9 = vmul.f32 %v10368_v1, %v11384_v17  ;;  %1881 = vst.msk [vmem:[#allocation2 + $0x41] sm:$0xff] %vm495_vm1, %v1835_v61  ;;  %v1902_v17 = vld [vmem:[#allocation2 + $0x2] sm:$0xff] }
 0x4ef   : > { %v10372_v12 = vpop.eup %10371  ;;  %v1838_v14 = vmul.f32 %v10370_v50, %v11386_v36  ;;  %1882 = vst.msk [vmem:[#allocation2 + $0x51] sm:$0xff] %vm495_vm1, %v1836_v34  ;;  %9134 = vmatprep.subr.bf16.mxu1 %v9133_v63 }
 0x4f0   : > { %v1839_v60 = vmul.f32 %v10372_v12, %v11388_v37  ;;  %1883 = vst.msk [vmem:[#allocation2 + $0x61] sm:$0xff] %vm495_vm1, %v1837_v9  ;;  %9136 = vmatpush3.bf16.msra.mxu1 %v9135_v19 }
 0x4f1   : > { %1884 = vst.msk [vmem:[#allocation2 + $0x71] sm:$0xff] %vm495_vm1, %v1838_v14  ;;  %v1957_v14 = vld [vmem:[#allocation2 + $0x92] sm:$0xff] }
 0x4f2   : > { %1885 = vst.msk [vmem:[#allocation2 + $0x81] sm:$0xff] %vm495_vm1, %v1839_v60  ;;  %v1926_v23 = vld [vmem:[#allocation2 + $0x12] sm:$0xff] }
 0x4f3   : > { %v1950_v3 = vld [vmem:[#allocation2 + $0x22] sm:$0xff]  ;;  %v9463_v36 = vpack.i.bf16 %v1894_v31, %v1926_v23  ;;  %v11432_v11 = vld [vmem:[#allocation2 + $0x10] sm:$0xff] }
 0x4f4   : > { %v11428_v10 = vld [vmem:[#allocation2 + $0x20] sm:$0xff]  ;;  %8923 = vmatprep.mubr.msk.f32.mxu0 %vm495_vm1, %v1950_v3  ;;  %v1951_v18 = vld [vmem:[#allocation2 + $0x32] sm:$0xff] }
 0x4f5   : > { %v9468_v37 = vpack.i.bf16 %v1902_v17, %v11428_v10  ;;  %v11434_v25 = vld [vmem:[#allocation2 + $0x21] sm:$0xff]  ;;  %8924 = vmatmul.mubr.msk.f32.vlgmr.msra.gmra.mrb[10].mxu0 %vm495_vm1, %v1951_v18  ;;  %9464 = vrot.lane.b32.xlu0 %v9463_v36, %s14245_s3  ;;  %v11438_v35 = vld [vmem:[#allocation2 + $0x11] sm:$0xff] }
 0x4f6   : > { %v1952_v26 = vld [vmem:[#allocation2 + $0x42] sm:$0xff]  ;;  %v9473_v15 = vpack.i.bf16 %v11432_v11, %v11434_v25  ;;  %v1953_v38 = vld [vmem:[#allocation2 + $0x52] sm:$0xff]  ;;  %v9478_v59 = vpack.i.bf16 %v11438_v35, %v1950_v3  ;;  %v9493_v29 = vpack.i.bf16 %v11434_v25, %v1951_v18 }
 0x4f7   : > { %8926 = vmatprep.mubr.msk.f32.mxu0 %vm495_vm1, %v1952_v26  ;;  %9469 = vrot.lane.b32.xlu1 %v9468_v37, %s14246_s16  ;;  %v11445_v49 = vld [vmem:[#allocation2 + $0x30] sm:$0xff]  ;;  %v1954_v42 = vld [vmem:[#allocation2 + $0x62] sm:$0xff] }
 0x4f8   : > { %v11449_v43 = vld [vmem:[#allocation2 + $0x31] sm:$0xff]  ;;  %v9483_v48 = vpack.i.bf16 %v1926_v23, %v11445_v49  ;;  %v11458_v47 = vld [vmem:[#allocation2 + $0x40] sm:$0xff] }
 0x4f9   : > { %8927 = vmatmul.mubr.msk.f32.gmra.mrb[12].mxu0 %vm495_vm1, %v1953_v38  ;;  %9474 = vrot.lane.b32.xlu0 %v9473_v15, %s14247_s18  ;;  %v1955_v52 = vld [vmem:[#allocation2 + $0x72] sm:$0xff]  ;;  %v9488_v51 = vpack.i.bf16 %v11428_v10, %v11449_v43  ;;  %v1956_v45 = vld [vmem:[#allocation2 + $0x82] sm:$0xff]  ;;  %v9498_v62 = vpack.i.bf16 %v1950_v3, %v11458_v47  ;;  %v9508_v56 = vpack.i.bf16 %v11449_v43, %v1952_v26 }
 0x4fa   : > { %8929 = vmatprep.mubr.msk.f32.mxu0 %vm495_vm1, %v1954_v42  ;;  %v11464_v57 = vld [vmem:[#allocation2 + $0x41] sm:$0xff]  ;;  %v11471_v5 = vld [vmem:[#allocation2 + $0x50] sm:$0xff] }
 0x4fb   : > { %9479 = vrot.lane.b32.xlu1 %v9478_v59, %s14245_s3  ;;  %v9503_v7 = vpack.i.bf16 %v11445_v49, %v11464_v57  ;;  %v11474_v0 = vld [vmem:[#allocation2 + $0x51] sm:$0xff]  ;;  %v9513_v41 = vpack.i.bf16 %v1951_v18, %v11471_v5  ;;  %v11481_v55 = vld [vmem:[#allocation2 + $0x60] sm:$0xff]  ;;  %v9523_v8 = vpack.i.bf16 %v11464_v57, %v1953_v38 }
 0x4fc   : > { %v9518_v53 = vpack.i.bf16 %v11458_v47, %v11474_v0  ;;  %v9528_v61 = vpack.i.bf16 %v1952_v26, %v11481_v55  ;;  %v11486_v39 = vld [vmem:[#allocation2 + $0x61] sm:$0xff]  ;;  %v9538_v34 = vpack.i.bf16 %v11474_v0, %v1954_v42  ;;  %v11493_v2 = vld [vmem:[#allocation2 + $0x70] sm:$0xff] }
 0x4fd   : > { %8930 = vmatmul.mubr.msk.f32.gmra.mrb[14].mxu0 %vm495_vm1, %v1955_v52  ;;  %9484 = vrot.lane.b32.xlu0 %v9483_v48, %s14246_s16  ;;  %v9533_v1 = vpack.i.bf16 %v11471_v5, %v11486_v39  ;;  %v11496_v4 = vld [vmem:[#allocation2 + $0x71] sm:$0xff]  ;;  %v9543_v6 = vpack.i.bf16 %v1953_v38, %v11493_v2  ;;  %v1940_v9 = vld [vmem:[#allocation2 + $0x80] sm:$0xff]  ;;  %v9553_v63 = vpack.i.bf16 %v11486_v39, %v1955_v52 }
 0x4fe   : > { %8932 = vmatprep.mubr.msk.f32.mxu0 %vm495_vm1, %v1956_v45  ;;  %v9548_v50 = vpack.i.bf16 %v11481_v55, %v11496_v4  ;;  %v9558_v46 = vpack.i.bf16 %v1954_v42, %v1940_v9  ;;  %v11505_v12 = vld [vmem:[#allocation2 + $0x81] sm:$0xff]  ;;  %v9568_v60 = vpack.i.bf16 %v11496_v4, %v1956_v45  ;;  %v1941_v31 = vld [vmem:[#allocation2 + $0x90] sm:$0xff] }
 0x4ff   : > { %9489 = vrot.lane.b32.xlu1 %v9488_v51, %s14247_s18  ;;  %v9563_v19 = vpack.i.bf16 %v11493_v2, %v11505_v12  ;;  %v1949_v17 = vld [vmem:[#allocation2 + $0x91] sm:$0xff]  ;;  %v9573_v23 = vpack.i.bf16 %v1955_v52, %v1941_v31  ;;  %v1886_v36 = vld [vmem:[#allocation2] sm:$0xff] }
 0x500   : > { %v9578_v3 = vpack.i.bf16 %v1940_v9, %v1949_v17 }
 0x501   : > { %9494 = vrot.lane.b32.xlu0 %v9493_v29, %s14245_s3  ;;  %8933 = vmatmul.mubr.msk.f32.gmra.mrb[16].mxu0 %vm495_vm1, %v1957_v14 }
 0x502   : > { %8943 = vmatprep.mubr.msk.f32.mxu0 %vm10519_vm2, %v10520_v16 }
 0x503   : > { %9499 = vrot.lane.b32.xlu1 %v9498_v62, %s14246_s16 }
 0x505   : > { %9504 = vrot.lane.b32.xlu0 %v9503_v7, %s14247_s18 }
 0x507   : > { %9509 = vrot.lane.b32.xlu1 %v9508_v56, %s14245_s3 }
 0x509   : > { %9514 = vrot.lane.b32.xlu0 %v9513_v41, %s14246_s16 }
 0x50b   : > { %9519 = vrot.lane.b32.xlu1 %v9518_v53, %s14247_s18 }
 0x50d   : > { %9524 = vrot.lane.b32.xlu0 %v9523_v8, %s14245_s3 }
 0x50f   : > { %9529 = vrot.lane.b32.xlu1 %v9528_v61, %s14246_s16 }
 0x511   : > { %9534 = vrot.lane.b32.xlu0 %v9533_v1, %s14247_s18 }
 0x513   : > { %9539 = vrot.lane.b32.xlu1 %v9538_v34, %s14245_s3 }
 0x515   : > { %9544 = vrot.lane.b32.xlu0 %v9543_v6, %s14246_s16 }
 0x517   : > { %9549 = vrot.lane.b32.xlu1 %v9548_v50, %s14247_s18 }
 0x519   : > { %9554 = vrot.lane.b32.xlu0 %v9553_v63, %s14245_s3 }
 0x51b   : > { %9559 = vrot.lane.b32.xlu1 %v9558_v46, %s14246_s16 }
 0x51d   : > { %9564 = vrot.lane.b32.xlu0 %v9563_v19, %s14247_s18 }
 0x51f   : > { %9569 = vrot.lane.b32.xlu1 %v9568_v60, %s14245_s3 }
 0x521   : > { %9574 = vrot.lane.b32.xlu0 %v9573_v23, %s14246_s16 }
 0x523   : > { %9579 = vrot.lane.b32.xlu1 %v9578_v3, %s14247_s18 }
 0x567   : > { %v9465_v18 = vpop.permute.xlu0 %9464 }
 0x568   : > { %v9467_v26 = vunpack.i.h.bf16 %v9465_v18  ;;  %v9466_v15 = vunpack.i.l.bf16 %v9465_v18 }
 0x569   : > { %v9470_v37 = vpop.permute.xlu1 %9469 }
 0x56a   : > { %v9472_v38 = vunpack.i.h.bf16 %v9470_v37  ;;  %v9471_v59 = vunpack.i.l.bf16 %v9470_v37  ;;  %v2150_v42 = vsel %vm495_vm1, %v1886_v36, %v9467_v26  ;;  %v2174_v48 = vsel %vm495_vm1, %v11438_v35, %v9466_v15 }
 0x56b   : > { %v9475_v51 = vpop.permute.xlu0 %9474 }
 0x56c   : > { %v9477_v45 = vunpack.i.h.bf16 %v9475_v51  ;;  %v9476_v52 = vunpack.i.l.bf16 %v9475_v51  ;;  %v2182_v56 = vsel %vm1323_vm6, %v2174_v48, %v9471_v59  ;;  %v2158_v41 = vsel %vm1323_vm6, %v2150_v42, %v9472_v38 }
 0x56d   : > { %v9480_v29 = vpop.permute.xlu1 %9479 }
 0x56e   : > { %v9482_v62 = vunpack.i.h.bf16 %v9480_v29  ;;  %v9481_v7 = vunpack.i.l.bf16 %v9480_v29  ;;  %v2190_v53 = vsel %vm1332_vm7, %v2182_v56, %v9476_v52  ;;  %v2166_v8 = vsel %vm1332_vm7, %v2158_v41, %v9477_v45 }
 0x56f   : > { %2290 = vmatprep.mubr.f32.mxu1 %v2190_v53  ;;  %v9485_v61 = vpop.permute.xlu0 %9484 }
 0x570   : > { %v9487_v1 = vunpack.i.h.bf16 %v9485_v61  ;;  %v9486_v34 = vunpack.i.l.bf16 %v9485_v61  ;;  %2291 = vmatmul.mubr.f32.vlgmr.msra.gmra.mrb[26].mxu1 %v2166_v8  ;;  %v2175_v9 = vsel %vm495_vm1, %v11434_v25, %v9481_v7  ;;  %v2151_v63 = vsel %vm495_vm1, %v11432_v11, %v9482_v62 }
 0x571   : > { %v9490_v6 = vpop.permute.xlu1 %9489 }
 0x572   : > { %v9492_v35 = vunpack.i.h.bf16 %v9490_v6  ;;  %v9491_v50 = vunpack.i.l.bf16 %v9490_v6  ;;  %v2183_v46 = vsel %vm1323_vm6, %v2175_v9, %v9486_v34  ;;  %v2159_v14 = vsel %vm1323_vm6, %v2151_v63, %v9487_v1 }
 0x573   : > { %v9495_v19 = vpop.permute.xlu0 %9494 }
 0x574   : > { %v2191_v60 = vsel %vm1332_vm7, %v2183_v46, %v9491_v50  ;;  %v2167_v31 = vsel %vm1332_vm7, %v2159_v14, %v9492_v35  ;;  %v9497_v17 = vunpack.i.h.bf16 %v9495_v19  ;;  %v9496_v23 = vunpack.i.l.bf16 %v9495_v19 }
 0x575   : > { %v9500_v3 = vpop.permute.xlu1 %9499  ;;  %2295 = vmatprep.mubr.f32.mxu1 %v2191_v60 }
 0x576   : > { %v9502_v36 = vunpack.i.h.bf16 %v9500_v3  ;;  %v9501_v18 = vunpack.i.l.bf16 %v9500_v3  ;;  %2296 = vmatmul.mubr.f32.gmra.mrb[28].mxu1 %v2167_v31  ;;  %v2176_v25 = vsel %vm495_vm1, %v11449_v43, %v9496_v23  ;;  %v2152_v11 = vsel %vm495_vm1, %v11428_v10, %v9497_v17 }
 0x577   : > { %v9505_v37 = vpop.permute.xlu0 %9504 }
 0x578   : > { %v9507_v26 = vunpack.i.h.bf16 %v9505_v37  ;;  %v9506_v15 = vunpack.i.l.bf16 %v9505_v37  ;;  %v2184_v48 = vsel %vm1323_vm6, %v2176_v25, %v9501_v18  ;;  %v2160_v51 = vsel %vm1323_vm6, %v2152_v11, %v9502_v36 }
 0x579   : > { %v9510_v38 = vpop.permute.xlu1 %9509 }
 0x57a   : > { %v9512_v59 = vunpack.i.h.bf16 %v9510_v38  ;;  %v9511_v42 = vunpack.i.l.bf16 %v9510_v38  ;;  %v2192_v45 = vsel %vm1332_vm7, %v2184_v48, %v9506_v15  ;;  %v2168_v52 = vsel %vm1332_vm7, %v2160_v51, %v9507_v26 }
 0x57b   : > { %v9515_v29 = vpop.permute.xlu0 %9514  ;;  %2300 = vmatprep.mubr.f32.mxu1 %v2192_v45 }
 0x57c   : > { %v9517_v43 = vunpack.i.h.bf16 %v9515_v29  ;;  %v9516_v62 = vunpack.i.l.bf16 %v9515_v29  ;;  %2301 = vmatmul.mubr.f32.gmra.mrb[30].mxu1 %v2168_v52  ;;  %v2177_v41 = vsel %vm495_vm1, %v11464_v57, %v9511_v42  ;;  %v2153_v53 = vsel %vm495_vm1, %v11445_v49, %v9512_v59 }
 0x57d   : > { %v9520_v7 = vpop.permute.xlu1 %9519 }
 0x57e   : > { %v9522_v10 = vunpack.i.h.bf16 %v9520_v7  ;;  %v9521_v56 = vunpack.i.l.bf16 %v9520_v7  ;;  %v2185_v8 = vsel %vm1323_vm6, %v2177_v41, %v9516_v62  ;;  %v2161_v61 = vsel %vm1323_vm6, %v2153_v53, %v9517_v43 }
 0x57f   : > { %v9525_v1 = vpop.permute.xlu0 %9524 }
 0x580   : > { %v2193_v34 = vsel %vm1332_vm7, %v2185_v8, %v9521_v56  ;;  %v2169_v6 = vsel %vm1332_vm7, %v2161_v61, %v9522_v10  ;;  %v9527_v35 = vunpack.i.h.bf16 %v9525_v1  ;;  %v9526_v50 = vunpack.i.l.bf16 %v9525_v1 }
 0x581   : > { %v9530_v9 = vpop.permute.xlu1 %9529  ;;  %2305 = vmatprep.mubr.f32.mxu1 %v2193_v34 }
 0x582   : > { %v9532_v63 = vunpack.i.h.bf16 %v9530_v9  ;;  %v9531_v46 = vunpack.i.l.bf16 %v9530_v9  ;;  %2306 = vmatmul.mubr.f32.gmra.mrb[32].mxu1 %v2169_v6  ;;  %v2178_v57 = vsel %vm495_vm1, %v11474_v0, %v9526_v50  ;;  %v2154_v49 = vsel %vm495_vm1, %v11458_v47, %v9527_v35 }
 0x583   : > { %v9535_v14 = vpop.permute.xlu0 %9534 }
 0x584   : > { %v9537_v19 = vunpack.i.h.bf16 %v9535_v14  ;;  %v9536_v60 = vunpack.i.l.bf16 %v9535_v14  ;;  %v2186_v3 = vsel %vm1323_vm6, %v2178_v57, %v9531_v46  ;;  %v2162_v36 = vsel %vm1323_vm6, %v2154_v49, %v9532_v63 }
 0x585   : > { %v9540_v31 = vpop.permute.xlu1 %9539 }
 0x586   : > { %v9542_v17 = vunpack.i.h.bf16 %v9540_v31  ;;  %v9541_v23 = vunpack.i.l.bf16 %v9540_v31  ;;  %v2194_v18 = vsel %vm1332_vm7, %v2186_v3, %v9536_v60  ;;  %v2170_v25 = vsel %vm1332_vm7, %v2162_v36, %v9537_v19 }
 0x587   : > { %v9545_v11 = vpop.permute.xlu0 %9544  ;;  %2310 = vmatprep.mubr.f32.mxu1 %v2194_v18 }
 0x588   : > { %v9547_v0 = vunpack.i.h.bf16 %v9545_v11  ;;  %v9546_v37 = vunpack.i.l.bf16 %v9545_v11  ;;  %2311 = vmatmul.mubr.f32.gmra.mrb[34].mxu1 %v2170_v25  ;;  %v2179_v38 = vsel %vm495_vm1, %v11486_v39, %v9541_v23  ;;  %v2155_v59 = vsel %vm495_vm1, %v11471_v5, %v9542_v17 }
 0x589   : > { %v9550_v26 = vpop.permute.xlu1 %9549 }
 0x58a   : > { %v9552_v47 = vunpack.i.h.bf16 %v9550_v26  ;;  %v9551_v15 = vunpack.i.l.bf16 %v9550_v26  ;;  %v2187_v42 = vsel %vm1323_vm6, %v2179_v38, %v9546_v37  ;;  %v2163_v48 = vsel %vm1323_vm6, %v2155_v59, %v9547_v0  ;;  %v2445_v37 = vld [vmem:[%s14212_s7 + $0x8] sm:$0xff]  ;;  %v2446_v26 = vld [vmem:[%s14212_s7 + $0x10] sm:$0xff] }
 0x58b   : > { %v9555_v51 = vpop.permute.xlu0 %9554 }
 0x58c   : > { %v2195_v45 = vsel %vm1332_vm7, %v2187_v42, %v9551_v15  ;;  %v2171_v52 = vsel %vm1332_vm7, %v2163_v48, %v9552_v47  ;;  %v9557_v29 = vunpack.i.h.bf16 %v9555_v51  ;;  %v9556_v43 = vunpack.i.l.bf16 %v9555_v51  ;;  %v2447_v15 = vld [vmem:[%s14212_s7 + $0x18] sm:$0xff]  ;;  %v11608_v42 = vld [vmem:[%s14244_s6 + $0x1] ss:$0 sm:$0xff]  ;;  %s487_s6 = sand.u32 1, %s10508_s21  }
 0x58d   : > { %v9560_v62 = vpop.permute.xlu1 %9559  ;;  %2315 = vmatprep.mubr.f32.mxu1 %v2195_v45  ;;  %v11601_v38 = vpack.c.bf16 %v2447_v15, %v2446_v26  ;;  %s8300_s27 = sshll.u32 %s487_s6, 4  ;;  %s14164_s17 = scalar_lea.sflag [#allocation7], %s487_s6 }
 0x58e   : > { %v9562_v7 = vunpack.i.h.bf16 %v9560_v62  ;;  %v9561_v10 = vunpack.i.l.bf16 %v9560_v62  ;;  %2316 = vmatmul.mubr.f32.gmra.mrb[36].mxu1 %v2171_v52  ;;  %v2180_v39 = vsel %vm495_vm1, %v11496_v4, %v9556_v43  ;;  %v2156_v5 = vsel %vm495_vm1, %v11481_v55, %v9557_v29 }
 0x58f   : > { %v9565_v56 = vpop.permute.xlu0 %9564 }
 0x590   : > { %v9567_v41 = vunpack.i.h.bf16 %v9565_v56  ;;  %v9566_v53 = vunpack.i.l.bf16 %v9565_v56  ;;  %v2188_v34 = vsel %vm1323_vm6, %v2180_v39, %v9561_v10  ;;  %v2164_v6 = vsel %vm1323_vm6, %v2156_v5, %v9562_v7 }
 0x591   : > { %v9570_v8 = vpop.permute.xlu1 %9569 }
 0x592   : > { %v9572_v61 = vunpack.i.h.bf16 %v9570_v8  ;;  %v9571_v1 = vunpack.i.l.bf16 %v9570_v8  ;;  %v2196_v35 = vsel %vm1332_vm7, %v2188_v34, %v9566_v53  ;;  %v2172_v50 = vsel %vm1332_vm7, %v2164_v6, %v9567_v41 }
 0x593   : > { %v9575_v9 = vpop.permute.xlu0 %9574  ;;  %2320 = vmatprep.mubr.f32.mxu1 %v2196_v35 }
 0x594   : > { %v9577_v4 = vunpack.i.h.bf16 %v9575_v9  ;;  %v9576_v63 = vunpack.i.l.bf16 %v9575_v9  ;;  %2321 = vmatmul.mubr.f32.gmra.mrb[38].mxu1 %v2172_v50  ;;  %v2181_v49 = vsel %vm495_vm1, %v11505_v12, %v9571_v1  ;;  %v2157_v14 = vsel %vm495_vm1, %v11493_v2, %v9572_v61  ;;  %v2444_v2 = vld [vmem:[%s14212_s7] sm:$0xff] }
 0x595   : > { %v9580_v46 = vpop.permute.xlu1 %9579  ;;  %v11595_v47 = vpack.c.bf16 %v2445_v37, %v2444_v2 }
 0x596   : > { %v9582_v55 = vunpack.i.h.bf16 %v9580_v46  ;;  %v9581_v57 = vunpack.i.l.bf16 %v9580_v46  ;;  %v2189_v19 = vsel %vm1323_vm6, %v2181_v49, %v9576_v63  ;;  %v2165_v60 = vsel %vm1323_vm6, %v2157_v14, %v9577_v4 }
 0x597   : > { %9147 = vmatpush3.bf16.msra.mxu0 %v11595_v47 }
 0x598   : > { %v2197_v31 = vsel %vm1332_vm7, %v2189_v19, %v9581_v57  ;;  %v2173_v17 = vsel %vm1332_vm7, %v2165_v60, %v9582_v55  ;;  %9148 = vmatprep.subr.bf16.mxu0 %v10518_v13 }
 0x599   : > { %2325 = vmatprep.mubr.f32.mxu1 %v2197_v31 }
 0x59a   : > { %2326 = vmatmul.mubr.f32.gmra.mrb[40].mxu1 %v2173_v17 }
 0x59b   : > { %9150 = vmatpush3.bf16.msra.mxu0 %v11601_v38 }
 0x5c8   : > { %v8925_v23 = vpop.f32.mrb[10].mxu0 }
 0x5c9   : > { %v2397_v3 = vpop.f32.mrb[11].mxu0 }
 0x5cc   : > { %v8928_v36 = vpop.f32.mrb[12].mxu0 }
 0x5cd   : > { %v2407_v18 = vpop.f32.mrb[13].mxu0 }
 0x5d0   : > { %v8931_v25 = vpop.f32.mrb[14].mxu0 }
 0x5d1   : > { %v2417_v11 = vpop.f32.mrb[15].mxu0 }
 0x5d4   : > { %v11582_v12 = vpop.f32.mrb[16].mxu0 }
 0x5d5   : > { %v11584_v0 = vpop.f32.mrb[17].mxu0 }
 0x643   : > { %v8641_v59 = vpop.f32.mrb[26].mxu1 }
 0x644   : > { %v8642_v48 = vpop.f32.mrb[27].mxu1 }
 0x645   : > { %v8643_v51 = vadd.f32 %v8642_v48, %v8641_v59 }
 0x647   : > { %v2293_v45 = vadd.f32 %v8643_v51, %v11608_v42 }
 0x649   : > { %v8644_v52 = vpop.f32.mrb[28].mxu1  ;;  %v2398_v29 = vadd.f32 %v2397_v3, %v2293_v45 }
 0x64a   : > { %v8645_v43 = vpop.f32.mrb[29].mxu1 }
 0x64b   : > { %v8646_v62 = vadd.f32 %v8645_v43, %v8644_v52  ;;  %v11619_v14 = vadd.f32 %v2398_v29, %v10714_v22 }
 0x64d   : > { %v2298_v7 = vadd.f32 %v8646_v62, %v11608_v42 }
 0x64f   : > { %v2403_v10 = vadd.f32 %v8925_v23, %v2298_v7  ;;  %v8647_v39 = vpop.f32.mrb[30].mxu1 }
 0x650   : > { %v8648_v5 = vpop.f32.mrb[31].mxu1 }
 0x651   : > { %v8649_v56 = vadd.f32 %v8648_v5, %v8647_v39  ;;  %v11616_v57 = vadd.f32 %v2403_v10, %v10712_v20  ;;  %v2473_v20 = vmul.f32 %v11619_v14, %v11619_v14 }
 0x653   : > { %v2303_v41 = vadd.f32 %v8649_v56, %v11608_v42  ;;  %v2474_v31 = vmul.f32 %v11616_v57, %v11616_v57  ;;  %v2453_v22 = vsel %vm495_vm1, %v11616_v57, 0.0  ;;  %v2481_v59 = vsel %vm495_vm1, %v2473_v20, 0.0 }
 0x655   : > { %v8650_v53 = vpop.f32.mrb[32].mxu1  ;;  %v2408_v8 = vadd.f32 %v2407_v18, %v2303_v41 }
 0x656   : > { %v8651_v61 = vpop.f32.mrb[33].mxu1 }
 0x657   : > { %v8652_v1 = vadd.f32 %v8651_v61, %v8650_v53  ;;  %v11622_v19 = vadd.f32 %v2408_v8, %v10728_v32 }
 0x659   : > { %v2308_v34 = vadd.f32 %v8652_v1, %v11608_v42  ;;  %v2475_v32 = vmul.f32 %v11622_v19, %v11622_v19  ;;  %v2455_v2 = vsel %vm495_vm1, %v11622_v19, 0.0 }
 0x65b   : > { %v2413_v6 = vadd.f32 %v8928_v36, %v2308_v34  ;;  %v8653_v35 = vpop.f32.mrb[34].mxu1  ;;  %v2484_v48 = vsel %vm495_vm1, %v2475_v32, 0.0 }
 0x65c   : > { %v8654_v50 = vpop.f32.mrb[35].mxu1 }
 0x65d   : > { %v8655_v9 = vadd.f32 %v8654_v50, %v8653_v35  ;;  %v11628_v17 = vadd.f32 %v2413_v6, %v10724_v28 }
 0x65f   : > { %v2313_v4 = vadd.f32 %v8655_v9, %v11608_v42  ;;  %v2476_v37 = vmul.f32 %v11628_v17, %v11628_v17  ;;  %v2457_v51 = vsel %vm495_vm1, %v11628_v17, 0.0 }
 0x661   : > { %v8656_v63 = vpop.f32.mrb[36].mxu1  ;;  %v2418_v46 = vadd.f32 %v2417_v11, %v2313_v4  ;;  %v2452_v11 = vsel %vm495_vm1, %v11619_v14, 0.0  ;;  %v2486_v7 = vsel %vm495_vm1, %v2476_v37, 0.0 }
 0x662   : > { %v8657_v55 = vpop.f32.mrb[37].mxu1  ;;  %v2454_v15 = vadd.f32 %v2453_v22, %v2452_v11 }
 0x663   : > { %v8658_v49 = vadd.f32 %v8657_v55, %v8656_v63  ;;  %v11637_v36 = vadd.f32 %v2418_v46, %v10741_v44 }
 0x664   : > { %v2456_v43 = vadd.f32 %v2455_v2, %v2454_v15 }
 0x665   : > { %v2318_v60 = vadd.f32 %v8658_v49, %v11608_v42  ;;  %v2477_v45 = vmul.f32 %v11637_v36, %v11637_v36  ;;  %v2459_v10 = vsel %vm495_vm1, %v11637_v36, 0.0 }
 0x666   : > { %v2458_v41 = vadd.f32 %v2457_v51, %v2456_v43  ;;  %v2722_v51 = vld [vmem:[%s14214_s9 + $0x108] sm:$0xff] }
 0x667   : > { %v2423_v23 = vadd.f32 %v8931_v25, %v2318_v60  ;;  %v8659_v3 = vpop.f32.mrb[38].mxu1  ;;  %v2482_v25 = vsel %vm495_vm1, %v2474_v31, 0.0  ;;  %v2488_v8 = vsel %vm495_vm1, %v2477_v45, 0.0 }
 0x668   : > { %v8660_v18 = vpop.f32.mrb[39].mxu1  ;;  %v2483_v29 = vadd.f32 %v2482_v25, %v2481_v59  ;;  %v2460_v34 = vadd.f32 %v2459_v10, %v2458_v41 }
 0x669   : > { %v8661_v28 = vadd.f32 %v8660_v18, %v8659_v3  ;;  %v11647_v26 = vadd.f32 %v2423_v23, %v10736_v40 }
 0x66a   : > { %v2485_v56 = vadd.f32 %v2484_v48, %v2483_v29  ;;  %v2721_v48 = vld [vmem:[%s14214_s9 + $0x100] sm:$0xff]  ;;  %v2724_v29 = vld [vmem:[%s14214_s9 + $0x118] sm:$0xff] }
 0x66b   : > { %v2323_v44 = vadd.f32 %v8661_v28, %v11608_v42  ;;  %v2478_v39 = vmul.f32 %v11647_v26, %v11647_v26  ;;  %v9183_v45 = vpack.c.bf16 %v2722_v51, %v2721_v48 }
 0x66c   : > { %v2487_v1 = vadd.f32 %v2486_v7, %v2485_v56  ;;  %v2689_v7 = vld [vmem:[%s14214_s9] sm:$0xff]  ;;  %v2708_v56 = vld [vmem:[%s14214_s9 + $0x98] sm:$0xff] }
 0x66d   : > { %v8662_v52 = vpop.f32.mrb[40].mxu1  ;;  %v2428_v62 = vadd.f32 %v11584_v0, %v2323_v44  ;;  %v2461_v0 = vsel %vm495_vm1, %v11647_v26, 0.0  ;;  %v2490_v50 = vsel %vm495_vm1, %v2478_v39, 0.0  ;;  %9184 = vmatprep.subr.bf16.mxu0 %v9183_v45  ;;  %v2690_v39 = vld [vmem:[%s14214_s9 + $0x8] sm:$0xff] }
 0x66e   : > { %v8663_v40 = vpop.f32.mrb[41].mxu1  ;;  %v2462_v9 = vadd.f32 %v2461_v0, %v2460_v34  ;;  %v2489_v4 = vadd.f32 %v2488_v8, %v2487_v1  ;;  %v9153_v41 = vpack.c.bf16 %v2690_v39, %v2689_v7  ;;  %v2691_v0 = vld [vmem:[%s14214_s9 + $0x10] sm:$0xff]  ;;  %v2709_v1 = vld [vmem:[%s14214_s9 + $0xa0] sm:$0xff]  ;;  %v2710_v34 = vld [vmem:[%s14214_s9 + $0xa8] sm:$0xff] }
 0x66f   : > { %v8664_v5 = vadd.f32 %v8663_v40, %v8662_v52  ;;  %v11663_v53 = vadd.f32 %v2428_v62, %v10755_v58  ;;  %v2723_v52 = vld [vmem:[%s14214_s9 + $0x110] sm:$0xff]  ;;  %v2705_v62 = vld [vmem:[%s14214_s9 + $0x80] sm:$0xff]  ;;  %v2706_v40 = vld [vmem:[%s14214_s9 + $0x88] sm:$0xff] }
 0x670   : > { %v2491_v55 = vadd.f32 %v2490_v50, %v2489_v4  ;;  %v9187_v43 = vpack.c.bf16 %v2724_v29, %v2723_v52  ;;  %v9151_v10 = vpack.c.bf16 %v2706_v40, %v2705_v62  ;;  %v2693_v50 = vld [vmem:[%s14214_s9 + $0x20] sm:$0xff]  ;;  %v2712_v4 = vld [vmem:[%s14214_s9 + $0xb8] sm:$0xff] }
 0x671   : > { %v2328_v61 = vadd.f32 %v8664_v5, %v11608_v42  ;;  %v2479_v6 = vmul.f32 %v11663_v53, %v11663_v53  ;;  %v2463_v35 = vsel %vm495_vm1, %v11663_v53, 0.0  ;;  %v2707_v5 = vld [vmem:[%s14214_s9 + $0x90] sm:$0xff]  ;;  %v8389_v39 = vld [vmem:[%s14213_s8] ss:$0 sm:$0xff] }
 0x672   : > { %v2464_v42 = vadd.f32 %v2463_v35, %v2462_v9  ;;  %v9155_v8 = vpack.c.bf16 %v2708_v56, %v2707_v5  ;;  %9152 = vmatprep.subr.bf16.mxu1 %v9151_v10  ;;  %v9159_v35 = vpack.c.bf16 %v2710_v34, %v2709_v1  ;;  %v2711_v9 = vld [vmem:[%s14214_s9 + $0xb0] sm:$0xff] }
 0x673   : > { %v2433_v58 = vadd.f32 %v11582_v12, %v2328_v61  ;;  %v2492_v63 = vsel %vm495_vm1, %v2479_v6, 0.0  ;;  %v2692_v61 = vld [vmem:[%s14214_s9 + $0x18] sm:$0xff]  ;;  %9154 = vmatpush3.bf16.msra.mxu1 %v9153_v41 }
 0x674   : > { %v2493_v31 = vadd.f32 %v2492_v63, %v2491_v55  ;;  %v9157_v6 = vpack.c.bf16 %v2692_v61, %v2691_v0  ;;  %9156 = vmatprep.subr.bf16.mxu1 %v9155_v8  ;;  %v2695_v55 = vld [vmem:[%s14214_s9 + $0x30] sm:$0xff] }
 0x675   : > { %v11677_v46 = vadd.f32 %v2433_v58, %v10750_v54  ;;  %v2694_v58 = vld [vmem:[%s14214_s9 + $0x28] sm:$0xff] }
 0x676   : > { %v9161_v63 = vpack.c.bf16 %v2694_v58, %v2693_v50 }
 0x677   : > { %v2465_v49 = vsel %vm495_vm1, %v11677_v46, 0.0  ;;  %v2480_v60 = vmul.f32 %v11677_v46, %v11677_v46  ;;  %9158 = vmatpush3.bf16.msra.mxu1 %v9157_v6  ;;  %v8390_v6 = vld [vmem:[%s14213_s8 + $0x1] ss:$0 sm:$0xff] }
 0x678   : > { %v2466_v23 = vadd.f32 %v2465_v49, %v2464_v42  ;;  %9160 = vmatprep.subr.bf16.mxu1 %v9159_v35  ;;  %v9163_v42 = vpack.c.bf16 %v2712_v4, %v2711_v9  ;;  %v2696_v49 = vld [vmem:[%s14214_s9 + $0x38] sm:$0xff] }
 0x679   : > { %v2494_v3 = vsel %vm495_vm1, %v2480_v60, 0.0  ;;  %v2713_v60 = vld [vmem:[%s14214_s9 + $0xc0] sm:$0xff] }
 0x67a   : > { %v2467_v12 = vrot.slane %v2466_v23, 4  ;;  %v2495_v20 = vadd.f32 %v2494_v3, %v2493_v31  ;;  %v2714_v31 = vld [vmem:[%s14214_s9 + $0xc8] sm:$0xff] }
 0x67b   : > { %9162 = vmatpush3.bf16.msra.mxu1 %v9161_v63 }
 0x67c   : > { %v2468_v22 = vadd.f32 %v2467_v12, %v2466_v23  ;;  %v2496_v32 = vrot.slane %v2495_v20, 4  ;;  %v9165_v23 = vpack.c.bf16 %v2696_v49, %v2695_v55  ;;  %9164 = vmatprep.subr.bf16.mxu1 %v9163_v42  ;;  %v9167_v12 = vpack.c.bf16 %v2714_v31, %v2713_v60 }
 0x67e   : > { %v2469_v18 = vrot.slane %v2468_v22, 2  ;;  %v2497_v11 = vadd.f32 %v2496_v32, %v2495_v20  ;;  %v2697_v20 = vld [vmem:[%s14214_s9 + $0x40] sm:$0xff] }
 0x67f   : > { %9166 = vmatpush3.bf16.msra.mxu1 %v9165_v23 }
 0x680   : > { %v2470_v54 = vadd.f32 %v2469_v18, %v2468_v22  ;;  %v2498_v28 = vrot.slane %v2497_v11, 2  ;;  %v2698_v22 = vld [vmem:[%s14214_s9 + $0x48] sm:$0xff]  ;;  %9168 = vmatprep.subr.bf16.mxu1 %v9167_v12 }
 0x682   : > { %v2471_v25 = vrot.slane %v2470_v54, 1  ;;  %v2499_v2 = vadd.f32 %v2498_v28, %v2497_v11  ;;  %v2715_v11 = vld [vmem:[%s14214_s9 + $0xd0] sm:$0xff] }
 0x684   : > { %v2500_v37 = vrot.slane %v2499_v2, 1  ;;  %v2472_v15 = vadd.f32 %v2471_v25, %v2470_v54  ;;  %v2716_v54 = vld [vmem:[%s14214_s9 + $0xd8] sm:$0xff]  ;;  %v9169_v25 = vpack.c.bf16 %v2698_v22, %v2697_v20 }
 0x686   : > { %v2501_v44 = vadd.f32 %v2500_v37, %v2499_v2  ;;  %v9171_v2 = vpack.c.bf16 %v2716_v54, %v2715_v11  ;;  %v2699_v37 = vld [vmem:[%s14214_s9 + $0x50] sm:$0xff]  ;;  %9170 = vmatpush3.bf16.msra.mxu1 %v9169_v25 }
 0x688   : > { %v2502_v59 = vsel %vm816_vm3, %v2472_v15, %v2501_v44  ;;  %v2700_v15 = vld [vmem:[%s14214_s9 + $0x58] sm:$0xff]  ;;  %9172 = vmatprep.subr.bf16.mxu1 %v9171_v2 }
 0x689   : > { %8944 = vmatmul.mubr.msk.f32.vlgmr.msra.gmra.mrb[18].mxu0 %vm495_vm1, %v2502_v59  ;;  %v9173_v48 = vpack.c.bf16 %v2700_v15, %v2699_v37 }
 0x68a   : > { %9186 = vmatpush3.bf16.msra.mxu0 %v9183_v45 }
 0x68b   : > { %9188 = vmatprep.subr.bf16.mxu0 %v9187_v43  ;;  %9174 = vmatpush3.bf16.msra.mxu1 %v9173_v48 }
 0x68e   : > { %9190 = vmatpush3.bf16.msra.mxu0 %v9187_v43 }
 0x68f   : > { %9191 = vmatprep.subr.bf16.mxu0 %v10518_v13 }
 0x75c   : > { %v2572_v3 = vpop.f32.mrb[18].mxu0 }
 0x75d   : > { %v2576_v32 = vmul.f32 0.001953125, %v2572_v3  ;;  %v8945_v18 = vpop.f32.mrb[19].mxu0 }
 0x75f   : > { %v2577_v28 = vmul.f32 %v2576_v32, %v2576_v32  ;;  %v2588_v52 = vrot.slane %v2576_v32, %v10967_v21 }
 0x761   : > { %v2579_v44 = vrot.slane %v2577_v28, 7  ;;  %v2589_v43 = vsub.f32 %v11619_v14, %v2588_v52  ;;  %v2590_v62 = vsub.f32 %v11616_v57, %v2588_v52  ;;  %v2591_v40 = vsub.f32 %v11622_v19, %v2588_v52 }
 0x762   : > { %v2592_v7 = vsub.f32 %v11628_v17, %v2588_v52  ;;  %v2593_v5 = vsub.f32 %v11637_v36, %v2588_v52  ;;  %v2594_v56 = vsub.f32 %v11647_v26, %v2588_v52  ;;  %v2595_v41 = vsub.f32 %v11663_v53, %v2588_v52 }
 0x763   : > { %v2581_v59 = vsub.f32 %v2576_v32, %v2579_v44  ;;  %v2596_v8 = vsub.f32 %v11677_v46, %v2588_v52 }
 0x765   : > { %v2582_v51 = vmax.f32 %v2581_v59, 0.0 }
 0x767   : > { %v2583_v45 = vadd.f32 1e-06, %v2582_v51 }
 0x769   : > { %10373 = vrsqrt.f32 %v2583_v45 }
 0x773   : > { %v10374_v29 = vpop.eup %10373 }
 0x774   : > { %v2600_v10 = vrot.slane %v10374_v29, %v10971_v24 }
 0x776   : > { %v2601_v0 = vmul.f32 %v2600_v10, %v2589_v43  ;;  %v2602_v61 = vmul.f32 %v2600_v10, %v2590_v62  ;;  %v2603_v1 = vmul.f32 %v2600_v10, %v2591_v40  ;;  %v2604_v34 = vmul.f32 %v2600_v10, %v2592_v7 }
 0x777   : > { %v2605_v35 = vmul.f32 %v2600_v10, %v2593_v5  ;;  %v2606_v50 = vmul.f32 %v2600_v10, %v2594_v56  ;;  %v2607_v58 = vmul.f32 %v2600_v10, %v2595_v41  ;;  %v2608_v9 = vmul.f32 %v2600_v10, %v2596_v8 }
 0x778   : > { %v2613_v4 = vmul.f32 %v8389_v39, %v2601_v0  ;;  %v2614_v63 = vmul.f32 %v8389_v39, %v2602_v61  ;;  %v2615_v42 = vmul.f32 %v8389_v39, %v2603_v1  ;;  %v2616_v55 = vmul.f32 %v8389_v39, %v2604_v34 }
 0x779   : > { %v2617_v49 = vmul.f32 %v8389_v39, %v2605_v35  ;;  %v2618_v60 = vmul.f32 %v8389_v39, %v2606_v50  ;;  %v2619_v31 = vmul.f32 %v8389_v39, %v2607_v58  ;;  %v2620_v23 = vmul.f32 %v8389_v39, %v2608_v9  ;;  %v2717_v58 = vld [vmem:[%s14214_s9 + $0xe0] sm:$0xff]  ;;  %v2718_v9 = vld [vmem:[%s14214_s9 + $0xe8] sm:$0xff] }
 0x77a   : > { %v2625_v3 = vadd.f32 %v8390_v6, %v2613_v4  ;;  %v2626_v12 = vadd.f32 %v8390_v6, %v2614_v63  ;;  %v2627_v20 = vadd.f32 %v8390_v6, %v2615_v42  ;;  %v2628_v22 = vadd.f32 %v8390_v6, %v2616_v55  ;;  %v2701_v4 = vld [vmem:[%s14214_s9 + $0x60] sm:$0xff] }
 0x77b   : > { %v2629_v32 = vadd.f32 %v8390_v6, %v2617_v49  ;;  %v11787_v18 = vadd.f32 %v8390_v6, %v2618_v60  ;;  %v11789_v11 = vadd.f32 %v8390_v6, %v2619_v31  ;;  %v11791_v2 = vadd.f32 %v8390_v6, %v2620_v23  ;;  %v2702_v49 = vld [vmem:[%s14214_s9 + $0x68] sm:$0xff] }
 0x77c   : > { %v8391_v54 = vmul.f32 -1.442695, %v2625_v3  ;;  %v8392_v28 = vmul.f32 -1.442695, %v2626_v12  ;;  %v8393_v25 = vmul.f32 -1.442695, %v2627_v20  ;;  %v9175_v55 = vpack.c.bf16 %v2718_v9, %v2717_v58 }
 0x77d   : > { %v8394_v37 = vmul.f32 -1.442695, %v2628_v22  ;;  %v8395_v15 = vmul.f32 -1.442695, %v2629_v32  ;;  %v8396_v44 = vmul.f32 -1.442695, %v11787_v18  ;;  %v9177_v23 = vpack.c.bf16 %v2702_v49, %v2701_v4 }
 0x77e   : > { %10375 = vpow2.f32 %v8391_v54  ;;  %v8397_v59 = vmul.f32 -1.442695, %v11789_v11  ;;  %v8398_v48 = vmul.f32 -1.442695, %v11791_v2  ;;  %9176 = vmatprep.subr.bf16.mxu1 %v9175_v55  ;;  %v2720_v54 = vld [vmem:[%s14214_s9 + $0xf8] sm:$0xff] }
 0x77f   : > { %10377 = vpow2.f32 %v8392_v28  ;;  %9178 = vmatpush3.bf16.msra.mxu1 %v9177_v23 }
 0x780   : > { %10379 = vpow2.f32 %v8393_v25 }
 0x781   : > { %10381 = vpow2.f32 %v8394_v37  ;;  %v2704_v37 = vld [vmem:[%s14214_s9 + $0x78] sm:$0xff] }
 0x782   : > { %10383 = vpow2.f32 %v8395_v15 }
 0x783   : > { %10385 = vpow2.f32 %v8396_v44 }
 0x784   : > { %10387 = vpow2.f32 %v8397_v59 }
 0x785   : > { %10389 = vpow2.f32 %v8398_v48 }
 0x788   : > { %v10376_v51 = vpop.eup %10375 }
 0x789   : > { %v10378_v45 = vpop.eup %10377  ;;  %v2657_v52 = vadd.f32 1.0, %v10376_v51  ;;  %v2742_v51 = vld [vmem:[#allocation2 + $0x1] sm:$0xff] }
 0x78a   : > { %v10380_v29 = vpop.eup %10379  ;;  %v2658_v43 = vadd.f32 1.0, %v10378_v45 }
 0x78b   : > { %v10382_v62 = vpop.eup %10381  ;;  %v2659_v40 = vadd.f32 1.0, %v10380_v29  ;;  %10391 = vrcp.f32 %v2657_v52 }
 0x78c   : > { %v10384_v7 = vpop.eup %10383  ;;  %v2660_v10 = vadd.f32 1.0, %v10382_v62  ;;  %10393 = vrcp.f32 %v2658_v43 }
 0x78d   : > { %v10386_v39 = vpop.eup %10385  ;;  %v2661_v5 = vadd.f32 1.0, %v10384_v7  ;;  %10395 = vrcp.f32 %v2659_v40 }
 0x78e   : > { %v10388_v56 = vpop.eup %10387  ;;  %v2662_v41 = vadd.f32 1.0, %v10386_v39  ;;  %10397 = vrcp.f32 %v2660_v10 }
 0x78f   : > { %v10390_v8 = vpop.eup %10389  ;;  %v2663_v0 = vadd.f32 1.0, %v10388_v56  ;;  %10399 = vrcp.f32 %v2661_v5 }
 0x790   : > { %v2664_v61 = vadd.f32 1.0, %v10390_v8  ;;  %10401 = vrcp.f32 %v2662_v41 }
 0x791   : > { %10403 = vrcp.f32 %v2663_v0 }
 0x792   : > { %10405 = vrcp.f32 %v2664_v61 }
 0x795   : > { %v10392_v1 = vpop.eup %10391 }
 0x796   : > { %v10394_v34 = vpop.eup %10393  ;;  %v2681_v6 = vmul.f32 %v10392_v1, %v2625_v3 }
 0x797   : > { %v10396_v35 = vpop.eup %10395  ;;  %v2682_v50 = vmul.f32 %v10394_v34, %v2626_v12 }
 0x798   : > { %v10398_v63 = vpop.eup %10397  ;;  %v2683_v42 = vmul.f32 %v10396_v35, %v2627_v20  ;;  %2726 = vst.msk [vmem:[#allocation2 + $0x11] sm:$0xff] %vm495_vm1, %v2681_v6  ;;  %v2719_v20 = vld [vmem:[%s14214_s9 + $0xf0] sm:$0xff] }
 0x799   : > { %v10400_v60 = vpop.eup %10399  ;;  %v2684_v31 = vmul.f32 %v10398_v63, %v2628_v22  ;;  %2727 = vst.msk [vmem:[#allocation2 + $0x21] sm:$0xff] %vm495_vm1, %v2682_v50  ;;  %v2703_v22 = vld [vmem:[%s14214_s9 + $0x70] sm:$0xff] }
 0x79a   : > { %v10402_v3 = vpop.eup %10401  ;;  %v2685_v12 = vmul.f32 %v10400_v60, %v2629_v32  ;;  %2728 = vst.msk [vmem:[#allocation2 + $0x31] sm:$0xff] %vm495_vm1, %v2683_v42  ;;  %v9179_v32 = vpack.c.bf16 %v2720_v54, %v2719_v20  ;;  %v9181_v59 = vpack.c.bf16 %v2704_v37, %v2703_v22 }
 0x79b   : > { %v10404_v28 = vpop.eup %10403  ;;  %v2686_v25 = vmul.f32 %v10402_v3, %v11787_v18  ;;  %2729 = vst.msk [vmem:[#allocation2 + $0x41] sm:$0xff] %vm495_vm1, %v2684_v31  ;;  %v2750_v18 = vld [vmem:[#allocation2 + $0x2] sm:$0xff] }
 0x79c   : > { %v10406_v15 = vpop.eup %10405  ;;  %v2687_v44 = vmul.f32 %v10404_v28, %v11789_v11  ;;  %2730 = vst.msk [vmem:[#allocation2 + $0x51] sm:$0xff] %vm495_vm1, %v2685_v12  ;;  %9180 = vmatprep.subr.bf16.mxu1 %v9179_v32 }
 0x79d   : > { %v2688_v48 = vmul.f32 %v10406_v15, %v11791_v2  ;;  %2731 = vst.msk [vmem:[#allocation2 + $0x61] sm:$0xff] %vm495_vm1, %v2686_v25  ;;  %9182 = vmatpush3.bf16.msra.mxu1 %v9181_v59 }
 0x79e   : > { %2732 = vst.msk [vmem:[#allocation2 + $0x71] sm:$0xff] %vm495_vm1, %v2687_v44  ;;  %v2805_v44 = vld [vmem:[#allocation2 + $0x92] sm:$0xff] }
 0x79f   : > { %2733 = vst.msk [vmem:[#allocation2 + $0x81] sm:$0xff] %vm495_vm1, %v2688_v48  ;;  %v2774_v45 = vld [vmem:[#allocation2 + $0x12] sm:$0xff] }
 0x7a0   : > { %v2798_v52 = vld [vmem:[#allocation2 + $0x22] sm:$0xff]  ;;  %v9583_v11 = vpack.i.bf16 %v2742_v51, %v2774_v45  ;;  %v11835_v62 = vld [vmem:[#allocation2 + $0x10] sm:$0xff] }
 0x7a1   : > { %v11831_v29 = vld [vmem:[#allocation2 + $0x20] sm:$0xff]  ;;  %8954 = vmatprep.mubr.msk.f32.mxu0 %vm495_vm1, %v2798_v52  ;;  %v2799_v43 = vld [vmem:[#allocation2 + $0x32] sm:$0xff] }
 0x7a2   : > { %v9588_v2 = vpack.i.bf16 %v2750_v18, %v11831_v29  ;;  %v11837_v40 = vld [vmem:[#allocation2 + $0x21] sm:$0xff]  ;;  %8955 = vmatmul.mubr.msk.f32.vlgmr.msra.gmra.mrb[20].mxu0 %vm495_vm1, %v2799_v43  ;;  %9584 = vrot.lane.b32.xlu0 %v9583_v11, %s14245_s3  ;;  %v11841_v10 = vld [vmem:[#allocation2 + $0x11] sm:$0xff] }
 0x7a3   : > { %v2800_v7 = vld [vmem:[#allocation2 + $0x42] sm:$0xff]  ;;  %v9593_v39 = vpack.i.bf16 %v11835_v62, %v11837_v40  ;;  %9193 = vmatpush3.bf16.msra.mxu0 %v11595_v47  ;;  %v2801_v5 = vld [vmem:[#allocation2 + $0x52] sm:$0xff]  ;;  %v9598_v56 = vpack.i.bf16 %v11841_v10, %v2798_v52  ;;  %v9613_v35 = vpack.i.bf16 %v11837_v40, %v2799_v43 }
 0x7a4   : > { %8957 = vmatprep.mubr.msk.f32.mxu0 %vm495_vm1, %v2800_v7  ;;  %9589 = vrot.lane.b32.xlu1 %v9588_v2, %s14246_s16  ;;  %v11849_v41 = vld [vmem:[#allocation2 + $0x30] sm:$0xff]  ;;  %v2802_v8 = vld [vmem:[#allocation2 + $0x62] sm:$0xff] }
 0x7a5   : > { %9194 = vmatprep.subr.bf16.mxu0 %v10518_v13  ;;  %v11854_v0 = vld [vmem:[#allocation2 + $0x31] sm:$0xff]  ;;  %v9603_v47 = vpack.i.bf16 %v2774_v45, %v11849_v41  ;;  %v11864_v6 = vld [vmem:[#allocation2 + $0x40] sm:$0xff] }
 0x7a6   : > { %8958 = vmatmul.mubr.msk.f32.gmra.mrb[22].mxu0 %vm495_vm1, %v2801_v5  ;;  %9594 = vrot.lane.b32.xlu0 %v9593_v39, %s14247_s18  ;;  %v2803_v61 = vld [vmem:[#allocation2 + $0x72] sm:$0xff]  ;;  %v9608_v1 = vpack.i.bf16 %v11831_v29, %v11854_v0  ;;  %v2804_v34 = vld [vmem:[#allocation2 + $0x82] sm:$0xff]  ;;  %v9618_v50 = vpack.i.bf16 %v2798_v52, %v11864_v6  ;;  %v9628_v9 = vpack.i.bf16 %v11854_v0, %v2800_v7 }
 0x7a7   : > { %8960 = vmatprep.mubr.msk.f32.mxu0 %vm495_vm1, %v2802_v8  ;;  %9196 = vmatpush3.bf16.msra.mxu0 %v11601_v38  ;;  %v11870_v38 = vld [vmem:[#allocation2 + $0x41] sm:$0xff]  ;;  %v11877_v4 = vld [vmem:[#allocation2 + $0x50] sm:$0xff] }
 0x7a8   : > { %9599 = vrot.lane.b32.xlu1 %v9598_v56, %s14245_s3  ;;  %v9623_v58 = vpack.i.bf16 %v11849_v41, %v11870_v38  ;;  %v11880_v63 = vld [vmem:[#allocation2 + $0x51] sm:$0xff]  ;;  %v9633_v42 = vpack.i.bf16 %v2799_v43, %v11877_v4  ;;  %v11887_v49 = vld [vmem:[#allocation2 + $0x60] sm:$0xff]  ;;  %v9643_v60 = vpack.i.bf16 %v11870_v38, %v2801_v5 }
 0x7a9   : > { %v9638_v55 = vpack.i.bf16 %v11864_v6, %v11880_v63  ;;  %v9648_v31 = vpack.i.bf16 %v2800_v7, %v11887_v49  ;;  %v11892_v23 = vld [vmem:[#allocation2 + $0x61] sm:$0xff]  ;;  %v9658_v12 = vpack.i.bf16 %v11880_v63, %v2802_v8  ;;  %v11899_v20 = vld [vmem:[#allocation2 + $0x70] sm:$0xff] }
 0x7aa   : > { %8961 = vmatmul.mubr.msk.f32.gmra.mrb[24].mxu0 %vm495_vm1, %v2803_v61  ;;  %9604 = vrot.lane.b32.xlu0 %v9603_v47, %s14246_s16  ;;  %v9653_v3 = vpack.i.bf16 %v11877_v4, %v11892_v23  ;;  %v11902_v54 = vld [vmem:[#allocation2 + $0x71] sm:$0xff]  ;;  %v9663_v22 = vpack.i.bf16 %v2801_v5, %v11899_v20  ;;  %v2788_v25 = vld [vmem:[#allocation2 + $0x80] sm:$0xff]  ;;  %v9673_v32 = vpack.i.bf16 %v11892_v23, %v2803_v61 }
 0x7ab   : > { %8963 = vmatprep.mubr.msk.f32.mxu0 %vm495_vm1, %v2804_v34  ;;  %v9668_v28 = vpack.i.bf16 %v11887_v49, %v11902_v54  ;;  %v9678_v37 = vpack.i.bf16 %v2802_v8, %v2788_v25  ;;  %v11911_v15 = vld [vmem:[#allocation2 + $0x81] sm:$0xff]  ;;  %v9688_v48 = vpack.i.bf16 %v11902_v54, %v2804_v34  ;;  %v2789_v51 = vld [vmem:[#allocation2 + $0x90] sm:$0xff] }
 0x7ac   : > { %9609 = vrot.lane.b32.xlu1 %v9608_v1, %s14247_s18  ;;  %v9683_v59 = vpack.i.bf16 %v11899_v20, %v11911_v15  ;;  %v2797_v18 = vld [vmem:[#allocation2 + $0x91] sm:$0xff]  ;;  %v9693_v45 = vpack.i.bf16 %v2803_v61, %v2789_v51  ;;  %v2734_v11 = vld [vmem:[#allocation2] sm:$0xff] }
 0x7ad   : > { %v9698_v52 = vpack.i.bf16 %v2788_v25, %v2797_v18 }
 0x7ae   : > { %9614 = vrot.lane.b32.xlu0 %v9613_v35, %s14245_s3  ;;  %8964 = vmatmul.mubr.msk.f32.gmra.mrb[26].mxu0 %vm495_vm1, %v2805_v44 }
 0x7af   : > { %8974 = vmatprep.mubr.msk.f32.mxu0 %vm10519_vm2, %v10520_v16  ;;  %vm8207_vm2 = vcmask 1047559  }
 0x7b0   : > { %9619 = vrot.lane.b32.xlu1 %v9618_v50, %s14246_s16 }
 0x7b2   : > { %9624 = vrot.lane.b32.xlu0 %v9623_v58, %s14247_s18 }
 0x7b4   : > { %9629 = vrot.lane.b32.xlu1 %v9628_v9, %s14245_s3 }
 0x7b6   : > { %9634 = vrot.lane.b32.xlu0 %v9633_v42, %s14246_s16 }
 0x7b8   : > { %9639 = vrot.lane.b32.xlu1 %v9638_v55, %s14247_s18 }
 0x7ba   : > { %9644 = vrot.lane.b32.xlu0 %v9643_v60, %s14245_s3 }
 0x7bc   : > { %9649 = vrot.lane.b32.xlu1 %v9648_v31, %s14246_s16 }
 0x7be   : > { %9654 = vrot.lane.b32.xlu0 %v9653_v3, %s14247_s18 }
 0x7c0   : > { %9659 = vrot.lane.b32.xlu1 %v9658_v12, %s14245_s3 }
 0x7c2   : > { %9664 = vrot.lane.b32.xlu0 %v9663_v22, %s14246_s16 }
 0x7c4   : > { %9669 = vrot.lane.b32.xlu1 %v9668_v28, %s14247_s18 }
 0x7c6   : > { %9674 = vrot.lane.b32.xlu0 %v9673_v32, %s14245_s3 }
 0x7c8   : > { %9679 = vrot.lane.b32.xlu1 %v9678_v37, %s14246_s16 }
 0x7ca   : > { %9684 = vrot.lane.b32.xlu0 %v9683_v59, %s14247_s18 }
 0x7cc   : > { %9689 = vrot.lane.b32.xlu1 %v9688_v48, %s14245_s3 }
 0x7ce   : > { %9694 = vrot.lane.b32.xlu0 %v9693_v45, %s14246_s16 }
 0x7d0   : > { %9699 = vrot.lane.b32.xlu1 %v9698_v52, %s14247_s18 }
 0x814   : > { %v9585_v43 = vpop.permute.xlu0 %9584 }
 0x815   : > { %v9587_v7 = vunpack.i.h.bf16 %v9585_v43  ;;  %v9586_v39 = vunpack.i.l.bf16 %v9585_v43 }
 0x816   : > { %v9590_v2 = vpop.permute.xlu1 %9589 }
 0x817   : > { %v9592_v5 = vunpack.i.h.bf16 %v9590_v2  ;;  %v9591_v56 = vunpack.i.l.bf16 %v9590_v2  ;;  %v2998_v8 = vsel %vm495_vm1, %v2734_v11, %v9587_v7  ;;  %v3022_v47 = vsel %vm495_vm1, %v11841_v10, %v9586_v39 }
 0x818   : > { %v9595_v1 = vpop.permute.xlu0 %9594 }
 0x819   : > { %v9597_v34 = vunpack.i.h.bf16 %v9595_v1  ;;  %v9596_v61 = vunpack.i.l.bf16 %v9595_v1  ;;  %v3030_v9 = vsel %vm1323_vm6, %v3022_v47, %v9591_v56  ;;  %v3006_v42 = vsel %vm1323_vm6, %v2998_v8, %v9592_v5 }
 0x81a   : > { %v9600_v35 = vpop.permute.xlu1 %9599 }
 0x81b   : > { %v9602_v50 = vunpack.i.h.bf16 %v9600_v35  ;;  %v9601_v58 = vunpack.i.l.bf16 %v9600_v35  ;;  %v3038_v55 = vsel %vm1332_vm7, %v3030_v9, %v9596_v61  ;;  %v3014_v60 = vsel %vm1332_vm7, %v3006_v42, %v9597_v34 }
 0x81c   : > { %3138 = vmatprep.mubr.f32.mxu1 %v3038_v55  ;;  %v9605_v31 = vpop.permute.xlu0 %9604 }
 0x81d   : > { %v9607_v3 = vunpack.i.h.bf16 %v9605_v31  ;;  %v9606_v12 = vunpack.i.l.bf16 %v9605_v31  ;;  %3139 = vmatmul.mubr.f32.vlgmr.msra.gmra.mrb[42].mxu1 %v3014_v60  ;;  %v3023_v25 = vsel %vm495_vm1, %v11837_v40, %v9601_v58  ;;  %v2999_v32 = vsel %vm495_vm1, %v11835_v62, %v9602_v50 }
 0x81e   : > { %v9610_v22 = vpop.permute.xlu1 %9609 }
 0x81f   : > { %v9612_v10 = vunpack.i.h.bf16 %v9610_v22  ;;  %v9611_v28 = vunpack.i.l.bf16 %v9610_v22  ;;  %v3031_v37 = vsel %vm1323_vm6, %v3023_v25, %v9606_v12  ;;  %v3007_v44 = vsel %vm1323_vm6, %v2999_v32, %v9607_v3 }
 0x820   : > { %v9615_v59 = vpop.permute.xlu0 %9614 }
 0x821   : > { %v3039_v48 = vsel %vm1332_vm7, %v3031_v37, %v9611_v28  ;;  %v3015_v51 = vsel %vm1332_vm7, %v3007_v44, %v9612_v10  ;;  %v9617_v18 = vunpack.i.h.bf16 %v9615_v59  ;;  %v9616_v45 = vunpack.i.l.bf16 %v9615_v59 }
 0x822   : > { %v9620_v52 = vpop.permute.xlu1 %9619  ;;  %3143 = vmatprep.mubr.f32.mxu1 %v3039_v48 }
 0x823   : > { %v9622_v11 = vunpack.i.h.bf16 %v9620_v52  ;;  %v9621_v43 = vunpack.i.l.bf16 %v9620_v52  ;;  %3144 = vmatmul.mubr.f32.gmra.mrb[44].mxu1 %v3015_v51  ;;  %v3024_v40 = vsel %vm495_vm1, %v11854_v0, %v9616_v45  ;;  %v3000_v62 = vsel %vm495_vm1, %v11831_v29, %v9617_v18 }
 0x824   : > { %v9625_v2 = vpop.permute.xlu0 %9624 }
 0x825   : > { %v9627_v7 = vunpack.i.h.bf16 %v9625_v2  ;;  %v9626_v39 = vunpack.i.l.bf16 %v9625_v2  ;;  %v3032_v47 = vsel %vm1323_vm6, %v3024_v40, %v9621_v43  ;;  %v3008_v1 = vsel %vm1323_vm6, %v3000_v62, %v9622_v11 }
 0x826   : > { %v9630_v5 = vpop.permute.xlu1 %9629 }
 0x827   : > { %v9632_v56 = vunpack.i.h.bf16 %v9630_v5  ;;  %v9631_v8 = vunpack.i.l.bf16 %v9630_v5  ;;  %v3040_v34 = vsel %vm1332_vm7, %v3032_v47, %v9626_v39  ;;  %v3016_v61 = vsel %vm1332_vm7, %v3008_v1, %v9627_v7 }
 0x828   : > { %v9635_v35 = vpop.permute.xlu0 %9634  ;;  %3148 = vmatprep.mubr.f32.mxu1 %v3040_v34 }
 0x829   : > { %v9637_v0 = vunpack.i.h.bf16 %v9635_v35  ;;  %v9636_v50 = vunpack.i.l.bf16 %v9635_v35  ;;  %3149 = vmatmul.mubr.f32.gmra.mrb[46].mxu1 %v3016_v61  ;;  %v3025_v42 = vsel %vm495_vm1, %v11870_v38, %v9631_v8  ;;  %v3001_v55 = vsel %vm495_vm1, %v11849_v41, %v9632_v56 }
 0x82a   : > { %v9640_v58 = vpop.permute.xlu1 %9639 }
 0x82b   : > { %v9642_v29 = vunpack.i.h.bf16 %v9640_v58  ;;  %v9641_v9 = vunpack.i.l.bf16 %v9640_v58  ;;  %v3033_v60 = vsel %vm1323_vm6, %v3025_v42, %v9636_v50  ;;  %v3009_v31 = vsel %vm1323_vm6, %v3001_v55, %v9637_v0 }
 0x82c   : > { %v9645_v3 = vpop.permute.xlu0 %9644 }
 0x82d   : > { %v3041_v12 = vsel %vm1332_vm7, %v3033_v60, %v9641_v9  ;;  %v3017_v22 = vsel %vm1332_vm7, %v3009_v31, %v9642_v29  ;;  %v9647_v10 = vunpack.i.h.bf16 %v9645_v3  ;;  %v9646_v28 = vunpack.i.l.bf16 %v9645_v3 }
 0x82e   : > { %v9650_v25 = vpop.permute.xlu1 %9649  ;;  %3153 = vmatprep.mubr.f32.mxu1 %v3041_v12 }
 0x82f   : > { %v9652_v32 = vunpack.i.h.bf16 %v9650_v25  ;;  %v9651_v37 = vunpack.i.l.bf16 %v9650_v25  ;;  %3154 = vmatmul.mubr.f32.gmra.mrb[48].mxu1 %v3017_v22  ;;  %v3026_v38 = vsel %vm495_vm1, %v11880_v63, %v9646_v28  ;;  %v3002_v41 = vsel %vm495_vm1, %v11864_v6, %v9647_v10 }
 0x830   : > { %v9655_v44 = vpop.permute.xlu0 %9654 }
 0x831   : > { %v9657_v59 = vunpack.i.h.bf16 %v9655_v44  ;;  %v9656_v48 = vunpack.i.l.bf16 %v9655_v44  ;;  %v3034_v52 = vsel %vm1323_vm6, %v3026_v38, %v9651_v37  ;;  %v3010_v11 = vsel %vm1323_vm6, %v3002_v41, %v9652_v32 }
 0x832   : > { %v9660_v51 = vpop.permute.xlu1 %9659 }
 0x833   : > { %v9662_v18 = vunpack.i.h.bf16 %v9660_v51  ;;  %v9661_v45 = vunpack.i.l.bf16 %v9660_v51  ;;  %v3042_v43 = vsel %vm1332_vm7, %v3034_v52, %v9656_v48  ;;  %v3018_v40 = vsel %vm1332_vm7, %v3010_v11, %v9657_v59 }
 0x834   : > { %v9665_v62 = vpop.permute.xlu0 %9664  ;;  %3158 = vmatprep.mubr.f32.mxu1 %v3042_v43 }
 0x835   : > { %v9667_v63 = vunpack.i.h.bf16 %v9665_v62  ;;  %v9666_v2 = vunpack.i.l.bf16 %v9665_v62  ;;  %3159 = vmatmul.mubr.f32.gmra.mrb[50].mxu1 %v3018_v40  ;;  %v3027_v5 = vsel %vm495_vm1, %v11892_v23, %v9661_v45  ;;  %v3003_v56 = vsel %vm495_vm1, %v11877_v4, %v9662_v18 }
 0x836   : > { %v9670_v7 = vpop.permute.xlu1 %9669 }
 0x837   : > { %v9672_v6 = vunpack.i.h.bf16 %v9670_v7  ;;  %v9671_v39 = vunpack.i.l.bf16 %v9670_v7  ;;  %v3035_v8 = vsel %vm1323_vm6, %v3027_v5, %v9666_v2  ;;  %v3011_v47 = vsel %vm1323_vm6, %v3003_v56, %v9667_v63  ;;  %v11993_v2 = vld [vmem:[%s14215_s10] ss:$0 sm:$0xff] }
 0x838   : > { %v9675_v1 = vpop.permute.xlu0 %9674 }
 0x839   : > { %v3043_v34 = vsel %vm1332_vm7, %v3035_v8, %v9671_v39  ;;  %v3019_v61 = vsel %vm1332_vm7, %v3011_v47, %v9672_v6  ;;  %v9677_v35 = vunpack.i.h.bf16 %v9675_v1  ;;  %v9676_v0 = vunpack.i.l.bf16 %v9675_v1 }
 0x83a   : > { %v9680_v50 = vpop.permute.xlu1 %9679  ;;  %3163 = vmatprep.mubr.f32.mxu1 %v3043_v34 }
 0x83b   : > { %v9682_v58 = vunpack.i.h.bf16 %v9680_v50  ;;  %v9681_v29 = vunpack.i.l.bf16 %v9680_v50  ;;  %3164 = vmatmul.mubr.f32.gmra.mrb[52].mxu1 %v3019_v61  ;;  %v3028_v23 = vsel %vm495_vm1, %v11902_v54, %v9676_v0  ;;  %v3004_v4 = vsel %vm495_vm1, %v11887_v49, %v9677_v35 }
 0x83c   : > { %v9685_v9 = vpop.permute.xlu0 %9684 }
 0x83d   : > { %v9687_v42 = vunpack.i.h.bf16 %v9685_v9  ;;  %v9686_v55 = vunpack.i.l.bf16 %v9685_v9  ;;  %v3036_v12 = vsel %vm1323_vm6, %v3028_v23, %v9681_v29  ;;  %v3012_v22 = vsel %vm1323_vm6, %v3004_v4, %v9682_v58 }
 0x83e   : > { %v9690_v60 = vpop.permute.xlu1 %9689 }
 0x83f   : > { %v9692_v31 = vunpack.i.h.bf16 %v9690_v60  ;;  %v9691_v3 = vunpack.i.l.bf16 %v9690_v60  ;;  %v3044_v10 = vsel %vm1332_vm7, %v3036_v12, %v9686_v55  ;;  %v3020_v28 = vsel %vm1332_vm7, %v3012_v22, %v9687_v42 }
 0x840   : > { %v9695_v25 = vpop.permute.xlu0 %9694  ;;  %3168 = vmatprep.mubr.f32.mxu1 %v3044_v10 }
 0x841   : > { %v9697_v54 = vunpack.i.h.bf16 %v9695_v25  ;;  %v9696_v32 = vunpack.i.l.bf16 %v9695_v25  ;;  %3169 = vmatmul.mubr.f32.gmra.mrb[54].mxu1 %v3020_v28  ;;  %v3029_v41 = vsel %vm495_vm1, %v11911_v15, %v9691_v3  ;;  %v3005_v44 = vsel %vm495_vm1, %v11899_v20, %v9692_v31 }
 0x842   : > { %v9700_v37 = vpop.permute.xlu1 %9699 }
 0x843   : > { %v9702_v49 = vunpack.i.h.bf16 %v9700_v37  ;;  %v9701_v38 = vunpack.i.l.bf16 %v9700_v37  ;;  %v3037_v59 = vsel %vm1323_vm6, %v3029_v41, %v9696_v32  ;;  %v3013_v48 = vsel %vm1323_vm6, %v3005_v44, %v9697_v54 }
 0x845   : > { %v3045_v51 = vsel %vm1332_vm7, %v3037_v59, %v9701_v38  ;;  %v3021_v18 = vsel %vm1332_vm7, %v3013_v48, %v9702_v49 }
 0x846   : > { %3173 = vmatprep.mubr.f32.mxu1 %v3045_v51 }
 0x847   : > { %3174 = vmatmul.mubr.f32.gmra.mrb[56].mxu1 %v3021_v18 }
 0x875   : > { %v8956_v45 = vpop.f32.mrb[20].mxu0 }
 0x876   : > { %v3245_v52 = vpop.f32.mrb[21].mxu0 }
 0x879   : > { %v8959_v11 = vpop.f32.mrb[22].mxu0 }
 0x87a   : > { %v3255_v43 = vpop.f32.mrb[23].mxu0 }
 0x87d   : > { %v8962_v40 = vpop.f32.mrb[24].mxu0 }
 0x87e   : > { %v3265_v62 = vpop.f32.mrb[25].mxu0 }
 0x881   : > { %v11988_v15 = vpop.f32.mrb[26].mxu0 }
 0x882   : > { %v3275_v63 = vpop.f32.mrb[27].mxu0 }
 0x8f0   : > { %v8714_v20 = vpop.f32.mrb[42].mxu1 }
 0x8f1   : > { %v8715_v7 = vpop.f32.mrb[43].mxu1 }
 0x8f2   : > { %v8716_v6 = vadd.f32 %v8715_v7, %v8714_v20 }
 0x8f4   : > { %v3141_v39 = vadd.f32 %v8716_v6, %v11993_v2 }
 0x8f6   : > { %v8717_v5 = vpop.f32.mrb[44].mxu1  ;;  %v11996_v56 = vadd.f32 %v3245_v52, %v3141_v39 }
 0x8f7   : > { %v8718_v8 = vpop.f32.mrb[45].mxu1 }
 0x8f8   : > { %v8719_v47 = vadd.f32 %v8718_v8, %v8717_v5  ;;  %v3305_v32 = vmul.f32 %v11996_v56, %v11996_v56  ;;  %v3284_v44 = vsel %vm495_vm1, %v11996_v56, 0.0 }
 0x8fa   : > { %v3146_v1 = vadd.f32 %v8719_v47, %v11993_v2 }
 0x8fc   : > { %v11999_v34 = vadd.f32 %v8956_v45, %v3146_v1  ;;  %v8720_v61 = vpop.f32.mrb[46].mxu1 }
 0x8fd   : > { %v8721_v35 = vpop.f32.mrb[47].mxu1 }
 0x8fe   : > { %v8722_v0 = vadd.f32 %v8721_v35, %v8720_v61  ;;  %v3306_v25 = vmul.f32 %v11999_v34, %v11999_v34  ;;  %v3285_v37 = vsel %vm495_vm1, %v11999_v34, 0.0 }
 0x8ff   : > { %v3286_v45 = vadd.f32 %v3285_v37, %v3284_v44 }
 0x900   : > { %v3151_v50 = vadd.f32 %v8722_v0, %v11993_v2  ;;  %v3314_v59 = vsel %vm495_vm1, %v3306_v25, 0.0 }
 0x902   : > { %v8723_v58 = vpop.f32.mrb[48].mxu1  ;;  %v12002_v29 = vadd.f32 %v3255_v43, %v3151_v50 }
 0x903   : > { %v8724_v23 = vpop.f32.mrb[49].mxu1 }
 0x904   : > { %v8725_v4 = vadd.f32 %v8724_v23, %v8723_v58  ;;  %v3307_v49 = vmul.f32 %v12002_v29, %v12002_v29  ;;  %v3287_v48 = vsel %vm495_vm1, %v12002_v29, 0.0 }
 0x905   : > { %v3288_v7 = vadd.f32 %v3287_v48, %v3286_v45 }
 0x906   : > { %v3156_v9 = vadd.f32 %v8725_v4, %v11993_v2  ;;  %v3316_v43 = vsel %vm495_vm1, %v3307_v49, 0.0 }
 0x908   : > { %v12005_v42 = vadd.f32 %v8959_v11, %v3156_v9  ;;  %v8726_v55 = vpop.f32.mrb[50].mxu1  ;;  %v3313_v11 = vsel %vm495_vm1, %v3305_v32, 0.0 }
 0x909   : > { %v8727_v60 = vpop.f32.mrb[51].mxu1  ;;  %v3315_v20 = vadd.f32 %v3314_v59, %v3313_v11 }
 0x90a   : > { %v8728_v31 = vadd.f32 %v8727_v60, %v8726_v55  ;;  %v3308_v51 = vmul.f32 %v12005_v42, %v12005_v42 }
 0x90b   : > { %v3317_v1 = vadd.f32 %v3316_v43, %v3315_v20 }
 0x90c   : > { %v3161_v3 = vadd.f32 %v8728_v31, %v11993_v2  ;;  %v3318_v39 = vsel %vm495_vm1, %v3308_v51, 0.0 }
 0x90d   : > { %v3319_v4 = vadd.f32 %v3318_v39, %v3317_v1  ;;  %v8452_v39 = vld [vmem:[%s14214_s9 + $0x228] sm:$0xff] }
 0x90e   : > { %v8729_v12 = vpop.f32.mrb[52].mxu1  ;;  %v12008_v22 = vadd.f32 %v3265_v62, %v3161_v3 }
 0x90f   : > { %v8730_v10 = vpop.f32.mrb[53].mxu1 }
 0x910   : > { %v8731_v28 = vadd.f32 %v8730_v10, %v8729_v12  ;;  %v3309_v62 = vmul.f32 %v12008_v22, %v12008_v22  ;;  %v3291_v5 = vsel %vm495_vm1, %v12008_v22, 0.0 }
 0x912   : > { %v3166_v54 = vadd.f32 %v8731_v28, %v11993_v2  ;;  %v3320_v50 = vsel %vm495_vm1, %v3309_v62, 0.0 }
 0x913   : > { %v3321_v12 = vadd.f32 %v3320_v50, %v3319_v4  ;;  %v8419_v50 = vld [vmem:[%s14214_s9 + $0x120] sm:$0xff]  ;;  %v8437_v4 = vld [vmem:[%s14214_s9 + $0x1b0] sm:$0xff] }
 0x914   : > { %v12019_v38 = vadd.f32 %v8962_v40, %v3166_v54  ;;  %v8732_v41 = vpop.f32.mrb[54].mxu1  ;;  %v3289_v40 = vsel %vm495_vm1, %v12005_v42, 0.0 }
 0x915   : > { %v8733_v18 = vpop.f32.mrb[55].mxu1  ;;  %v3290_v61 = vadd.f32 %v3289_v40, %v3288_v7 }
 0x916   : > { %v8734_v52 = vadd.f32 %v8733_v18, %v8732_v41  ;;  %v3310_v8 = vmul.f32 %v12019_v38, %v12019_v38  ;;  %v3293_v58 = vsel %vm495_vm1, %v12019_v38, 0.0 }
 0x917   : > { %v3292_v9 = vadd.f32 %v3291_v5, %v3290_v61  ;;  %v8435_v61 = vld [vmem:[%s14214_s9 + $0x1a0] sm:$0xff] }
 0x918   : > { %v3171_v6 = vadd.f32 %v8734_v52, %v11993_v2  ;;  %v3322_v31 = vsel %vm495_vm1, %v3310_v8, 0.0  ;;  %v8453_v8 = vld [vmem:[%s14214_s9 + $0x230] sm:$0xff] }
 0x919   : > { %v3294_v3 = vadd.f32 %v3293_v58, %v3292_v9  ;;  %v3323_v54 = vadd.f32 %v3322_v31, %v3321_v12  ;;  %v8438_v9 = vld [vmem:[%s14214_s9 + $0x1b8] sm:$0xff]  ;;  %v8421_v31 = vld [vmem:[%s14214_s9 + $0x130] sm:$0xff]  ;;  %v8440_v12 = vld [vmem:[%s14214_s9 + $0x1c8] sm:$0xff] }
 0x91a   : > { %v8735_v47 = vpop.f32.mrb[56].mxu1  ;;  %v12040_v35 = vadd.f32 %v3275_v63, %v3171_v6  ;;  %v8451_v6 = vld [vmem:[%s14214_s9 + $0x220] sm:$0xff] }
 0x91b   : > { %v8736_v0 = vpop.f32.mrb[57].mxu1  ;;  %v9229_v5 = vpack.c.bf16 %v8452_v39, %v8451_v6 }
 0x91c   : > { %v8737_v23 = vadd.f32 %v8736_v0, %v8735_v47  ;;  %v3311_v55 = vmul.f32 %v12040_v35, %v12040_v35  ;;  %v3295_v60 = vsel %vm495_vm1, %v12040_v35, 0.0  ;;  %v8454_v47 = vld [vmem:[%s14214_s9 + $0x238] sm:$0xff]  ;;  %v8436_v0 = vld [vmem:[%s14214_s9 + $0x1a8] sm:$0xff] }
 0x91d   : > { %v3296_v25 = vadd.f32 %v3295_v60, %v3294_v3  ;;  %v9233_v1 = vpack.c.bf16 %v8454_v47, %v8453_v8  ;;  %9230 = vmatprep.subr.bf16.mxu0 %v9229_v5  ;;  %v9197_v58 = vpack.c.bf16 %v8436_v0, %v8435_v61  ;;  %v9201_v60 = vpack.c.bf16 %v8438_v9, %v8437_v4  ;;  %v8439_v3 = vld [vmem:[%s14214_s9 + $0x1c0] sm:$0xff]  ;;  %v8430_v8 = vld [vmem:[%s14214_s9 + $0x178] sm:$0xff]  ;;  %v8448_v61 = vld [vmem:[%s14214_s9 + $0x208] sm:$0xff] }
 0x91e   : > { %v3176_v63 = vadd.f32 %v8737_v23, %v11993_v2  ;;  %v3324_v10 = vsel %vm495_vm1, %v3311_v55, 0.0  ;;  %v8420_v23 = vld [vmem:[%s14214_s9 + $0x128] sm:$0xff] }
 0x91f   : > { %v3325_v49 = vadd.f32 %v3324_v10, %v3323_v54  ;;  %v9199_v55 = vpack.c.bf16 %v8420_v23, %v8419_v50  ;;  %9198 = vmatprep.subr.bf16.mxu1 %v9197_v58  ;;  %v8423_v54 = vld [vmem:[%s14214_s9 + $0x140] sm:$0xff] }
 0x920   : > { %v12053_v28 = vadd.f32 %v11988_v15, %v3176_v63  ;;  %v8422_v63 = vld [vmem:[%s14214_s9 + $0x138] sm:$0xff] }
 0x921   : > { %9200 = vmatpush3.bf16.msra.mxu1 %v9199_v55  ;;  %v9203_v10 = vpack.c.bf16 %v8422_v63, %v8421_v31 }
 0x922   : > { %v3297_v32 = vsel %vm495_vm1, %v12053_v28, 0.0  ;;  %v3312_v37 = vmul.f32 %v12053_v28, %v12053_v28  ;;  %9202 = vmatprep.subr.bf16.mxu1 %v9201_v60 }
 0x923   : > { %v3298_v41 = vadd.f32 %v3297_v32, %v3296_v25  ;;  %v9205_v25 = vpack.c.bf16 %v8440_v12, %v8439_v3  ;;  %v8424_v32 = vld [vmem:[%s14214_s9 + $0x148] sm:$0xff] }
 0x924   : > { %v3326_v44 = vsel %vm495_vm1, %v3312_v37, 0.0  ;;  %v8441_v37 = vld [vmem:[%s14214_s9 + $0x1d0] sm:$0xff] }
 0x925   : > { %v3299_v2 = vrot.slane %v3298_v41, 4  ;;  %v3327_v59 = vadd.f32 %v3326_v44, %v3325_v49  ;;  %v8442_v49 = vld [vmem:[%s14214_s9 + $0x1d8] sm:$0xff]  ;;  %9204 = vmatpush3.bf16.msra.mxu1 %v9203_v10  ;;  %v8409_v10 = vld [vmem:[%s14213_s8 + $0x2] ss:$0 sm:$0xff] }
 0x926   : > { %9206 = vmatprep.subr.bf16.mxu1 %v9205_v25  ;;  %v9209_v44 = vpack.c.bf16 %v8442_v49, %v8441_v37 }
 0x927   : > { %v3300_v48 = vadd.f32 %v3299_v2, %v3298_v41  ;;  %v3328_v51 = vrot.slane %v3327_v59, 4  ;;  %v9207_v41 = vpack.c.bf16 %v8424_v32, %v8423_v54  ;;  %v8425_v2 = vld [vmem:[%s14214_s9 + $0x150] sm:$0xff] }
 0x929   : > { %v3301_v18 = vrot.slane %v3300_v48, 2  ;;  %v3329_v45 = vadd.f32 %v3328_v51, %v3327_v59  ;;  %v8426_v59 = vld [vmem:[%s14214_s9 + $0x158] sm:$0xff]  ;;  %v8444_v51 = vld [vmem:[%s14214_s9 + $0x1e8] sm:$0xff]  ;;  %9208 = vmatpush3.bf16.msra.mxu1 %v9207_v41 }
 0x92a   : > { %9210 = vmatprep.subr.bf16.mxu1 %v9209_v44 }
 0x92b   : > { %v3302_v15 = vadd.f32 %v3301_v18, %v3300_v48  ;;  %v3330_v52 = vrot.slane %v3329_v45, 2  ;;  %v8443_v48 = vld [vmem:[%s14214_s9 + $0x1e0] sm:$0xff]  ;;  %v9211_v18 = vpack.c.bf16 %v8426_v59, %v8425_v2 }
 0x92d   : > { %v3303_v11 = vrot.slane %v3302_v15, 1  ;;  %v3331_v43 = vadd.f32 %v3330_v52, %v3329_v45  ;;  %v8427_v52 = vld [vmem:[%s14214_s9 + $0x160] sm:$0xff]  ;;  %9212 = vmatpush3.bf16.msra.mxu1 %v9211_v18 }
 0x92f   : > { %v3332_v40 = vrot.slane %v3331_v43, 1  ;;  %v3304_v62 = vadd.f32 %v3303_v11, %v3302_v15  ;;  %v9213_v15 = vpack.c.bf16 %v8444_v51, %v8443_v48  ;;  %v8428_v11 = vld [vmem:[%s14214_s9 + $0x168] sm:$0xff] }
 0x930   : > { %v9215_v6 = vpack.c.bf16 %v8428_v11, %v8427_v52 }
 0x931   : > { %v3333_v20 = vadd.f32 %v3332_v40, %v3331_v43  ;;  %9214 = vmatprep.subr.bf16.mxu1 %v9213_v15 }
 0x932   : > { %9216 = vmatpush3.bf16.msra.mxu1 %v9215_v6 }
 0x933   : > { %v3334_v7 = vsel %vm816_vm3, %v3304_v62, %v3333_v20  ;;  %v8445_v62 = vld [vmem:[%s14214_s9 + $0x1f0] sm:$0xff]  ;;  %v8446_v20 = vld [vmem:[%s14214_s9 + $0x1f8] sm:$0xff] }
 0x934   : > { %8975 = vmatmul.mubr.msk.f32.vlgmr.msra.gmra.mrb[28].mxu0 %vm495_vm1, %v3334_v7  ;;  %v9217_v39 = vpack.c.bf16 %v8446_v20, %v8445_v62 }
 0x935   : > { %9232 = vmatpush3.bf16.msra.mxu0 %v9229_v5  ;;  %v8429_v5 = vld [vmem:[%s14214_s9 + $0x170] sm:$0xff] }
 0x936   : > { %9234 = vmatprep.subr.bf16.mxu0 %v9233_v1  ;;  %v9219_v50 = vpack.c.bf16 %v8430_v8, %v8429_v5  ;;  %9218 = vmatprep.subr.bf16.mxu1 %v9217_v39 }
 0x938   : > { %9220 = vmatpush3.bf16.msra.mxu1 %v9219_v50 }
 0x939   : > { %9236 = vmatpush3.bf16.msra.mxu0 %v9233_v1  ;;  %v8447_v1 = vld [vmem:[%s14214_s9 + $0x200] sm:$0xff] }
 0x93a   : > { %9237 = vmatprep.subr.bf16.mxu0 %v10518_v13  ;;  %v9221_v58 = vpack.c.bf16 %v8448_v61, %v8447_v1 }
 0x93c   : > { %9222 = vmatprep.subr.bf16.mxu1 %v9221_v58 }
 0xa07   : > { %v3404_v45 = vpop.f32.mrb[28].mxu0 }
 0xa08   : > { %v3408_v43 = vmul.f32 0.001953125, %v3404_v45  ;;  %v8976_v40 = vpop.f32.mrb[29].mxu0 }
 0xa0a   : > { %v3409_v7 = vmul.f32 %v3408_v43, %v3408_v43  ;;  %v3420_v9 = vrot.slane %v3408_v43, %v10967_v21 }
 0xa0c   : > { %v3411_v47 = vrot.slane %v3409_v7, 7  ;;  %v3421_v60 = vsub.f32 %v11996_v56, %v3420_v9  ;;  %v3422_v31 = vsub.f32 %v11999_v34, %v3420_v9  ;;  %v3423_v63 = vsub.f32 %v12002_v29, %v3420_v9 }
 0xa0d   : > { %v3424_v3 = vsub.f32 %v12005_v42, %v3420_v9  ;;  %v3425_v25 = vsub.f32 %v12008_v22, %v3420_v9  ;;  %v3426_v54 = vsub.f32 %v12019_v38, %v3420_v9  ;;  %v3427_v32 = vsub.f32 %v12040_v35, %v3420_v9 }
 0xa0e   : > { %v3413_v0 = vsub.f32 %v3408_v43, %v3411_v47  ;;  %v3428_v56 = vsub.f32 %v12053_v28, %v3420_v9 }
 0xa10   : > { %v3414_v23 = vmax.f32 %v3413_v0, 0.0 }
 0xa12   : > { %v3415_v4 = vadd.f32 1e-06, %v3414_v23 }
 0xa14   : > { %10407 = vrsqrt.f32 %v3415_v4 }
 0xa1e   : > { %v10408_v55 = vpop.eup %10407 }
 0xa1f   : > { %v3432_v12 = vrot.slane %v10408_v55, %v10971_v24  ;;  %v8410_v24 = vld [vmem:[%s14213_s8 + $0x3] ss:$0 sm:$0xff] }
 0xa21   : > { %v3433_v37 = vmul.f32 %v3432_v12, %v3421_v60  ;;  %v3434_v34 = vmul.f32 %v3432_v12, %v3422_v31  ;;  %v3435_v49 = vmul.f32 %v3432_v12, %v3423_v63  ;;  %v3436_v29 = vmul.f32 %v3432_v12, %v3424_v3 }
 0xa22   : > { %v3437_v42 = vmul.f32 %v3432_v12, %v3425_v25  ;;  %v3438_v41 = vmul.f32 %v3432_v12, %v3426_v54  ;;  %v3439_v44 = vmul.f32 %v3432_v12, %v3427_v32  ;;  %v3440_v2 = vmul.f32 %v3432_v12, %v3428_v56 }
 0xa23   : > { %v3445_v59 = vmul.f32 %v8409_v10, %v3433_v37  ;;  %v3446_v22 = vmul.f32 %v8409_v10, %v3434_v34  ;;  %v3447_v48 = vmul.f32 %v8409_v10, %v3435_v49  ;;  %v3448_v38 = vmul.f32 %v8409_v10, %v3436_v29 }
 0xa24   : > { %v3449_v51 = vmul.f32 %v8409_v10, %v3437_v42  ;;  %v3450_v35 = vmul.f32 %v8409_v10, %v3438_v41  ;;  %v3451_v18 = vmul.f32 %v8409_v10, %v3439_v44  ;;  %v3452_v28 = vmul.f32 %v8409_v10, %v3440_v2  ;;  %v8432_v42 = vld [vmem:[%s14214_s9 + $0x188] sm:$0xff]  ;;  %v8449_v41 = vld [vmem:[%s14214_s9 + $0x210] sm:$0xff] }
 0xa25   : > { %v3457_v45 = vadd.f32 %v8410_v24, %v3445_v59  ;;  %v3458_v15 = vadd.f32 %v8410_v24, %v3446_v22  ;;  %v3459_v52 = vadd.f32 %v8410_v24, %v3447_v48  ;;  %v3460_v11 = vadd.f32 %v8410_v24, %v3448_v38  ;;  %v8450_v22 = vld [vmem:[%s14214_s9 + $0x218] sm:$0xff] }
 0xa26   : > { %v3461_v43 = vadd.f32 %v8410_v24, %v3449_v51  ;;  %v12169_v40 = vadd.f32 %v8410_v24, %v3450_v35  ;;  %v12171_v62 = vadd.f32 %v8410_v24, %v3451_v18  ;;  %v12173_v39 = vadd.f32 %v8410_v24, %v3452_v28  ;;  %v8431_v24 = vld [vmem:[%s14214_s9 + $0x180] sm:$0xff]  ;;  %v8433_v28 = vld [vmem:[%s14214_s9 + $0x190] sm:$0xff] }
 0xa27   : > { %v8411_v20 = vmul.f32 -1.442695, %v3457_v45  ;;  %v8412_v7 = vmul.f32 -1.442695, %v3458_v15  ;;  %v8413_v6 = vmul.f32 -1.442695, %v3459_v52  ;;  %v9223_v59 = vpack.c.bf16 %v8432_v42, %v8431_v24 }
 0xa28   : > { %v8414_v5 = vmul.f32 -1.442695, %v3460_v11  ;;  %v8415_v8 = vmul.f32 -1.442695, %v3461_v43  ;;  %v8416_v47 = vmul.f32 -1.442695, %v12169_v40  ;;  %v9225_v51 = vpack.c.bf16 %v8450_v22, %v8449_v41 }
 0xa29   : > { %10409 = vpow2.f32 %v8411_v20  ;;  %v8417_v1 = vmul.f32 -1.442695, %v12171_v62  ;;  %v8418_v61 = vmul.f32 -1.442695, %v12173_v39  ;;  %9224 = vmatpush3.bf16.msra.mxu1 %v9223_v59 }
 0xa2a   : > { %10411 = vpow2.f32 %v8412_v7  ;;  %9226 = vmatprep.subr.bf16.mxu1 %v9225_v51 }
 0xa2b   : > { %10413 = vpow2.f32 %v8413_v6  ;;  %v3575_v6 = vld [vmem:[#allocation2 + $0x1] sm:$0xff] }
 0xa2c   : > { %10415 = vpow2.f32 %v8414_v5  ;;  %v3583_v5 = vld [vmem:[#allocation2 + $0x2] sm:$0xff] }
 0xa2d   : > { %10417 = vpow2.f32 %v8415_v8 }
 0xa2e   : > { %10419 = vpow2.f32 %v8416_v47 }
 0xa2f   : > { %10421 = vpow2.f32 %v8417_v1 }
 0xa30   : > { %10423 = vpow2.f32 %v8418_v61 }
 0xa33   : > { %v10410_v0 = vpop.eup %10409 }
 0xa34   : > { %v10412_v50 = vpop.eup %10411  ;;  %v3489_v58 = vadd.f32 1.0, %v10410_v0 }
 0xa35   : > { %v10414_v23 = vpop.eup %10413  ;;  %v3490_v4 = vadd.f32 1.0, %v10412_v50 }
 0xa36   : > { %v10416_v9 = vpop.eup %10415  ;;  %v3491_v55 = vadd.f32 1.0, %v10414_v23  ;;  %10425 = vrcp.f32 %v3489_v58 }
 0xa37   : > { %v10418_v60 = vpop.eup %10417  ;;  %v3492_v31 = vadd.f32 1.0, %v10416_v9  ;;  %10427 = vrcp.f32 %v3490_v4 }
 0xa38   : > { %v10420_v63 = vpop.eup %10419  ;;  %v3493_v3 = vadd.f32 1.0, %v10418_v60  ;;  %10429 = vrcp.f32 %v3491_v55 }
 0xa39   : > { %v10422_v12 = vpop.eup %10421  ;;  %v3494_v10 = vadd.f32 1.0, %v10420_v63  ;;  %10431 = vrcp.f32 %v3492_v31 }
 0xa3a   : > { %v10424_v25 = vpop.eup %10423  ;;  %v3495_v54 = vadd.f32 1.0, %v10422_v12  ;;  %10433 = vrcp.f32 %v3493_v3 }
 0xa3b   : > { %v3496_v32 = vadd.f32 1.0, %v10424_v25  ;;  %10435 = vrcp.f32 %v3494_v10 }
 0xa3c   : > { %10437 = vrcp.f32 %v3495_v54 }
 0xa3d   : > { %10439 = vrcp.f32 %v3496_v32 }
 0xa40   : > { %v10426_v56 = vpop.eup %10425 }
 0xa41   : > { %v10428_v37 = vpop.eup %10427  ;;  %v3513_v34 = vmul.f32 %v10426_v56, %v3457_v45  ;;  %v8434_v45 = vld [vmem:[%s14214_s9 + $0x198] sm:$0xff] }
 0xa42   : > { %v10430_v49 = vpop.eup %10429  ;;  %v3514_v29 = vmul.f32 %v10428_v37, %v3458_v15 }
 0xa43   : > { %v10432_v44 = vpop.eup %10431  ;;  %v3515_v2 = vmul.f32 %v10430_v49, %v3459_v52  ;;  %3559 = vst.msk [vmem:[#allocation2 + $0x11] sm:$0xff] %vm495_vm1, %v3513_v34 }
 0xa44   : > { %v10434_v48 = vpop.eup %10433  ;;  %v3516_v38 = vmul.f32 %v10432_v44, %v3460_v11  ;;  %3560 = vst.msk [vmem:[#allocation2 + $0x21] sm:$0xff] %vm495_vm1, %v3514_v29  ;;  %v9227_v11 = vpack.c.bf16 %v8434_v45, %v8433_v28 }
 0xa45   : > { %v10436_v35 = vpop.eup %10435  ;;  %v3517_v18 = vmul.f32 %v10434_v48, %v3461_v43  ;;  %3561 = vst.msk [vmem:[#allocation2 + $0x31] sm:$0xff] %vm495_vm1, %v3515_v2 }
 0xa46   : > { %v10438_v15 = vpop.eup %10437  ;;  %v3518_v52 = vmul.f32 %v10436_v35, %v12169_v40  ;;  %3562 = vst.msk [vmem:[#allocation2 + $0x41] sm:$0xff] %vm495_vm1, %v3516_v38  ;;  %9228 = vmatpush3.bf16.msra.mxu1 %v9227_v11  ;;  %v3638_v11 = vld [vmem:[#allocation2 + $0x92] sm:$0xff] }
 0xa47   : > { %v10440_v20 = vpop.eup %10439  ;;  %v3519_v43 = vmul.f32 %v10438_v15, %v12171_v62  ;;  %3563 = vst.msk [vmem:[#allocation2 + $0x51] sm:$0xff] %vm495_vm1, %v3517_v18 }
 0xa48   : > { %v3520_v7 = vmul.f32 %v10440_v20, %v12173_v39  ;;  %3564 = vst.msk [vmem:[#allocation2 + $0x61] sm:$0xff] %vm495_vm1, %v3518_v52 }
 0xa49   : > { %3565 = vst.msk [vmem:[#allocation2 + $0x71] sm:$0xff] %vm495_vm1, %v3519_v43 }
 0xa4a   : > { %3566 = vst.msk [vmem:[#allocation2 + $0x81] sm:$0xff] %vm495_vm1, %v3520_v7  ;;  %v3607_v40 = vld [vmem:[#allocation2 + $0x12] sm:$0xff] }
 0xa4b   : > { %v3631_v8 = vld [vmem:[#allocation2 + $0x22] sm:$0xff]  ;;  %v9703_v1 = vpack.i.bf16 %v3575_v6, %v3607_v40  ;;  %v12211_v39 = vld [vmem:[#allocation2 + $0x10] sm:$0xff] }
 0xa4c   : > { %v12207_v47 = vld [vmem:[#allocation2 + $0x20] sm:$0xff]  ;;  %8985 = vmatprep.mubr.msk.f32.mxu0 %vm495_vm1, %v3631_v8  ;;  %v3632_v62 = vld [vmem:[#allocation2 + $0x32] sm:$0xff] }
 0xa4d   : > { %v9708_v61 = vpack.i.bf16 %v3583_v5, %v12207_v47  ;;  %v12213_v0 = vld [vmem:[#allocation2 + $0x21] sm:$0xff]  ;;  %8986 = vmatmul.mubr.msk.f32.vlgmr.msra.gmra.mrb[30].mxu0 %vm495_vm1, %v3632_v62  ;;  %9704 = vrot.lane.b32.xlu0 %v9703_v1, %s14245_s3  ;;  %v12217_v58 = vld [vmem:[#allocation2 + $0x11] sm:$0xff] }
 0xa4e   : > { %v3633_v50 = vld [vmem:[#allocation2 + $0x42] sm:$0xff]  ;;  %v9713_v23 = vpack.i.bf16 %v12211_v39, %v12213_v0  ;;  %v3634_v4 = vld [vmem:[#allocation2 + $0x52] sm:$0xff]  ;;  %v9718_v9 = vpack.i.bf16 %v12217_v58, %v3631_v8  ;;  %v9733_v54 = vpack.i.bf16 %v12213_v0, %v3632_v62 }
 0xa4f   : > { %8988 = vmatprep.mubr.msk.f32.mxu0 %vm495_vm1, %v3633_v50  ;;  %9709 = vrot.lane.b32.xlu1 %v9708_v61, %s14246_s16  ;;  %v12224_v55 = vld [vmem:[#allocation2 + $0x30] sm:$0xff]  ;;  %v3635_v60 = vld [vmem:[#allocation2 + $0x62] sm:$0xff] }
 0xa50   : > { %v12228_v31 = vld [vmem:[#allocation2 + $0x31] sm:$0xff]  ;;  %v9723_v63 = vpack.i.bf16 %v3607_v40, %v12224_v55  ;;  %v12237_v25 = vld [vmem:[#allocation2 + $0x40] sm:$0xff] }
 0xa51   : > { %8989 = vmatmul.mubr.msk.f32.gmra.mrb[32].mxu0 %vm495_vm1, %v3634_v4  ;;  %9714 = vrot.lane.b32.xlu0 %v9713_v23, %s14247_s18  ;;  %v3636_v3 = vld [vmem:[#allocation2 + $0x72] sm:$0xff]  ;;  %v9728_v12 = vpack.i.bf16 %v12207_v47, %v12228_v31  ;;  %v3637_v10 = vld [vmem:[#allocation2 + $0x82] sm:$0xff]  ;;  %v9738_v32 = vpack.i.bf16 %v3631_v8, %v12237_v25  ;;  %v9748_v34 = vpack.i.bf16 %v12228_v31, %v3633_v50 }
 0xa52   : > { %8991 = vmatprep.mubr.msk.f32.mxu0 %vm495_vm1, %v3635_v60  ;;  %v12243_v56 = vld [vmem:[#allocation2 + $0x41] sm:$0xff]  ;;  %v12250_v49 = vld [vmem:[#allocation2 + $0x50] sm:$0xff] }
 0xa53   : > { %9719 = vrot.lane.b32.xlu1 %v9718_v9, %s14245_s3  ;;  %v9743_v37 = vpack.i.bf16 %v12224_v55, %v12243_v56  ;;  %v12253_v29 = vld [vmem:[#allocation2 + $0x51] sm:$0xff]  ;;  %v9753_v24 = vpack.i.bf16 %v3632_v62, %v12250_v49  ;;  %v12260_v41 = vld [vmem:[#allocation2 + $0x60] sm:$0xff]  ;;  %v9763_v44 = vpack.i.bf16 %v12243_v56, %v3634_v4 }
 0xa54   : > { %v9758_v42 = vpack.i.bf16 %v12237_v25, %v12253_v29  ;;  %v9768_v2 = vpack.i.bf16 %v3633_v50, %v12260_v41  ;;  %v12265_v59 = vld [vmem:[#allocation2 + $0x61] sm:$0xff]  ;;  %v9778_v48 = vpack.i.bf16 %v12253_v29, %v3635_v60  ;;  %v12272_v38 = vld [vmem:[#allocation2 + $0x70] sm:$0xff] }
 0xa55   : > { %8992 = vmatmul.mubr.msk.f32.gmra.mrb[34].mxu0 %vm495_vm1, %v3636_v3  ;;  %9724 = vrot.lane.b32.xlu0 %v9723_v63, %s14246_s16  ;;  %v9773_v22 = vpack.i.bf16 %v12250_v49, %v12265_v59  ;;  %v12275_v51 = vld [vmem:[#allocation2 + $0x71] sm:$0xff]  ;;  %v9783_v35 = vpack.i.bf16 %v3634_v4, %v12272_v38  ;;  %v3621_v28 = vld [vmem:[#allocation2 + $0x80] sm:$0xff]  ;;  %v9793_v45 = vpack.i.bf16 %v12265_v59, %v3636_v3 }
 0xa56   : > { %8994 = vmatprep.mubr.msk.f32.mxu0 %vm495_vm1, %v3637_v10  ;;  %v9788_v18 = vpack.i.bf16 %v12260_v41, %v12275_v51  ;;  %v9798_v15 = vpack.i.bf16 %v3635_v60, %v3621_v28  ;;  %v12284_v52 = vld [vmem:[#allocation2 + $0x81] sm:$0xff]  ;;  %v9808_v43 = vpack.i.bf16 %v12275_v51, %v3637_v10  ;;  %v3622_v7 = vld [vmem:[#allocation2 + $0x90] sm:$0xff] }
 0xa57   : > { %9729 = vrot.lane.b32.xlu1 %v9728_v12, %s14247_s18  ;;  %v9803_v20 = vpack.i.bf16 %v12272_v38, %v12284_v52  ;;  %v3630_v6 = vld [vmem:[#allocation2 + $0x91] sm:$0xff]  ;;  %v9813_v5 = vpack.i.bf16 %v3636_v3, %v3622_v7  ;;  %v3567_v8 = vld [vmem:[#allocation2] sm:$0xff] }
 0xa58   : > { %v9818_v40 = vpack.i.bf16 %v3621_v28, %v3630_v6 }
 0xa59   : > { %9734 = vrot.lane.b32.xlu0 %v9733_v54, %s14245_s3  ;;  %8995 = vmatmul.mubr.msk.f32.gmra.mrb[36].mxu0 %vm495_vm1, %v3638_v11 }
 0xa5b   : > { %9739 = vrot.lane.b32.xlu1 %v9738_v32, %s14246_s16 }
 0xa5d   : > { %9744 = vrot.lane.b32.xlu0 %v9743_v37, %s14247_s18 }
 0xa5f   : > { %9749 = vrot.lane.b32.xlu1 %v9748_v34, %s14245_s3 }
 0xa61   : > { %9754 = vrot.lane.b32.xlu0 %v9753_v24, %s14246_s16 }
 0xa63   : > { %9759 = vrot.lane.b32.xlu1 %v9758_v42, %s14247_s18 }
 0xa65   : > { %9764 = vrot.lane.b32.xlu0 %v9763_v44, %s14245_s3 }
 0xa67   : > { %9769 = vrot.lane.b32.xlu1 %v9768_v2, %s14246_s16 }
 0xa69   : > { %9774 = vrot.lane.b32.xlu0 %v9773_v22, %s14247_s18 }
 0xa6b   : > { %9779 = vrot.lane.b32.xlu1 %v9778_v48, %s14245_s3 }
 0xa6d   : > { %9784 = vrot.lane.b32.xlu0 %v9783_v35, %s14246_s16 }
 0xa6f   : > { %9789 = vrot.lane.b32.xlu1 %v9788_v18, %s14247_s18 }
 0xa71   : > { %9794 = vrot.lane.b32.xlu0 %v9793_v45, %s14245_s3 }
 0xa73   : > { %9799 = vrot.lane.b32.xlu1 %v9798_v15, %s14246_s16 }
 0xa75   : > { %9804 = vrot.lane.b32.xlu0 %v9803_v20, %s14247_s18 }
 0xa77   : > { %9809 = vrot.lane.b32.xlu1 %v9808_v43, %s14245_s3 }
 0xa79   : > { %9814 = vrot.lane.b32.xlu0 %v9813_v5, %s14246_s16 }
 0xa7b   : > { %9819 = vrot.lane.b32.xlu1 %v9818_v40, %s14247_s18 }
 0xabf   : > { %v9705_v1 = vpop.permute.xlu0 %9704 }
 0xac0   : > { %v9707_v61 = vunpack.i.h.bf16 %v9705_v1  ;;  %v9706_v50 = vunpack.i.l.bf16 %v9705_v1 }
 0xac1   : > { %v9710_v62 = vpop.permute.xlu1 %9709 }
 0xac2   : > { %v9712_v23 = vunpack.i.h.bf16 %v9710_v62  ;;  %v9711_v4 = vunpack.i.l.bf16 %v9710_v62  ;;  %v3831_v9 = vsel %vm495_vm1, %v3567_v8, %v9707_v61  ;;  %v3855_v60 = vsel %vm495_vm1, %v12217_v58, %v9706_v50 }
 0xac3   : > { %v9715_v63 = vpop.permute.xlu0 %9714 }
 0xac4   : > { %v9717_v12 = vunpack.i.h.bf16 %v9715_v63  ;;  %v9716_v3 = vunpack.i.l.bf16 %v9715_v63  ;;  %v3863_v37 = vsel %vm1323_vm6, %v3855_v60, %v9711_v4  ;;  %v3839_v34 = vsel %vm1323_vm6, %v3831_v9, %v9712_v23 }
 0xac5   : > { %v9720_v10 = vpop.permute.xlu1 %9719 }
 0xac6   : > { %v9722_v54 = vunpack.i.h.bf16 %v9720_v10  ;;  %v9721_v32 = vunpack.i.l.bf16 %v9720_v10  ;;  %v3871_v24 = vsel %vm1332_vm7, %v3863_v37, %v9716_v3  ;;  %v3847_v42 = vsel %vm1332_vm7, %v3839_v34, %v9717_v12 }
 0xac7   : > { %3971 = vmatprep.mubr.f32.mxu1 %v3871_v24  ;;  %v9725_v44 = vpop.permute.xlu0 %9724 }
 0xac8   : > { %v9727_v2 = vunpack.i.h.bf16 %v9725_v44  ;;  %v9726_v22 = vunpack.i.l.bf16 %v9725_v44  ;;  %3972 = vmatmul.mubr.f32.vlgmr.msra.gmra.mrb[58].mxu1 %v3847_v42  ;;  %v3856_v18 = vsel %vm495_vm1, %v12213_v0, %v9721_v32  ;;  %v3832_v28 = vsel %vm495_vm1, %v12211_v39, %v9722_v54 }
 0xac9   : > { %v9730_v48 = vpop.permute.xlu1 %9729 }
 0xaca   : > { %v9732_v58 = vunpack.i.h.bf16 %v9730_v48  ;;  %v9731_v35 = vunpack.i.l.bf16 %v9730_v48  ;;  %v3864_v45 = vsel %vm1323_vm6, %v3856_v18, %v9726_v22  ;;  %v3840_v15 = vsel %vm1323_vm6, %v3832_v28, %v9727_v2 }
 0xacb   : > { %v9735_v11 = vpop.permute.xlu0 %9734 }
 0xacc   : > { %v3872_v20 = vsel %vm1332_vm7, %v3864_v45, %v9731_v35  ;;  %v3848_v43 = vsel %vm1332_vm7, %v3840_v15, %v9732_v58  ;;  %v9737_v7 = vunpack.i.h.bf16 %v9735_v11  ;;  %v9736_v6 = vunpack.i.l.bf16 %v9735_v11 }
 0xacd   : > { %v9740_v5 = vpop.permute.xlu1 %9739  ;;  %3976 = vmatprep.mubr.f32.mxu1 %v3872_v20 }
 0xace   : > { %v9742_v40 = vunpack.i.h.bf16 %v9740_v5  ;;  %v9741_v8 = vunpack.i.l.bf16 %v9740_v5  ;;  %3977 = vmatmul.mubr.f32.gmra.mrb[60].mxu1 %v3848_v43  ;;  %v3857_v0 = vsel %vm495_vm1, %v12228_v31, %v9736_v6  ;;  %v3833_v39 = vsel %vm495_vm1, %v12207_v47, %v9737_v7 }
 0xacf   : > { %v9745_v1 = vpop.permute.xlu0 %9744 }
 0xad0   : > { %v9747_v62 = vunpack.i.h.bf16 %v9745_v1  ;;  %v9746_v61 = vunpack.i.l.bf16 %v9745_v1  ;;  %v3865_v9 = vsel %vm1323_vm6, %v3857_v0, %v9741_v8  ;;  %v3841_v60 = vsel %vm1323_vm6, %v3833_v39, %v9742_v40 }
 0xad1   : > { %v9750_v50 = vpop.permute.xlu1 %9749 }
 0xad2   : > { %v9752_v23 = vunpack.i.h.bf16 %v9750_v50  ;;  %v9751_v4 = vunpack.i.l.bf16 %v9750_v50  ;;  %v3873_v63 = vsel %vm1332_vm7, %v3865_v9, %v9746_v61  ;;  %v3849_v12 = vsel %vm1332_vm7, %v3841_v60, %v9747_v62 }
 0xad3   : > { %v9755_v3 = vpop.permute.xlu0 %9754  ;;  %3981 = vmatprep.mubr.f32.mxu1 %v3873_v63 }
 0xad4   : > { %v9757_v31 = vunpack.i.h.bf16 %v9755_v3  ;;  %v9756_v10 = vunpack.i.l.bf16 %v9755_v3  ;;  %3982 = vmatmul.mubr.f32.gmra.mrb[62].mxu1 %v3849_v12  ;;  %v3858_v37 = vsel %vm495_vm1, %v12243_v56, %v9751_v4  ;;  %v3834_v34 = vsel %vm495_vm1, %v12224_v55, %v9752_v23 }
 0xad5   : > { %v9760_v54 = vpop.permute.xlu1 %9759 }
 0xad6   : > { %v9762_v47 = vunpack.i.h.bf16 %v9760_v54  ;;  %v9761_v32 = vunpack.i.l.bf16 %v9760_v54  ;;  %v3866_v24 = vsel %vm1323_vm6, %v3858_v37, %v9756_v10  ;;  %v3842_v42 = vsel %vm1323_vm6, %v3834_v34, %v9757_v31 }
 0xad7   : > { %v9765_v44 = vpop.permute.xlu0 %9764 }
 0xad8   : > { %v3874_v2 = vsel %vm1332_vm7, %v3866_v24, %v9761_v32  ;;  %v3850_v22 = vsel %vm1332_vm7, %v3842_v42, %v9762_v47  ;;  %v9767_v48 = vunpack.i.h.bf16 %v9765_v44  ;;  %v9766_v58 = vunpack.i.l.bf16 %v9765_v44 }
 0xad9   : > { %v9770_v35 = vpop.permute.xlu1 %9769  ;;  %3986 = vmatprep.mubr.f32.mxu1 %v3874_v2 }
 0xada   : > { %v9772_v18 = vunpack.i.h.bf16 %v9770_v35  ;;  %v9771_v28 = vunpack.i.l.bf16 %v9770_v35  ;;  %3987 = vmatmul.mubr.f32.gmra.mrb[64].mxu1 %v3850_v22  ;;  %v3859_v56 = vsel %vm495_vm1, %v12253_v29, %v9766_v58  ;;  %v3835_v55 = vsel %vm495_vm1, %v12237_v25, %v9767_v48 }
 0xadb   : > { %v9775_v45 = vpop.permute.xlu0 %9774 }
 0xadc   : > { %v9777_v15 = vunpack.i.h.bf16 %v9775_v45  ;;  %v9776_v11 = vunpack.i.l.bf16 %v9775_v45  ;;  %v3867_v6 = vsel %vm1323_vm6, %v3859_v56, %v9771_v28  ;;  %v3843_v5 = vsel %vm1323_vm6, %v3835_v55, %v9772_v18 }
 0xadd   : > { %v9780_v20 = vpop.permute.xlu1 %9779 }
 0xade   : > { %v9782_v43 = vunpack.i.h.bf16 %v9780_v20  ;;  %v9781_v7 = vunpack.i.l.bf16 %v9780_v20  ;;  %v3875_v40 = vsel %vm1332_vm7, %v3867_v6, %v9776_v11  ;;  %v3851_v8 = vsel %vm1332_vm7, %v3843_v5, %v9777_v15 }
 0xadf   : > { %v9785_v0 = vpop.permute.xlu0 %9784  ;;  %3991 = vmatprep.mubr.f32.mxu1 %v3875_v40 }
 0xae0   : > { %v9787_v29 = vunpack.i.h.bf16 %v9785_v0  ;;  %v9786_v39 = vunpack.i.l.bf16 %v9785_v0  ;;  %3992 = vmatmul.mubr.f32.gmra.mrb[66].mxu1 %v3851_v8  ;;  %v3860_v61 = vsel %vm495_vm1, %v12265_v59, %v9781_v7  ;;  %v3836_v50 = vsel %vm495_vm1, %v12250_v49, %v9782_v43  ;;  %v4814_v8 = vld [vmem:[%s14216_s11 + $0x108] sm:$0xff] }
 0xae1   : > { %v9790_v1 = vpop.permute.xlu1 %9789 }
 0xae2   : > { %v9792_v25 = vunpack.i.h.bf16 %v9790_v1  ;;  %v9791_v62 = vunpack.i.l.bf16 %v9790_v1  ;;  %v3868_v23 = vsel %vm1323_vm6, %v3860_v61, %v9786_v39  ;;  %v3844_v4 = vsel %vm1323_vm6, %v3836_v50, %v9787_v29  ;;  %v4815_v29 = vld [vmem:[%s14216_s11 + $0x110] sm:$0xff]  ;;  %v4816_v39 = vld [vmem:[%s14216_s11 + $0x118] sm:$0xff]  ;;  %v4781_v61 = vld [vmem:[%s14216_s11] sm:$0xff] }
 0xae3   : > { %v9795_v9 = vpop.permute.xlu0 %9794  ;;  %v9289_v1 = vpack.c.bf16 %v4816_v39, %v4815_v29  ;;  %v4782_v50 = vld [vmem:[%s14216_s11 + $0x8] sm:$0xff] }
 0xae4   : > { %v3876_v60 = vsel %vm1332_vm7, %v3868_v23, %v9791_v62  ;;  %v3852_v63 = vsel %vm1332_vm7, %v3844_v4, %v9792_v25  ;;  %v9797_v12 = vunpack.i.h.bf16 %v9795_v9  ;;  %v9796_v3 = vunpack.i.l.bf16 %v9795_v9  ;;  %v4783_v4 = vld [vmem:[%s14216_s11 + $0x10] sm:$0xff]  ;;  %v4784_v9 = vld [vmem:[%s14216_s11 + $0x18] sm:$0xff] }
 0xae5   : > { %v9800_v31 = vpop.permute.xlu1 %9799  ;;  %3996 = vmatprep.mubr.f32.mxu1 %v3876_v60  ;;  %v9238_v23 = vpack.c.bf16 %v4782_v50, %v4781_v61  ;;  %v10524_v60 = vmov 1966171168  }
 0xae6   : > { %v9802_v10 = vunpack.i.h.bf16 %v9800_v31  ;;  %v9801_v54 = vunpack.i.l.bf16 %v9800_v31  ;;  %3997 = vmatmul.mubr.f32.gmra.mrb[68].mxu1 %v3852_v63  ;;  %v3861_v59 = vsel %vm495_vm1, %v12275_v51, %v9796_v3  ;;  %v3837_v49 = vsel %vm495_vm1, %v12260_v41, %v9797_v12  ;;  %v12399_v31 = vld [vmem:[%s14215_s10 + $0x1] ss:$0 sm:$0xff] }
 0xae7   : > { %v9805_v47 = vpop.permute.xlu0 %9804  ;;  %9239 = vmatpush1.bf16.msra.mxu0 %v9238_v23  ;;  %v4135_v63 = vunpack.c.l.s4 %v10524_v60  ;;  %v9241_v12 = vpack.c.bf16 %v4784_v9, %v4783_v4 }
 0xae8   : > { %v9807_v32 = vunpack.i.h.bf16 %v9805_v47  ;;  %v9806_v37 = vunpack.i.l.bf16 %v9805_v47  ;;  %v3869_v44 = vsel %vm1323_vm6, %v3861_v59, %v9801_v54  ;;  %v3845_v2 = vsel %vm1323_vm6, %v3837_v49, %v9802_v10  ;;  %9240 = vmatprep.subr.bf16.mxu0 %v10518_v13  ;;  %v4785_v54 = vld [vmem:[%s14216_s11 + $0x20] sm:$0xff]  ;;  %v4786_v59 = vld [vmem:[%s14216_s11 + $0x28] sm:$0xff] }
 0xae9   : > { %v9810_v34 = vpop.permute.xlu1 %9809  ;;  %v4136_v49 = vunpack.c.0.s8 %v4135_v63 }
 0xaea   : > { %v9812_v24 = vunpack.i.h.bf16 %v9810_v34  ;;  %v9811_v42 = vunpack.i.l.bf16 %v9810_v34  ;;  %v3877_v22 = vsel %vm1332_vm7, %v3869_v44, %v9806_v37  ;;  %v3853_v48 = vsel %vm1332_vm7, %v3845_v2, %v9807_v32  ;;  %v4787_v44 = vld [vmem:[%s14216_s11 + $0x30] sm:$0xff]  ;;  %v4788_v2 = vld [vmem:[%s14216_s11 + $0x38] sm:$0xff] }
 0xaeb   : > { %v9815_v58 = vpop.permute.xlu0 %9814  ;;  %4001 = vmatprep.mubr.f32.mxu1 %v3877_v22  ;;  %9242 = vmatpush1.bf16.msra.mxu0 %v9241_v12  ;;  %v9244_v32 = vpack.c.bf16 %v4786_v59, %v4785_v54  ;;  %v10525_v34 = vmov 1983009808   ;;  %v12417_v22 = vsub.s32 %v4136_v49, %v10770_v27 }
 0xaec   : > { %v9817_v51 = vunpack.i.h.bf16 %v9815_v58  ;;  %v9816_v35 = vunpack.i.l.bf16 %v9815_v58  ;;  %4002 = vmatmul.mubr.f32.gmra.mrb[70].mxu1 %v3853_v48  ;;  %v3862_v56 = vsel %vm495_vm1, %v12284_v52, %v9811_v42  ;;  %v3838_v55 = vsel %vm495_vm1, %v12272_v38, %v9812_v24  ;;  %v4813_v38 = vld [vmem:[%s14216_s11 + $0x100] sm:$0xff]  ;;  %9243 = vmatprep.subr.bf16.mxu0 %v10518_v13 }
 0xaed   : > { %v9820_v18 = vpop.permute.xlu1 %9819  ;;  %v9285_v0 = vpack.c.bf16 %v4814_v8, %v4813_v38  ;;  %v4821_v24 = vunpack.c.l.s4 %v10525_v34 }
 0xaee   : > { %v9822_v41 = vunpack.i.h.bf16 %v9820_v18  ;;  %v9821_v28 = vunpack.i.l.bf16 %v9820_v18  ;;  %v3870_v45 = vsel %vm1323_vm6, %v3862_v56, %v9816_v35  ;;  %v3846_v15 = vsel %vm1323_vm6, %v3838_v55, %v9817_v51  ;;  %v4789_v56 = vld [vmem:[%s14216_s11 + $0x40] sm:$0xff]  ;;  %v4790_v55 = vld [vmem:[%s14216_s11 + $0x48] sm:$0xff] }
 0xaef   : > { %9286 = vmatprep.subr.bf16.mxu1 %v9285_v0  ;;  %9245 = vmatpush1.bf16.msra.mxu0 %v9244_v32  ;;  %v9247_v51 = vpack.c.bf16 %v4788_v2, %v4787_v44 }
 0xaf0   : > { %v3878_v11 = vsel %vm1332_vm7, %v3870_v45, %v9821_v28  ;;  %v3854_v20 = vsel %vm1332_vm7, %v3846_v15, %v9822_v41  ;;  %9288 = vmatpush3.bf16.msra.mxu1 %v9285_v0  ;;  %9246 = vmatprep.subr.bf16.mxu0 %v10518_v13  ;;  %v4822_v41 = vunpack.c.0.s8 %v4821_v24 }
 0xaf1   : > { %4006 = vmatprep.mubr.f32.mxu1 %v3878_v11  ;;  %9290 = vmatprep.subr.bf16.mxu1 %v9289_v1  ;;  %v9250_v11 = vpack.c.bf16 %v4790_v55, %v4789_v56 }
 0xaf2   : > { %4007 = vmatmul.mubr.f32.gmra.mrb[72].mxu1 %v3854_v20  ;;  %v12432_v0 = vsub.s32 %v4822_v41, %v10770_v27 }
 0xaf3   : > { %9248 = vmatpush1.bf16.msra.mxu0 %v9247_v51 }
 0xaf4   : > { %9292 = vmatpush3.bf16.msra.mxu1 %v9289_v1  ;;  %9249 = vmatprep.subr.bf16.mxu0 %v10518_v13 }
 0xaf7   : > { %9251 = vmatpush1.bf16.msra.mxu0 %v9250_v11 }
 0xaf8   : > { %9252 = vmatprep.subr.bf16.mxu0 %v10518_v13 }
 0xb20   : > { %v8987_v43 = vpop.f32.mrb[30].mxu0 }
 0xb21   : > { %v4078_v7 = vpop.f32.mrb[31].mxu0 }
 0xb24   : > { %v12359_v6 = vpop.f32.mrb[32].mxu0 }
 0xb25   : > { %v12361_v5 = vpop.f32.mrb[33].mxu0 }
 0xb28   : > { %v12363_v52 = vpop.f32.mrb[34].mxu0 }
 0xb29   : > { %v12365_v40 = vpop.f32.mrb[35].mxu0 }
 0xb2c   : > { %v12379_v25 = vpop.f32.mrb[36].mxu0 }
 0xb2d   : > { %v12381_v62 = vpop.f32.mrb[37].mxu0 }
 0xb9b   : > { %v8787_v3 = vpop.f32.mrb[58].mxu1 }
 0xb9c   : > { %v8788_v10 = vpop.f32.mrb[59].mxu1 }
 0xb9d   : > { %v8789_v47 = vadd.f32 %v8788_v10, %v8787_v3 }
 0xb9f   : > { %v3974_v37 = vadd.f32 %v8789_v47, %v12399_v31 }
 0xba1   : > { %v8790_v42 = vpop.f32.mrb[60].mxu1  ;;  %v4079_v48 = vadd.f32 %v4078_v7, %v3974_v37 }
 0xba2   : > { %v8791_v58 = vpop.f32.mrb[61].mxu1 }
 0xba3   : > { %v8792_v35 = vadd.f32 %v8791_v58, %v8790_v42  ;;  %v4117_v18 = vadd.f32 %v4079_v48, %v11619_v14 }
 0xba5   : > { %v3979_v28 = vadd.f32 %v8792_v35, %v12399_v31  ;;  %v4133_v45 = vcombine.high %v4117_v18, %v4117_v18  ;;  %v4140_v15 = vrot.slane %v4117_v18, %v12417_v22 }
 0xba7   : > { %v4084_v20 = vadd.f32 %v8987_v43, %v3979_v28  ;;  %v4147_v14 = vrot.slane %v4133_v45, %v12417_v22  ;;  %v4148_v7 = vcombine.high %v4140_v15, %v4140_v15  ;;  %v4156_v38 = vrot.slane %v4140_v15, %v12417_v22  ;;  %v8793_v8 = vpop.f32.mrb[62].mxu1 }
 0xba8   : > { %v8794_v39 = vpop.f32.mrb[63].mxu1 }
 0xba9   : > { %v4118_v29 = vadd.f32 %v4084_v20, %v11616_v57  ;;  %v4149_v1 = vcombine.high %v4147_v14, %v4147_v14  ;;  %v4163_v61 = vrot.slane %v4147_v14, %v12417_v22  ;;  %v4170_v43 = vrot.slane %v4148_v7, %v12417_v22 }
 0xbaa   : > { %v4178_v50 = vcombine.high %v4156_v38, %v4156_v38  ;;  %v4528_v23 = vrot.slane %v4156_v38, %v10967_v21  ;;  %v8795_v60 = vadd.f32 %v8794_v39, %v8793_v8 }
 0xbab   : > { %v4182_v4 = vcombine.high %v4118_v29, %v4118_v29  ;;  %v4189_v9 = vrot.slane %v4118_v29, %v12417_v22  ;;  %v4177_v27 = vrot.slane %v4149_v1, %v12417_v22  ;;  %v4179_v63 = vcombine.high %v4163_v61, %v4163_v61 }
 0xbac   : > { %v4180_v12 = vcombine.high %v4170_v43, %v4170_v43  ;;  %v4532_v57 = vrot.slane %v4170_v43, %v10967_v21  ;;  %v4536_v3 = vrot.slane %v4178_v50, %v10967_v21  ;;  %v4544_v10 = vrot.slane %v4163_v61, %v10967_v21 }
 0xbad   : > { %v4196_v54 = vrot.slane %v4182_v4, %v12417_v22  ;;  %v4197_v59 = vcombine.high %v4189_v9, %v4189_v9  ;;  %v8796_v49 = vpop.f32.mrb[64].mxu1  ;;  %v4181_v47 = vcombine.high %v4177_v27, %v4177_v27  ;;  %v4548_v37 = vrot.slane %v4177_v27, %v10967_v21 }
 0xbae   : > { %v4540_v32 = vrot.slane %v4180_v12, %v10967_v21  ;;  %v4552_v34 = vrot.slane %v4179_v63, %v10967_v21  ;;  %v8797_v24 = vpop.f32.mrb[65].mxu1  ;;  %v4818_v42 = vcombine.low %v4528_v23, %v4532_v57  ;;  %v4205_v2 = vrot.slane %v4189_v9, %v12417_v22  ;;  %v4791_v63 = vld [vmem:[%s14216_s11 + $0x50] sm:$0xff]  ;;  %v4792_v12 = vld [vmem:[%s14216_s11 + $0x58] sm:$0xff] }
 0xbaf   : > { %v4198_v44 = vcombine.high %v4196_v54, %v4196_v54  ;;  %v4212_v48 = vrot.slane %v4196_v54, %v12417_v22  ;;  %v4556_v58 = vrot.slane %v4181_v47, %v10967_v21  ;;  %v4835_v35 = vcombine.low %v4544_v10, %v4548_v37 }
 0xbb0   : > { %v4819_v51 = vcombine.low %v4536_v3, %v4540_v32  ;;  %v4219_v18 = vrot.slane %v4197_v59, %v12417_v22  ;;  %v4826_v41 = vrot.slane %v4818_v42, %v12432_v0  ;;  %v4227_v56 = vcombine.high %v4205_v2, %v4205_v2  ;;  %v4794_v42 = vld [vmem:[%s14216_s11 + $0x68] sm:$0xff] }
 0xbb1   : > { %v4226_v28 = vrot.slane %v4198_v44, %v12417_v22  ;;  %v4228_v55 = vcombine.high %v4212_v48, %v4212_v48  ;;  %v4836_v15 = vcombine.low %v4552_v34, %v4556_v58  ;;  %v4843_v11 = vrot.slane %v4835_v35, %v12432_v0  ;;  %v4793_v34 = vld [vmem:[%s14216_s11 + $0x60] sm:$0xff]  ;;  %v4795_v35 = vld [vmem:[%s14216_s11 + $0x70] sm:$0xff] }
 0xbb2   : > { %v4833_v45 = vrot.slane %v4819_v51, %v12432_v0  ;;  %v4229_v20 = vcombine.high %v4219_v18, %v4219_v18  ;;  %v4560_v7 = vrot.slane %v4205_v2, %v10967_v21  ;;  %v4564_v38 = vrot.slane %v4219_v18, %v10967_v21  ;;  %v4796_v18 = vld [vmem:[%s14216_s11 + $0x78] sm:$0xff] }
 0xbb3   : > { %v4230_v14 = vcombine.high %v4226_v28, %v4226_v28  ;;  %v4568_v8 = vrot.slane %v4227_v56, %v10967_v21  ;;  %v4850_v39 = vrot.slane %v4836_v15, %v12432_v0  ;;  %v4576_v61 = vrot.slane %v4212_v48, %v10967_v21  ;;  %v8799_v43 = vpop.f32.mrb[66].mxu1  ;;  %v12505_v15 = vld [vmem:[%s14216_s11 + $0x88] sm:$0xff] }
 0xbb4   : > { %v4834_v29 = vcombine.low %v4826_v41, %v4833_v45  ;;  %v4572_v1 = vrot.slane %v4229_v20, %v10967_v21  ;;  %v4580_v50 = vrot.slane %v4226_v28, %v10967_v21  ;;  %v4584_v23 = vrot.slane %v4228_v55, %v10967_v21  ;;  %v8800_v27 = vpop.f32.mrb[67].mxu1  ;;  %v12515_v20 = vld [vmem:[%s14216_s11 + $0x98] sm:$0xff] }
 0xbb5   : > { %v4588_v4 = vrot.slane %v4230_v14, %v10967_v21  ;;  %v4852_v9 = vcombine.low %v4560_v7, %v4564_v38  ;;  %v4851_v57 = vcombine.low %v4843_v11, %v4850_v39  ;;  %v3984_v10 = vadd.f32 %v8795_v60, %v12399_v31  ;;  %v12510_v11 = vld [vmem:[%s14216_s11 + $0x90] sm:$0xff] }
 0xbb6   : > { %5107 = vst.msk [vmem:[#allocation3 + $0x19] sm:$0xff] %vm495_vm1, %v4834_v29  ;;  %5109 = vst.msk [vmem:[#allocation3 + $0x31] sm:$0xff] %vm495_vm1, %v4834_v29  ;;  %v4853_v3 = vcombine.low %v4568_v8, %v4572_v1  ;;  %v8798_v54 = vadd.f32 %v8797_v24, %v8796_v49  ;;  %v4869_v47 = vcombine.low %v4576_v61, %v4580_v50 }
 0xbb7   : > { %v4860_v59 = vrot.slane %v4852_v9, %v12432_v0  ;;  %v4870_v32 = vcombine.low %v4584_v23, %v4588_v4  ;;  %v8801_v37 = vadd.f32 %v8800_v27, %v8799_v43  ;;  %5108 = vst.msk [vmem:[#allocation3 + $0x21] sm:$0xff] %vm495_vm1, %v4851_v57  ;;  %5110 = vst.msk [vmem:[#allocation3 + $0x39] sm:$0xff] %vm495_vm1, %v4851_v57 }
 0xbb8   : > { %v4867_v60 = vrot.slane %v4853_v3, %v12432_v0  ;;  %v4089_v49 = vadd.f32 %v12361_v5, %v3984_v10  ;;  %v3989_v24 = vadd.f32 %v8798_v54, %v12399_v31  ;;  %v9253_v44 = vpack.c.bf16 %v4792_v12, %v4791_v63  ;;  %v12498_v5 = vld [vmem:[%s14216_s11 + $0x80] sm:$0xff] }
 0xbb9   : > { %v4877_v2 = vrot.slane %v4869_v47, %v12432_v0  ;;  %v4884_v48 = vrot.slane %v4870_v32, %v12432_v0  ;;  %v3994_v58 = vadd.f32 %v8801_v37, %v12399_v31  ;;  %v8802_v51 = vpop.f32.mrb[68].mxu1  ;;  %v9256_v45 = vpack.c.bf16 %v4794_v42, %v4793_v34 }
 0xbba   : > { %v4868_v41 = vcombine.low %v4860_v59, %v4867_v60  ;;  %v4119_v28 = vadd.f32 %v4089_v49, %v11622_v19  ;;  %v4094_v56 = vadd.f32 %v12359_v6, %v3989_v24  ;;  %v8803_v55 = vpop.f32.mrb[69].mxu1  ;;  %9254 = vmatpush1.bf16.msra.mxu0 %v9253_v44  ;;  %v9259_v29 = vpack.c.bf16 %v4796_v18, %v4795_v35 }
 0xbbb   : > { %v4885_v19 = vcombine.low %v4877_v2, %v4884_v48  ;;  %v4099_v6 = vadd.f32 %v12365_v40, %v3994_v58  ;;  %v8804_v14 = vadd.f32 %v8803_v55, %v8802_v51  ;;  %9255 = vmatprep.subr.bf16.mxu0 %v10518_v13  ;;  %v9262_v1 = vpack.c.bf16 %v12505_v15, %v12498_v5 }
 0xbbc   : > { %5111 = vst.msk [vmem:[#allocation3 + $0x49] sm:$0xff] %vm495_vm1, %v4868_v41  ;;  %5113 = vst.msk [vmem:[#allocation3 + $0x61] sm:$0xff] %vm495_vm1, %v4868_v41  ;;  %v4231_v7 = vcombine.high %v4119_v28, %v4119_v28  ;;  %v4238_v38 = vrot.slane %v4119_v28, %v12417_v22  ;;  %v4120_v8 = vadd.f32 %v4094_v56, %v11628_v17 }
 0xbbd   : > { %5112 = vst.msk [vmem:[#allocation3 + $0x51] sm:$0xff] %vm495_vm1, %v4885_v19  ;;  %5114 = vst.msk [vmem:[#allocation3 + $0x69] sm:$0xff] %vm495_vm1, %v4885_v19  ;;  %v12526_v39 = vadd.f32 %v4099_v6, %v11637_v36  ;;  %v3999_v40 = vadd.f32 %v8804_v14, %v12399_v31  ;;  %v9265_v61 = vpack.c.bf16 %v12515_v20, %v12510_v11 }
 0xbbe   : > { %v4245_v43 = vrot.slane %v4231_v7, %v12417_v22  ;;  %v4246_v50 = vcombine.high %v4238_v38, %v4238_v38  ;;  %v4254_v17 = vrot.slane %v4238_v38, %v12417_v22  ;;  %v4280_v23 = vcombine.high %v4120_v8, %v4120_v8  ;;  %9257 = vmatpush1.bf16.msra.mxu0 %v9256_v45  ;;  %v12545_v63 = vld [vmem:[#allocation3 + $0x32] sm:$0xff]  ;;  %v12547_v12 = vld [vmem:[#allocation3 + $0x3a] sm:$0xff] }
 0xbbf   : > { %v4287_v4 = vrot.slane %v4120_v8, %v12417_v22  ;;  %v4329_v36 = vcombine.high %v12526_v39, %v12526_v39  ;;  %v12540_v9 = vrot.slane %v12526_v39, %v12417_v22  ;;  %v12543_v27 = vadd.f32 %v12363_v52, %v3999_v40  ;;  %9258 = vmatprep.subr.bf16.mxu0 %v10518_v13  ;;  %v12552_v59 = vpop.f32.mrb[70].mxu1 }
 0xbc0   : > { %v4247_v57 = vcombine.high %v4245_v43, %v4245_v43  ;;  %v4261_v3 = vrot.slane %v4245_v43, %v12417_v22  ;;  %v4268_v10 = vrot.slane %v4246_v50, %v12417_v22  ;;  %v4276_v54 = vcombine.high %v4254_v17, %v4254_v17  ;;  %9005 = vmatprep.mubr.msk.f32.mxu1 %vm495_vm1, %v12545_v63  ;;  %v12559_v34 = vpop.f32.mrb[71].mxu1 }
 0xbc1   : > { %v4592_v52 = vrot.slane %v4254_v17, %v10967_v21  ;;  %v4294_v47 = vrot.slane %v4280_v23, %v12417_v22  ;;  %v4295_v32 = vcombine.high %v4287_v4, %v4287_v4  ;;  %v4303_v37 = vrot.slane %v4287_v4, %v12417_v22  ;;  %9006 = vmatmul.mubr.msk.f32.vlgmr.msra.gmra.mrb[74].mxu1 %vm495_vm1, %v12547_v12 }
 0xbc2   : > { %v4275_v42 = vrot.slane %v4247_v57, %v12417_v22  ;;  %v4277_v60 = vcombine.high %v4261_v3, %v4261_v3  ;;  %v4278_v49 = vcombine.high %v4268_v10, %v4268_v10  ;;  %v4596_v24 = vrot.slane %v4268_v10, %v10967_v21  ;;  %9260 = vmatpush1.bf16.msra.mxu0 %v9259_v29 }
 0xbc3   : > { %v4600_v44 = vrot.slane %v4276_v54, %v10967_v21  ;;  %v4608_v2 = vrot.slane %v4261_v3, %v10967_v21  ;;  %v4296_v48 = vcombine.high %v4294_v47, %v4294_v47  ;;  %v4310_v58 = vrot.slane %v4294_v47, %v12417_v22  ;;  %9261 = vmatprep.subr.bf16.mxu0 %v10518_v13 }
 0xbc4   : > { %v4279_v51 = vcombine.high %v4275_v42, %v4275_v42  ;;  %v4604_v35 = vrot.slane %v4278_v49, %v10967_v21  ;;  %v4612_v18 = vrot.slane %v4275_v42, %v10967_v21  ;;  %v4616_v41 = vrot.slane %v4277_v60, %v10967_v21  ;;  %v12572_v28 = vld [vmem:[#allocation3 + $0x4a] sm:$0xff]  ;;  %v12574_v56 = vld [vmem:[#allocation3 + $0x52] sm:$0xff]  ;;  %v12587_v43 = vld [vmem:[#allocation3 + $0x62] sm:$0xff] }
 0xbc5   : > { %v4886_v55 = vcombine.low %v4592_v52, %v4596_v24  ;;  %v4317_v45 = vrot.slane %v4295_v32, %v12417_v22  ;;  %v4324_v19 = vrot.slane %v4296_v48, %v12417_v22  ;;  %v4325_v6 = vcombine.high %v4303_v37, %v4303_v37  ;;  %v12578_v14 = vpop.f32.mrb[72].mxu1  ;;  %9008 = vmatprep.mubr.msk.f32.mxu1 %vm495_vm1, %v12572_v28  ;;  %v12603_v42 = vld [vmem:[#allocation3 + $0x6a] sm:$0xff] }
 0xbc6   : > { %v4620_v7 = vrot.slane %v4279_v51, %v10967_v21  ;;  %v4887_v38 = vcombine.low %v4600_v44, %v4604_v35  ;;  %v4903_v8 = vcombine.low %v4608_v2, %v4612_v18  ;;  %v4326_v29 = vcombine.high %v4310_v58, %v4310_v58  ;;  %v12583_v40 = vpop.f32.mrb[73].mxu1  ;;  %9009 = vmatmul.mubr.msk.f32.gmra.mrb[76].mxu1 %vm495_vm1, %v12574_v56 }
 0xbc7   : > { %v4894_v50 = vrot.slane %v4886_v55, %v12432_v0  ;;  %v4327_v17 = vcombine.high %v4317_v45, %v4317_v45  ;;  %v4328_v23 = vcombine.high %v4324_v19, %v4324_v19  ;;  %v4624_v4 = vrot.slane %v4303_v37, %v10967_v21  ;;  %9011 = vmatprep.mubr.msk.f32.mxu1 %vm495_vm1, %v12587_v43 }
 0xbc8   : > { %v4901_v57 = vrot.slane %v4887_v38, %v12432_v0  ;;  %v4904_v3 = vcombine.low %v4616_v41, %v4620_v7  ;;  %v4911_v10 = vrot.slane %v4903_v8, %v12432_v0  ;;  %v4628_v54 = vrot.slane %v4317_v45, %v10967_v21  ;;  %9263 = vmatpush1.bf16.msra.mxu0 %v9262_v1 }
 0xbc9   : > { %v4632_v52 = vrot.slane %v4325_v6, %v10967_v21  ;;  %v4636_v47 = vrot.slane %v4327_v17, %v10967_v21  ;;  %v4640_v32 = vrot.slane %v4310_v58, %v10967_v21  ;;  %v4644_v37 = vrot.slane %v4324_v19, %v10967_v21  ;;  %9264 = vmatprep.subr.bf16.mxu0 %v10518_v13  ;;  %v12638_v17 = vld [vmem:[#allocation3 + $0x30] sm:$0xff] }
 0xbca   : > { %v4902_v60 = vcombine.low %v4894_v50, %v4901_v57  ;;  %v4918_v49 = vrot.slane %v4904_v3, %v12432_v0  ;;  %v4648_v24 = vrot.slane %v4326_v29, %v10967_v21  ;;  %v4652_v5 = vrot.slane %v4328_v23, %v10967_v21  ;;  %9012 = vmatmul.mubr.msk.f32.gmra.mrb[78].mxu1 %vm495_vm1, %v12603_v42  ;;  %v5203_v50 = vld [vmem:[#allocation3 + $0x2] sm:$0xff] }
 0xbcb   : > { %v4920_v15 = vcombine.low %v4624_v4, %v4628_v54  ;;  %v4921_v1 = vcombine.low %v4632_v52, %v4636_v47  ;;  %v4937_v44 = vcombine.low %v4640_v32, %v4644_v37  ;;  %v4343_v2 = vrot.slane %v4329_v36, %v12417_v22 }
 0xbcc   : > { %v4919_v48 = vcombine.low %v4911_v10, %v4918_v49  ;;  %5115 = vst.msk [vmem:[#allocation3 + $0x79] sm:$0xff] %vm495_vm1, %v4902_v60  ;;  %5117 = vst.msk [vmem:[#allocation3 + $0x91] sm:$0xff] %vm495_vm1, %v4902_v60  ;;  %v4938_v58 = vcombine.low %v4648_v24, %v4652_v5  ;;  %v4344_v51 = vcombine.high %v12540_v9, %v12540_v9  ;;  %9266 = vmatpush1.bf16.msra.mxu0 %v9265_v61 }
 0xbcd   : > { %v4352_v35 = vrot.slane %v12540_v9, %v12417_v22  ;;  %v4928_v18 = vrot.slane %v4920_v15, %v12432_v0  ;;  %v4935_v39 = vrot.slane %v4921_v1, %v12432_v0  ;;  %v4945_v36 = vrot.slane %v4937_v44, %v12432_v0  ;;  %9267 = vmatprep.subr.bf16.mxu0 %v10518_v13 }
 0xbce   : > { %v4345_v41 = vcombine.high %v4343_v2, %v4343_v2  ;;  %5116 = vst.msk [vmem:[#allocation3 + $0x81] sm:$0xff] %vm495_vm1, %v4919_v48  ;;  %5118 = vst.msk [vmem:[#allocation3 + $0x99] sm:$0xff] %vm495_vm1, %v4919_v48  ;;  %v4952_v55 = vrot.slane %v4938_v58, %v12432_v0  ;;  %v4359_v9 = vrot.slane %v4343_v2, %v12417_v22 }
 0xbcf   : > { %v4366_v11 = vrot.slane %v4344_v51, %v12417_v22  ;;  %v4374_v20 = vcombine.high %v4352_v35, %v4352_v35  ;;  %v4936_v61 = vcombine.low %v4928_v18, %v4935_v39  ;;  %v4656_v19 = vrot.slane %v4352_v35, %v10967_v21 }
 0xbd0   : > { %v4373_v45 = vrot.slane %v4345_v41, %v12417_v22  ;;  %v4122_v6 = vadd.f32 %v12543_v27, %v11647_v26  ;;  %v4953_v7 = vcombine.low %v4945_v36, %v4952_v55  ;;  %v4375_v38 = vcombine.high %v4359_v9, %v4359_v9  ;;  %v5235_v26 = vld [vmem:[#allocation3 + $0x18] sm:$0xff] }
 0xbd1   : > { %v4376_v8 = vcombine.high %v4366_v11, %v4366_v11  ;;  %v4660_v29 = vrot.slane %v4366_v11, %v10967_v21  ;;  %5119 = vst.msk [vmem:[#allocation3 + $0xa9] sm:$0xff] %vm495_vm1, %v4936_v61  ;;  %5121 = vst.msk [vmem:[#allocation3 + $0xc1] sm:$0xff] %vm495_vm1, %v4936_v61  ;;  %v4664_v4 = vrot.slane %v4374_v20, %v10967_v21  ;;  %v12645_v27 = vld [vmem:[#allocation3 + $0x31] sm:$0xff]  ;;  %v5172_v11 = vld [vmem:[#allocation3 + $0x9] sm:$0xff] }
 0xbd2   : > { %v4377_v23 = vcombine.high %v4373_v45, %v4373_v45  ;;  %v4672_v57 = vrot.slane %v4359_v9, %v10967_v21  ;;  %v4676_v3 = vrot.slane %v4373_v45, %v10967_v21  ;;  %5120 = vst.msk [vmem:[#allocation3 + $0xb1] sm:$0xff] %vm495_vm1, %v4953_v7  ;;  %5122 = vst.msk [vmem:[#allocation3 + $0xc9] sm:$0xff] %vm495_vm1, %v4953_v7  ;;  %v12669_v20 = vld [vmem:[#allocation3 + $0x22] sm:$0xff]  ;;  %v12677_v7 = vld [vmem:[#allocation3 + $0x1a] sm:$0xff] }
 0xbd3   : > { %v4668_v10 = vrot.slane %v4376_v8, %v10967_v21  ;;  %v4680_v54 = vrot.slane %v4375_v38, %v10967_v21  ;;  %v4954_v52 = vcombine.low %v4656_v19, %v4660_v29  ;;  %v4378_v47 = vcombine.high %v4122_v6, %v4122_v6 }
 0xbd4   : > { %v4684_v32 = vrot.slane %v4377_v23, %v10967_v21  ;;  %v4971_v37 = vcombine.low %v4672_v57, %v4676_v3  ;;  %v4385_v60 = vrot.slane %v4122_v6, %v12417_v22  ;;  %v9823_v49 = vpack.i.bf16 %v5203_v50, %v12638_v17 }
 0xbd5   : > { %v4955_v24 = vcombine.low %v4664_v4, %v4668_v10  ;;  %v4392_v5 = vrot.slane %v4378_v47, %v12417_v22  ;;  %v9828_v15 = vpack.i.bf16 %v5235_v26, %v12645_v27  ;;  %v4962_v1 = vrot.slane %v4954_v52, %v12432_v0  ;;  %v12659_v58 = vld [vmem:[#allocation3 + $0x7a] sm:$0xff]  ;;  %v12673_v61 = vld [vmem:[#allocation3 + $0x82] sm:$0xff]  ;;  %v12681_v38 = vld [vmem:[#allocation3 + $0x92] sm:$0xff] }
 0xbd6   : > { %v4972_v44 = vcombine.low %v4680_v54, %v4684_v32  ;;  %v4393_v2 = vcombine.high %v4385_v60, %v4385_v60  ;;  %v4401_v48 = vrot.slane %v4385_v60, %v12417_v22  ;;  %9824 = vrot.lane.b32.xlu1 %v9823_v49, %s14246_s16  ;;  %v8807_v39 = vadd.f32 %v12559_v34, %v12552_v59  ;;  %v5171_v34 = vld [vmem:[#allocation3 + $0x1] sm:$0xff]  ;;  %v5204_v10 = vld [vmem:[#allocation3 + $0xa] sm:$0xff]  ;;  %v12701_v49 = vld [vmem:[#allocation3 + $0x39] sm:$0xff] }
 0xbd7   : > { %v4969_v51 = vrot.slane %v4955_v24, %v12432_v0  ;;  %v4394_v35 = vcombine.high %v4392_v5, %v4392_v5  ;;  %v4408_v18 = vrot.slane %v4392_v5, %v12417_v22  ;;  %9829 = vrot.lane.b32.xlu0 %v9828_v15, %s14247_s18  ;;  %v4979_v36 = vrot.slane %v4971_v37, %v12432_v0  ;;  %v12697_v37 = vld [vmem:[#allocation3 + $0x38] sm:$0xff]  ;;  %v12699_v60 = vld [vmem:[#allocation3 + $0x20] sm:$0xff] }
 0xbd8   : > { %v4986_v41 = vrot.slane %v4972_v44, %v12432_v0  ;;  %v4415_v55 = vrot.slane %v4393_v2, %v12417_v22  ;;  %v4423_v9 = vcombine.high %v4401_v48, %v4401_v48  ;;  %9014 = vmatprep.mubr.msk.f32.mxu1 %vm495_vm1, %v12659_v58  ;;  %v4688_v59 = vrot.slane %v4401_v48, %v10967_v21  ;;  %v12710_v48 = vld [vmem:[#allocation3 + $0x21] sm:$0xff] }
 0xbd9   : > { %v4970_v45 = vcombine.low %v4962_v1, %v4969_v51  ;;  %v4422_v19 = vrot.slane %v4394_v35, %v12417_v22  ;;  %v4424_v6 = vcombine.high %v4408_v18, %v4408_v18  ;;  %9015 = vmatmul.mubr.msk.f32.gmra.mrb[80].mxu1 %vm495_vm1, %v12673_v61  ;;  %v4704_v23 = vrot.slane %v4408_v18, %v10967_v21  ;;  %v12712_v51 = vld [vmem:[#allocation3 + $0x9a] sm:$0xff] }
 0xbda   : > { %v4987_v8 = vcombine.low %v4979_v36, %v4986_v41  ;;  %v4425_v29 = vcombine.high %v4415_v55, %v4415_v55  ;;  %v4692_v50 = vrot.slane %v4415_v55, %v10967_v21  ;;  %9017 = vmatprep.mubr.msk.f32.mxu1 %vm495_vm1, %v12681_v38  ;;  %v4696_v57 = vrot.slane %v4423_v9, %v10967_v21  ;;  %v12718_v41 = vld [vmem:[#allocation3 + $0x49] sm:$0xff]  ;;  %v12728_v9 = vld [vmem:[#allocation3 + $0x19] sm:$0xff] }
 0xbdb   : > { %5123 = vst.msk [vmem:[#allocation3 + $0xd9] sm:$0xff] %vm495_vm1, %v4970_v45  ;;  %5125 = vst.msk [vmem:[#allocation3 + $0xf1] sm:$0xff] %vm495_vm1, %v4970_v45  ;;  %v4426_v4 = vcombine.high %v4422_v19, %v4422_v19  ;;  %v4708_v3 = vrot.slane %v4422_v19, %v10967_v21  ;;  %v9838_v26 = vpack.i.bf16 %v5172_v11, %v12669_v20  ;;  %v12730_v11 = vld [vmem:[#allocation3 + $0x48] sm:$0xff] }
 0xbdc   : > { %5124 = vst.msk [vmem:[#allocation3 + $0xe1] sm:$0xff] %vm495_vm1, %v4987_v8  ;;  %5126 = vst.msk [vmem:[#allocation3 + $0xf9] sm:$0xff] %vm495_vm1, %v4987_v8  ;;  %v4700_v54 = vrot.slane %v4425_v29, %v10967_v21  ;;  %v4988_v52 = vcombine.low %v4688_v59, %v4692_v50  ;;  %v9833_v47 = vpack.i.bf16 %v5171_v34, %v12677_v7  ;;  %v12734_v45 = vld [vmem:[#allocation3 + $0x61] sm:$0xff] }
 0xbdd   : > { %v4004_v32 = vadd.f32 %v8807_v39, %v12399_v31  ;;  %v4712_v24 = vrot.slane %v4424_v6, %v10967_v21  ;;  %v4716_v5 = vrot.slane %v4426_v4, %v10967_v21  ;;  %v5005_v15 = vcombine.low %v4704_v23, %v4708_v3  ;;  %9839 = vrot.lane.b32.xlu1 %v9838_v26, %s14245_s3  ;;  %v12743_v34 = vld [vmem:[#allocation3 + $0x60] sm:$0xff]  ;;  %v12751_v4 = vld [vmem:[#allocation3 + $0x50] sm:$0xff] }
 0xbde   : > { %v8810_v1 = vadd.f32 %v12583_v40, %v12578_v14  ;;  %v4989_v44 = vcombine.low %v4696_v57, %v4700_v54  ;;  %9834 = vrot.lane.b32.xlu0 %v9833_v47, %s14245_s3  ;;  %v9843_v39 = vpack.i.bf16 %v5204_v10, %v12697_v37  ;;  %v9848_v36 = vpack.i.bf16 %v12699_v60, %v12701_v49  ;;  %v12722_v14 = vld [vmem:[#allocation3 + $0xaa] sm:$0xff] }
 0xbdf   : > { %v4109_v2 = vadd.f32 %v12381_v62, %v4004_v32  ;;  %v5006_v35 = vcombine.low %v4712_v24, %v4716_v5  ;;  %9018 = vmatmul.mubr.msk.f32.gmra.mrb[82].mxu1 %vm495_vm1, %v12712_v51  ;;  %v4996_v62 = vrot.slane %v4988_v52, %v12432_v0  ;;  %v5013_v55 = vrot.slane %v5005_v15, %v12432_v0  ;;  %v12753_v57 = vld [vmem:[#allocation3 + $0x51] sm:$0xff]  ;;  %v12762_v52 = vld [vmem:[#allocation3 + $0xc2] sm:$0xff] }
 0xbe0   : > { %v4009_v18 = vadd.f32 %v8810_v1, %v12399_v31  ;;  %v5003_v40 = vrot.slane %v4989_v44, %v12432_v0  ;;  %9020 = vmatprep.mubr.msk.f32.mxu1 %vm495_vm1, %v12722_v14  ;;  %v9853_v59 = vpack.i.bf16 %v12728_v9, %v12545_v63  ;;  %v9868_v23 = vpack.i.bf16 %v12638_v17, %v12718_v41 }
 0xbe1   : > { %v4123_v31 = vadd.f32 %v4109_v2, %v11663_v53  ;;  %v5020_v19 = vrot.slane %v5006_v35, %v12432_v0  ;;  %9849 = vrot.lane.b32.xlu1 %v9848_v36, %s14247_s18  ;;  %v9858_v53 = vpack.i.bf16 %v12710_v48, %v12547_v12  ;;  %v9863_v10 = vpack.i.bf16 %v12677_v7, %v12730_v11  ;;  %v12783_v35 = vld [vmem:[#allocation3 + $0xca] sm:$0xff] }
 0xbe2   : > { %v4114_v6 = vadd.f32 %v12379_v25, %v4009_v18  ;;  %v5004_v8 = vcombine.low %v4996_v62, %v5003_v40  ;;  %9844 = vrot.lane.b32.xlu0 %v9843_v39, %s14246_s16  ;;  %v12749_v25 = vld [vmem:[#allocation3 + $0xb2] sm:$0xff]  ;;  %v9878_v54 = vpack.i.bf16 %v12730_v11, %v12734_v45  ;;  %v9873_v7 = vpack.i.bf16 %v12545_v63, %v12743_v34 }
 0xbe3   : > { %v4427_v29 = vcombine.high %v4123_v31, %v4123_v31  ;;  %v4434_v50 = vrot.slane %v4123_v31, %v12417_v22  ;;  %v5021_v3 = vcombine.low %v5013_v55, %v5020_v19  ;;  %9021 = vmatmul.mubr.msk.f32.gmra.mrb[84].mxu1 %vm495_vm1, %v12749_v25  ;;  %v9883_v5 = vpack.i.bf16 %v12669_v20, %v12751_v4  ;;  %v12790_v40 = vld [vmem:[#allocation3 + $0xda] sm:$0xff] }
 0xbe4   : > { %v4124_v26 = vadd.f32 %v4114_v6, %v11677_v46  ;;  %5127 = vst.msk [vmem:[#allocation3 + $0x109] sm:$0xff] %vm495_vm1, %v5004_v8  ;;  %5129 = vst.msk [vmem:[#allocation3 + $0x121] sm:$0xff] %vm495_vm1, %v5004_v8  ;;  %9023 = vmatprep.mubr.msk.f32.mxu1 %vm495_vm1, %v12762_v52  ;;  %v9888_v15 = vpack.i.bf16 %v12697_v37, %v12753_v57  ;;  %v9898_v37 = vpack.i.bf16 %v12701_v49, %v12574_v56 }
 0xbe5   : > { %v4441_v17 = vrot.slane %v4427_v29, %v12417_v22  ;;  %v4442_v47 = vcombine.high %v4434_v50, %v4434_v50  ;;  %v4450_v46 = vrot.slane %v4434_v50, %v12417_v22  ;;  %5128 = vst.msk [vmem:[#allocation3 + $0x111] sm:$0xff] %vm495_vm1, %v5021_v3  ;;  %5130 = vst.msk [vmem:[#allocation3 + $0x129] sm:$0xff] %vm495_vm1, %v5021_v3  ;;  %9859 = vrot.lane.b32.xlu1 %v9858_v53, %s14245_s3 }
 0xbe6   : > { %v4476_v32 = vcombine.high %v4124_v26, %v4124_v26  ;;  %v4483_v24 = vrot.slane %v4124_v26, %v12417_v22  ;;  %9854 = vrot.lane.b32.xlu0 %v9853_v59, %s14245_s3 }
 0xbe7   : > { %v4443_v1 = vcombine.high %v4441_v17, %v4441_v17  ;;  %v4457_v63 = vrot.slane %v4441_v17, %v12417_v22  ;;  %v4464_v44 = vrot.slane %v4442_v47, %v12417_v22  ;;  %v4472_v2 = vcombine.high %v4450_v46, %v4450_v46  ;;  %9024 = vmatmul.mubr.msk.f32.gmra.mrb[86].mxu1 %vm495_vm1, %v12783_v35  ;;  %v12804_v47 = vld [vmem:[#allocation3 + $0xe2] sm:$0xff] }
 0xbe8   : > { %v4720_v18 = vrot.slane %v4450_v46, %v10967_v21  ;;  %v4490_v39 = vrot.slane %v4476_v32, %v12417_v22  ;;  %v4491_v36 = vcombine.high %v4483_v24, %v4483_v24  ;;  %v4499_v62 = vrot.slane %v4483_v24, %v12417_v22  ;;  %9026 = vmatprep.mubr.msk.f32.mxu1 %vm495_vm1, %v12790_v40 }
 0xbe9   : > { %v4471_v55 = vrot.slane %v4443_v1, %v12417_v22  ;;  %v4473_v31 = vcombine.high %v4457_v63, %v4457_v63  ;;  %v4474_v19 = vcombine.high %v4464_v44, %v4464_v44  ;;  %v4724_v6 = vrot.slane %v4464_v44, %v10967_v21  ;;  %9864 = vrot.lane.b32.xlu1 %v9863_v10, %s14246_s16  ;;  %v12810_v10 = vld [vmem:[#allocation3 + $0xf2] sm:$0xff] }
 0xbea   : > { %v4728_v59 = vrot.slane %v4472_v2, %v10967_v21  ;;  %v4736_v53 = vrot.slane %v4457_v63, %v10967_v21  ;;  %v4492_v8 = vcombine.high %v4490_v39, %v4490_v39  ;;  %v4506_v29 = vrot.slane %v4490_v39, %v12417_v22  ;;  %9869 = vrot.lane.b32.xlu0 %v9868_v23, %s14247_s18 }
 0xbeb   : > { %v4475_v50 = vcombine.high %v4471_v55, %v4471_v55  ;;  %v4732_v3 = vrot.slane %v4474_v19, %v10967_v21  ;;  %v4740_v26 = vrot.slane %v4471_v55, %v10967_v21  ;;  %v4744_v17 = vrot.slane %v4473_v31, %v10967_v21  ;;  %9027 = vmatmul.mubr.msk.f32.gmra.mrb[88].mxu1 %vm495_vm1, %v12804_v47 }
 0xbec   : > { %v5022_v46 = vcombine.low %v4720_v18, %v4724_v6  ;;  %v4513_v32 = vrot.slane %v4491_v36, %v12417_v22  ;;  %v4520_v24 = vrot.slane %v4492_v8, %v12417_v22  ;;  %v4521_v1 = vcombine.high %v4499_v62, %v4499_v62  ;;  %9029 = vmatprep.mubr.msk.f32.mxu1 %vm495_vm1, %v12810_v10 }
 0xbed   : > { %v4748_v63 = vrot.slane %v4475_v50, %v10967_v21  ;;  %v5023_v44 = vcombine.low %v4728_v59, %v4732_v3  ;;  %v5039_v2 = vcombine.low %v4736_v53, %v4740_v26  ;;  %v4522_v39 = vcombine.high %v4506_v29, %v4506_v29  ;;  %9874 = vrot.lane.b32.xlu1 %v9873_v7, %s14246_s16  ;;  %v12825_v59 = vld [vmem:[#allocation3 + $0xfa] sm:$0xff]  ;;  %v12833_v50 = vld [vmem:[#allocation3 + $0x10a] sm:$0xff] }
 0xbee   : > { %v5030_v23 = vrot.slane %v5022_v46, %v12432_v0  ;;  %v4523_v18 = vcombine.high %v4513_v32, %v4513_v32  ;;  %v4524_v36 = vcombine.high %v4520_v24, %v4520_v24  ;;  %v4752_v22 = vrot.slane %v4499_v62, %v10967_v21  ;;  %9879 = vrot.lane.b32.xlu0 %v9878_v54, %s14247_s18 }
 0xbef   : > { %v5037_v55 = vrot.slane %v5023_v44, %v12432_v0  ;;  %v5040_v31 = vcombine.low %v4744_v17, %v4748_v63  ;;  %v5047_v19 = vrot.slane %v5039_v2, %v12432_v0  ;;  %v4756_v6 = vrot.slane %v4513_v32, %v10967_v21  ;;  %9030 = vmatmul.mubr.msk.f32.gmra.mrb[90].mxu1 %vm495_vm1, %v12825_v59  ;;  %v12866_v2 = vld [vmem:[#allocation3 + $0x69] sm:$0xff] }
 0xbf0   : > { %v4760_v53 = vrot.slane %v4521_v1, %v10967_v21  ;;  %v4764_v62 = vrot.slane %v4523_v18, %v10967_v21  ;;  %v4768_v7 = vrot.slane %v4506_v29, %v10967_v21  ;;  %v4772_v8 = vrot.slane %v4520_v24, %v10967_v21  ;;  %9032 = vmatprep.mubr.msk.f32.mxu1 %vm495_vm1, %v12833_v50 }
 0xbf1   : > { %v5038_v3 = vcombine.low %v5030_v23, %v5037_v55  ;;  %v5054_v26 = vrot.slane %v5040_v31, %v12432_v0  ;;  %v4776_v11 = vrot.slane %v4522_v39, %v10967_v21  ;;  %v4780_v54 = vrot.slane %v4524_v36, %v10967_v21  ;;  %9889 = vrot.lane.b32.xlu1 %v9888_v15, %s14247_s18  ;;  %v12850_v21 = vld [vmem:[#allocation3 + $0x112] sm:$0xff]  ;;  %v12858_v15 = vld [vmem:[#allocation3 + $0x122] sm:$0xff]  ;;  %v12874_v36 = vld [vmem:[#allocation3 + $0x12a] sm:$0xff] }
 0xbf2   : > { %v5056_v17 = vcombine.low %v4752_v22, %v4756_v6  ;;  %v5057_v46 = vcombine.low %v4760_v53, %v4764_v62  ;;  %v5073_v29 = vcombine.low %v4768_v7, %v4772_v8  ;;  %9884 = vrot.lane.b32.xlu0 %v9883_v5, %s14246_s16  ;;  %v9893_v44 = vpack.i.bf16 %v12645_v27, %v12572_v28  ;;  %v12871_v23 = vld [vmem:[#allocation3 + $0x68] sm:$0xff]  ;;  %v4801_v22 = vld [vmem:[%s14216_s11 + $0xa0] sm:$0xff]  ;;  %v5338_v6 = vld [vmem:[#allocation3 + $0x78] sm:$0xff] }
 0xbf3   : > { %v5055_v32 = vcombine.low %v5047_v19, %v5054_v26  ;;  %5131 = vst.msk [vmem:[#allocation3 + $0x139] sm:$0xff] %vm495_vm1, %v5038_v3  ;;  %5133 = vst.msk [vmem:[#allocation3 + $0x151] sm:$0xff] %vm495_vm1, %v5038_v3  ;;  %v5074_v24 = vcombine.low %v4776_v11, %v4780_v54  ;;  %9033 = vmatmul.mubr.msk.f32.gmra.mrb[92].mxu1 %vm495_vm1, %v12850_v21  ;;  %v9903_v27 = vpack.i.bf16 %v12547_v12, %v12871_v23  ;;  %v4803_v12 = vld [vmem:[%s14216_s11 + $0xb0] sm:$0xff]  ;;  %v4804_v7 = vld [vmem:[%s14216_s11 + $0xb8] sm:$0xff] }
 0xbf4   : > { %v5064_v1 = vrot.slane %v5056_v17, %v12432_v0  ;;  %v5071_v63 = vrot.slane %v5057_v46, %v12432_v0  ;;  %v5081_v20 = vrot.slane %v5073_v29, %v12432_v0  ;;  %9035 = vmatprep.mubr.msk.f32.mxu1 %vm495_vm1, %v12858_v15  ;;  %v9918_v55 = vpack.i.bf16 %v12753_v57, %v12603_v42  ;;  %v12911_v8 = vld [vmem:[#allocation3 + $0x79] sm:$0xff]  ;;  %v12926_v46 = vld [vmem:[#allocation3 + $0x90] sm:$0xff] }
 0xbf5   : > { %5132 = vst.msk [vmem:[#allocation3 + $0x141] sm:$0xff] %vm495_vm1, %v5055_v32  ;;  %5134 = vst.msk [vmem:[#allocation3 + $0x159] sm:$0xff] %vm495_vm1, %v5055_v32  ;;  %v5088_v5 = vrot.slane %v5074_v24, %v12432_v0  ;;  %9899 = vrot.lane.b32.xlu1 %v9898_v37, %s14245_s3  ;;  %v9908_v0 = vpack.i.bf16 %v12751_v4, %v12866_v2  ;;  %v4802_v4 = vld [vmem:[%s14216_s11 + $0xa8] sm:$0xff]  ;;  %v9913_v19 = vpack.i.bf16 %v12718_v41, %v12587_v43  ;;  %v4805_v54 = vld [vmem:[%s14216_s11 + $0xc0] sm:$0xff] }
 0xbf6   : > { %v5072_v39 = vcombine.low %v5064_v1, %v5071_v63  ;;  %9894 = vrot.lane.b32.xlu0 %v9893_v44, %s14245_s3  ;;  %v9268_v62 = vpack.c.bf16 %v4802_v4, %v4801_v22  ;;  %v9923_v26 = vpack.i.bf16 %v12572_v28, %v5338_v6  ;;  %v9271_v11 = vpack.c.bf16 %v4804_v7, %v4803_v12  ;;  %v4806_v32 = vld [vmem:[%s14216_s11 + $0xc8] sm:$0xff]  ;;  %v12935_v28 = vld [vmem:[#allocation3 + $0x91] sm:$0xff]  ;;  %v4809_v4 = vld [vmem:[%s14216_s11 + $0xe0] sm:$0xff] }
 0xbf7   : > { %v5089_v18 = vcombine.low %v5081_v20, %v5088_v5  ;;  %9036 = vmatmul.mubr.msk.f32.gmra.mrb[94].mxu1 %vm495_vm1, %v12874_v36  ;;  %v9928_v17 = vpack.i.bf16 %v12743_v34, %v12911_v8  ;;  %v9933_v34 = vpack.i.bf16 %v12587_v43, %v12926_v46  ;;  %v9274_v1 = vpack.c.bf16 %v4806_v32, %v4805_v54  ;;  %v4807_v63 = vld [vmem:[%s14216_s11 + $0xd0] sm:$0xff]  ;;  %v5371_v20 = vld [vmem:[#allocation3 + $0x81] sm:$0xff]  ;;  %v4808_v44 = vld [vmem:[%s14216_s11 + $0xd8] sm:$0xff] }
 0xbf8   : > { %5135 = vst.msk [vmem:[#allocation3 + $0x169] sm:$0xff] %vm495_vm1, %v5072_v39  ;;  %5137 = vst.msk [vmem:[#allocation3 + $0x181] sm:$0xff] %vm495_vm1, %v5072_v39  ;;  %9269 = vmatpush1.bf16.msra.mxu0 %v9268_v62  ;;  %v9938_v37 = vpack.i.bf16 %v5338_v6, %v12935_v28  ;;  %v5339_v43 = vld [vmem:[#allocation3 + $0x80] sm:$0xff]  ;;  %v9953_v12 = vpack.i.bf16 %v12734_v45, %v12659_v58  ;;  %v4811_v6 = vld [vmem:[%s14216_s11 + $0xf0] sm:$0xff]  ;;  %v9973_v54 = vpack.i.bf16 %v12911_v8, %v12681_v38 }
 0xbf9   : > { %5136 = vst.msk [vmem:[#allocation3 + $0x171] sm:$0xff] %vm495_vm1, %v5089_v18  ;;  %5138 = vst.msk [vmem:[#allocation3 + $0x189] sm:$0xff] %vm495_vm1, %v5089_v18  ;;  %9909 = vrot.lane.b32.xlu1 %v9908_v0, %s14247_s18  ;;  %9270 = vmatprep.subr.bf16.mxu0 %v10518_v13  ;;  %v9948_v18 = vpack.i.bf16 %v12871_v23, %v5371_v20  ;;  %v9277_v0 = vpack.c.bf16 %v4808_v44, %v4807_v63  ;;  %v4812_v62 = vld [vmem:[%s14216_s11 + $0xf8] sm:$0xff]  ;;  %v5374_v32 = vld [vmem:[#allocation3 + $0xa9] sm:$0xff] }
 0xbfa   : > { %9904 = vrot.lane.b32.xlu0 %v9903_v27, %s14246_s16  ;;  %v9943_v27 = vpack.i.bf16 %v12574_v56, %v5339_v43  ;;  %v9958_v56 = vpack.i.bf16 %v12866_v2, %v12673_v61  ;;  %v5341_v7 = vld [vmem:[#allocation3 + $0x98] sm:$0xff] }
 0xbfb   : > { %v9963_v45 = vpack.i.bf16 %v12603_v42, %v5341_v7  ;;  %v5375_v8 = vld [vmem:[#allocation3 + $0xb1] sm:$0xff] }
 0xbfc   : > { %v12896_v31 = vld [vmem:[#allocation3 + $0x13a] sm:$0xff]  ;;  %v12905_v53 = vld [vmem:[#allocation3 + $0x142] sm:$0xff]  ;;  %v12915_v3 = vld [vmem:[#allocation3 + $0x152] sm:$0xff]  ;;  %9272 = vmatpush1.bf16.msra.mxu0 %v9271_v11  ;;  %v9978_v11 = vpack.i.bf16 %v5371_v20, %v12712_v51  ;;  %v10008_v44 = vpack.i.bf16 %v5341_v7, %v5375_v8 }
 0xbfd   : > { %9038 = vmatprep.mubr.msk.f32.mxu1 %vm495_vm1, %v12896_v31  ;;  %9919 = vrot.lane.b32.xlu1 %v9918_v55, %s14245_s3  ;;  %v12928_v29 = vld [vmem:[#allocation3 + $0x15a] sm:$0xff]  ;;  %v4810_v55 = vld [vmem:[%s14216_s11 + $0xe8] sm:$0xff]  ;;  %v5343_v20 = vld [vmem:[#allocation3 + $0xb0] sm:$0xff] }
 0xbfe   : > { %9039 = vmatmul.mubr.msk.f32.gmra.mrb[96].mxu1 %vm495_vm1, %v12905_v53  ;;  %9914 = vrot.lane.b32.xlu0 %v9913_v19, %s14245_s3  ;;  %v9280_v23 = vpack.c.bf16 %v4810_v55, %v4809_v4  ;;  %v5373_v19 = vld [vmem:[#allocation3 + $0x99] sm:$0xff] }
 0xbff   : > { %9041 = vmatprep.mubr.msk.f32.mxu1 %vm495_vm1, %v12915_v3  ;;  %9273 = vmatprep.subr.bf16.mxu0 %v10518_v13  ;;  %v9968_v2 = vpack.i.bf16 %v5339_v43, %v5373_v19  ;;  %v10013_v43 = vpack.i.bf16 %v12935_v28, %v12722_v14  ;;  %v5378_v28 = vld [vmem:[#allocation3 + $0xd9] sm:$0xff] }
 0xc00   : > { %v12939_v24 = vld [vmem:[#allocation3 + $0x16a] sm:$0xff]  ;;  %v12950_v5 = vld [vmem:[#allocation3 + $0x172] sm:$0xff]  ;;  %v5424_v39 = vld [vmem:[#allocation3 + $0x182] sm:$0xff]  ;;  %9275 = vmatpush1.bf16.msra.mxu0 %v9274_v1 }
 0xc01   : > { %9924 = vrot.lane.b32.xlu1 %v9923_v26, %s14246_s16  ;;  %v5425_v22 = vld [vmem:[#allocation3 + $0x18a] sm:$0xff]  ;;  %9276 = vmatprep.subr.bf16.mxu0 %v10518_v13  ;;  %v9283_v26 = vpack.c.bf16 %v4812_v62, %v4811_v6  ;;  %v5376_v1 = vld [vmem:[#allocation3 + $0xc1] sm:$0xff] }
 0xc02   : > { %9042 = vmatmul.mubr.msk.f32.gmra.mrb[98].mxu1 %vm495_vm1, %v12928_v29  ;;  %9929 = vrot.lane.b32.xlu0 %v9928_v17, %s14247_s18  ;;  %v5342_v17 = vld [vmem:[#allocation3 + $0xa8] sm:$0xff]  ;;  %v5347_v6 = vld [vmem:[#allocation3 + $0xe0] sm:$0xff] }
 0xc03   : > { %9044 = vmatprep.mubr.msk.f32.mxu1 %vm495_vm1, %v12939_v24  ;;  %v9983_v42 = vpack.i.bf16 %v12659_v58, %v5342_v17  ;;  %v10003_v58 = vpack.i.bf16 %v12673_v61, %v5343_v20  ;;  %v10038_v61 = vpack.i.bf16 %v5375_v8, %v12783_v35 }
 0xc04   : > { %9278 = vmatpush1.bf16.msra.mxu0 %v9277_v0 }
 0xc05   : > { %9934 = vrot.lane.b32.xlu1 %v9933_v34, %s14246_s16  ;;  %9279 = vmatprep.subr.bf16.mxu0 %v10518_v13  ;;  %v5344_v34 = vld [vmem:[#allocation3 + $0xc0] sm:$0xff] }
 0xc06   : > { %9045 = vmatmul.mubr.msk.f32.gmra.mrb[100].mxu1 %vm495_vm1, %v12950_v5  ;;  %9939 = vrot.lane.b32.xlu0 %v9938_v37, %s14247_s18  ;;  %v9993_v63 = vpack.i.bf16 %v12681_v38, %v5344_v34  ;;  %v9998_v37 = vpack.i.bf16 %v5342_v17, %v5376_v1  ;;  %v5377_v38 = vld [vmem:[#allocation3 + $0xc9] sm:$0xff]  ;;  %v10048_v55 = vpack.i.bf16 %v5344_v34, %v5378_v28 }
 0xc07   : > { %9047 = vmatprep.mubr.msk.f32.mxu1 %vm495_vm1, %v5424_v39  ;;  %v5345_v39 = vld [vmem:[#allocation3 + $0xc8] sm:$0xff]  ;;  %v10078_v7 = vpack.i.bf16 %v5377_v38, %v12804_v47 }
 0xc08   : > { %9281 = vmatpush1.bf16.msra.mxu0 %v9280_v23  ;;  %v10023_v0 = vpack.i.bf16 %v12712_v51, %v5345_v39  ;;  %v13019_v51 = vld [vmem:[#allocation3 + $0xf1] sm:$0xff]  ;;  %v5350_v17 = vld [vmem:[#allocation3 + $0x108] sm:$0xff] }
 0xc09   : > { %9949 = vrot.lane.b32.xlu1 %v9948_v18, %s14247_s18  ;;  %9282 = vmatprep.subr.bf16.mxu0 %v10518_v13  ;;  %v9988_v13 = vpack.i.bf16 %v12926_v46, %v5374_v32  ;;  %v10018_v46 = vpack.i.bf16 %v5373_v19, %v12749_v25  ;;  %v10028_v18 = vpack.i.bf16 %v5343_v20, %v5377_v38  ;;  %v5379_v19 = vld [vmem:[#allocation3 + $0xe1] sm:$0xff]  ;;  %v13053_v20 = vld [vmem:[#allocation3 + $0x111] sm:$0xff] }
 0xc0a   : > { %9048 = vmatmul.mubr.msk.f32.gmra.mrb[102].mxu1 %vm495_vm1, %v5425_v22  ;;  %9944 = vrot.lane.b32.xlu0 %v9943_v27, %s14246_s16  ;;  %v10033_v27 = vpack.i.bf16 %v5374_v32, %v12762_v52  ;;  %v5346_v22 = vld [vmem:[#allocation3 + $0xd8] sm:$0xff]  ;;  %v10068_v62 = vpack.i.bf16 %v5345_v39, %v5379_v19  ;;  %v13039_v32 = vld [vmem:[#allocation3 + $0x109] sm:$0xff] }
 0xc0b   : > { %v10043_v4 = vpack.i.bf16 %v12722_v14, %v5346_v22  ;;  %v10063_v14 = vpack.i.bf16 %v12749_v25, %v5347_v6  ;;  %v10098_v25 = vpack.i.bf16 %v5379_v19, %v12825_v59 }
 0xc0c   : > { %9284 = vmatpush1.bf16.msra.mxu0 %v9283_v26  ;;  %v5349_v26 = vld [vmem:[#allocation3 + $0xf8] sm:$0xff] }
 0xc0d   : > { %9959 = vrot.lane.b32.xlu1 %v9958_v56, %s14245_s3  ;;  %v5348_v56 = vld [vmem:[#allocation3 + $0xf0] sm:$0xff] }
 0xc0e   : > { %9954 = vrot.lane.b32.xlu0 %v9953_v12, %s14245_s3  ;;  %v10053_v23 = vpack.i.bf16 %v12762_v52, %v5348_v56  ;;  %v10058_v12 = vpack.i.bf16 %v5346_v22, %v13019_v51  ;;  %v5381_v52 = vld [vmem:[#allocation3 + $0xf9] sm:$0xff] }
 0xc11   : > { %9969 = vrot.lane.b32.xlu1 %v9968_v2, %s14247_s18  ;;  %v10073_v2 = vpack.i.bf16 %v5376_v1, %v12790_v40  ;;  %v13047_v1 = vld [vmem:[#allocation3 + $0x121] sm:$0xff] }
 0xc12   : > { %9964 = vrot.lane.b32.xlu0 %v9963_v45, %s14246_s16  ;;  %v10088_v45 = vpack.i.bf16 %v5347_v6, %v5381_v52  ;;  %v10118_v8 = vpack.i.bf16 %v5350_v17, %v13047_v1 }
 0xc15   : > { %9979 = vrot.lane.b32.xlu1 %v9978_v11, %s14245_s3  ;;  %v10083_v11 = vpack.i.bf16 %v12783_v35, %v5349_v26  ;;  %v13044_v35 = vld [vmem:[#allocation3 + $0x120] sm:$0xff] }
 0xc16   : > { %9974 = vrot.lane.b32.xlu0 %v9973_v54, %s14245_s3  ;;  %v10093_v54 = vpack.i.bf16 %v5378_v28, %v12810_v10 }
 0xc19   : > { %9984 = vrot.lane.b32.xlu1 %v9983_v42, %s14246_s16  ;;  %v10103_v42 = vpack.i.bf16 %v12790_v40, %v5350_v17  ;;  %v5351_v40 = vld [vmem:[#allocation3 + $0x110] sm:$0xff] }
 0xc1a   : > { %9989 = vrot.lane.b32.xlu0 %v9988_v13, %s14247_s18  ;;  %v10108_v13 = vpack.i.bf16 %v5348_v56, %v13039_v32  ;;  %v10123_v38 = vpack.i.bf16 %v12804_v47, %v5351_v40 }
 0xc1d   : > { %9994 = vrot.lane.b32.xlu1 %v9993_v63, %s14246_s16 }
 0xc1e   : > { %9999 = vrot.lane.b32.xlu0 %v9998_v37, %s14247_s18  ;;  %v10113_v37 = vpack.i.bf16 %v12810_v10, %v13044_v35  ;;  %v10138_v10 = vpack.i.bf16 %v5381_v52, %v12850_v21 }
 0xc21   : > { %10009 = vrot.lane.b32.xlu1 %v10008_v44, %s14247_s18 }
 0xc22   : > { %10004 = vrot.lane.b32.xlu0 %v10003_v58, %s14246_s16  ;;  %v10128_v58 = vpack.i.bf16 %v5349_v26, %v13053_v20 }
 0xc25   : > { %10019 = vrot.lane.b32.xlu1 %v10018_v46, %s14245_s3  ;;  %v5139_v46 = vld [vmem:[#allocation3] sm:$0xff] }
 0xc26   : > { %10014 = vrot.lane.b32.xlu0 %v10013_v43, %s14245_s3 }
 0xc29   : > { %10029 = vrot.lane.b32.xlu1 %v10028_v18, %s14247_s18 }
 0xc2a   : > { %10024 = vrot.lane.b32.xlu0 %v10023_v0, %s14246_s16 }
 0xc2d   : > { %10039 = vrot.lane.b32.xlu1 %v10038_v61, %s14245_s3 }
 0xc2e   : > { %10034 = vrot.lane.b32.xlu0 %v10033_v27, %s14245_s3 }
 0xc31   : > { %10044 = vrot.lane.b32.xlu1 %v10043_v4, %s14246_s16 }
 0xc32   : > { %10049 = vrot.lane.b32.xlu0 %v10048_v55, %s14247_s18 }
 0xc35   : > { %10054 = vrot.lane.b32.xlu1 %v10053_v23, %s14246_s16  ;;  %v5140_v23 = vld [vmem:[#allocation3 + $0x8] sm:$0xff] }
 0xc36   : > { %10059 = vrot.lane.b32.xlu0 %v10058_v12, %s14247_s18 }
 0xc39   : > { %10069 = vrot.lane.b32.xlu1 %v10068_v62, %s14247_s18  ;;  %v10133_v62 = vpack.i.bf16 %v13019_v51, %v12833_v50 }
 0xc3a   : > { %10064 = vrot.lane.b32.xlu0 %v10063_v14, %s14246_s16 }
 0xc3d   : > { %10079 = vrot.lane.b32.xlu1 %v10078_v7, %s14245_s3  ;;  %v13069_v7 = vld [vmem:[#allocation3 + $0x129] sm:$0xff] }
 0xc3e   : > { %10074 = vrot.lane.b32.xlu0 %v10073_v2, %s14245_s3 }
 0xc41   : > { %10089 = vrot.lane.b32.xlu1 %v10088_v45, %s14247_s18  ;;  %v13074_v45 = vld [vmem:[#allocation3 + $0x128] sm:$0xff] }
 0xc42   : > { %10084 = vrot.lane.b32.xlu0 %v10083_v11, %s14246_s16 }
 0xc45   : > { %10099 = vrot.lane.b32.xlu1 %v10098_v25, %s14245_s3 }
 0xc46   : > { %10094 = vrot.lane.b32.xlu0 %v10093_v54, %s14245_s3 }
 0xc48   : > { %v9825_v34 = vpop.permute.xlu1 %9824 }
 0xc49   : > { %10104 = vrot.lane.b32.xlu1 %v10103_v42, %s14246_s16  ;;  %v9830_v63 = vpop.permute.xlu0 %9829  ;;  %v9827_v0 = vunpack.i.h.bf16 %v9825_v34  ;;  %v9826_v61 = vunpack.i.l.bf16 %v9825_v34  ;;  %v10148_v42 = vpack.i.bf16 %v5351_v40, %v13069_v7  ;;  %v10158_v40 = vpack.i.bf16 %v13053_v20, %v12874_v36 }
 0xc4a   : > { %10109 = vrot.lane.b32.xlu0 %v10108_v13, %s14247_s18  ;;  %v9832_v28 = vunpack.i.h.bf16 %v9830_v63  ;;  %v9831_v4 = vunpack.i.l.bf16 %v9830_v63 }
 0xc4d   : > { %10114 = vrot.lane.b32.xlu1 %v10113_v37, %s14246_s16  ;;  %v10143_v37 = vpack.i.bf16 %v12825_v59, %v13074_v45  ;;  %v10153_v59 = vpack.i.bf16 %v13039_v32, %v12858_v15 }
 0xc4e   : > { %10119 = vrot.lane.b32.xlu0 %v10118_v8, %s14247_s18 }
 0xc4f   : > { %v9840_v44 = vpop.permute.xlu1 %9839 }
 0xc50   : > { %v9835_v43 = vpop.permute.xlu0 %9834  ;;  %v9842_v27 = vunpack.i.h.bf16 %v9840_v44  ;;  %v9841_v22 = vunpack.i.l.bf16 %v9840_v44 }
 0xc51   : > { %v9837_v39 = vunpack.i.h.bf16 %v9835_v43  ;;  %v9836_v18 = vunpack.i.l.bf16 %v9835_v43  ;;  %10129 = vrot.lane.b32.xlu1 %v10128_v58, %s14247_s18 }
 0xc52   : > { %10124 = vrot.lane.b32.xlu0 %v10123_v38, %s14246_s16  ;;  %v6293_v51 = vsel %vm495_vm1, %v12710_v48, %v9841_v22  ;;  %v6197_v25 = vsel %vm495_vm1, %v5140_v23, %v9842_v27  ;;  %v13095_v22 = vld [vmem:[#allocation3 + $0x139] sm:$0xff] }
 0xc53   : > { %v6196_v55 = vsel %vm495_vm1, %v5139_v46, %v9837_v39  ;;  %v9850_v56 = vpop.permute.xlu1 %9849  ;;  %v6292_v47 = vsel %vm495_vm1, %v12728_v9, %v9836_v18  ;;  %v5269_v39 = vld [vmem:[#allocation3 + $0x31] sm:$0xff] }
 0xc54   : > { %v9845_v12 = vpop.permute.xlu0 %9844  ;;  %v9851_v19 = vunpack.i.l.bf16 %v9850_v56  ;;  %v6324_v6 = vsel %vm1323_vm6, %v6292_v47, %v9826_v61  ;;  %v6228_v14 = vsel %vm1323_vm6, %v6196_v55, %v9827_v0  ;;  %v9852_v11 = vunpack.i.h.bf16 %v9850_v56  ;;  %v5354_v18 = vld [vmem:[#allocation3 + $0x138] sm:$0xff] }
 0xc55   : > { %v9847_v2 = vunpack.i.h.bf16 %v9845_v12  ;;  %v9846_v52 = vunpack.i.l.bf16 %v9845_v12  ;;  %v6356_v26 = vsel %vm1332_vm7, %v6324_v6, %v9831_v4  ;;  %10139 = vrot.lane.b32.xlu1 %v10138_v10, %s14245_s3  ;;  %v6260_v9 = vsel %vm1332_vm7, %v6228_v14, %v9832_v28  ;;  %v5141_v10 = vld [vmem:[#allocation3 + $0x18] sm:$0xff] }
 0xc56   : > { %6554 = vmatprep.mubr.f32.mxu0 %v6356_v26  ;;  %10134 = vrot.lane.b32.xlu0 %v10133_v62, %s14245_s3  ;;  %v10163_v56 = vpack.i.bf16 %v12833_v50, %v5354_v18  ;;  %v10168_v12 = vpack.i.bf16 %v13044_v35, %v13095_v22  ;;  %v13109_v6 = vld [vmem:[#allocation3 + $0x151] sm:$0xff] }
 0xc57   : > { %6555 = vmatmul.mubr.f32.vlgmr.msra.gmra.mrb[38].mxu0 %v6260_v9  ;;  %v9860_v54 = vpop.permute.xlu1 %9859  ;;  %v6325_v17 = vsel %vm1323_vm6, %v6293_v51, %v9846_v52  ;;  %v6229_v13 = vsel %vm1323_vm6, %v6197_v25, %v9847_v2  ;;  %v10178_v35 = vpack.i.bf16 %v5354_v18, %v13109_v6 }
 0xc58   : > { %v9855_v34 = vpop.permute.xlu0 %9854  ;;  %v6357_v63 = vsel %vm1332_vm7, %v6325_v17, %v9851_v19  ;;  %v6261_v48 = vsel %vm1332_vm7, %v6229_v13, %v9852_v11  ;;  %v13106_v19 = vld [vmem:[#allocation3 + $0x150] sm:$0xff]  ;;  %v9862_v62 = vunpack.i.h.bf16 %v9860_v54  ;;  %v9861_v14 = vunpack.i.l.bf16 %v9860_v54  ;;  %v13115_v11 = vld [vmem:[#allocation3 + $0x141] sm:$0xff] }
 0xc59   : > { %v9857_v8 = vunpack.i.h.bf16 %v9855_v34  ;;  %v9856_v44 = vunpack.i.l.bf16 %v9855_v34  ;;  %6559 = vmatprep.mubr.f32.mxu0 %v6357_v63  ;;  %10149 = vrot.lane.b32.xlu1 %v10148_v42, %s14247_s18  ;;  %v10173_v50 = vpack.i.bf16 %v12858_v15, %v13106_v19  ;;  %v5355_v17 = vld [vmem:[#allocation3 + $0x140] sm:$0xff]  ;;  %v10188_v34 = vpack.i.bf16 %v13074_v45, %v13115_v11 }
 0xc5a   : > { %10144 = vrot.lane.b32.xlu0 %v10143_v37, %s14246_s16  ;;  %v6295_v54 = vsel %vm495_vm1, %v12701_v49, %v9861_v14  ;;  %v6199_v15 = vsel %vm495_vm1, %v12699_v60, %v9862_v62  ;;  %v10198_v60 = vpack.i.bf16 %v13069_v7, %v12905_v53  ;;  %v10193_v7 = vpack.i.bf16 %v13047_v1, %v12896_v31 }
 0xc5b   : > { %6560 = vmatmul.mubr.f32.gmra.mrb[40].mxu0 %v6261_v48  ;;  %v9865_v58 = vpop.permute.xlu1 %9864  ;;  %v6294_v27 = vsel %vm495_vm1, %v5269_v39, %v9856_v44  ;;  %v6198_v28 = vsel %vm495_vm1, %v5141_v10, %v9857_v8  ;;  %v10183_v44 = vpack.i.bf16 %v12850_v21, %v5355_v17 }
 0xc5c   : > { %v9870_v46 = vpop.permute.xlu0 %9869  ;;  %v9867_v43 = vunpack.i.h.bf16 %v9865_v58  ;;  %v9866_v38 = vunpack.i.l.bf16 %v9865_v58 }
 0xc5d   : > { %v9872_v0 = vunpack.i.h.bf16 %v9870_v46  ;;  %v9871_v61 = vunpack.i.l.bf16 %v9870_v46  ;;  %10159 = vrot.lane.b32.xlu1 %v10158_v40, %s14245_s3 }
 0xc5e   : > { %10154 = vrot.lane.b32.xlu0 %v10153_v59, %s14245_s3  ;;  %v6326_v20 = vsel %vm1323_vm6, %v6294_v27, %v9866_v38  ;;  %v6230_v4 = vsel %vm1323_vm6, %v6198_v28, %v9867_v43  ;;  %v5143_v38 = vld [vmem:[#allocation3 + $0x30] sm:$0xff] }
 0xc5f   : > { %v9875_v32 = vpop.permute.xlu1 %9874  ;;  %v6358_v55 = vsel %vm1332_vm7, %v6326_v20, %v9871_v61  ;;  %v6262_v47 = vsel %vm1332_vm7, %v6230_v4, %v9872_v0  ;;  %v13141_v20 = vld [vmem:[#allocation3 + $0x159] sm:$0xff] }
 0xc60   : > { %v9880_v23 = vpop.permute.xlu0 %9879  ;;  %6564 = vmatprep.mubr.f32.mxu0 %v6358_v55  ;;  %v9877_v40 = vunpack.i.h.bf16 %v9875_v32  ;;  %v9876_v46 = vunpack.i.l.bf16 %v9875_v32 }
 0xc61   : > { %10164 = vrot.lane.b32.xlu1 %v10163_v56, %s14246_s16  ;;  %6565 = vmatmul.mubr.f32.gmra.mrb[42].mxu0 %v6262_v47  ;;  %v9882_v59 = vunpack.i.h.bf16 %v9880_v23  ;;  %v9881_v21 = vunpack.i.l.bf16 %v9880_v23  ;;  %v13146_v56 = vld [vmem:[#allocation3 + $0x158] sm:$0xff] }
 0xc62   : > { %10169 = vrot.lane.b32.xlu0 %v10168_v12, %s14247_s18  ;;  %v5144_v47 = vld [vmem:[#allocation3 + $0x38] sm:$0xff] }
 0xc63   : > { %v9890_v2 = vpop.permute.xlu1 %9889 }
 0xc64   : > { %v9885_v52 = vpop.permute.xlu0 %9884  ;;  %v9892_v26 = vunpack.i.h.bf16 %v9890_v2  ;;  %v9891_v9 = vunpack.i.l.bf16 %v9890_v2  ;;  %v10208_v2 = vpack.i.bf16 %v5355_v17, %v13141_v20  ;;  %v10218_v17 = vpack.i.bf16 %v13115_v11, %v12928_v29 }
 0xc65   : > { %v9887_v51 = vunpack.i.h.bf16 %v9885_v52  ;;  %v9886_v25 = vunpack.i.l.bf16 %v9885_v52  ;;  %10174 = vrot.lane.b32.xlu1 %v10173_v50, %s14246_s16 }
 0xc66   : > { %10179 = vrot.lane.b32.xlu0 %v10178_v35, %s14247_s18 }
 0xc67   : > { %v9900_v42 = vpop.permute.xlu1 %9899  ;;  %v6327_v13 = vsel %vm1323_vm6, %v6295_v54, %v9886_v25  ;;  %v6231_v63 = vsel %vm1323_vm6, %v6199_v15, %v9887_v51 }
 0xc68   : > { %v9895_v37 = vpop.permute.xlu0 %9894  ;;  %v6359_v8 = vsel %vm1332_vm7, %v6327_v13, %v9891_v9  ;;  %v6263_v48 = vsel %vm1332_vm7, %v6231_v63, %v9892_v26  ;;  %v9902_v45 = vunpack.i.h.bf16 %v9900_v42  ;;  %v9901_v43 = vunpack.i.l.bf16 %v9900_v42  ;;  %v5273_v13 = vld [vmem:[#allocation3 + $0x61] sm:$0xff] }
 0xc69   : > { %v9897_v58 = vunpack.i.h.bf16 %v9895_v37  ;;  %v9896_v49 = vunpack.i.l.bf16 %v9895_v37  ;;  %6569 = vmatprep.mubr.f32.mxu0 %v6359_v8  ;;  %10189 = vrot.lane.b32.xlu1 %v10188_v34, %s14247_s18  ;;  %v10203_v9 = vpack.i.bf16 %v12874_v36, %v13146_v56  ;;  %v10213_v36 = vpack.i.bf16 %v13095_v22, %v12915_v3  ;;  %v5358_v34 = vld [vmem:[#allocation3 + $0x168] sm:$0xff] }
 0xc6a   : > { %10184 = vrot.lane.b32.xlu0 %v10183_v44, %s14246_s16  ;;  %6570 = vmatmul.mubr.f32.gmra.mrb[44].mxu0 %v6263_v48  ;;  %v6297_v1 = vsel %vm495_vm1, %v12753_v57, %v9901_v43  ;;  %v6201_v12 = vsel %vm495_vm1, %v5144_v47, %v9902_v45  ;;  %v5145_v63 = vld [vmem:[#allocation3 + $0x48] sm:$0xff]  ;;  %v13182_v43 = vld [vmem:[#allocation3 + $0x180] sm:$0xff] }
 0xc6b   : > { %v9910_v39 = vpop.permute.xlu1 %9909  ;;  %v6296_v18 = vsel %vm495_vm1, %v12718_v41, %v9896_v49  ;;  %v6200_v10 = vsel %vm495_vm1, %v5143_v38, %v9897_v58  ;;  %v13169_v48 = vld [vmem:[#allocation3 + $0x169] sm:$0xff]  ;;  %v5392_v38 = vld [vmem:[#allocation3 + $0x181] sm:$0xff] }
 0xc6c   : > { %v9905_v0 = vpop.permute.xlu0 %9904  ;;  %v9911_v61 = vunpack.i.l.bf16 %v9910_v39  ;;  %v6328_v27 = vsel %vm1323_vm6, %v6296_v18, %v9876_v46  ;;  %v6232_v28 = vsel %vm1323_vm6, %v6200_v10, %v9877_v40  ;;  %v9912_v23 = vunpack.i.h.bf16 %v9910_v39 }
 0xc6d   : > { %v9907_v4 = vunpack.i.h.bf16 %v9905_v0  ;;  %v9906_v32 = vunpack.i.l.bf16 %v9905_v0  ;;  %10199 = vrot.lane.b32.xlu1 %v10198_v60, %s14245_s3  ;;  %v6360_v55 = vsel %vm1332_vm7, %v6328_v27, %v9881_v21  ;;  %v6264_v41 = vsel %vm1332_vm7, %v6232_v28, %v9882_v59  ;;  %v5274_v28 = vld [vmem:[#allocation3 + $0x69] sm:$0xff] }
 0xc6e   : > { %10194 = vrot.lane.b32.xlu0 %v10193_v7, %s14245_s3  ;;  %6574 = vmatprep.mubr.f32.mxu0 %v6360_v55  ;;  %v10223_v60 = vpack.i.bf16 %v12896_v31, %v5358_v34  ;;  %v10228_v45 = vpack.i.bf16 %v13106_v19, %v13169_v48  ;;  %v10233_v39 = vpack.i.bf16 %v12915_v3, %v13182_v43 }
 0xc6f   : > { %6575 = vmatmul.mubr.f32.gmra.mrb[46].mxu0 %v6264_v41  ;;  %v13152_v62 = vpop.permute.xlu1 %9919  ;;  %v6329_v14 = vsel %vm1323_vm6, %v6297_v1, %v9906_v32  ;;  %v6233_v50 = vsel %vm1323_vm6, %v6201_v12, %v9907_v4  ;;  %v10238_v19 = vpack.i.bf16 %v5358_v34, %v5392_v38  ;;  %v13193_v4 = vld [vmem:[#allocation3 + $0x170] sm:$0xff] }
 0xc70   : > { %v9915_v52 = vpop.permute.xlu0 %9914  ;;  %v6361_v26 = vsel %vm1332_vm7, %v6329_v14, %v9911_v61  ;;  %v6265_v57 = vsel %vm1332_vm7, %v6233_v50, %v9912_v23  ;;  %v9922_v59 = vunpack.i.h.bf16 %v13152_v62  ;;  %v9921_v21 = vunpack.i.l.bf16 %v13152_v62  ;;  %v13190_v61 = vld [vmem:[#allocation3 + $0x171] sm:$0xff] }
 0xc71   : > { %v9917_v35 = vunpack.i.h.bf16 %v9915_v52  ;;  %v9916_v51 = vunpack.i.l.bf16 %v9915_v52  ;;  %6579 = vmatprep.mubr.f32.mxu0 %v6361_v26  ;;  %10209 = vrot.lane.b32.xlu1 %v10208_v2, %s14247_s18  ;;  %v5146_v32 = vld [vmem:[#allocation3 + $0x50] sm:$0xff]  ;;  %v10248_v23 = vpack.i.bf16 %v13146_v56, %v13190_v61  ;;  %v10243_v14 = vpack.i.bf16 %v12905_v53, %v13193_v4 }
 0xc72   : > { %10204 = vrot.lane.b32.xlu0 %v10203_v9, %s14246_s16  ;;  %v6299_v55 = vsel %vm495_vm1, %v5274_v28, %v9921_v21  ;;  %v6203_v3 = vsel %vm495_vm1, %v5146_v32, %v9922_v59  ;;  %v10258_v26 = vpack.i.bf16 %v13141_v20, %v12950_v5  ;;  %v10253_v20 = vpack.i.bf16 %v13109_v6, %v12939_v24 }
 0xc73   : > { %6580 = vmatmul.mubr.f32.gmra.mrb[48].mxu0 %v6265_v57  ;;  %v9925_v25 = vpop.permute.xlu1 %9924  ;;  %v6298_v44 = vsel %vm495_vm1, %v5273_v13, %v9916_v51  ;;  %v6202_v58 = vsel %vm495_vm1, %v5145_v63, %v9917_v35  ;;  %v5275_v57 = vld [vmem:[#allocation3 + $0x79] sm:$0xff]  ;;  %v5393_v63 = vld [vmem:[#allocation3 + $0x189] sm:$0xff] }
 0xc74   : > { %v9930_v54 = vpop.permute.xlu0 %9929  ;;  %v9927_v15 = vunpack.i.h.bf16 %v9925_v25  ;;  %v9926_v42 = vunpack.i.l.bf16 %v9925_v25  ;;  %v5147_v25 = vld [vmem:[#allocation3 + $0x60] sm:$0xff] }
 0xc75   : > { %v9932_v37 = vunpack.i.h.bf16 %v9930_v54  ;;  %v9931_v8 = vunpack.i.l.bf16 %v9930_v54  ;;  %10219 = vrot.lane.b32.xlu1 %v10218_v17, %s14245_s3 }
 0xc76   : > { %10214 = vrot.lane.b32.xlu0 %v10213_v36, %s14245_s3  ;;  %v6330_v29 = vsel %vm1323_vm6, %v6298_v44, %v9926_v42  ;;  %v6234_v11 = vsel %vm1323_vm6, %v6202_v58, %v9927_v15 }
 0xc77   : > { %v9935_v22 = vpop.permute.xlu1 %9934  ;;  %v6362_v49 = vsel %vm1332_vm7, %v6330_v29, %v9931_v8  ;;  %v6266_v40 = vsel %vm1332_vm7, %v6234_v11, %v9932_v37  ;;  %v5276_v29 = vld [vmem:[#allocation3 + $0x81] sm:$0xff] }
 0xc78   : > { %v13178_v46 = vpop.permute.xlu0 %9939  ;;  %6584 = vmatprep.mubr.f32.mxu0 %v6362_v49  ;;  %v9937_v9 = vunpack.i.h.bf16 %v9935_v22  ;;  %v9936_v56 = vunpack.i.l.bf16 %v9935_v22  ;;  %v13221_v11 = vld [vmem:[#allocation3 + $0x188] sm:$0xff] }
 0xc79   : > { %10224 = vrot.lane.b32.xlu1 %v10223_v60, %s14246_s16  ;;  %6585 = vmatmul.mubr.f32.gmra.mrb[50].mxu0 %v6266_v40  ;;  %v9942_v53 = vunpack.i.h.bf16 %v13178_v46  ;;  %v9941_v17 = vunpack.i.l.bf16 %v13178_v46  ;;  %v5148_v22 = vld [vmem:[#allocation3 + $0x68] sm:$0xff]  ;;  %v5232_v46 = vld [vmem:[#allocation3 + $0x15a] sm:$0xff] }
 0xc7a   : > { %10229 = vrot.lane.b32.xlu0 %v10228_v45, %s14247_s18  ;;  %v10268_v45 = vpack.i.bf16 %v13193_v4, %v5393_v63 }
 0xc7b   : > { %v9950_v31 = vpop.permute.xlu1 %9949 }
 0xc7c   : > { %v9945_v18 = vpop.permute.xlu0 %9944  ;;  %v9952_v10 = vunpack.i.h.bf16 %v9950_v31  ;;  %v9951_v0 = vunpack.i.l.bf16 %v9950_v31  ;;  %v10263_v31 = vpack.i.bf16 %v5232_v46, %v13221_v11 }
 0xc7d   : > { %v9947_v7 = vunpack.i.h.bf16 %v9945_v18  ;;  %v9946_v27 = vunpack.i.l.bf16 %v9945_v18  ;;  %10234 = vrot.lane.b32.xlu1 %v10233_v39, %s14246_s16  ;;  %v5233_v39 = vld [vmem:[#allocation3 + $0x16a] sm:$0xff]  ;;  %v5362_v18 = vld [vmem:[#allocation3 + $0x198] sm:$0xff] }
 0xc7e   : > { %10239 = vrot.lane.b32.xlu0 %v10238_v19, %s14247_s18  ;;  %v5329_v19 = vld [vmem:[#allocation3 + $0x182] sm:$0xff]  ;;  %v10283_v32 = vpack.i.bf16 %v5233_v39, %v5362_v18  ;;  %v5151_v18 = vld [vmem:[#allocation3 + $0x90] sm:$0xff] }
 0xc7f   : > { %v9960_v41 = vpop.permute.xlu1 %9959  ;;  %v6331_v47 = vsel %vm1323_vm6, %v6299_v55, %v9946_v27  ;;  %v6235_v1 = vsel %vm1323_vm6, %v6203_v3, %v9947_v7  ;;  %v5426_v7 = vld [vmem:[#allocation3 + $0x19a] sm:$0xff]  ;;  %v5427_v27 = vld [vmem:[#allocation3 + $0x1a2] sm:$0xff] }
 0xc80   : > { %v9955_v12 = vpop.permute.xlu0 %9954  ;;  %v6363_v62 = vsel %vm1332_vm7, %v6331_v47, %v9951_v0  ;;  %v6267_v2 = vsel %vm1332_vm7, %v6235_v1, %v9952_v10  ;;  %v9962_v35 = vunpack.i.h.bf16 %v9960_v41  ;;  %v9961_v51 = vunpack.i.l.bf16 %v9960_v41  ;;  %9050 = vmatprep.mubr.msk.f32.mxu1 %vm495_vm1, %v5426_v7  ;;  %v5330_v1 = vld [vmem:[#allocation3 + $0x18a] sm:$0xff] }
 0xc81   : > { %v9957_v50 = vunpack.i.h.bf16 %v9955_v12  ;;  %v9956_v52 = vunpack.i.l.bf16 %v9955_v12  ;;  %6589 = vmatprep.mubr.f32.mxu0 %v6363_v62  ;;  %10249 = vrot.lane.b32.xlu1 %v10248_v23, %s14247_s18  ;;  %v10273_v47 = vpack.i.bf16 %v13169_v48, %v5329_v19  ;;  %v5277_v23 = vld [vmem:[#allocation3 + $0x91] sm:$0xff]  ;;  %v5279_v39 = vld [vmem:[#allocation3 + $0xa9] sm:$0xff] }
 0xc82   : > { %10244 = vrot.lane.b32.xlu0 %v10243_v14, %s14246_s16  ;;  %6590 = vmatmul.mubr.f32.gmra.mrb[52].mxu0 %v6267_v2  ;;  %v6301_v24 = vsel %vm495_vm1, %v5276_v29, %v9961_v51  ;;  %v6205_v6 = vsel %vm495_vm1, %v5148_v22, %v9962_v35  ;;  %v5149_v12 = vld [vmem:[#allocation3 + $0x78] sm:$0xff]  ;;  %v10288_v35 = vpack.i.bf16 %v13190_v61, %v5330_v1 }
 0xc83   : > { %v9970_v54 = vpop.permute.xlu1 %9969  ;;  %v6300_v15 = vsel %vm495_vm1, %v5275_v57, %v9956_v52  ;;  %v6204_v42 = vsel %vm495_vm1, %v5147_v25, %v9957_v50  ;;  %9051 = vmatmul.mubr.msk.f32.gmra.mrb[104].mxu1 %vm495_vm1, %v5427_v27  ;;  %v5394_v50 = vld [vmem:[#allocation3 + $0x199] sm:$0xff] }
 0xc84   : > { %v9965_v36 = vpop.permute.xlu0 %9964  ;;  %v9971_v5 = vunpack.i.l.bf16 %v9970_v54  ;;  %v6332_v13 = vsel %vm1323_vm6, %v6300_v15, %v9936_v56  ;;  %v6236_v34 = vsel %vm1323_vm6, %v6204_v42, %v9937_v9  ;;  %v9972_v49 = vunpack.i.h.bf16 %v9970_v54  ;;  %v5234_v61 = vld [vmem:[#allocation3 + $0x172] sm:$0xff] }
 0xc85   : > { %v9967_v37 = vunpack.i.h.bf16 %v9965_v36  ;;  %v9966_v8 = vunpack.i.l.bf16 %v9965_v36  ;;  %10259 = vrot.lane.b32.xlu1 %v10258_v26, %s14245_s3  ;;  %v6364_v44 = vsel %vm1332_vm7, %v6332_v13, %v9941_v17  ;;  %v6268_v58 = vsel %vm1332_vm7, %v6236_v34, %v9942_v53  ;;  %v5395_v53 = vld [vmem:[#allocation3 + $0x1a1] sm:$0xff] }
 0xc86   : > { %10254 = vrot.lane.b32.xlu0 %v10253_v20, %s14245_s3  ;;  %6594 = vmatprep.mubr.f32.mxu0 %v6364_v44  ;;  %v10278_v25 = vpack.i.bf16 %v13182_v43, %v5394_v50  ;;  %v5363_v17 = vld [vmem:[#allocation3 + $0x1a0] sm:$0xff]  ;;  %v10298_v36 = vpack.i.bf16 %v13221_v11, %v5395_v53 }
 0xc87   : > { %6595 = vmatmul.mubr.f32.gmra.mrb[54].mxu0 %v6268_v58  ;;  %v13226_v60 = vpop.permute.xlu1 %9979  ;;  %v6333_v40 = vsel %vm1323_vm6, %v6301_v24, %v9966_v8  ;;  %v6237_v38 = vsel %vm1323_vm6, %v6205_v6, %v9967_v37  ;;  %v10293_v34 = vpack.i.bf16 %v5234_v61, %v5363_v17  ;;  %v5278_v37 = vld [vmem:[#allocation3 + $0x99] sm:$0xff] }
 0xc88   : > { %v9975_v59 = vpop.permute.xlu0 %9974  ;;  %v6365_v21 = vsel %vm1332_vm7, %v6333_v40, %v9971_v5  ;;  %v6269_v28 = vsel %vm1332_vm7, %v6237_v38, %v9972_v49  ;;  %v9982_v54 = vunpack.i.h.bf16 %v13226_v60  ;;  %v9981_v15 = vunpack.i.l.bf16 %v13226_v60  ;;  %v5150_v8 = vld [vmem:[#allocation3 + $0x80] sm:$0xff] }
 0xc89   : > { %v9977_v10 = vunpack.i.h.bf16 %v9975_v59  ;;  %v9976_v0 = vunpack.i.l.bf16 %v9975_v59  ;;  %6599 = vmatprep.mubr.f32.mxu0 %v6365_v21  ;;  %10269 = vrot.lane.b32.xlu1 %v10268_v45, %s14247_s18 }
 0xc8a   : > { %10264 = vrot.lane.b32.xlu0 %v10263_v31, %s14246_s16  ;;  %v6303_v58 = vsel %vm495_vm1, %v5278_v37, %v9981_v15  ;;  %v6207_v29 = vsel %vm495_vm1, %v5150_v8, %v9982_v54 }
 0xc8b   : > { %6600 = vmatmul.mubr.f32.gmra.mrb[56].mxu0 %v6269_v28  ;;  %v9985_v4 = vpop.permute.xlu1 %9984  ;;  %v6302_v2 = vsel %vm495_vm1, %v5277_v23, %v9976_v0  ;;  %v6206_v52 = vsel %vm495_vm1, %v5149_v12, %v9977_v10 }
 0xc8c   : > { %v9990_v55 = vpop.permute.xlu0 %9989  ;;  %v9987_v3 = vunpack.i.h.bf16 %v9985_v4  ;;  %v9986_v41 = vunpack.i.l.bf16 %v9985_v4 }
 0xc8d   : > { %v9992_v62 = vunpack.i.h.bf16 %v9990_v55  ;;  %v9991_v14 = vunpack.i.l.bf16 %v9990_v55  ;;  %10284 = vrot.lane.b32.xlu1 %v10283_v32, %s14246_s16 }
 0xc8e   : > { %10274 = vrot.lane.b32.xlu0 %v10273_v47, %s14245_s3  ;;  %v6334_v26 = vsel %vm1323_vm6, %v6302_v2, %v9986_v41  ;;  %v6238_v9 = vsel %vm1323_vm6, %v6206_v52, %v9987_v3 }
 0xc8f   : > { %v13245_v48 = vpop.permute.xlu1 %9994  ;;  %v6366_v56 = vsel %vm1332_vm7, %v6334_v26, %v9991_v14  ;;  %v6270_v51 = vsel %vm1332_vm7, %v6238_v9, %v9992_v62  ;;  %v5280_v62 = vld [vmem:[#allocation3 + $0xb1] sm:$0xff] }
 0xc90   : > { %v10000_v57 = vpop.permute.xlu0 %9999  ;;  %6604 = vmatprep.mubr.f32.mxu0 %v6366_v56  ;;  %v9997_v38 = vunpack.i.h.bf16 %v13245_v48  ;;  %v9996_v59 = vunpack.i.l.bf16 %v13245_v48  ;;  %v5152_v14 = vld [vmem:[#allocation3 + $0x98] sm:$0xff] }
 0xc91   : > { %10289 = vrot.lane.b32.xlu1 %v10288_v35, %s14245_s3  ;;  %6605 = vmatmul.mubr.f32.gmra.mrb[58].mxu0 %v6270_v51  ;;  %v10002_v0 = vunpack.i.h.bf16 %v10000_v57  ;;  %v10001_v19 = vunpack.i.l.bf16 %v10000_v57  ;;  %s8521_s3 = sshll.u32 %s10634_s14, 8 }
 0xc92   : > { %10279 = vrot.lane.b32.xlu0 %v10278_v25, %s14247_s18  ;;  %s14155_s26 = scalar_lea.hbm %s14220_s15, %s8521_s3 }
 0xc93   : > { %v10010_v42 = vpop.permute.xlu1 %10009 }
 0xc94   : > { %v10005_v5 = vpop.permute.xlu0 %10004  ;;  %v10012_v20 = vunpack.i.h.bf16 %v10010_v42  ;;  %v10011_v13 = vunpack.i.l.bf16 %v10010_v42  ;;  %v13265_v44 = vpop.f32.mrb[74].mxu1 }
 0xc95   : > { %v10007_v43 = vunpack.i.h.bf16 %v10005_v5  ;;  %v10006_v63 = vunpack.i.l.bf16 %v10005_v5  ;;  %10299 = vrot.lane.b32.xlu1 %v10298_v36, %s14247_s18  ;;  %v13270_v22 = vpop.f32.mrb[75].mxu1  ;;  %v5281_v36 = vld [vmem:[#allocation3 + $0xc1] sm:$0xff] }
 0xc96   : > { %10294 = vrot.lane.b32.xlu0 %v10293_v34, %s14246_s16  ;;  %v5153_v5 = vld [vmem:[#allocation3 + $0xa8] sm:$0xff]  ;;  %s489_s16 = scalar_lea.vmem [#allocation6], %s8300_s27 }
 0xc97   : > { %v10020_v11 = vpop.permute.xlu1 %10019  ;;  %v6335_v49 = vsel %vm1323_vm6, %v6303_v58, %v10006_v63  ;;  %v6239_v24 = vsel %vm1323_vm6, %v6207_v29, %v10007_v43  ;;  %s8234_s18 = sshll.u32 %s489_s16, 4  ;;  %s14157_s18 = int_to_ptr.vmem [resolvable:$true] %s8234_s18 }
 0xc98   : > { %v10015_v6 = vpop.permute.xlu0 %10014  ;;  %v6367_v60 = vsel %vm1332_vm7, %v6335_v49, %v10011_v13  ;;  %v6271_v40 = vsel %vm1332_vm7, %v6239_v24, %v10012_v20  ;;  %v10022_v21 = vunpack.i.h.bf16 %v10020_v11  ;;  %v10021_v31 = vunpack.i.l.bf16 %v10020_v11  ;;  %s10454_s0 = scalar_lea.vmem %s14157_s18, 256  ;;  %p10461_p0 = scmp.lt.s32.totalorder %s14157_s18, %s10459_s2 }
 0xc99   : > { %v10017_v46 = vunpack.i.h.bf16 %v10015_v6  ;;  %v10016_v45 = vunpack.i.l.bf16 %v10015_v6  ;;  %6609 = vmatprep.mubr.f32.mxu0 %v6367_v60  ;;  %v13278_v10 = vpop.f32.mrb[76].mxu1  ;;  %p10455_p11 = scmp.ne.s32.totalorder %s14157_s18, %s10454_s0  ;;  %p10462_p1 = scmp.lt.s32.totalorder %s10460_s19, %s10454_s0 }
 0xc9a   : > { %6610 = vmatmul.mubr.f32.gmra.mrb[60].mxu0 %v6271_v40  ;;  %v13282_v4 = vpop.f32.mrb[77].mxu1  ;;  %v6305_v50 = vsel %vm495_vm1, %v5280_v62, %v10021_v31  ;;  %v6209_v52 = vsel %vm495_vm1, %v5152_v14, %v10022_v21  ;;  %v5282_v21 = vld [vmem:[#allocation3 + $0xc9] sm:$0xff]  ;;  %v5283_v62 = vld [vmem:[#allocation3 + $0xd9] sm:$0xff] }
 0xc9b   : > { %v10030_v7 = vpop.permute.xlu1 %10029  ;;  %v6304_v27 = vsel %vm495_vm1, %v5279_v39, %v10016_v45  ;;  %v6208_v28 = vsel %vm495_vm1, %v5151_v18, %v10017_v46  ;;  %v5154_v31 = vld [vmem:[#allocation3 + $0xb0] sm:$0xff]  ;;  %v5155_v14 = vld [vmem:[#allocation3 + $0xc0] sm:$0xff]  ;;  %p10456_p12 = pnand %p10455_p11, %p10651_p5  ;;  %p10463_p2 = por %p10462_p1, %p10461_p0 }
 0xc9c   : > { %v10025_v32 = vpop.permute.xlu0 %10024  ;;  %v10031_v55 = vunpack.i.l.bf16 %v10030_v7  ;;  %v6336_v3 = vsel %vm1323_vm6, %v6304_v27, %v9996_v59  ;;  %v6240_v41 = vsel %vm1323_vm6, %v6208_v28, %v9997_v38  ;;  %v10032_v2 = vunpack.i.h.bf16 %v10030_v7 }
 0xc9d   : > { %v10027_v47 = vunpack.i.h.bf16 %v10025_v32  ;;  %v10026_v23 = vunpack.i.l.bf16 %v10025_v32  ;;  %v6368_v1 = vsel %vm1332_vm7, %v6336_v3, %v10001_v19  ;;  %v6272_v12 = vsel %vm1332_vm7, %v6240_v41, %v10002_v0  ;;  %v13290_v26 = vpop.f32.mrb[78].mxu1  ;;  %p10457_p13 = pneg %p10456_p12 }
 0xc9e   : > { %6614 = vmatprep.mubr.f32.mxu0 %v6368_v1  ;;  %v13294_v35 = vpop.f32.mrb[79].mxu1 }
 0xc9f   : > { %6615 = vmatmul.mubr.f32.gmra.mrb[62].mxu0 %v6272_v12  ;;  %v10040_v9 = vpop.permute.xlu1 %10039  ;;  %v6337_v48 = vsel %vm1323_vm6, %v6305_v50, %v10026_v23  ;;  %v6241_v56 = vsel %vm1323_vm6, %v6209_v52, %v10027_v47  ;;  %p10464_p3 = pnand %p10463_p2, %p10457_p13 }
 0xca0   : > { %v10035_v51 = vpop.permute.xlu0 %10034  ;;  %v6369_v57 = vsel %vm1332_vm7, %v6337_v48, %v10031_v55  ;;  %v6273_v61 = vsel %vm1332_vm7, %v6241_v56, %v10032_v2  ;;  %v10042_v49 = vunpack.i.h.bf16 %v10040_v9  ;;  %v10041_v24 = vunpack.i.l.bf16 %v10040_v9 }
 0xca1   : > { %v10037_v25 = vunpack.i.h.bf16 %v10035_v51  ;;  %v10036_v53 = vunpack.i.l.bf16 %v10035_v51  ;;  %6619 = vmatprep.mubr.f32.mxu0 %v6369_v57 }
 0xca2   : > { %v6307_v18 = vsel %vm495_vm1, %v5282_v21, %v10041_v24  ;;  %v6211_v0 = vsel %vm495_vm1, %v5154_v31, %v10042_v49 }
 0xca3   : > { %6620 = vmatmul.mubr.f32.gmra.mrb[64].mxu0 %v6273_v61  ;;  %v10045_v17 = vpop.permute.xlu1 %10044  ;;  %v6306_v34 = vsel %vm495_vm1, %v5281_v36, %v10036_v53  ;;  %v6210_v43 = vsel %vm495_vm1, %v5153_v5, %v10037_v25  ;;  %v5284_v36 = vld [vmem:[#allocation3 + $0xe1] sm:$0xff] }
 0xca4   : > { %v10050_v54 = vpop.permute.xlu0 %10049  ;;  %v10047_v15 = vunpack.i.h.bf16 %v10045_v17  ;;  %v10046_v42 = vunpack.i.l.bf16 %v10045_v17  ;;  %v5156_v5 = vld [vmem:[#allocation3 + $0xc8] sm:$0xff] }
 0xca5   : > { %v10052_v20 = vunpack.i.h.bf16 %v10050_v54  ;;  %v10051_v13 = vunpack.i.l.bf16 %v10050_v54 }
 0xca6   : > { %v6338_v63 = vsel %vm1323_vm6, %v6306_v34, %v10046_v42  ;;  %v6242_v37 = vsel %vm1323_vm6, %v6210_v43, %v10047_v15 }
 0xca7   : > { %v10055_v8 = vpop.permute.xlu1 %10054  ;;  %v6370_v58 = vsel %vm1332_vm7, %v6338_v63, %v10051_v13  ;;  %v6274_v29 = vsel %vm1332_vm7, %v6242_v37, %v10052_v20 }
 0xca8   : > { %v10060_v11 = vpop.permute.xlu0 %10059  ;;  %6624 = vmatprep.mubr.f32.mxu0 %v6370_v58  ;;  %v10057_v47 = vunpack.i.h.bf16 %v10055_v8  ;;  %v10056_v23 = vunpack.i.l.bf16 %v10055_v8 }
 0xca9   : > { %6625 = vmatmul.mubr.f32.gmra.mrb[66].mxu0 %v6274_v29  ;;  %v10062_v50 = vunpack.i.h.bf16 %v10060_v11  ;;  %v10061_v52 = vunpack.i.l.bf16 %v10060_v11 }
 0xcab   : > { %v10070_v6 = vpop.permute.xlu1 %10069 }
 0xcac   : > { %v10065_v60 = vpop.permute.xlu0 %10064  ;;  %v10072_v40 = vunpack.i.h.bf16 %v10070_v6  ;;  %v10071_v46 = vunpack.i.l.bf16 %v10070_v6  ;;  %v13304_v45 = vpop.f32.mrb[80].mxu1 }
 0xcad   : > { %v10067_v38 = vunpack.i.h.bf16 %v10065_v60  ;;  %v10066_v59 = vunpack.i.l.bf16 %v10065_v60  ;;  %v13306_v39 = vpop.f32.mrb[81].mxu1 }
 0xcaf   : > { %v10080_v19 = vpop.permute.xlu1 %10079  ;;  %v6339_v7 = vsel %vm1323_vm6, %v6307_v18, %v10066_v59  ;;  %v6243_v27 = vsel %vm1323_vm6, %v6211_v0, %v10067_v38  ;;  %v5157_v0 = vld [vmem:[#allocation3 + $0xd8] sm:$0xff] }
 0xcb0   : > { %v10075_v28 = vpop.permute.xlu0 %10074  ;;  %v6371_v32 = vsel %vm1332_vm7, %v6339_v7, %v10071_v46  ;;  %v6275_v55 = vsel %vm1332_vm7, %v6243_v27, %v10072_v40  ;;  %v10082_v1 = vunpack.i.h.bf16 %v10080_v19  ;;  %v10081_v12 = vunpack.i.l.bf16 %v10080_v19  ;;  %v5285_v46 = vld [vmem:[#allocation3 + $0xf1] sm:$0xff] }
 0xcb1   : > { %v10077_v3 = vunpack.i.h.bf16 %v10075_v28  ;;  %v10076_v41 = vunpack.i.l.bf16 %v10075_v28  ;;  %6629 = vmatprep.mubr.f32.mxu0 %v6371_v32 }
 0xcb2   : > { %6630 = vmatmul.mubr.f32.gmra.mrb[68].mxu0 %v6275_v55  ;;  %v13314_v2 = vpop.f32.mrb[82].mxu1  ;;  %v6309_v13 = vsel %vm495_vm1, %v5284_v36, %v10081_v12  ;;  %v6213_v34 = vsel %vm495_vm1, %v5156_v5, %v10082_v1 }
 0xcb3   : > { %v10090_v9 = vpop.permute.xlu1 %10089  ;;  %v6308_v48 = vsel %vm495_vm1, %v5283_v62, %v10076_v41  ;;  %v6212_v56 = vsel %vm495_vm1, %v5155_v14, %v10077_v3  ;;  %v13318_v51 = vpop.f32.mrb[83].mxu1 }
 0xcb4   : > { %v10085_v57 = vpop.permute.xlu0 %10084  ;;  %v10091_v25 = vunpack.i.l.bf16 %v10090_v9  ;;  %v6340_v53 = vsel %vm1323_vm6, %v6308_v48, %v10056_v23  ;;  %v6244_v61 = vsel %vm1323_vm6, %v6212_v56, %v10057_v47  ;;  %v10092_v20 = vunpack.i.h.bf16 %v10090_v9 }
 0xcb5   : > { %v10087_v17 = vunpack.i.h.bf16 %v10085_v57  ;;  %v10086_v54 = vunpack.i.l.bf16 %v10085_v57  ;;  %v6372_v15 = vsel %vm1332_vm7, %v6340_v53, %v10061_v52  ;;  %v6276_v42 = vsel %vm1332_vm7, %v6244_v61, %v10062_v50  ;;  %v5286_v53 = vld [vmem:[#allocation3 + $0xf9] sm:$0xff] }
 0xcb6   : > { %6634 = vmatprep.mubr.f32.mxu0 %v6372_v15  ;;  %v13326_v43 = vpop.f32.mrb[84].mxu1  ;;  %v5158_v61 = vld [vmem:[#allocation3 + $0xe0] sm:$0xff] }
 0xcb7   : > { %6635 = vmatmul.mubr.f32.gmra.mrb[70].mxu0 %v6276_v42  ;;  %v13328_v63 = vpop.permute.xlu1 %10099  ;;  %v6341_v37 = vsel %vm1323_vm6, %v6309_v13, %v10086_v54  ;;  %v6245_v8 = vsel %vm1323_vm6, %v6213_v34, %v10087_v17  ;;  %v13332_v58 = vpop.f32.mrb[85].mxu1 }
 0xcb8   : > { %v10095_v29 = vpop.permute.xlu0 %10094  ;;  %v6373_v11 = vsel %vm1332_vm7, %v6341_v37, %v10091_v25  ;;  %v6277_v6 = vsel %vm1332_vm7, %v6245_v8, %v10092_v20  ;;  %v10102_v12 = vunpack.i.h.bf16 %v13328_v63  ;;  %v10101_v62 = vunpack.i.l.bf16 %v13328_v63 }
 0xcb9   : > { %v10097_v49 = vunpack.i.h.bf16 %v10095_v29  ;;  %v10096_v24 = vunpack.i.l.bf16 %v10095_v29  ;;  %6639 = vmatprep.mubr.f32.mxu0 %v6373_v11 }
 0xcba   : > { %v13336_v60 = vpop.f32.mrb[86].mxu1  ;;  %v6311_v17 = vsel %vm495_vm1, %v5286_v53, %v10101_v62  ;;  %v6215_v54 = vsel %vm495_vm1, %v5158_v61, %v10102_v12  ;;  %v5160_v12 = vld [vmem:[#allocation3 + $0xf8] sm:$0xff] }
 0xcbb   : > { %6640 = vmatmul.mubr.f32.gmra.mrb[72].mxu0 %v6277_v6  ;;  %v10105_v40 = vpop.permute.xlu1 %10104  ;;  %v13338_v38 = vpop.f32.mrb[87].mxu1  ;;  %v6310_v18 = vsel %vm495_vm1, %v5285_v46, %v10096_v24  ;;  %v6214_v27 = vsel %vm495_vm1, %v5157_v0, %v10097_v49  ;;  %v5287_v24 = vld [vmem:[#allocation3 + $0x109] sm:$0xff] }
 0xcbc   : > { %v10110_v59 = vpop.permute.xlu0 %10109  ;;  %v10107_v21 = vunpack.i.h.bf16 %v10105_v40  ;;  %v10106_v31 = vunpack.i.l.bf16 %v10105_v40  ;;  %v5159_v6 = vld [vmem:[#allocation3 + $0xf0] sm:$0xff] }
 0xcbd   : > { %v10112_v19 = vunpack.i.h.bf16 %v10110_v59  ;;  %v10111_v7 = vunpack.i.l.bf16 %v10110_v59 }
 0xcbe   : > { %v6342_v28 = vsel %vm1323_vm6, %v6310_v18, %v10106_v31  ;;  %v6246_v32 = vsel %vm1323_vm6, %v6214_v27, %v10107_v21  ;;  %v13344_v55 = vpop.f32.mrb[88].mxu1 }
 0xcbf   : > { %v10115_v3 = vpop.permute.xlu1 %10114  ;;  %v6374_v41 = vsel %vm1332_vm7, %v6342_v28, %v10111_v7  ;;  %v6278_v47 = vsel %vm1332_vm7, %v6246_v32, %v10112_v19  ;;  %v13416_v23 = vpop.f32.mrb[89].mxu1 }
 0xcc0   : > { %v10120_v1 = vpop.permute.xlu0 %10119  ;;  %6644 = vmatprep.mubr.f32.mxu0 %v6374_v41  ;;  %v10117_v8 = vunpack.i.h.bf16 %v10115_v3  ;;  %v10116_v29 = vunpack.i.l.bf16 %v10115_v3 }
 0xcc1   : > { %6645 = vmatmul.mubr.f32.gmra.mrb[74].mxu0 %v6278_v47  ;;  %v10122_v46 = vunpack.i.h.bf16 %v10120_v1  ;;  %v10121_v59 = vunpack.i.l.bf16 %v10120_v1  ;;  %v5288_v1 = vld [vmem:[#allocation3 + $0x111] sm:$0xff] }
 0xcc2   : > { %v13420_v14 = vpop.f32.mrb[90].mxu1 }
 0xcc3   : > { %v10130_v50 = vpop.permute.xlu1 %10129  ;;  %v13424_v52 = vpop.f32.mrb[91].mxu1 }
 0xcc4   : > { %v10125_v9 = vpop.permute.xlu0 %10124  ;;  %v10132_v48 = vunpack.i.h.bf16 %v10130_v50  ;;  %v10131_v56 = vunpack.i.l.bf16 %v10130_v50 }
 0xcc5   : > { %v10127_v57 = vunpack.i.h.bf16 %v10125_v9  ;;  %v10126_v25 = vunpack.i.l.bf16 %v10125_v9 }
 0xcc6   : > { %v13432_v15 = vpop.f32.mrb[92].mxu1 }
 0xcc7   : > { %v10140_v42 = vpop.permute.xlu1 %10139  ;;  %v6343_v36 = vsel %vm1323_vm6, %v6311_v17, %v10126_v25  ;;  %v6247_v5 = vsel %vm1323_vm6, %v6215_v54, %v10127_v57  ;;  %v13436_v20 = vpop.f32.mrb[93].mxu1 }
 0xcc8   : > { %v10135_v16 = vpop.permute.xlu0 %10134  ;;  %v6375_v13 = vsel %vm1332_vm7, %v6343_v36, %v10131_v56  ;;  %v6279_v34 = vsel %vm1332_vm7, %v6247_v5, %v10132_v48  ;;  %v10142_v11 = vunpack.i.h.bf16 %v10140_v42  ;;  %v10141_v49 = vunpack.i.l.bf16 %v10140_v42 }
 0xcc9   : > { %v10137_v63 = vunpack.i.h.bf16 %v10135_v16  ;;  %v10136_v37 = vunpack.i.l.bf16 %v10135_v16  ;;  %6649 = vmatprep.mubr.f32.mxu0 %v6375_v13 }
 0xcca   : > { %6650 = vmatmul.mubr.f32.gmra.mrb[76].mxu0 %v6279_v34  ;;  %v13440_v40 = vpop.f32.mrb[94].mxu1  ;;  %v6313_v50 = vsel %vm495_vm1, %v5288_v1, %v10141_v49  ;;  %v6217_v9 = vsel %vm495_vm1, %v5160_v12, %v10142_v11 }
 0xccb   : > { %v10150_v21 = vpop.permute.xlu1 %10149  ;;  %v6312_v31 = vsel %vm495_vm1, %v5287_v24, %v10136_v37  ;;  %v6216_v18 = vsel %vm495_vm1, %v5159_v6, %v10137_v63  ;;  %v13444_v0 = vpop.f32.mrb[95].mxu1  ;;  %v5289_v63 = vld [vmem:[#allocation3 + $0x121] sm:$0xff] }
 0xccc   : > { %v10145_v19 = vpop.permute.xlu0 %10144  ;;  %v10151_v7 = vunpack.i.l.bf16 %v10150_v21  ;;  %v6344_v27 = vsel %vm1323_vm6, %v6312_v31, %v10116_v29  ;;  %v6248_v28 = vsel %vm1323_vm6, %v6216_v18, %v10117_v8  ;;  %v10152_v62 = vunpack.i.h.bf16 %v10150_v21  ;;  %v5161_v37 = vld [vmem:[#allocation3 + $0x108] sm:$0xff] }
 0xccd   : > { %v10147_v32 = vunpack.i.h.bf16 %v10145_v19  ;;  %v10146_v3 = vunpack.i.l.bf16 %v10145_v19  ;;  %v6376_v41 = vsel %vm1332_vm7, %v6344_v27, %v10121_v59  ;;  %v6280_v47 = vsel %vm1332_vm7, %v6248_v28, %v10122_v46 }
 0xcce   : > { %6654 = vmatprep.mubr.f32.mxu0 %v6376_v41 }
 0xccf   : > { %6655 = vmatmul.mubr.f32.gmra.mrb[78].mxu0 %v6280_v47  ;;  %v10160_v48 = vpop.permute.xlu1 %10159  ;;  %v6345_v56 = vsel %vm1323_vm6, %v6313_v50, %v10146_v3  ;;  %v6249_v57 = vsel %vm1323_vm6, %v6217_v9, %v10147_v32  ;;  %v5290_v9 = vld [vmem:[#allocation3 + $0x129] sm:$0xff] }
 0xcd0   : > { %v10155_v25 = vpop.permute.xlu0 %10154  ;;  %v6377_v53 = vsel %vm1332_vm7, %v6345_v56, %v10151_v7  ;;  %v6281_v36 = vsel %vm1332_vm7, %v6249_v57, %v10152_v62  ;;  %v10162_v28 = vunpack.i.h.bf16 %v10160_v48  ;;  %v10161_v32 = vunpack.i.l.bf16 %v10160_v48  ;;  %v5162_v56 = vld [vmem:[#allocation3 + $0x110] sm:$0xff] }
 0xcd1   : > { %v13455_v61 = vpop.f32.mrb[96].mxu1  ;;  %v10157_v17 = vunpack.i.h.bf16 %v10155_v25  ;;  %v10156_v54 = vunpack.i.l.bf16 %v10155_v25  ;;  %6659 = vmatprep.mubr.f32.mxu0 %v6377_v53 }
 0xcd2   : > { %v13457_v42 = vpop.f32.mrb[97].mxu1  ;;  %v6315_v25 = vsel %vm495_vm1, %v5290_v9, %v10161_v32  ;;  %v6219_v53 = vsel %vm495_vm1, %v5162_v56, %v10162_v28  ;;  %v5292_v9 = vld [vmem:[#allocation3 + $0x141] sm:$0xff] }
 0xcd3   : > { %6660 = vmatmul.mubr.f32.gmra.mrb[80].mxu0 %v6281_v36  ;;  %v10165_v5 = vpop.permute.xlu1 %10164  ;;  %v6314_v49 = vsel %vm495_vm1, %v5289_v63, %v10156_v54  ;;  %v6218_v24 = vsel %vm495_vm1, %v5161_v37, %v10157_v17  ;;  %v5164_v56 = vld [vmem:[#allocation3 + $0x128] sm:$0xff] }
 0xcd4   : > { %v10170_v16 = vpop.permute.xlu0 %10169  ;;  %v10167_v13 = vunpack.i.h.bf16 %v10165_v5  ;;  %v10166_v34 = vunpack.i.l.bf16 %v10165_v5 }
 0xcd5   : > { %v13460_v8 = vpop.f32.mrb[98].mxu1  ;;  %v10172_v29 = vunpack.i.h.bf16 %v10170_v16  ;;  %v10171_v11 = vunpack.i.l.bf16 %v10170_v16 }
 0xcd6   : > { %v13464_v6 = vpop.f32.mrb[99].mxu1  ;;  %v6346_v46 = vsel %vm1323_vm6, %v6314_v49, %v10166_v34  ;;  %v6250_v59 = vsel %vm1323_vm6, %v6218_v24, %v10167_v13  ;;  %v5291_v49 = vld [vmem:[#allocation3 + $0x139] sm:$0xff] }
 0xcd7   : > { %v10175_v21 = vpop.permute.xlu1 %10174  ;;  %v6378_v31 = vsel %vm1332_vm7, %v6346_v46, %v10171_v11  ;;  %v6282_v18 = vsel %vm1332_vm7, %v6250_v59, %v10172_v29  ;;  %v5163_v24 = vld [vmem:[#allocation3 + $0x120] sm:$0xff] }
 0xcd8   : > { %v10180_v19 = vpop.permute.xlu0 %10179  ;;  %6664 = vmatprep.mubr.f32.mxu0 %v6378_v31  ;;  %v10177_v63 = vunpack.i.h.bf16 %v10175_v21  ;;  %v10176_v37 = vunpack.i.l.bf16 %v10175_v21 }
 0xcd9   : > { %v13470_v7 = vpop.f32.mrb[100].mxu1  ;;  %6665 = vmatmul.mubr.f32.gmra.mrb[82].mxu0 %v6282_v18  ;;  %v10182_v46 = vunpack.i.h.bf16 %v10180_v19  ;;  %v10181_v59 = vunpack.i.l.bf16 %v10180_v19 }
 0xcda   : > { %v13472_v27 = vpop.f32.mrb[101].mxu1 }
 0xcdb   : > { %v10190_v3 = vpop.permute.xlu1 %10189 }
 0xcdc   : > { %v10185_v41 = vpop.permute.xlu0 %10184  ;;  %v10192_v47 = vunpack.i.h.bf16 %v10190_v3  ;;  %v10191_v1 = vunpack.i.l.bf16 %v10190_v3 }
 0xcdd   : > { %v13474_v12 = vpop.f32.mrb[102].mxu1  ;;  %v10187_v62 = vunpack.i.h.bf16 %v10185_v41  ;;  %v10186_v50 = vunpack.i.l.bf16 %v10185_v41 }
 0xcde   : > { %v13476_v57 = vpop.f32.mrb[103].mxu1 }
 0xcdf   : > { %v10200_v17 = vpop.permute.xlu1 %10199  ;;  %v6347_v54 = vsel %vm1323_vm6, %v6315_v25, %v10186_v50  ;;  %v6251_v48 = vsel %vm1323_vm6, %v6219_v53, %v10187_v62 }
 0xce0   : > { %v10195_v36 = vpop.permute.xlu0 %10194  ;;  %v6379_v5 = vsel %vm1332_vm7, %v6347_v54, %v10191_v1  ;;  %v6283_v16 = vsel %vm1332_vm7, %v6251_v48, %v10192_v47  ;;  %v10202_v29 = vunpack.i.h.bf16 %v10200_v17  ;;  %v10201_v11 = vunpack.i.l.bf16 %v10200_v17 }
 0xce1   : > { %v10197_v13 = vunpack.i.h.bf16 %v10195_v36  ;;  %v10196_v34 = vunpack.i.l.bf16 %v10195_v36  ;;  %6669 = vmatprep.mubr.f32.mxu0 %v6379_v5 }
 0xce2   : > { %6670 = vmatmul.mubr.f32.gmra.mrb[84].mxu0 %v6283_v16  ;;  %v6317_v25 = vsel %vm495_vm1, %v5292_v9, %v10201_v11  ;;  %v6221_v53 = vsel %vm495_vm1, %v5164_v56, %v10202_v29  ;;  %v5293_v29 = vld [vmem:[#allocation3 + $0x151] sm:$0xff] }
 0xce3   : > { %v10210_v31 = vpop.permute.xlu1 %10209  ;;  %v6316_v18 = vsel %vm495_vm1, %v5291_v49, %v10196_v34  ;;  %v6220_v28 = vsel %vm495_vm1, %v5163_v24, %v10197_v13  ;;  %v5165_v24 = vld [vmem:[#allocation3 + $0x138] sm:$0xff] }
 0xce4   : > { %v10205_v32 = vpop.permute.xlu0 %10204  ;;  %v10211_v3 = vunpack.i.l.bf16 %v10210_v31  ;;  %v6348_v41 = vsel %vm1323_vm6, %v6316_v18, %v10176_v37  ;;  %v6252_v47 = vsel %vm1323_vm6, %v6220_v28, %v10177_v63  ;;  %v10212_v19 = vunpack.i.h.bf16 %v10210_v31 }
 0xce5   : > { %v10207_v1 = vunpack.i.h.bf16 %v10205_v32  ;;  %v10206_v21 = vunpack.i.l.bf16 %v10205_v32  ;;  %v6380_v62 = vsel %vm1332_vm7, %v6348_v41, %v10181_v59  ;;  %v6284_v50 = vsel %vm1332_vm7, %v6252_v47, %v10182_v46 }
 0xce6   : > { %6674 = vmatprep.mubr.f32.mxu0 %v6380_v62 }
 0xce7   : > { %6675 = vmatmul.mubr.f32.gmra.mrb[86].mxu0 %v6284_v50  ;;  %v10220_v17 = vpop.permute.xlu1 %10219  ;;  %v6349_v54 = vsel %vm1323_vm6, %v6317_v25, %v10206_v21  ;;  %v6253_v48 = vsel %vm1323_vm6, %v6221_v53, %v10207_v1 }
 0xce8   : > { %v10215_v36 = vpop.permute.xlu0 %10214  ;;  %v6381_v5 = vsel %vm1332_vm7, %v6349_v54, %v10211_v3  ;;  %v6285_v34 = vsel %vm1332_vm7, %v6253_v48, %v10212_v19  ;;  %v10222_v21 = vunpack.i.h.bf16 %v10220_v17  ;;  %v10221_v62 = vunpack.i.l.bf16 %v10220_v17  ;;  %v5294_v54 = vld [vmem:[#allocation3 + $0x159] sm:$0xff] }
 0xce9   : > { %v10217_v16 = vunpack.i.h.bf16 %v10215_v36  ;;  %v10216_v13 = vunpack.i.l.bf16 %v10215_v36  ;;  %6679 = vmatprep.mubr.f32.mxu0 %v6381_v5  ;;  %v5166_v48 = vld [vmem:[#allocation3 + $0x140] sm:$0xff] }
 0xcea   : > { %v6319_v36 = vsel %vm495_vm1, %v5294_v54, %v10221_v62  ;;  %v6223_v5 = vsel %vm495_vm1, %v5166_v48, %v10222_v21  ;;  %v5168_v54 = vld [vmem:[#allocation3 + $0x158] sm:$0xff] }
 0xceb   : > { %6680 = vmatmul.mubr.f32.gmra.mrb[88].mxu0 %v6285_v34  ;;  %v10225_v63 = vpop.permute.xlu1 %10224  ;;  %v6318_v31 = vsel %vm495_vm1, %v5293_v29, %v10216_v13  ;;  %v6222_v18 = vsel %vm495_vm1, %v5165_v24, %v10217_v16  ;;  %v10442_v48 = vld [vmem:[#allocation3 + $0x171] sm:$0xff] }
 0xcec   : > { %v10230_v37 = vpop.permute.xlu0 %10229  ;;  %v10227_v11 = vunpack.i.h.bf16 %v10225_v63  ;;  %v10226_v49 = vunpack.i.l.bf16 %v10225_v63 }
 0xced   : > { %v10232_v46 = vunpack.i.h.bf16 %v10230_v37  ;;  %v10231_v59 = vunpack.i.l.bf16 %v10230_v37 }
 0xcee   : > { %v6350_v28 = vsel %vm1323_vm6, %v6318_v31, %v10226_v49  ;;  %v6254_v32 = vsel %vm1323_vm6, %v6222_v18, %v10227_v11  ;;  %v5167_v31 = vld [vmem:[#allocation3 + $0x150] sm:$0xff] }
 0xcef   : > { %v10235_v3 = vpop.permute.xlu1 %10234  ;;  %v6382_v41 = vsel %vm1332_vm7, %v6350_v28, %v10231_v59  ;;  %v6286_v47 = vsel %vm1332_vm7, %v6254_v32, %v10232_v46 }
 0xcf0   : > { %v10240_v1 = vpop.permute.xlu0 %10239  ;;  %6684 = vmatprep.mubr.f32.mxu0 %v6382_v41  ;;  %v10237_v29 = vunpack.i.h.bf16 %v10235_v3  ;;  %v10236_v24 = vunpack.i.l.bf16 %v10235_v3  ;;  %v10441_v41 = vld [vmem:[#allocation3 + $0x169] sm:$0xff] }
 0xcf1   : > { %6685 = vmatmul.mubr.f32.gmra.mrb[90].mxu0 %v6286_v47  ;;  %v10242_v18 = vunpack.i.h.bf16 %v10240_v1  ;;  %v10241_v28 = vunpack.i.l.bf16 %v10240_v1 }
 0xcf3   : > { %v10250_v50 = vpop.permute.xlu1 %10249 }
 0xcf4   : > { %v10245_v9 = vpop.permute.xlu0 %10244  ;;  %v10252_v56 = vunpack.i.h.bf16 %v10250_v50  ;;  %v10251_v19 = vunpack.i.l.bf16 %v10250_v50 }
 0xcf5   : > { %v10247_v25 = vunpack.i.h.bf16 %v10245_v9  ;;  %v10246_v53 = vunpack.i.l.bf16 %v10245_v9 }
 0xcf7   : > { %v10260_v16 = vpop.permute.xlu1 %10259  ;;  %v6351_v13 = vsel %vm1323_vm6, %v6319_v36, %v10246_v53  ;;  %v6255_v34 = vsel %vm1323_vm6, %v6223_v5, %v10247_v25 }
 0xcf8   : > { %v10255_v63 = vpop.permute.xlu0 %10254  ;;  %v6383_v17 = vsel %vm1332_vm7, %v6351_v13, %v10251_v19  ;;  %v6287_v37 = vsel %vm1332_vm7, %v6255_v34, %v10252_v56  ;;  %v10262_v46 = vunpack.i.h.bf16 %v10260_v16  ;;  %v10261_v59 = vunpack.i.l.bf16 %v10260_v16 }
 0xcf9   : > { %v10257_v11 = vunpack.i.h.bf16 %v10255_v63  ;;  %v10256_v49 = vunpack.i.l.bf16 %v10255_v63  ;;  %6689 = vmatprep.mubr.f32.mxu0 %v6383_v17 }
 0xcfa   : > { %6690 = vmatmul.mubr.f32.gmra.mrb[92].mxu0 %v6287_v37  ;;  %v6321_v36 = vsel %vm495_vm1, %v10442_v48, %v10261_v59  ;;  %v6225_v5 = vsel %vm495_vm1, %v5168_v54, %v10262_v46  ;;  %v5169_v59 = vld [vmem:[#allocation3 + $0x168] sm:$0xff] }
 0xcfb   : > { %v10270_v32 = vpop.permute.xlu1 %10269  ;;  %v6320_v47 = vsel %vm495_vm1, %v10441_v41, %v10256_v49  ;;  %v6224_v21 = vsel %vm495_vm1, %v5167_v31, %v10257_v11  ;;  %v5297_v31 = vld [vmem:[#allocation3 + $0x181] sm:$0xff] }
 0xcfc   : > { %v10265_v62 = vpop.permute.xlu0 %10264  ;;  %v10271_v50 = vunpack.i.l.bf16 %v10270_v32  ;;  %v6352_v9 = vsel %vm1323_vm6, %v6320_v47, %v10236_v24  ;;  %v6256_v56 = vsel %vm1323_vm6, %v6224_v21, %v10237_v29  ;;  %v10272_v1 = vunpack.i.h.bf16 %v10270_v32 }
 0xcfd   : > { %v10267_v19 = vunpack.i.h.bf16 %v10265_v62  ;;  %v10266_v3 = vunpack.i.l.bf16 %v10265_v62  ;;  %v6384_v25 = vsel %vm1332_vm7, %v6352_v9, %v10241_v28  ;;  %v6288_v53 = vsel %vm1332_vm7, %v6256_v56, %v10242_v18 }
 0xcfe   : > { %6694 = vmatprep.mubr.f32.mxu0 %v6384_v25 }
 0xcff   : > { %6695 = vmatmul.mubr.f32.gmra.mrb[94].mxu0 %v6288_v53  ;;  %v10285_v16 = vpop.permute.xlu1 %10284  ;;  %v6353_v13 = vsel %vm1323_vm6, %v6321_v36, %v10266_v3  ;;  %v6257_v34 = vsel %vm1323_vm6, %v6225_v5, %v10267_v19  ;;  %v5170_v36 = vld [vmem:[#allocation3 + $0x170] sm:$0xff] }
 0xd00   : > { %v10275_v63 = vpop.permute.xlu0 %10274  ;;  %v6385_v17 = vsel %vm1332_vm7, %v6353_v13, %v10271_v50  ;;  %v10287_v49 = vunpack.i.h.bf16 %v10285_v16  ;;  %v10286_v29 = vunpack.i.l.bf16 %v10285_v16  ;;  %v6289_v24 = vsel %vm1332_vm7, %v6257_v34, %v10272_v1  ;;  %v10443_v5 = vld [vmem:[#allocation3 + $0x189] sm:$0xff] }
 0xd01   : > { %v10277_v37 = vunpack.i.h.bf16 %v10275_v63  ;;  %v10276_v11 = vunpack.i.l.bf16 %v10275_v63  ;;  %6699 = vmatprep.mubr.f32.mxu0 %v6385_v17 }
 0xd03   : > { %6700 = vmatmul.mubr.f32.gmra.mrb[96].mxu0 %v6289_v24  ;;  %v10290_v46 = vpop.permute.xlu1 %10289  ;;  %v6322_v18 = vsel %vm495_vm1, %v5297_v31, %v10276_v11  ;;  %v6226_v28 = vsel %vm495_vm1, %v5169_v59, %v10277_v37  ;;  %v13535_v11 = vld [vmem:[%s14217_s12] ss:$0 sm:$0xff]  ;;  %v6973_v31 = vld [vmem:[#allocation4] sm:$0xff] }
 0xd04   : > { %v10280_v32 = vpop.permute.xlu0 %10279  ;;  %v10292_v21 = vunpack.i.h.bf16 %v10290_v46  ;;  %v10291_v62 = vunpack.i.l.bf16 %v10290_v46  ;;  %v6354_v50 = vsel %vm1323_vm6, %v6322_v18, %v10286_v29  ;;  %v6258_v9 = vsel %vm1323_vm6, %v6226_v28, %v10287_v49  ;;  %v13542_v46 = vld [vmem:[%s14218_s13] ss:$0 sm:$0xff]  ;;  %v7044_v18 = vld [vmem:[#allocation4 + $0x1] sm:$0xff]  ;;  %v13547_v28 = vld [vmem:[%s14218_s13 + $0x1] ss:$0 sm:$0xff] }
 0xd05   : > { %v10282_v41 = vunpack.i.h.bf16 %v10280_v32  ;;  %v10281_v47 = vunpack.i.l.bf16 %v10280_v32 }
 0xd06   : > { %v6323_v16 = vsel %vm495_vm1, %v10443_v5, %v10291_v62  ;;  %v6227_v13 = vsel %vm495_vm1, %v5170_v36, %v10292_v21  ;;  %v7012_v21 = vmul.f32 %v13542_v46, %v6973_v31  ;;  %vm8205_vm1 = vcmask 1046534  }
 0xd07   : > { %v10300_v56 = vpop.permute.xlu1 %10299  ;;  %v6386_v19 = vsel %vm1332_vm7, %v6354_v50, %v10281_v47  ;;  %v6290_v3 = vsel %vm1332_vm7, %v6258_v9, %v10282_v41  ;;  %v7148_v50 = vld [vmem:[#allocation4 + $0x2] sm:$0xff]  ;;  %v13557_v9 = vld [vmem:[%s14218_s13 + $0x2] ss:$0 sm:$0xff] }
 0xd08   : > { %v10295_v25 = vpop.permute.xlu0 %10294  ;;  %v10302_v53 = vunpack.i.h.bf16 %v10300_v56  ;;  %v10301_v54 = vunpack.i.l.bf16 %v10300_v56  ;;  %6704 = vmatprep.mubr.f32.mxu0 %v6386_v19  ;;  %v6974_v56 = vld [vmem:[#allocation4 + $0x8] sm:$0xff] }
 0xd09   : > { %v10297_v1 = vunpack.i.h.bf16 %v10295_v25  ;;  %v10296_v48 = vunpack.i.l.bf16 %v10295_v25  ;;  %6705 = vmatmul.mubr.f32.gmra.mrb[98].mxu0 %v6290_v3  ;;  %v7045_v19 = vld [vmem:[#allocation4 + $0x9] sm:$0xff] }
 0xd0a   : > { %v7085_v36 = vmul.f32 %v13547_v28, %v7045_v19 }
 0xd0b   : > { %v6355_v34 = vsel %vm1323_vm6, %v6323_v16, %v10296_v48  ;;  %v6259_v63 = vsel %vm1323_vm6, %v6227_v13, %v10297_v1  ;;  %v7013_v48 = vmul.f32 %v13542_v46, %v6974_v56  ;;  %v7149_v16 = vld [vmem:[#allocation4 + $0xa] sm:$0xff] }
 0xd0c   : > { %v6387_v17 = vsel %vm1332_vm7, %v6355_v34, %v10301_v54  ;;  %v6291_v37 = vsel %vm1332_vm7, %v6259_v63, %v10302_v53  ;;  %v7188_v53 = vmul.f32 %v13557_v9, %v7148_v50  ;;  %v13589_v50 = vld [vmem:[%s14218_s13 + $0x6] ss:$0 sm:$0xff] }
 0xd0d   : > { %6709 = vmatprep.mubr.f32.mxu0 %v6387_v17  ;;  %v7117_v17 = vadd.f32 %v7085_v36, %v7013_v48 }
 0xd0e   : > { %6710 = vmatmul.mubr.f32.gmra.mrb[100].mxu0 %v6291_v37  ;;  %v7189_v37 = vmul.f32 %v13557_v9, %v7149_v16 }
 0xd2a   : > { %v6556_v49 = vpop.f32.mrb[38].mxu0 }
 0xd2b   : > { %v6557_v29 = vadd.f32 %v13535_v11, %v6556_v49  ;;  %v6558_v24 = vpop.f32.mrb[39].mxu0 }
 0xd2c   : > { %v13576_v24 = vld [vmem:[%s14218_s13 + $0x4] ss:$0 sm:$0xff] }
 0xd2d   : > { %v6782_v59 = vadd.f32 %v13270_v22, %v6557_v29  ;;  %v7084_v22 = vmul.f32 %v13547_v28, %v7044_v18 }
 0xd2e   : > { %v6561_v32 = vpop.f32.mrb[40].mxu0 }
 0xd2f   : > { %6941 = vst.msk [vmem:[#allocation4 + $0x19] sm:$0xff] %vm566_vm8, %v6782_v59  ;;  %v6562_v41 = vadd.f32 %v13535_v11, %v6561_v32  ;;  %v6563_v47 = vpop.f32.mrb[41].mxu0  ;;  %v7116_v25 = vadd.f32 %v7084_v22, %v7012_v21  ;;  %v7221_v32 = vadd.f32 %v7189_v37, %v7117_v17 }
 0xd31   : > { %v6787_v62 = vadd.f32 %v13265_v44, %v6562_v41  ;;  %v13565_v44 = vld [vmem:[%s14218_s13 + $0x3] ss:$0 sm:$0xff]  ;;  %v7220_v34 = vadd.f32 %v7188_v53, %v7116_v25 }
 0xd33   : > { %6942 = vst.msk [vmem:[#allocation4 + $0x21] sm:$0xff] %vm566_vm8, %v6787_v62 }
 0xd34   : > { %v6566_v3 = vpop.f32.mrb[42].mxu0 }
 0xd35   : > { %v6567_v54 = vadd.f32 %v13535_v11, %v6566_v3  ;;  %v6568_v1 = vpop.f32.mrb[43].mxu0 }
 0xd36   : > { %v7252_v5 = vld [vmem:[#allocation4 + $0x18] sm:$0xff] }
 0xd37   : > { %v6792_v13 = vadd.f32 %v13282_v4, %v6567_v54  ;;  %v7292_v63 = vmul.f32 %v13565_v44, %v7252_v5  ;;  %v7356_v29 = vld [vmem:[#allocation4 + $0x19] sm:$0xff]  ;;  %v13581_v4 = vld [vmem:[%s14218_s13 + $0x5] ss:$0 sm:$0xff]  ;;  %v7014_v56 = vmul.f32 %v13542_v46, %v7252_v5 }
 0xd38   : > { %v7396_v22 = vmul.f32 %v13576_v24, %v7356_v29  ;;  %v7086_v19 = vmul.f32 %v13547_v28, %v7356_v29 }
 0xd39   : > { %6943 = vst.msk [vmem:[#allocation4 + $0x31] sm:$0xff] %vm566_vm8, %v6792_v13  ;;  %v7324_v31 = vadd.f32 %v7292_v63, %v7220_v34 }
 0xd3a   : > { %v7253_v49 = vld [vmem:[#allocation4 + $0x20] sm:$0xff]  ;;  %v7118_v17 = vadd.f32 %v7086_v19, %v7014_v56 }
 0xd3b   : > { %v7460_v18 = vld [vmem:[#allocation4 + $0x1a] sm:$0xff]  ;;  %v7293_v41 = vmul.f32 %v13565_v44, %v7253_v49  ;;  %v7428_v25 = vadd.f32 %v7396_v22, %v7324_v31  ;;  %v7015_v36 = vmul.f32 %v13542_v46, %v7253_v49  ;;  %v7461_v31 = vld [vmem:[#allocation4 + $0x22] sm:$0xff] }
 0xd3c   : > { %v7357_v62 = vld [vmem:[#allocation4 + $0x21] sm:$0xff]  ;;  %v7500_v53 = vmul.f32 %v13581_v4, %v7460_v18  ;;  %v7190_v48 = vmul.f32 %v13557_v9, %v7460_v18  ;;  %v13607_v18 = vld [vmem:[%s14218_s13 + $0x7] ss:$0 sm:$0xff]  ;;  %v7501_v19 = vmul.f32 %v13581_v4, %v7461_v31 }
 0xd3d   : > { %v6571_v59 = vpop.f32.mrb[44].mxu0  ;;  %v7325_v1 = vadd.f32 %v7293_v41, %v7221_v32  ;;  %v7087_v16 = vmul.f32 %v13547_v28, %v7357_v62 }
 0xd3e   : > { %v6572_v47 = vadd.f32 %v13535_v11, %v6571_v59  ;;  %v6573_v21 = vpop.f32.mrb[45].mxu0  ;;  %v7532_v29 = vadd.f32 %v7500_v53, %v7428_v25  ;;  %v7222_v41 = vadd.f32 %v7190_v48, %v7118_v17  ;;  %v7191_v25 = vmul.f32 %v13557_v9, %v7461_v31 }
 0xd40   : > { %v6797_v3 = vadd.f32 %v13278_v10, %v6572_v47  ;;  %v7565_v54 = vld [vmem:[#allocation4 + $0x30] sm:$0xff]  ;;  %v7397_v10 = vmul.f32 %v13576_v24, %v7357_v62  ;;  %v7119_v47 = vadd.f32 %v7087_v16, %v7015_v36 }
 0xd41   : > { %v7605_v5 = vmul.f32 %v13589_v50, %v7565_v54  ;;  %v7294_v37 = vmul.f32 %v13565_v44, %v7565_v54  ;;  %v7669_v49 = vld [vmem:[#allocation4 + $0x31] sm:$0xff] }
 0xd42   : > { %6944 = vst.msk [vmem:[#allocation4 + $0x39] sm:$0xff] %vm566_vm8, %v6797_v3  ;;  %v6576_v13 = vpop.f32.mrb[46].mxu0  ;;  %v7429_v32 = vadd.f32 %v7397_v10, %v7325_v1  ;;  %v7709_v53 = vmul.f32 %v13607_v18, %v7669_v49 }
 0xd43   : > { %v6577_v34 = vadd.f32 %v13535_v11, %v6576_v13  ;;  %v6578_v63 = vpop.f32.mrb[47].mxu0  ;;  %v7637_v22 = vadd.f32 %v7605_v5, %v7532_v29  ;;  %v7326_v3 = vadd.f32 %v7294_v37, %v7222_v41  ;;  %v7398_v5 = vmul.f32 %v13576_v24, %v7669_v49 }
 0xd44   : > { %v7533_v36 = vadd.f32 %v7501_v19, %v7429_v32  ;;  %v7016_v37 = vmul.f32 %v13542_v46, %v7565_v54  ;;  %v7088_v32 = vmul.f32 %v13547_v28, %v7669_v49 }
 0xd45   : > { %v6802_v59 = vadd.f32 %v13294_v35, %v6577_v34  ;;  %v13614_v35 = vld [vmem:[%s14218_s13 + $0x8] ss:$0 sm:$0xff]  ;;  %v7223_v34 = vadd.f32 %v7191_v25, %v7119_v47  ;;  %v7741_v63 = vadd.f32 %v7709_v53, %v7637_v22  ;;  %v7430_v31 = vadd.f32 %v7398_v5, %v7326_v3 }
 0xd46   : > { %v6581_v21 = vpop.f32.mrb[48].mxu0 }
 0xd47   : > { %6945 = vst.msk [vmem:[#allocation4 + $0x49] sm:$0xff] %vm566_vm8, %v6802_v59  ;;  %v6582_v62 = vadd.f32 %v13535_v11, %v6581_v21  ;;  %v6583_v56 = vpop.f32.mrb[49].mxu0 }
 0xd49   : > { %v6807_v1 = vadd.f32 %v13290_v26, %v6582_v62  ;;  %v7773_v48 = vld [vmem:[#allocation4 + $0x32] sm:$0xff]  ;;  %v7774_v29 = vld [vmem:[#allocation4 + $0x3a] sm:$0xff] }
 0xd4a   : > { %v7566_v16 = vld [vmem:[#allocation4 + $0x38] sm:$0xff]  ;;  %v7813_v10 = vmul.f32 %v13614_v35, %v7773_v48  ;;  %v7502_v26 = vmul.f32 %v13581_v4, %v7773_v48  ;;  %v7814_v62 = vmul.f32 %v13614_v35, %v7774_v29  ;;  %v7192_v3 = vmul.f32 %v13557_v9, %v7773_v48 }
 0xd4b   : > { %v7670_v13 = vld [vmem:[#allocation4 + $0x39] sm:$0xff]  ;;  %v7606_v17 = vmul.f32 %v13589_v50, %v7566_v16  ;;  %6946 = vst.msk [vmem:[#allocation4 + $0x51] sm:$0xff] %vm566_vm8, %v6807_v1  ;;  %v7295_v59 = vmul.f32 %v13565_v44, %v7566_v16 }
 0xd4c   : > { %v6586_v41 = vpop.f32.mrb[50].mxu0  ;;  %v7845_v21 = vadd.f32 %v7813_v10, %v7741_v63  ;;  %v7710_v22 = vmul.f32 %v13607_v18, %v7670_v13  ;;  %v7399_v25 = vmul.f32 %v13576_v24, %v7670_v13  ;;  %v7017_v63 = vmul.f32 %v13542_v46, %v7566_v16 }
 0xd4d   : > { %v7638_v47 = vadd.f32 %v7606_v17, %v7533_v36  ;;  %v6587_v56 = vadd.f32 %v13535_v11, %v6586_v41  ;;  %v6588_v19 = vpop.f32.mrb[51].mxu0  ;;  %v7327_v54 = vadd.f32 %v7295_v59, %v7223_v34  ;;  %v7089_v36 = vmul.f32 %v13547_v28, %v7670_v13 }
 0xd4e   : > { %v7877_v53 = vsel %vm566_vm8, %v7845_v21, 0.0  ;;  %v7567_v5 = vld [vmem:[#allocation4 + $0x48] sm:$0xff]  ;;  %v7534_v17 = vadd.f32 %v7502_v26, %v7430_v31  ;;  %v7120_v19 = vadd.f32 %v7088_v32, %v7016_v37  ;;  %v7503_v16 = vmul.f32 %v13581_v4, %v7774_v29 }
 0xd4f   : > { %v7742_v1 = vadd.f32 %v7710_v22, %v7638_v47  ;;  %v7671_v49 = vld [vmem:[#allocation4 + $0x49] sm:$0xff]  ;;  %v6812_v10 = vadd.f32 %v13306_v39, %v6587_v56  ;;  %7878 = vadd.xlane.f32.xlu0 %v7877_v53  ;;  %v7607_v41 = vmul.f32 %v13589_v50, %v7567_v5  ;;  %v7431_v34 = vadd.f32 %v7399_v25, %v7327_v54 }
 0xd50   : > { %v7296_v48 = vmul.f32 %v13565_v44, %v7567_v5  ;;  %v7711_v47 = vmul.f32 %v13607_v18, %v7671_v49  ;;  %v7224_v31 = vadd.f32 %v7192_v3, %v7120_v19  ;;  %v7121_v26 = vadd.f32 %v7089_v36, %v7017_v63 }
 0xd51   : > { %v7846_v59 = vadd.f32 %v7814_v62, %v7742_v1  ;;  %6947 = vst.msk [vmem:[#allocation4 + $0x61] sm:$0xff] %vm566_vm8, %v6812_v10  ;;  %v7639_v21 = vadd.f32 %v7607_v41, %v7534_v17  ;;  %v7535_v32 = vadd.f32 %v7503_v16, %v7431_v34  ;;  %v7193_v1 = vmul.f32 %v13557_v9, %v7774_v29 }
 0xd52   : > { %v7775_v22 = vld [vmem:[#allocation4 + $0x4a] sm:$0xff]  ;;  %v7776_v25 = vld [vmem:[#allocation4 + $0x52] sm:$0xff]  ;;  %v7328_v53 = vadd.f32 %v7296_v48, %v7224_v31  ;;  %v7400_v36 = vmul.f32 %v13576_v24, %v7671_v49  ;;  %v7018_v34 = vmul.f32 %v13542_v46, %v7567_v5  ;;  %v7090_v19 = vmul.f32 %v13547_v28, %v7671_v49 }
 0xd53   : > { %v7880_v13 = vsel %vm566_vm8, %v7846_v59, 0.0  ;;  %v7568_v39 = vld [vmem:[#allocation4 + $0x50] sm:$0xff]  ;;  %v7743_v54 = vadd.f32 %v7711_v47, %v7639_v21  ;;  %v7815_v37 = vmul.f32 %v13614_v35, %v7775_v22  ;;  %v7816_v29 = vmul.f32 %v13614_v35, %v7776_v25 }
 0xd54   : > { %v7672_v56 = vld [vmem:[#allocation4 + $0x51] sm:$0xff]  ;;  %7881 = vadd.xlane.f32.xlu1 %v7880_v13  ;;  %v7608_v62 = vmul.f32 %v13589_v50, %v7568_v39  ;;  %v7297_v33 = vmul.f32 %v13565_v44, %v7568_v39  ;;  %v7225_v47 = vadd.f32 %v7193_v1, %v7121_v26  ;;  %v7432_v13 = vadd.f32 %v7400_v36, %v7328_v53 }
 0xd55   : > { %v6591_v10 = vpop.f32.mrb[52].mxu0  ;;  %v7847_v17 = vadd.f32 %v7815_v37, %v7743_v54  ;;  %v7712_v59 = vmul.f32 %v13607_v18, %v7672_v56  ;;  %v7504_v31 = vmul.f32 %v13581_v4, %v7775_v22  ;;  %v7019_v26 = vmul.f32 %v13542_v46, %v7568_v39 }
 0xd56   : > { %v7640_v41 = vadd.f32 %v7608_v62, %v7535_v32  ;;  %v6592_v3 = vadd.f32 %v13535_v11, %v6591_v10  ;;  %v6593_v63 = vpop.f32.mrb[53].mxu0  ;;  %v7329_v32 = vadd.f32 %v7297_v33, %v7225_v47  ;;  %v7194_v62 = vmul.f32 %v13557_v9, %v7775_v22 }
 0xd57   : > { %v7883_v48 = vsel %vm566_vm8, %v7847_v17, 0.0  ;;  %v7401_v10 = vmul.f32 %v13576_v24, %v7672_v56  ;;  %v7536_v22 = vadd.f32 %v7504_v31, %v7432_v13  ;;  %v7195_v13 = vmul.f32 %v13557_v9, %v7776_v25 }
 0xd58   : > { %v7744_v21 = vadd.f32 %v7712_v59, %v7640_v41  ;;  %v6817_v16 = vadd.f32 %v13304_v45, %v6592_v3  ;;  %7884 = vadd.xlane.f32.xlu0 %v7883_v48  ;;  %v7569_v54 = vld [vmem:[#allocation4 + $0x60] sm:$0xff]  ;;  %v7091_v45 = vmul.f32 %v13547_v28, %v7672_v56  ;;  %v7122_v41 = vadd.f32 %v7090_v19, %v7018_v34 }
 0xd59   : > { %v7609_v49 = vmul.f32 %v13589_v50, %v7569_v54  ;;  %v7298_v33 = vmul.f32 %v13565_v44, %v7569_v54  ;;  %v7673_v3 = vld [vmem:[#allocation4 + $0x61] sm:$0xff]  ;;  %v7433_v63 = vadd.f32 %v7401_v10, %v7329_v32  ;;  %v7505_v34 = vmul.f32 %v13581_v4, %v7776_v25 }
 0xd5a   : > { %v7848_v37 = vadd.f32 %v7816_v29, %v7744_v21  ;;  %6948 = vst.msk [vmem:[#allocation4 + $0x69] sm:$0xff] %vm566_vm8, %v6817_v16  ;;  %v6596_v5 = vpop.f32.mrb[54].mxu0  ;;  %v7226_v36 = vadd.f32 %v7194_v62, %v7122_v41  ;;  %v7123_v39 = vadd.f32 %v7091_v45, %v7019_v26  ;;  %v13666_v29 = vpop.f32.mrb[104].mxu1  ;;  %v7020_v10 = vmul.f32 %v13542_v46, %v7569_v54 }
 0xd5b   : > { %v6597_v53 = vadd.f32 %v13535_v11, %v6596_v5  ;;  %v6598_v1 = vpop.f32.mrb[55].mxu0  ;;  %v7641_v21 = vadd.f32 %v7609_v49, %v7536_v22  ;;  %v13671_v16 = vpop.f32.mrb[105].mxu1  ;;  %v7537_v32 = vadd.f32 %v7505_v34, %v7433_v63  ;;  %v7402_v49 = vmul.f32 %v13576_v24, %v7673_v3 }
 0xd5c   : > { %v7886_v17 = vsel %vm566_vm8, %v7848_v37, 0.0  ;;  %v7330_v19 = vadd.f32 %v7298_v33, %v7226_v36  ;;  %v7092_v33 = vmul.f32 %v13547_v28, %v7673_v3 }
 0xd5d   : > { %7887 = vadd.xlane.f32.xlu0 %v7886_v17  ;;  %v6822_v59 = vadd.f32 %v13318_v51, %v6597_v53  ;;  %v7713_v51 = vmul.f32 %v13607_v18, %v7673_v3  ;;  %v7227_v17 = vadd.f32 %v7195_v13, %v7123_v39 }
 0xd5e   : > { %v6601_v48 = vpop.f32.mrb[56].mxu0  ;;  %v7434_v25 = vadd.f32 %v7402_v49, %v7330_v19 }
 0xd5f   : > { %6949 = vst.msk [vmem:[#allocation4 + $0x79] sm:$0xff] %vm566_vm8, %v6822_v59  ;;  %v6602_v56 = vadd.f32 %v13535_v11, %v6601_v48  ;;  %v6603_v47 = vpop.f32.mrb[57].mxu0  ;;  %v7745_v26 = vadd.f32 %v7713_v51, %v7641_v21 }
 0xd61   : > { %v6827_v31 = vadd.f32 %v13314_v2, %v6602_v56  ;;  %v7777_v37 = vld [vmem:[#allocation4 + $0x62] sm:$0xff]  ;;  %v7778_v1 = vld [vmem:[#allocation4 + $0x6a] sm:$0xff] }
 0xd62   : > { %v7570_v62 = vld [vmem:[#allocation4 + $0x68] sm:$0xff]  ;;  %v7817_v45 = vmul.f32 %v13614_v35, %v7777_v37  ;;  %v7506_v2 = vmul.f32 %v13581_v4, %v7777_v37  ;;  %v7818_v36 = vmul.f32 %v13614_v35, %v7778_v1  ;;  %v7196_v47 = vmul.f32 %v13557_v9, %v7777_v37 }
 0xd63   : > { %v7674_v5 = vld [vmem:[#allocation4 + $0x69] sm:$0xff]  ;;  %v7610_v53 = vmul.f32 %v13589_v50, %v7570_v62  ;;  %6950 = vst.msk [vmem:[#allocation4 + $0x81] sm:$0xff] %vm566_vm8, %v6827_v31  ;;  %v7299_v41 = vmul.f32 %v13565_v44, %v7570_v62  ;;  %v7021_v13 = vmul.f32 %v13542_v46, %v7570_v62  ;;  %v7507_v62 = vmul.f32 %v13581_v4, %v7778_v1 }
 0xd64   : > { %v6606_v22 = vpop.f32.mrb[58].mxu0  ;;  %v7849_v59 = vadd.f32 %v7817_v45, %v7745_v26  ;;  %v7714_v54 = vmul.f32 %v13607_v18, %v7674_v5  ;;  %v7403_v56 = vmul.f32 %v13576_v24, %v7674_v5  ;;  %v7093_v31 = vmul.f32 %v13547_v28, %v7674_v5 }
 0xd65   : > { %v7642_v63 = vadd.f32 %v7610_v53, %v7537_v32  ;;  %v6607_v48 = vadd.f32 %v13535_v11, %v6606_v22  ;;  %v6608_v21 = vpop.f32.mrb[59].mxu0  ;;  %v7331_v39 = vadd.f32 %v7299_v41, %v7227_v17  ;;  %v7538_v49 = vadd.f32 %v7506_v2, %v7434_v25 }
 0xd66   : > { %v7889_v34 = vsel %vm566_vm8, %v7849_v59, 0.0  ;;  %v7571_v51 = vld [vmem:[#allocation4 + $0x78] sm:$0xff]  ;;  %v7124_v17 = vadd.f32 %v7092_v33, %v7020_v10  ;;  %v7125_v2 = vadd.f32 %v7093_v31, %v7021_v13 }
 0xd67   : > { %v7746_v19 = vadd.f32 %v7714_v54, %v7642_v63  ;;  %v7675_v3 = vld [vmem:[#allocation4 + $0x79] sm:$0xff]  ;;  %v6832_v32 = vadd.f32 %v13332_v58, %v6607_v48  ;;  %7890 = vadd.xlane.f32.xlu1 %v7889_v34  ;;  %v7611_v26 = vmul.f32 %v13589_v50, %v7571_v51  ;;  %v7435_v45 = vadd.f32 %v7403_v56, %v7331_v39 }
 0xd68   : > { %v7300_v37 = vmul.f32 %v13565_v44, %v7571_v51  ;;  %v7715_v22 = vmul.f32 %v13607_v18, %v7675_v3  ;;  %v7228_v25 = vadd.f32 %v7196_v47, %v7124_v17  ;;  %v7197_v39 = vmul.f32 %v13557_v9, %v7778_v1 }
 0xd69   : > { %v7850_v53 = vadd.f32 %v7818_v36, %v7746_v19  ;;  %6951 = vst.msk [vmem:[#allocation4 + $0x91] sm:$0xff] %vm566_vm8, %v6832_v32  ;;  %v7643_v41 = vadd.f32 %v7611_v26, %v7538_v49  ;;  %v7539_v33 = vadd.f32 %v7507_v62, %v7435_v45  ;;  %v7404_v31 = vmul.f32 %v13576_v24, %v7675_v3 }
 0xd6a   : > { %v7779_v59 = vld [vmem:[#allocation4 + $0x7a] sm:$0xff]  ;;  %v7780_v48 = vld [vmem:[#allocation4 + $0x82] sm:$0xff]  ;;  %v7332_v21 = vadd.f32 %v7300_v37, %v7228_v25  ;;  %v7022_v26 = vmul.f32 %v13542_v46, %v7571_v51  ;;  %v7094_v45 = vmul.f32 %v13547_v28, %v7675_v3  ;;  %v7229_v37 = vadd.f32 %v7197_v39, %v7125_v2 }
 0xd6b   : > { %v7892_v5 = vsel %vm566_vm8, %v7850_v53, 0.0  ;;  %v7572_v58 = vld [vmem:[#allocation4 + $0x80] sm:$0xff]  ;;  %v7747_v54 = vadd.f32 %v7715_v22, %v7643_v41  ;;  %v7819_v10 = vmul.f32 %v13614_v35, %v7779_v59  ;;  %v7820_v1 = vmul.f32 %v13614_v35, %v7780_v48 }
 0xd6c   : > { %v7676_v63 = vld [vmem:[#allocation4 + $0x81] sm:$0xff]  ;;  %7893 = vadd.xlane.f32.xlu0 %v7892_v5  ;;  %v7612_v36 = vmul.f32 %v13589_v50, %v7572_v58  ;;  %v7301_v49 = vmul.f32 %v13565_v44, %v7572_v58  ;;  %v7436_v22 = vadd.f32 %v7404_v31, %v7332_v21  ;;  %v7508_v62 = vmul.f32 %v13581_v4, %v7779_v59 }
 0xd6d   : > { %v6611_v56 = vpop.f32.mrb[60].mxu0  ;;  %v7851_v34 = vadd.f32 %v7819_v10, %v7747_v54  ;;  %v7716_v32 = vmul.f32 %v13607_v18, %v7676_v63  ;;  %v7198_v10 = vmul.f32 %v13557_v9, %v7779_v59  ;;  %v7023_v2 = vmul.f32 %v13542_v46, %v7572_v58 }
 0xd6e   : > { %v7644_v19 = vadd.f32 %v7612_v36, %v7539_v33  ;;  %v6612_v47 = vadd.f32 %v13535_v11, %v6611_v56  ;;  %v6613_v13 = vpop.f32.mrb[61].mxu0  ;;  %v7333_v54 = vadd.f32 %v7301_v49, %v7229_v37  ;;  %v7405_v33 = vmul.f32 %v13576_v24, %v7676_v63 }
 0xd6f   : > { %v7895_v53 = vsel %vm566_vm8, %v7851_v34, 0.0  ;;  %v7126_v56 = vadd.f32 %v7094_v45, %v7022_v26  ;;  %v7540_v59 = vadd.f32 %v7508_v62, %v7436_v22 }
 0xd70   : > { %v7748_v17 = vadd.f32 %v7716_v32, %v7644_v19  ;;  %v6837_v41 = vadd.f32 %v13326_v43, %v6612_v47  ;;  %7896 = vadd.xlane.f32.xlu1 %v7895_v53  ;;  %v7573_v5 = vld [vmem:[#allocation4 + $0x90] sm:$0xff]  ;;  %v7095_v43 = vmul.f32 %v13547_v28, %v7676_v63  ;;  %v7437_v49 = vadd.f32 %v7405_v33, %v7333_v54 }
 0xd71   : > { %v7613_v3 = vmul.f32 %v13589_v50, %v7573_v5  ;;  %v7302_v34 = vmul.f32 %v13565_v44, %v7573_v5  ;;  %v7677_v32 = vld [vmem:[#allocation4 + $0x91] sm:$0xff]  ;;  %v7230_v47 = vadd.f32 %v7198_v10, %v7126_v56  ;;  %v7024_v54 = vmul.f32 %v13542_v46, %v7573_v5 }
 0xd72   : > { %v7852_v25 = vadd.f32 %v7820_v1, %v7748_v17  ;;  %6952 = vst.msk [vmem:[#allocation4 + $0x99] sm:$0xff] %vm566_vm8, %v6837_v41  ;;  %v6616_v51 = vpop.f32.mrb[62].mxu0  ;;  %v7127_v58 = vadd.f32 %v7095_v43, %v7023_v2  ;;  %v7509_v17 = vmul.f32 %v13581_v4, %v7780_v48  ;;  %v7717_v45 = vmul.f32 %v13607_v18, %v7677_v32 }
 0xd73   : > { %v6617_v36 = vadd.f32 %v13535_v11, %v6616_v51  ;;  %v6618_v21 = vpop.f32.mrb[63].mxu0  ;;  %v7645_v31 = vadd.f32 %v7613_v3, %v7540_v59  ;;  %v7334_v26 = vadd.f32 %v7302_v34, %v7230_v47  ;;  %v7199_v1 = vmul.f32 %v13557_v9, %v7780_v48 }
 0xd74   : > { %v7898_v39 = vsel %vm566_vm8, %v7852_v25, 0.0  ;;  %v7541_v41 = vadd.f32 %v7509_v17, %v7437_v49  ;;  %v7406_v25 = vmul.f32 %v13576_v24, %v7677_v32 }
 0xd75   : > { %7899 = vadd.xlane.f32.xlu0 %v7898_v39  ;;  %v6842_v19 = vadd.f32 %v13338_v38, %v6617_v36  ;;  %v7749_v10 = vadd.f32 %v7717_v45, %v7645_v31  ;;  %v7231_v2 = vadd.f32 %v7199_v1, %v7127_v58  ;;  %v7096_v36 = vmul.f32 %v13547_v28, %v7677_v32 }
 0xd76   : > { %v6621_v13 = vpop.f32.mrb[64].mxu0  ;;  %v7438_v48 = vadd.f32 %v7406_v25, %v7334_v26 }
 0xd77   : > { %6953 = vst.msk [vmem:[#allocation4 + $0xa9] sm:$0xff] %vm566_vm8, %v6842_v19  ;;  %v6622_v63 = vadd.f32 %v13535_v11, %v6621_v13  ;;  %v6623_v53 = vpop.f32.mrb[65].mxu0  ;;  %v7128_v25 = vadd.f32 %v7096_v36, %v7024_v54 }
 0xd79   : > { %v6847_v38 = vadd.f32 %v13336_v60, %v6622_v63  ;;  %v7781_v37 = vld [vmem:[#allocation4 + $0x92] sm:$0xff]  ;;  %v7782_v33 = vld [vmem:[#allocation4 + $0x9a] sm:$0xff] }
 0xd7a   : > { %v7574_v22 = vld [vmem:[#allocation4 + $0x98] sm:$0xff]  ;;  %v7821_v51 = vmul.f32 %v13614_v35, %v7781_v37  ;;  %v7510_v60 = vmul.f32 %v13581_v4, %v7781_v37  ;;  %v7822_v34 = vmul.f32 %v13614_v35, %v7782_v33  ;;  %v7200_v13 = vmul.f32 %v13557_v9, %v7781_v37 }
 0xd7b   : > { %v7678_v62 = vld [vmem:[#allocation4 + $0x99] sm:$0xff]  ;;  %v7614_v3 = vmul.f32 %v13589_v50, %v7574_v22  ;;  %6954 = vst.msk [vmem:[#allocation4 + $0xb1] sm:$0xff] %vm566_vm8, %v6847_v38  ;;  %v7303_v43 = vmul.f32 %v13565_v44, %v7574_v22  ;;  %v7025_v53 = vmul.f32 %v13542_v46, %v7574_v22  ;;  %v7511_v22 = vmul.f32 %v13581_v4, %v7782_v33 }
 0xd7c   : > { %v6626_v21 = vpop.f32.mrb[66].mxu0  ;;  %v7853_v39 = vadd.f32 %v7821_v51, %v7749_v10  ;;  %v7718_v5 = vmul.f32 %v13607_v18, %v7678_v62  ;;  %v7407_v47 = vmul.f32 %v13576_v24, %v7678_v62  ;;  %v7097_v17 = vmul.f32 %v13547_v28, %v7678_v62 }
 0xd7d   : > { %v7646_v56 = vadd.f32 %v7614_v3, %v7541_v41  ;;  %v6627_v59 = vadd.f32 %v13535_v11, %v6626_v21  ;;  %v6628_v19 = vpop.f32.mrb[67].mxu0  ;;  %v7335_v49 = vadd.f32 %v7303_v43, %v7231_v2  ;;  %v7542_v45 = vadd.f32 %v7510_v60, %v7438_v48 }
 0xd7e   : > { %v7901_v31 = vsel %vm566_vm8, %v7853_v39, 0.0  ;;  %v7575_v63 = vld [vmem:[#allocation4 + $0xa8] sm:$0xff]  ;;  %v7232_v48 = vadd.f32 %v7200_v13, %v7128_v25  ;;  %v7129_v60 = vadd.f32 %v7097_v17, %v7025_v53 }
 0xd7f   : > { %v7750_v58 = vadd.f32 %v7718_v5, %v7646_v56  ;;  %v7679_v32 = vld [vmem:[#allocation4 + $0xa9] sm:$0xff]  ;;  %v6852_v26 = vadd.f32 %v13416_v23, %v6627_v59  ;;  %7902 = vadd.xlane.f32.xlu1 %v7901_v31  ;;  %v7615_v1 = vmul.f32 %v13589_v50, %v7575_v63  ;;  %v7439_v38 = vadd.f32 %v7407_v47, %v7335_v49 }
 0xd80   : > { %v7304_v37 = vmul.f32 %v13565_v44, %v7575_v63  ;;  %v7719_v51 = vmul.f32 %v13607_v18, %v7679_v32  ;;  %v7201_v5 = vmul.f32 %v13557_v9, %v7782_v33  ;;  %v7026_v53 = vmul.f32 %v13542_v46, %v7575_v63 }
 0xd81   : > { %v7854_v41 = vadd.f32 %v7822_v34, %v7750_v58  ;;  %6955 = vst.msk [vmem:[#allocation4 + $0xc1] sm:$0xff] %vm566_vm8, %v6852_v26  ;;  %v7647_v10 = vadd.f32 %v7615_v1, %v7542_v45  ;;  %v7543_v36 = vadd.f32 %v7511_v22, %v7439_v38  ;;  %v7408_v58 = vmul.f32 %v13576_v24, %v7679_v32 }
 0xd82   : > { %v7783_v3 = vld [vmem:[#allocation4 + $0xaa] sm:$0xff]  ;;  %v7784_v39 = vld [vmem:[#allocation4 + $0xb2] sm:$0xff]  ;;  %v7336_v56 = vadd.f32 %v7304_v37, %v7232_v48  ;;  %v7098_v17 = vmul.f32 %v13547_v28, %v7679_v32  ;;  %v7233_v1 = vadd.f32 %v7201_v5, %v7129_v60 }
 0xd83   : > { %v7904_v62 = vsel %vm566_vm8, %v7854_v41, 0.0  ;;  %v7576_v23 = vld [vmem:[#allocation4 + $0xb0] sm:$0xff]  ;;  %v7751_v43 = vadd.f32 %v7719_v51, %v7647_v10  ;;  %v7823_v54 = vmul.f32 %v13614_v35, %v7783_v3  ;;  %v7824_v33 = vmul.f32 %v13614_v35, %v7784_v39 }
 0xd84   : > { %v7680_v2 = vld [vmem:[#allocation4 + $0xb1] sm:$0xff]  ;;  %7905 = vadd.xlane.f32.xlu0 %v7904_v62  ;;  %v7616_v21 = vmul.f32 %v13589_v50, %v7576_v23  ;;  %v7305_v47 = vmul.f32 %v13565_v44, %v7576_v23  ;;  %v7440_v41 = vadd.f32 %v7408_v58, %v7336_v56  ;;  %v7512_v25 = vmul.f32 %v13581_v4, %v7783_v3 }
 0xd85   : > { %v6631_v34 = vpop.f32.mrb[68].mxu0  ;;  %v7855_v59 = vadd.f32 %v7823_v54, %v7751_v43  ;;  %v7720_v49 = vmul.f32 %v13607_v18, %v7680_v2  ;;  %v7202_v22 = vmul.f32 %v13557_v9, %v7783_v3  ;;  %v7409_v62 = vmul.f32 %v13576_v24, %v7680_v2 }
 0xd86   : > { %v7648_v19 = vadd.f32 %v7616_v21, %v7543_v36  ;;  %v6632_v13 = vadd.f32 %v13535_v11, %v6631_v34  ;;  %v6633_v31 = vpop.f32.mrb[69].mxu0  ;;  %v7337_v51 = vadd.f32 %v7305_v47, %v7233_v1  ;;  %v7027_v48 = vmul.f32 %v13542_v46, %v7576_v23 }
 0xd87   : > { %v7907_v26 = vsel %vm566_vm8, %v7855_v59, 0.0  ;;  %v7130_v36 = vadd.f32 %v7098_v17, %v7026_v53  ;;  %v7544_v3 = vadd.f32 %v7512_v25, %v7440_v41  ;;  %v10526_v47 = vmov 0  }
 0xd88   : > { %v7752_v45 = vadd.f32 %v7720_v49, %v7648_v19  ;;  %v6857_v38 = vadd.f32 %v13344_v55, %v6632_v13  ;;  %7908 = vadd.xlane.f32.xlu1 %v7907_v26  ;;  %v7577_v37 = vld [vmem:[#allocation4 + $0xc0] sm:$0xff]  ;;  %v7099_v55 = vmul.f32 %v13547_v28, %v7680_v2  ;;  %v7441_v34 = vadd.f32 %v7409_v62, %v7337_v51 }
 0xd89   : > { %v7617_v32 = vmul.f32 %v13589_v50, %v7577_v37  ;;  %v7306_v21 = vmul.f32 %v13565_v44, %v7577_v37  ;;  %v7681_v5 = vld [vmem:[#allocation4 + $0xc1] sm:$0xff]  ;;  %v7234_v59 = vadd.f32 %v7202_v22, %v7130_v36  ;;  %10303 = vset.pattern.permute.xlu1 %v10526_v47  ;;  %10304 = vset.pattern.permute.xlu0 %v10526_v47 }
 0xd8a   : > { %v7856_v10 = vadd.f32 %v7824_v33, %v7752_v45  ;;  %6956 = vst.msk [vmem:[#allocation4 + $0xc9] sm:$0xff] %vm566_vm8, %v6857_v38  ;;  %v6636_v63 = vpop.f32.mrb[70].mxu0  ;;  %v7131_v23 = vadd.f32 %v7099_v55, %v7027_v48  ;;  %v7513_v31 = vmul.f32 %v13581_v4, %v7784_v39  ;;  %v7721_v53 = vmul.f32 %v13607_v18, %v7681_v5 }
 0xd8b   : > { %v6637_v60 = vadd.f32 %v13535_v11, %v6636_v63  ;;  %v6638_v43 = vpop.f32.mrb[71].mxu0  ;;  %v7649_v49 = vadd.f32 %v7617_v32, %v7544_v3  ;;  %v7338_v58 = vadd.f32 %v7306_v21, %v7234_v59  ;;  %v7410_v38 = vmul.f32 %v13576_v24, %v7681_v5 }
 0xd8c   : > { %v7910_v54 = vsel %vm566_vm8, %v7856_v10, 0.0  ;;  %v7545_v45 = vadd.f32 %v7513_v31, %v7441_v34  ;;  %v7028_v41 = vmul.f32 %v13542_v46, %v7577_v37  ;;  %v7100_v62 = vmul.f32 %v13547_v28, %v7681_v5 }
 0xd8d   : > { %7911 = vadd.xlane.f32.xlu0 %v7910_v54  ;;  %v6862_v56 = vadd.f32 %v13424_v52, %v6637_v60  ;;  %v7203_v52 = vmul.f32 %v13557_v9, %v7784_v39  ;;  %v7753_v25 = vadd.f32 %v7721_v53, %v7649_v49  ;;  %v7442_v39 = vadd.f32 %v7410_v38, %v7338_v58 }
 0xd8e   : > { %v6641_v19 = vpop.f32.mrb[72].mxu0  ;;  %v7132_v53 = vadd.f32 %v7100_v62, %v7028_v41 }
 0xd8f   : > { %6957 = vst.msk [vmem:[#allocation4 + $0xd9] sm:$0xff] %vm566_vm8, %v6862_v56  ;;  %v6642_v2 = vadd.f32 %v13535_v11, %v6641_v19  ;;  %v6643_v13 = vpop.f32.mrb[73].mxu0  ;;  %v7235_v63 = vadd.f32 %v7203_v52, %v7131_v23 }
 0xd91   : > { %v6867_v17 = vadd.f32 %v13420_v14, %v6642_v2  ;;  %v7785_v26 = vld [vmem:[#allocation4 + $0xc2] sm:$0xff]  ;;  %v7786_v22 = vld [vmem:[#allocation4 + $0xca] sm:$0xff] }
 0xd92   : > { %v7578_v33 = vld [vmem:[#allocation4 + $0xc8] sm:$0xff]  ;;  %v7825_v10 = vmul.f32 %v13614_v35, %v7785_v26  ;;  %v7514_v14 = vmul.f32 %v13581_v4, %v7785_v26  ;;  %v7826_v43 = vmul.f32 %v13614_v35, %v7786_v22  ;;  %v7204_v56 = vmul.f32 %v13557_v9, %v7785_v26 }
 0xd93   : > { %v7682_v1 = vld [vmem:[#allocation4 + $0xc9] sm:$0xff]  ;;  %v7618_v51 = vmul.f32 %v13589_v50, %v7578_v33  ;;  %6958 = vst.msk [vmem:[#allocation4 + $0xe1] sm:$0xff] %vm566_vm8, %v6867_v17  ;;  %v7307_v32 = vmul.f32 %v13565_v44, %v7578_v33  ;;  %v7029_v49 = vmul.f32 %v13542_v46, %v7578_v33  ;;  %v7205_v62 = vmul.f32 %v13557_v9, %v7786_v22 }
 0xd94   : > { %v6646_v48 = vpop.f32.mrb[74].mxu0  ;;  %v7857_v55 = vadd.f32 %v7825_v10, %v7753_v25  ;;  %v7722_v37 = vmul.f32 %v13607_v18, %v7682_v1  ;;  %v7411_v3 = vmul.f32 %v13576_v24, %v7682_v1  ;;  %v7101_v23 = vmul.f32 %v13547_v28, %v7682_v1 }
 0xd95   : > { %v7650_v60 = vadd.f32 %v7618_v51, %v7545_v45  ;;  %v6647_v54 = vadd.f32 %v13535_v11, %v6646_v48  ;;  %v6648_v36 = vpop.f32.mrb[75].mxu0  ;;  %v7339_v21 = vadd.f32 %v7307_v32, %v7235_v63  ;;  %v7546_v2 = vadd.f32 %v7514_v14, %v7442_v39 }
 0xd96   : > { %v7913_v34 = vsel %vm566_vm8, %v7857_v55, 0.0  ;;  %v7579_v19 = vld [vmem:[#allocation4 + $0xd8] sm:$0xff]  ;;  %v7515_v45 = vmul.f32 %v13581_v4, %v7786_v22  ;;  %v7236_v25 = vadd.f32 %v7204_v56, %v7132_v53  ;;  %v7133_v10 = vadd.f32 %v7101_v23, %v7029_v49 }
 0xd97   : > { %v7754_v59 = vadd.f32 %v7722_v37, %v7650_v60  ;;  %v7683_v5 = vld [vmem:[#allocation4 + $0xd9] sm:$0xff]  ;;  %v6872_v47 = vadd.f32 %v13436_v20, %v6647_v54  ;;  %7914 = vadd.xlane.f32.xlu1 %v7913_v34  ;;  %v7619_v13 = vmul.f32 %v13589_v50, %v7579_v19  ;;  %v7443_v31 = vadd.f32 %v7411_v3, %v7339_v21 }
 0xd98   : > { %v7308_v52 = vmul.f32 %v13565_v44, %v7579_v19  ;;  %v7723_v26 = vmul.f32 %v13607_v18, %v7683_v5  ;;  %v7412_v21 = vmul.f32 %v13576_v24, %v7683_v5  ;;  %v7030_v3 = vmul.f32 %v13542_v46, %v7579_v19 }
 0xd99   : > { %v7858_v58 = vadd.f32 %v7826_v43, %v7754_v59  ;;  %6959 = vst.msk [vmem:[#allocation4 + $0xf1] sm:$0xff] %vm566_vm8, %v6872_v47  ;;  %v7651_v17 = vadd.f32 %v7619_v13, %v7546_v2  ;;  %v7547_v63 = vadd.f32 %v7515_v45, %v7443_v31  ;;  %v7102_v56 = vmul.f32 %v13547_v28, %v7683_v5 }
 0xd9a   : > { %v7787_v1 = vld [vmem:[#allocation4 + $0xda] sm:$0xff]  ;;  %v7788_v14 = vld [vmem:[#allocation4 + $0xe2] sm:$0xff]  ;;  %v7340_v32 = vadd.f32 %v7308_v52, %v7236_v25  ;;  %v7237_v49 = vadd.f32 %v7205_v62, %v7133_v10 }
 0xd9b   : > { %v7916_v33 = vsel %vm566_vm8, %v7858_v58, 0.0  ;;  %v7580_v20 = vld [vmem:[#allocation4 + $0xe0] sm:$0xff]  ;;  %v7755_v51 = vadd.f32 %v7723_v26, %v7651_v17  ;;  %v7827_v41 = vmul.f32 %v13614_v35, %v7787_v1  ;;  %v7828_v22 = vmul.f32 %v13614_v35, %v7788_v14 }
 0xd9c   : > { %v7684_v38 = vld [vmem:[#allocation4 + $0xe1] sm:$0xff]  ;;  %7917 = vadd.xlane.f32.xlu0 %v7916_v33  ;;  %v7620_v39 = vmul.f32 %v13589_v50, %v7580_v20  ;;  %v7309_v43 = vmul.f32 %v13565_v44, %v7580_v20  ;;  %v7444_v47 = vadd.f32 %v7412_v21, %v7340_v32  ;;  %v7516_v2 = vmul.f32 %v13581_v4, %v7787_v1  ;;  %v13841_v21 = vld [vmem:[%s14218_s13] ss:$0 sm:$0xff] }
 0xd9d   : > { %v6651_v48 = vpop.f32.mrb[76].mxu0  ;;  %v7859_v55 = vadd.f32 %v7827_v41, %v7755_v51  ;;  %v7724_v37 = vmul.f32 %v13607_v18, %v7684_v38  ;;  %v7206_v53 = vmul.f32 %v13557_v9, %v7787_v1  ;;  %v7413_v52 = vmul.f32 %v13576_v24, %v7684_v38 }
 0xd9e   : > { %v7652_v60 = vadd.f32 %v7620_v39, %v7547_v63  ;;  %v6652_v54 = vadd.f32 %v13535_v11, %v6651_v48  ;;  %v6653_v36 = vpop.f32.mrb[77].mxu0  ;;  %v7341_v58 = vadd.f32 %v7309_v43, %v7237_v49  ;;  %v7031_v17 = vmul.f32 %v13542_v46, %v7580_v20  ;;  %v13851_v49 = vld [vmem:[%s14218_s13 + $0x3] ss:$0 sm:$0xff] }
 0xd9f   : > { %v7919_v34 = vsel %vm566_vm8, %v7859_v55, 0.0  ;;  %v7134_v25 = vadd.f32 %v7102_v56, %v7030_v3  ;;  %v7548_v1 = vadd.f32 %v7516_v2, %v7444_v47  ;;  %v7517_v20 = vmul.f32 %v13581_v4, %v7788_v14  ;;  %v13857_v47 = vld [vmem:[%s14218_s13 + $0x1] ss:$0 sm:$0xff] }
 0xda0   : > { %v7756_v59 = vadd.f32 %v7724_v37, %v7652_v60  ;;  %v6877_v23 = vadd.f32 %v13432_v15, %v6652_v54  ;;  %7920 = vadd.xlane.f32.xlu1 %v7919_v34  ;;  %v7581_v13 = vld [vmem:[#allocation4 + $0xf0] sm:$0xff]  ;;  %v7103_v15 = vmul.f32 %v13547_v28, %v7684_v38  ;;  %v7445_v63 = vadd.f32 %v7413_v52, %v7341_v58 }
 0xda1   : > { %v7621_v5 = vmul.f32 %v13589_v50, %v7581_v13  ;;  %v7310_v10 = vmul.f32 %v13565_v44, %v7581_v13  ;;  %v7685_v41 = vld [vmem:[#allocation4 + $0xf1] sm:$0xff]  ;;  %v7238_v39 = vadd.f32 %v7206_v53, %v7134_v25  ;;  %v7207_v48 = vmul.f32 %v13557_v9, %v7788_v14 }
 0xda2   : > { %v7860_v31 = vadd.f32 %v7828_v22, %v7756_v59  ;;  %6960 = vst.msk [vmem:[#allocation4 + $0xf9] sm:$0xff] %vm566_vm8, %v6877_v23  ;;  %v6656_v19 = vpop.f32.mrb[78].mxu0  ;;  %v7135_v46 = vadd.f32 %v7103_v15, %v7031_v17  ;;  %v7549_v37 = vadd.f32 %v7517_v20, %v7445_v63  ;;  %v7414_v36 = vmul.f32 %v13576_v24, %v7685_v41  ;;  %v13867_v15 = vld [vmem:[%s14218_s13 + $0x2] ss:$0 sm:$0xff]  ;;  %v13881_v20 = vld [vmem:[%s14218_s13 + $0x5] ss:$0 sm:$0xff] }
 0xda3   : > { %v6657_v26 = vadd.f32 %v13535_v11, %v6656_v19  ;;  %v6658_v45 = vpop.f32.mrb[79].mxu0  ;;  %v7653_v62 = vadd.f32 %v7621_v5, %v7548_v1  ;;  %v13830_v11 = vld [vmem:[%s14217_s12] ss:$0 sm:$0xff]  ;;  %v7342_v38 = vadd.f32 %v7310_v10, %v7238_v39  ;;  %v7032_v3 = vmul.f32 %v13841_v21, %v7581_v13 }
 0xda4   : > { %v7922_v33 = vsel %vm566_vm8, %v7860_v31, 0.0  ;;  %v7104_v2 = vmul.f32 %v13857_v47, %v7685_v41 }
 0xda5   : > { %7923 = vadd.xlane.f32.xlu0 %v7922_v33  ;;  %v6882_v51 = vadd.f32 %v13444_v0, %v6657_v26  ;;  %v7725_v0 = vmul.f32 %v13607_v18, %v7685_v41  ;;  %v7446_v59 = vadd.f32 %v7414_v36, %v7342_v38 }
 0xda6   : > { %v6661_v32 = vpop.f32.mrb[80].mxu0 }
 0xda7   : > { %6961 = vst.msk [vmem:[#allocation4 + $0x109] sm:$0xff] %vm566_vm8, %v6882_v51  ;;  %v6662_v28 = vadd.f32 %v13830_v11, %v6661_v32  ;;  %v6663_v44 = vpop.f32.mrb[81].mxu0  ;;  %v7757_v56 = vadd.f32 %v7725_v0, %v7653_v62  ;;  %v7136_v62 = vadd.f32 %v7104_v2, %v7032_v3 }
 0xda9   : > { %v6887_v55 = vadd.f32 %v13440_v40, %v6662_v28  ;;  %v7789_v60 = vld [vmem:[#allocation4 + $0xf2] sm:$0xff]  ;;  %v7790_v14 = vld [vmem:[#allocation4 + $0xfa] sm:$0xff]  ;;  %v7239_v40 = vadd.f32 %v7207_v48, %v7135_v46 }
 0xdaa   : > { %v7582_v43 = vld [vmem:[#allocation4 + $0xf8] sm:$0xff]  ;;  %v7829_v34 = vmul.f32 %v13614_v35, %v7789_v60  ;;  %v7518_v22 = vmul.f32 %v13581_v4, %v7789_v60  ;;  %v7830_v4 = vmul.f32 %v13614_v35, %v7790_v14  ;;  %v7208_v26 = vmul.f32 %v13867_v15, %v7789_v60 }
 0xdab   : > { %v7686_v54 = vld [vmem:[#allocation4 + $0xf9] sm:$0xff]  ;;  %v7622_v9 = vmul.f32 %v13589_v50, %v7582_v43  ;;  %6962 = vst.msk [vmem:[#allocation4 + $0x111] sm:$0xff] %vm566_vm8, %v6887_v55  ;;  %v7311_v23 = vmul.f32 %v13851_v49, %v7582_v43  ;;  %v7033_v1 = vmul.f32 %v13841_v21, %v7582_v43 }
 0xdac   : > { %v6666_v13 = vpop.f32.mrb[82].mxu0  ;;  %v7861_v31 = vadd.f32 %v7829_v34, %v7757_v56  ;;  %v7726_v53 = vmul.f32 %v13607_v18, %v7686_v54  ;;  %v7415_v17 = vmul.f32 %v13576_v24, %v7686_v54  ;;  %v7105_v51 = vmul.f32 %v13857_v47, %v7686_v54 }
 0xdad   : > { %v7654_v58 = vadd.f32 %v7622_v9, %v7549_v37  ;;  %v6667_v19 = vadd.f32 %v13830_v11, %v6666_v13  ;;  %v6668_v5 = vpop.f32.mrb[83].mxu0  ;;  %v7343_v52 = vadd.f32 %v7311_v23, %v7239_v40  ;;  %v7550_v24 = vadd.f32 %v7518_v22, %v7446_v59  ;;  %v13896_v22 = vld [vmem:[%s14218_s13 + $0x7] ss:$0 sm:$0xff] }
 0xdae   : > { %v7925_v45 = vsel %vm566_vm8, %v7861_v31, 0.0  ;;  %v7583_v25 = vld [vmem:[#allocation4 + $0x108] sm:$0xff]  ;;  %v7240_v55 = vadd.f32 %v7208_v26, %v7136_v62  ;;  %v7137_v60 = vadd.f32 %v7105_v51, %v7033_v1  ;;  %v7209_v34 = vmul.f32 %v13867_v15, %v7790_v14  ;;  %v13904_v31 = vld [vmem:[%s14218_s13 + $0x4] ss:$0 sm:$0xff]  ;;  %v13913_v5 = vld [vmem:[%s14218_s13 + $0x8] ss:$0 sm:$0xff] }
 0xdaf   : > { %v7758_v33 = vadd.f32 %v7726_v53, %v7654_v58  ;;  %v7687_v10 = vld [vmem:[#allocation4 + $0x109] sm:$0xff]  ;;  %v6892_v41 = vadd.f32 %v13457_v42, %v6667_v19  ;;  %7926 = vadd.xlane.f32.xlu1 %v7925_v45  ;;  %v7623_v63 = vmul.f32 %v13589_v50, %v7583_v25  ;;  %v7447_v39 = vadd.f32 %v7415_v17, %v7343_v52 }
 0xdb0   : > { %v7312_v46 = vmul.f32 %v13851_v49, %v7583_v25  ;;  %v7727_v44 = vmul.f32 %v13607_v18, %v7687_v10  ;;  %v7519_v42 = vmul.f32 %v13881_v20, %v7790_v14  ;;  %v13889_v18 = vld [vmem:[%s14218_s13 + $0x6] ss:$0 sm:$0xff]  ;;  %v7416_v14 = vmul.f32 %v13904_v31, %v7687_v10 }
 0xdb1   : > { %v7862_v32 = vadd.f32 %v7830_v4, %v7758_v33  ;;  %6963 = vst.msk [vmem:[#allocation4 + $0x121] sm:$0xff] %vm566_vm8, %v6892_v41  ;;  %v7655_v28 = vadd.f32 %v7623_v63, %v7550_v24  ;;  %v7034_v58 = vmul.f32 %v13841_v21, %v7583_v25  ;;  %v7106_v53 = vmul.f32 %v13857_v47, %v7687_v10 }
 0xdb2   : > { %v7791_v50 = vld [vmem:[#allocation4 + $0x10a] sm:$0xff]  ;;  %v7551_v54 = vadd.f32 %v7519_v42, %v7447_v39  ;;  %v7792_v3 = vld [vmem:[#allocation4 + $0x112] sm:$0xff]  ;;  %v7344_v56 = vadd.f32 %v7312_v46, %v7240_v55  ;;  %v7241_v17 = vadd.f32 %v7209_v34, %v7137_v60 }
 0xdb3   : > { %v7928_v38 = vsel %vm566_vm8, %v7862_v32, 0.0  ;;  %v7584_v0 = vld [vmem:[#allocation4 + $0x110] sm:$0xff]  ;;  %v7759_v37 = vadd.f32 %v7727_v44, %v7655_v28  ;;  %v7831_v43 = vmul.f32 %v13614_v35, %v7791_v50  ;;  %v7832_v52 = vmul.f32 %v13913_v5, %v7792_v3 }
 0xdb4   : > { %v7688_v48 = vld [vmem:[#allocation4 + $0x111] sm:$0xff]  ;;  %7929 = vadd.xlane.f32.xlu0 %v7928_v38  ;;  %v7624_v36 = vmul.f32 %v13889_v18, %v7584_v0  ;;  %v7313_v23 = vmul.f32 %v13851_v49, %v7584_v0  ;;  %v7448_v45 = vadd.f32 %v7416_v14, %v7344_v56  ;;  %v7520_v33 = vmul.f32 %v13881_v20, %v7791_v50 }
 0xdb5   : > { %v6671_v9 = vpop.f32.mrb[84].mxu0  ;;  %v7863_v40 = vadd.f32 %v7831_v43, %v7759_v37  ;;  %v7728_v35 = vmul.f32 %v13896_v22, %v7688_v48  ;;  %v7210_v51 = vmul.f32 %v13867_v15, %v7791_v50  ;;  %v7417_v63 = vmul.f32 %v13904_v31, %v7688_v48 }
 0xdb6   : > { %v7656_v59 = vadd.f32 %v7624_v36, %v7551_v54  ;;  %v6672_v2 = vadd.f32 %v13830_v11, %v6671_v9  ;;  %v6673_v13 = vpop.f32.mrb[85].mxu0  ;;  %v7345_v10 = vadd.f32 %v7313_v23, %v7241_v17  ;;  %v7035_v39 = vmul.f32 %v13841_v21, %v7584_v0 }
 0xdb7   : > { %v7931_v4 = vsel %vm566_vm8, %v7863_v40, 0.0  ;;  %v7138_v28 = vadd.f32 %v7106_v53, %v7034_v58  ;;  %v7552_v42 = vadd.f32 %v7520_v33, %v7448_v45  ;;  %v7521_v0 = vmul.f32 %v13881_v20, %v7792_v3 }
 0xdb8   : > { %v7760_v19 = vadd.f32 %v7728_v35, %v7656_v59  ;;  %v6897_v26 = vadd.f32 %v13455_v61, %v6672_v2  ;;  %7932 = vadd.xlane.f32.xlu1 %v7931_v4  ;;  %v7585_v25 = vld [vmem:[#allocation4 + $0x120] sm:$0xff]  ;;  %v7107_v61 = vmul.f32 %v13857_v47, %v7688_v48  ;;  %v7449_v55 = vadd.f32 %v7417_v63, %v7345_v10 }
 0xdb9   : > { %v7625_v24 = vmul.f32 %v13889_v18, %v7585_v25  ;;  %v7314_v44 = vmul.f32 %v13851_v49, %v7585_v25  ;;  %v7689_v38 = vld [vmem:[#allocation4 + $0x121] sm:$0xff]  ;;  %v7242_v60 = vadd.f32 %v7210_v51, %v7138_v28  ;;  %v7036_v34 = vmul.f32 %v13841_v21, %v7585_v25 }
 0xdba   : > { %v7864_v1 = vadd.f32 %v7832_v52, %v7760_v19  ;;  %6964 = vst.msk [vmem:[#allocation4 + $0x129] sm:$0xff] %vm566_vm8, %v6897_v26  ;;  %v6676_v41 = vpop.f32.mrb[86].mxu0  ;;  %v7139_v48 = vadd.f32 %v7107_v61, %v7035_v39  ;;  %v7108_v9 = vmul.f32 %v13857_v47, %v7689_v38  ;;  %v7729_v40 = vmul.f32 %v13896_v22, %v7689_v38 }
 0xdbb   : > { %v6677_v32 = vadd.f32 %v13830_v11, %v6676_v41  ;;  %v6678_v62 = vpop.f32.mrb[87].mxu0  ;;  %v7657_v43 = vadd.f32 %v7625_v24, %v7552_v42  ;;  %v7346_v56 = vadd.f32 %v7314_v44, %v7242_v60  ;;  %v7553_v23 = vadd.f32 %v7521_v0, %v7449_v55 }
 0xdbc   : > { %v7934_v46 = vsel %vm566_vm8, %v7864_v1, 0.0  ;;  %v7418_v14 = vmul.f32 %v13904_v31, %v7689_v38  ;;  %v7140_v26 = vadd.f32 %v7108_v9, %v7036_v34 }
 0xdbd   : > { %7935 = vadd.xlane.f32.xlu0 %v7934_v46  ;;  %v6902_v50 = vadd.f32 %v13464_v6, %v6677_v32  ;;  %v7211_v6 = vmul.f32 %v13867_v15, %v7792_v3  ;;  %v7761_v58 = vadd.f32 %v7729_v40, %v7657_v43 }
 0xdbe   : > { %v6681_v37 = vpop.f32.mrb[88].mxu0  ;;  %v7450_v17 = vadd.f32 %v7418_v14, %v7346_v56 }
 0xdbf   : > { %6965 = vst.msk [vmem:[#allocation4 + $0x139] sm:$0xff] %vm566_vm8, %v6902_v50  ;;  %v6682_v54 = vadd.f32 %v13830_v11, %v6681_v37  ;;  %v6683_v36 = vpop.f32.mrb[89].mxu0  ;;  %v7243_v52 = vadd.f32 %v7211_v6, %v7139_v48 }
 0xdc1   : > { %v6907_v59 = vadd.f32 %v13460_v8, %v6682_v54  ;;  %v7793_v35 = vld [vmem:[#allocation4 + $0x122] sm:$0xff]  ;;  %v7794_v19 = vld [vmem:[#allocation4 + $0x12a] sm:$0xff] }
 0xdc2   : > { %v7586_v2 = vld [vmem:[#allocation4 + $0x128] sm:$0xff]  ;;  %v7833_v53 = vmul.f32 %v13913_v5, %v7793_v35  ;;  %v7522_v3 = vmul.f32 %v13881_v20, %v7793_v35  ;;  %v7834_v10 = vmul.f32 %v13913_v5, %v7794_v19  ;;  %v7212_v39 = vmul.f32 %v13867_v15, %v7793_v35 }
 0xdc3   : > { %v7690_v13 = vld [vmem:[#allocation4 + $0x129] sm:$0xff]  ;;  %v7626_v4 = vmul.f32 %v13889_v18, %v7586_v2  ;;  %6966 = vst.msk [vmem:[#allocation4 + $0x141] sm:$0xff] %vm566_vm8, %v6907_v59  ;;  %v7315_v8 = vmul.f32 %v13851_v49, %v7586_v2  ;;  %v7037_v28 = vmul.f32 %v13841_v21, %v7586_v2  ;;  %v7523_v37 = vmul.f32 %v13881_v20, %v7794_v19 }
 0xdc4   : > { %v6686_v45 = vpop.f32.mrb[90].mxu0  ;;  %v7865_v33 = vadd.f32 %v7833_v53, %v7761_v58  ;;  %v7730_v1 = vmul.f32 %v13896_v22, %v7690_v13  ;;  %v7419_v63 = vmul.f32 %v13904_v31, %v7690_v13  ;;  %v7109_v44 = vmul.f32 %v13857_v47, %v7690_v13 }
 0xdc5   : > { %v7658_v25 = vadd.f32 %v7626_v4, %v7553_v23  ;;  %v6687_v51 = vadd.f32 %v13830_v11, %v6686_v45  ;;  %v6688_v41 = vpop.f32.mrb[91].mxu0  ;;  %v7347_v24 = vadd.f32 %v7315_v8, %v7243_v52  ;;  %v7554_v38 = vadd.f32 %v7522_v3, %v7450_v17 }
 0xdc6   : > { %v7937_v61 = vsel %vm566_vm8, %v7865_v33, 0.0  ;;  %v7587_v62 = vld [vmem:[#allocation4 + $0x138] sm:$0xff]  ;;  %v7244_v54 = vadd.f32 %v7212_v39, %v7140_v26  ;;  %v7141_v40 = vadd.f32 %v7109_v44, %v7037_v28  ;;  %v7213_v14 = vmul.f32 %v13867_v15, %v7794_v19 }
 0xdc7   : > { %v7762_v32 = vadd.f32 %v7730_v1, %v7658_v25  ;;  %v7691_v46 = vld [vmem:[#allocation4 + $0x139] sm:$0xff]  ;;  %v6912_v42 = vadd.f32 %v13472_v27, %v6687_v51  ;;  %7938 = vadd.xlane.f32.xlu1 %v7937_v61  ;;  %v7627_v50 = vmul.f32 %v13889_v18, %v7587_v62  ;;  %v7451_v55 = vadd.f32 %v7419_v63, %v7347_v24 }
 0xdc8   : > { %v7316_v43 = vmul.f32 %v13851_v49, %v7587_v62  ;;  %v7731_v48 = vmul.f32 %v13896_v22, %v7691_v46  ;;  %v7420_v13 = vmul.f32 %v13904_v31, %v7691_v46  ;;  %v7038_v3 = vmul.f32 %v13841_v21, %v7587_v62 }
 0xdc9   : > { %v7866_v60 = vadd.f32 %v7834_v10, %v7762_v32  ;;  %6967 = vst.msk [vmem:[#allocation4 + $0x151] sm:$0xff] %vm566_vm8, %v6912_v42  ;;  %v7659_v0 = vadd.f32 %v7627_v50, %v7554_v38  ;;  %v7555_v27 = vadd.f32 %v7523_v37, %v7451_v55  ;;  %v7245_v33 = vadd.f32 %v7213_v14, %v7141_v40 }
 0xdca   : > { %v7795_v56 = vld [vmem:[#allocation4 + $0x13a] sm:$0xff]  ;;  %v7796_v23 = vld [vmem:[#allocation4 + $0x142] sm:$0xff]  ;;  %v7348_v2 = vadd.f32 %v7316_v43, %v7244_v54  ;;  %v7110_v25 = vmul.f32 %v13857_v47, %v7691_v46 }
 0xdcb   : > { %v7940_v36 = vsel %vm566_vm8, %v7866_v60, 0.0  ;;  %v7588_v34 = vld [vmem:[#allocation4 + $0x140] sm:$0xff]  ;;  %v7763_v6 = vadd.f32 %v7731_v48, %v7659_v0  ;;  %v7835_v59 = vmul.f32 %v13913_v5, %v7795_v56  ;;  %v7836_v45 = vmul.f32 %v13913_v5, %v7796_v23 }
 0xdcc   : > { %v7692_v9 = vld [vmem:[#allocation4 + $0x141] sm:$0xff]  ;;  %7941 = vadd.xlane.f32.xlu0 %v7940_v36  ;;  %v7628_v35 = vmul.f32 %v13889_v18, %v7588_v34  ;;  %v7317_v58 = vmul.f32 %v13851_v49, %v7588_v34  ;;  %v7452_v10 = vadd.f32 %v7420_v13, %v7348_v2  ;;  %v7524_v51 = vmul.f32 %v13881_v20, %v7795_v56 }
 0xdcd   : > { %v6691_v53 = vpop.f32.mrb[92].mxu0  ;;  %v7867_v4 = vadd.f32 %v7835_v59, %v7763_v6  ;;  %v7732_v17 = vmul.f32 %v13896_v22, %v7692_v9  ;;  %v7214_v39 = vmul.f32 %v13867_v15, %v7795_v56  ;;  %v7039_v62 = vmul.f32 %v13841_v21, %v7588_v34 }
 0xdce   : > { %v7660_v52 = vadd.f32 %v7628_v35, %v7555_v27  ;;  %v6692_v8 = vadd.f32 %v13830_v11, %v6691_v53  ;;  %v6693_v26 = vpop.f32.mrb[93].mxu0  ;;  %v7349_v63 = vadd.f32 %v7317_v58, %v7245_v33  ;;  %v7111_v46 = vmul.f32 %v13857_v47, %v7692_v9 }
 0xdcf   : > { %v7943_v1 = vsel %vm566_vm8, %v7867_v4, 0.0  ;;  %v7142_v44 = vadd.f32 %v7110_v25, %v7038_v3  ;;  %v7556_v55 = vadd.f32 %v7524_v51, %v7452_v10  ;;  %v7421_v60 = vmul.f32 %v13904_v31, %v7692_v9 }
 0xdd0   : > { %v7764_v19 = vadd.f32 %v7732_v17, %v7660_v52  ;;  %v6917_v41 = vadd.f32 %v13470_v7, %v6692_v8  ;;  %7944 = vadd.xlane.f32.xlu1 %v7943_v1  ;;  %v7589_v24 = vld [vmem:[#allocation4 + $0x150] sm:$0xff]  ;;  %v7143_v36 = vadd.f32 %v7111_v46, %v7039_v62  ;;  %v7525_v27 = vmul.f32 %v13881_v20, %v7796_v23 }
 0xdd1   : > { %v7629_v32 = vmul.f32 %v13889_v18, %v7589_v24  ;;  %v7318_v42 = vmul.f32 %v13851_v49, %v7589_v24  ;;  %v7693_v37 = vld [vmem:[#allocation4 + $0x151] sm:$0xff]  ;;  %v7246_v43 = vadd.f32 %v7214_v39, %v7142_v44  ;;  %v7453_v54 = vadd.f32 %v7421_v60, %v7349_v63 }
 0xdd2   : > { %v7868_v61 = vadd.f32 %v7836_v45, %v7764_v19  ;;  %6968 = vst.msk [vmem:[#allocation4 + $0x159] sm:$0xff] %vm566_vm8, %v6917_v41  ;;  %v6696_v28 = vpop.f32.mrb[94].mxu0  ;;  %v7215_v40 = vmul.f32 %v13867_v15, %v7796_v23  ;;  %v7733_v9 = vmul.f32 %v13896_v22, %v7693_v37  ;;  %v7040_v35 = vmul.f32 %v13841_v21, %v7589_v24 }
 0xdd3   : > { %v6697_v7 = vadd.f32 %v13830_v11, %v6696_v28  ;;  %v6698_v38 = vpop.f32.mrb[95].mxu0  ;;  %v7661_v48 = vadd.f32 %v7629_v32, %v7556_v55  ;;  %v7350_v34 = vadd.f32 %v7318_v42, %v7246_v43  ;;  %v7422_v2 = vmul.f32 %v13904_v31, %v7693_v37 }
 0xdd4   : > { %v7946_v50 = vsel %vm566_vm8, %v7868_v61, 0.0  ;;  %v7557_v53 = vadd.f32 %v7525_v27, %v7453_v54  ;;  %v7247_v52 = vadd.f32 %v7215_v40, %v7143_v36 }
 0xdd5   : > { %7947 = vadd.xlane.f32.xlu0 %v7946_v50  ;;  %v6922_v0 = vadd.f32 %v13476_v57, %v6697_v7  ;;  %v7112_v57 = vmul.f32 %v13857_v47, %v7693_v37  ;;  %v7765_v14 = vadd.f32 %v7733_v9, %v7661_v48  ;;  %v7454_v26 = vadd.f32 %v7422_v2, %v7350_v34 }
 0xdd6   : > { %v6701_v56 = vpop.f32.mrb[96].mxu0 }
 0xdd7   : > { %6969 = vst.msk [vmem:[#allocation4 + $0x169] sm:$0xff] %vm566_vm8, %v6922_v0  ;;  %v6702_v6 = vadd.f32 %v13830_v11, %v6701_v56  ;;  %v6703_v59 = vpop.f32.mrb[97].mxu0  ;;  %v7144_v1 = vadd.f32 %v7112_v57, %v7040_v35 }
 0xdd9   : > { %v6927_v13 = vadd.f32 %v13474_v12, %v6702_v6  ;;  %v7797_v58 = vld [vmem:[#allocation4 + $0x152] sm:$0xff]  ;;  %v7798_v8 = vld [vmem:[#allocation4 + $0x15a] sm:$0xff] }
 0xdda   : > { %v7590_v4 = vld [vmem:[#allocation4 + $0x158] sm:$0xff]  ;;  %v7837_v17 = vmul.f32 %v13913_v5, %v7797_v58  ;;  %v7526_v45 = vmul.f32 %v13881_v20, %v7797_v58  ;;  %v7838_v12 = vmul.f32 %v13913_v5, %v7798_v8  ;;  %v7216_v24 = vmul.f32 %v13867_v15, %v7797_v58 }
 0xddb   : > { %v7694_v23 = vld [vmem:[#allocation4 + $0x159] sm:$0xff]  ;;  %v7630_v3 = vmul.f32 %v13889_v18, %v7590_v4  ;;  %6970 = vst.msk [vmem:[#allocation4 + $0x171] sm:$0xff] %vm566_vm8, %v6927_v13  ;;  %v7319_v25 = vmul.f32 %v13851_v49, %v7590_v4  ;;  %v7041_v32 = vmul.f32 %v13841_v21, %v7590_v4  ;;  %v7527_v38 = vmul.f32 %v13881_v20, %v7798_v8 }
 0xddc   : > { %v7734_v33 = vmul.f32 %v13896_v22, %v7694_v23  ;;  %v6706_v19 = vpop.f32.mrb[98].mxu0  ;;  %v7869_v10 = vadd.f32 %v7837_v17, %v7765_v14  ;;  %v7423_v41 = vmul.f32 %v13904_v31, %v7694_v23  ;;  %v7113_v62 = vmul.f32 %v13857_v47, %v7694_v23 }
 0xddd   : > { %v7662_v51 = vadd.f32 %v7630_v3, %v7557_v53  ;;  %v6707_v63 = vadd.f32 %v13830_v11, %v6706_v19  ;;  %v6708_v39 = vpop.f32.mrb[99].mxu0  ;;  %v7351_v61 = vadd.f32 %v7319_v25, %v7247_v52  ;;  %v7558_v44 = vadd.f32 %v7526_v45, %v7454_v26 }
 0xdde   : > { %v7949_v46 = vsel %vm566_vm8, %v7869_v10, 0.0  ;;  %v7591_v42 = vld [vmem:[#allocation4 + $0x168] sm:$0xff]  ;;  %v7248_v37 = vadd.f32 %v7216_v24, %v7144_v1  ;;  %v7145_v48 = vadd.f32 %v7113_v62, %v7041_v32  ;;  %v7217_v54 = vmul.f32 %v13867_v15, %v7798_v8 }
 0xddf   : > { %v7766_v28 = vadd.f32 %v7734_v33, %v7662_v51  ;;  %v7695_v7 = vld [vmem:[#allocation4 + $0x169] sm:$0xff]  ;;  %v6932_v50 = vadd.f32 %v13671_v16, %v6707_v63  ;;  %7950 = vadd.xlane.f32.xlu1 %v7949_v46  ;;  %v7631_v55 = vmul.f32 %v13889_v18, %v7591_v42  ;;  %v7455_v60 = vadd.f32 %v7423_v41, %v7351_v61 }
 0xde0   : > { %v7320_v0 = vmul.f32 %v13851_v49, %v7591_v42  ;;  %v7735_v27 = vmul.f32 %v13896_v22, %v7695_v7  ;;  %v7424_v16 = vmul.f32 %v13904_v31, %v7695_v7  ;;  %v7042_v13 = vmul.f32 %v13841_v21, %v7591_v42 }
 0xde1   : > { %v7870_v43 = vadd.f32 %v7838_v12, %v7766_v28  ;;  %6971 = vst.msk [vmem:[#allocation4 + $0x181] sm:$0xff] %vm566_vm8, %v6932_v50  ;;  %v6711_v36 = vpop.f32.mrb[100].mxu0  ;;  %v7663_v56 = vadd.f32 %v7631_v55, %v7558_v44  ;;  %v7559_v34 = vadd.f32 %v7527_v38, %v7455_v60  ;;  %v7114_v23 = vmul.f32 %v13857_v47, %v7695_v7  ;;  %v7595_v60 = vld [vmem:[#allocation4 + $0x198] sm:$0xff] }
 0xde2   : > { %v6712_v40 = vadd.f32 %v13830_v11, %v6711_v36  ;;  %v6713_v6 = vpop.f32.mrb[101].mxu0  ;;  %v7799_v9 = vld [vmem:[#allocation4 + $0x16a] sm:$0xff]  ;;  %v7352_v2 = vadd.f32 %v7320_v0, %v7248_v37  ;;  %v7800_v4 = vld [vmem:[#allocation4 + $0x172] sm:$0xff]  ;;  %v7249_v3 = vadd.f32 %v7217_v54, %v7145_v48 }
 0xde3   : > { %v7952_v59 = vsel %vm566_vm8, %v7870_v43, 0.0  ;;  %v7592_v35 = vld [vmem:[#allocation4 + $0x170] sm:$0xff]  ;;  %v7767_v14 = vadd.f32 %v7735_v27, %v7663_v56  ;;  %v7839_v58 = vmul.f32 %v13913_v5, %v7799_v9  ;;  %v7528_v45 = vmul.f32 %v13881_v20, %v7799_v9 }
 0xde4   : > { %v7696_v57 = vld [vmem:[#allocation4 + $0x171] sm:$0xff]  ;;  %7953 = vadd.xlane.f32.xlu0 %v7952_v59  ;;  %v7632_v53 = vmul.f32 %v13889_v18, %v7592_v35  ;;  %v6937_v11 = vadd.f32 %v13666_v29, %v6712_v40  ;;  %v7456_v17 = vadd.f32 %v7424_v16, %v7352_v2  ;;  %v7321_v33 = vmul.f32 %v13851_v49, %v7592_v35  ;;  %v7699_v16 = vld [vmem:[#allocation4 + $0x199] sm:$0xff] }
 0xde5   : > { %v7736_v52 = vmul.f32 %v13896_v22, %v7696_v57  ;;  %v7871_v8 = vadd.f32 %v7839_v58, %v7767_v14  ;;  %v7840_v12 = vmul.f32 %v13913_v5, %v7800_v4  ;;  %v7218_v25 = vmul.f32 %v13867_v15, %v7799_v9  ;;  %v7803_v9 = vld [vmem:[#allocation4 + $0x19a] sm:$0xff] }
 0xde6   : > { %v7664_v26 = vadd.f32 %v7632_v53, %v7559_v34  ;;  %6972 = vst.msk [vmem:[#allocation4 + $0x189] sm:$0xff] %vm566_vm8, %v6937_v11  ;;  %v7353_v29 = vadd.f32 %v7321_v33, %v7249_v3  ;;  %v7043_v10 = vmul.f32 %v13841_v21, %v7592_v35  ;;  %v7425_v24 = vmul.f32 %v13904_v31, %v7696_v57  ;;  %v7596_v14 = vld [vmem:[#allocation4 + $0x1a0] sm:$0xff] }
 0xde7   : > { %v7955_v1 = vsel %vm566_vm8, %v7871_v8, 0.0  ;;  %v7146_v63 = vadd.f32 %v7114_v23, %v7042_v13  ;;  %v7115_v39 = vmul.f32 %v13857_v47, %v7696_v57  ;;  %v7560_v32 = vadd.f32 %v7528_v45, %v7456_v17  ;;  %v7700_v8 = vld [vmem:[#allocation4 + $0x1a1] sm:$0xff] }
 0xde8   : > { %v7768_v19 = vadd.f32 %v7736_v52, %v7664_v26  ;;  %7956 = vadd.xlane.f32.xlu1 %v7955_v1  ;;  %v7593_v51 = vld [vmem:[#allocation4 + $0x180] sm:$0xff]  ;;  %v7457_v46 = vadd.f32 %v7425_v24, %v7353_v29  ;;  %v7529_v50 = vmul.f32 %v13881_v20, %v7800_v4  ;;  %v7219_v54 = vmul.f32 %v13867_v15, %v7800_v4 }
 0xde9   : > { %v7697_v41 = vld [vmem:[#allocation4 + $0x181] sm:$0xff]  ;;  %v7633_v62 = vmul.f32 %v13889_v18, %v7593_v51  ;;  %v7250_v28 = vadd.f32 %v7218_v25, %v7146_v63  ;;  %v7322_v44 = vmul.f32 %v13851_v49, %v7593_v51  ;;  %v7147_v38 = vadd.f32 %v7115_v39, %v7043_v10  ;;  %v8514_v39 = vld [vmem:[#allocation5] ss:$0 sm:$0xff] }
 0xdea   : > { %v7872_v61 = vadd.f32 %v7840_v12, %v7768_v19  ;;  %v7737_v21 = vmul.f32 %v13896_v22, %v7697_v41  ;;  %v7426_v47 = vmul.f32 %v13904_v31, %v7697_v41  ;;  %v7561_v56 = vadd.f32 %v7529_v50, %v7457_v46  ;;  %v7804_v25 = vld [vmem:[#allocation4 + $0x1a2] sm:$0xff] }
 0xdeb   : > { %v7665_v7 = vadd.f32 %v7633_v62, %v7560_v32  ;;  %v7354_v55 = vadd.f32 %v7322_v44, %v7250_v28  ;;  %v7635_v59 = vmul.f32 %v13889_v18, %v7595_v60  ;;  %v7251_v35 = vadd.f32 %v7219_v54, %v7147_v38 }
 0xdec   : > { %v7958_v42 = vsel %vm566_vm8, %v7872_v61, 0.0  ;;  %v7739_v53 = vmul.f32 %v13896_v22, %v7699_v16  ;;  %v7843_v3 = vmul.f32 %v13913_v5, %v7803_v9  ;;  %v7636_v33 = vmul.f32 %v13889_v18, %v7596_v14  ;;  %v7882_v61 = vpop.xlane.xlu1 %7881 }
 0xded   : > { %7959 = vadd.xlane.f32.xlu0 %v7958_v42  ;;  %v7769_v37 = vadd.f32 %v7737_v21, %v7665_v7  ;;  %v7801_v43 = vld [vmem:[#allocation4 + $0x182] sm:$0xff]  ;;  %v7458_v34 = vadd.f32 %v7426_v47, %v7354_v55  ;;  %v7802_v40 = vld [vmem:[#allocation4 + $0x18a] sm:$0xff]  ;;  %v7844_v41 = vmul.f32 %v13913_v5, %v7804_v25 }
 0xdee   : > { %v7594_v0 = vld [vmem:[#allocation4 + $0x188] sm:$0xff]  ;;  %v7841_v36 = vmul.f32 %v13913_v5, %v7801_v43  ;;  %v7530_v6 = vmul.f32 %v13881_v20, %v7801_v43  ;;  %v7842_v17 = vmul.f32 %v13913_v5, %v7802_v40  ;;  %v7531_v45 = vmul.f32 %v13881_v20, %v7802_v40 }
 0xdef   : > { %v7698_v48 = vld [vmem:[#allocation4 + $0x189] sm:$0xff]  ;;  %v7634_v27 = vmul.f32 %v13889_v18, %v7594_v0  ;;  %v7323_v57 = vmul.f32 %v13851_v49, %v7594_v0 }
 0xdf0   : > { %v7873_v2 = vadd.f32 %v7841_v36, %v7769_v37  ;;  %v7738_v15 = vmul.f32 %v13896_v22, %v7698_v48  ;;  %v7562_v58 = vadd.f32 %v7530_v6, %v7458_v34  ;;  %v7427_v23 = vmul.f32 %v13904_v31, %v7698_v48 }
 0xdf1   : > { %v7666_v13 = vadd.f32 %v7634_v27, %v7561_v56  ;;  %v7355_v4 = vadd.f32 %v7323_v57, %v7251_v35  ;;  %v7740_v31 = vmul.f32 %v13896_v22, %v7700_v8  ;;  %v7879_v22 = vpop.xlane.xlu0 %7878 }
 0xdf2   : > { %v7961_v11 = vsel %vm566_vm8, %v7873_v2, 0.0  ;;  %v7667_v49 = vadd.f32 %v7635_v59, %v7562_v58 }
 0xdf3   : > { %v7770_v52 = vadd.f32 %v7738_v15, %v7666_v13  ;;  %7962 = vadd.xlane.f32.xlu1 %v7961_v11  ;;  %v7459_v26 = vadd.f32 %v7427_v23, %v7355_v4 }
 0xdf4   : > { %v7771_v1 = vadd.f32 %v7739_v53, %v7667_v49  ;;  %v7891_v32 = vpop.xlane.xlu1 %7890 }
 0xdf5   : > { %v7874_v12 = vadd.f32 %v7842_v17, %v7770_v52  ;;  %v7563_v19 = vadd.f32 %v7531_v45, %v7459_v26  ;;  %v7885_v46 = vpop.xlane.xlu0 %7884 }
 0xdf6   : > { %v7875_v10 = vadd.f32 %v7843_v3, %v7771_v1 }
 0xdf7   : > { %v7964_v29 = vsel %vm566_vm8, %v7874_v12, 0.0  ;;  %v7668_v51 = vadd.f32 %v7636_v33, %v7563_v19 }
 0xdf8   : > { %7965 = vadd.xlane.f32.xlu0 %v7964_v29  ;;  %v7967_v24 = vsel %vm566_vm8, %v7875_v10, 0.0 }
 0xdf9   : > { %v7772_v63 = vadd.f32 %v7740_v31, %v7668_v51  ;;  %7968 = vadd.xlane.f32.xlu1 %v7967_v24  ;;  %v7888_v44 = vpop.xlane.xlu0 %7887 }
 0xdfb   : > { %v7876_v20 = vadd.f32 %v7844_v41, %v7772_v63 }
 0xdfd   : > { %v7970_v18 = vsel %vm566_vm8, %v7876_v20, 0.0  ;;  %v7897_v62 = vpop.xlane.xlu1 %7896  ;;  %v7894_v7 = vpop.xlane.xlu0 %7893 }
 0xdfe   : > { %7971 = vadd.xlane.f32.xlu0 %v7970_v18 }
 0xe02   : > { %v7900_v21 = vpop.xlane.xlu0 %7899 }
 0xe0a   : > { %7980 = vperm.xlu1 %10303, %v8514_v39  }
 0xe0c   : > { %v7903_v28 = vpop.xlane.xlu1 %7902 }
 0xe11   : > { %v7906_v50 = vpop.xlane.xlu0 %7905 }
 0xe15   : > { %v7909_v42 = vpop.xlane.xlu1 %7908 }
 0xe1a   : > { %v7912_v47 = vpop.xlane.xlu0 %7911 }
 0xe24   : > { %v7915_v5 = vpop.xlane.xlu1 %7914 }
 0xe29   : > { %v7918_v37 = vpop.xlane.xlu0 %7917 }
 0xe2d   : > { %v7921_v38 = vpop.xlane.xlu1 %7920 }
 0xe32   : > { %v7924_v0 = vpop.xlane.xlu0 %7923 }
 0xe3c   : > { %v7927_v55 = vpop.xlane.xlu1 %7926 }
 0xe41   : > { %v7930_v54 = vpop.xlane.xlu0 %7929 }
 0xe45   : > { %v7933_v60 = vpop.xlane.xlu1 %7932 }
 0xe4a   : > { %v7936_v56 = vpop.xlane.xlu0 %7935 }
 0xe54   : > { %v7939_v43 = vpop.xlane.xlu1 %7938 }
 0xe59   : > { %v7942_v34 = vpop.xlane.xlu0 %7941 }
 0xe5d   : > { %v7945_v48 = vpop.xlane.xlu1 %7944 }
 0xe62   : > { %v7948_v40 = vpop.xlane.xlu0 %7947 }
 0xe6c   : > { %v7951_v36 = vpop.xlane.xlu1 %7950 }
 0xe71   : > { %v7954_v59 = vpop.xlane.xlu0 %7953 }
 0xe75   : > { %v7957_v27 = vpop.xlane.xlu1 %7956 }
 0xe7a   : > { %v7960_v4 = vpop.xlane.xlu0 %7959 }
 0xe80   : > { %v7963_v16 = vpop.xlane.xlu1 %7962 }
 0xe85   : > { %v7966_v10 = vpop.xlane.xlu0 %7965 }
 0xe86   : > { %v7969_v6 = vpop.xlane.xlu1 %7968 }
 0xe8a   : > { %v14052_v9 = vpop.permute.xlu1 %7980 }
 0xe8b   : > { %v7983_v35 = vadd.f32 %v14052_v9, %v7879_v22  ;;  %v7984_v57 = vadd.f32 %v14052_v9, %v7882_v61  ;;  %v7985_v2 = vadd.f32 %v14052_v9, %v7885_v46  ;;  %v7986_v13 = vadd.f32 %v14052_v9, %v7888_v44 }
 0xe8c   : > { %v7987_v15 = vadd.f32 %v14052_v9, %v7891_v32  ;;  %v7988_v14 = vadd.f32 %v14052_v9, %v7894_v7  ;;  %v7989_v58 = vadd.f32 %v14052_v9, %v7897_v62  ;;  %v7990_v53 = vadd.f32 %v14052_v9, %v7900_v21  ;;  %v14248_v32 = vld [vmem:[#allocation9_spill] sm:$0xff] }
 0xe8d   : > { %v7991_v23 = vadd.f32 %v14052_v9, %v7903_v28  ;;  %v7992_v11 = vadd.f32 %v14052_v9, %v7906_v50  ;;  %v7993_v52 = vadd.f32 %v14052_v9, %v7909_v42  ;;  %v7994_v17 = vadd.f32 %v14052_v9, %v7912_v47 }
 0xe8e   : > { %v7995_v3 = vadd.f32 %v14052_v9, %v7915_v5  ;;  %v7996_v8 = vadd.f32 %v14052_v9, %v7918_v37  ;;  %v7997_v49 = vadd.f32 %v14052_v9, %v7921_v38  ;;  %v7998_v26 = vadd.f32 %v14052_v9, %v7924_v0 }
 0xe8f   : > { %v7999_v45 = vadd.f32 %v14052_v9, %v7927_v55  ;;  %v8000_v33 = vadd.f32 %v14052_v9, %v7930_v54  ;;  %v8001_v12 = vadd.f32 %v14052_v9, %v7933_v60  ;;  %v8002_v25 = vadd.f32 %v14052_v9, %v7936_v56 }
 0xe90   : > { %v8003_v1 = vadd.f32 %v14052_v9, %v7939_v43  ;;  %v8004_v19 = vadd.f32 %v14052_v9, %v7942_v34  ;;  %v8005_v31 = vadd.f32 %v14052_v9, %v7945_v48  ;;  %v8006_v29 = vadd.f32 %v14052_v9, %v7948_v40 }
 0xe91   : > { %v8007_v51 = vadd.f32 %v14052_v9, %v7951_v36  ;;  %v8008_v41 = vadd.f32 %v14052_v9, %v7954_v59  ;;  %v8009_v24 = vadd.f32 %v14052_v9, %v7957_v27  ;;  %v8010_v63 = vadd.f32 %v14052_v9, %v7960_v4 }
 0xe92   : > { %v8011_v20 = vadd.f32 %v14052_v9, %v7963_v16  ;;  %v8012_v18 = vadd.f32 %v14052_v9, %v7966_v10  ;;  %v14085_v39 = vadd.f32 %v14052_v9, %v7969_v6  ;;  %v8052_v61 = vrot.slane %v7983_v35, %v10777_v30 }
 0xe93   : > { %v8057_v22 = vrot.slane %v7984_v57, %v14248_v32  ;;  %v8063_v62 = vrot.slane %v7985_v2, %v10777_v30  ;;  %v8067_v46 = vrot.slane %v7986_v13, %v14248_v32  ;;  %v8072_v28 = vrot.slane %v7987_v15, %v10777_v30 }
 0xe94   : > { %v8076_v44 = vrot.slane %v7988_v14, %v14248_v32  ;;  %v8081_v42 = vrot.slane %v7989_v58, %v10777_v30  ;;  %v8085_v7 = vrot.slane %v7990_v53, %v14248_v32  ;;  %v8090_v5 = vrot.slane %v7991_v23, %v10777_v30  ;;  %v7972_v23 = vpop.xlane.xlu0 %7971 }
 0xe95   : > { %v8059_v21 = vsel %vm8058_vm11, %v8057_v22, %v8052_v61  ;;  %v8068_v38 = vsel %vm8058_vm11, %v8067_v46, %v8063_v62  ;;  %v8094_v50 = vrot.slane %v7992_v11, %v14248_v32  ;;  %v8099_v55 = vrot.slane %v7993_v52, %v10777_v30 }
 0xe96   : > { %v8077_v47 = vsel %vm8058_vm11, %v8076_v44, %v8072_v28  ;;  %v8086_v60 = vsel %vm8058_vm11, %v8085_v7, %v8081_v42  ;;  %v8103_v37 = vrot.slane %v7994_v17, %v14248_v32  ;;  %v8108_v43 = vrot.slane %v7995_v3, %v10777_v30 }
 0xe97   : > { %v8095_v0 = vsel %vm8058_vm11, %v8094_v50, %v8090_v5  ;;  %v8112_v48 = vrot.slane %v7996_v8, %v14248_v32  ;;  %v8117_v54 = vrot.slane %v7997_v49, %v10777_v30  ;;  %v8121_v36 = vrot.slane %v7998_v26, %v14248_v32 }
 0xe98   : > { %v8104_v56 = vsel %vm8058_vm11, %v8103_v37, %v8099_v55  ;;  %v8126_v27 = vrot.slane %v7999_v45, %v10777_v30  ;;  %v8130_v34 = vrot.slane %v8000_v33, %v14248_v32  ;;  %v8135_v16 = vrot.slane %v8001_v12, %v10777_v30 }
 0xe99   : > { %v8113_v40 = vsel %vm8058_vm11, %v8112_v48, %v8108_v43  ;;  %v8122_v6 = vsel %vm8058_vm11, %v8121_v36, %v8117_v54  ;;  %v8139_v59 = vrot.slane %v8002_v25, %v14248_v32  ;;  %v8144_v35 = vrot.slane %v8003_v1, %v10777_v30 }
 0xe9a   : > { %v8131_v57 = vsel %vm8058_vm11, %v8130_v34, %v8126_v27  ;;  %v8148_v2 = vrot.slane %v8004_v19, %v14248_v32  ;;  %v8153_v13 = vrot.slane %v8005_v31, %v10777_v30  ;;  %v8157_v15 = vrot.slane %v8006_v29, %v14248_v32 }
 0xe9b   : > { %v8140_v14 = vsel %vm8058_vm11, %v8139_v59, %v8135_v16  ;;  %v8162_v58 = vrot.slane %v8007_v51, %v10777_v30  ;;  %v8166_v53 = vrot.slane %v8008_v41, %v14248_v32  ;;  %v8171_v4 = vrot.slane %v8009_v24, %v10777_v30 }
 0xe9c   : > { %v8149_v11 = vsel %vm8058_vm11, %v8148_v2, %v8144_v35  ;;  %v8158_v52 = vsel %vm8058_vm11, %v8157_v15, %v8153_v13  ;;  %v8175_v17 = vrot.slane %v8010_v63, %v14248_v32  ;;  %v8180_v3 = vrot.slane %v8011_v20, %v10777_v30 }
 0xe9d   : > { %v8167_v8 = vsel %vm8058_vm11, %v8166_v53, %v8162_v58  ;;  %v8184_v49 = vrot.slane %v8012_v18, %v14248_v32  ;;  %v8189_v26 = vrot.slane %v14085_v39, %v10777_v30  ;;  %v8196_v45 = vsel %vm8195_vm12, %v8068_v38, %v8059_v21 }
 0xe9e   : > { %v8176_v33 = vsel %vm8058_vm11, %v8175_v17, %v8171_v4  ;;  %v8198_v12 = vsel %vm8197_vm13, %v8077_v47, %v8196_v45  ;;  %v8209_v25 = vsel %vm8195_vm12, %v8140_v14, %v8131_v57  ;;  %v8014_v1 = vadd.f32 %v14052_v9, %v7972_v23 }
 0xe9f   : > { %v8185_v19 = vsel %vm8058_vm11, %v8184_v49, %v8180_v3  ;;  %v8200_v31 = vsel %vm8199_vm14, %v8086_v60, %v8198_v12  ;;  %v8210_v29 = vsel %vm8197_vm13, %v8149_v11, %v8209_v25 }
 0xea0   : > { %v8202_v30 = vsel %vm8201_vm15, %v8095_v0, %v8200_v31  ;;  %v8211_v10 = vsel %vm8199_vm14, %v8158_v52, %v8210_v29  ;;  %v8193_v51 = vrot.slane %v8014_v1, %v14248_v32 }
 0xea1   : > { %v8204_v9 = vsel %vm8203_vm0, %v8104_v56, %v8202_v30  ;;  %v8212_v41 = vsel %vm8201_vm15, %v8167_v8, %v8211_v10 }
 0xea2   : > { %v8206_v24 = vsel %vm8205_vm1, %v8113_v40, %v8204_v9  ;;  %v8213_v63 = vsel %vm8203_vm0, %v8176_v33, %v8212_v41  ;;  %v8194_v20 = vsel %vm8058_vm11, %v8193_v51, %v8189_v26 }
 0xea3   : > { %v8208_v18 = vsel %vm8207_vm2, %v8122_v6, %v8206_v24  ;;  %v8214_v39 = vsel %vm8205_vm1, %v8185_v19, %v8213_v63 }
 0xea4   : > { %v8215_v61 = vsel %vm8207_vm2, %v8194_v20, %v8214_v39  ;;  %8218 = vst.msk [vmem:[%s489_s16] sm:$0xff] %vm566_vm8, %v8208_v18 }
 0xea5   : > { %8219 = vst.msk [vmem:[%s489_s16 + $0x8] sm:$0xff] %vm566_vm8, %v8215_v61 }
 0xea6   : > { %10467 = shalt.err (!%p10464_p3)
}
 0xea7   : > { %s10468_s4 = scalar_lea.hbm %s14155_s26, 256  ;;  %s10472_s27 = scalar_lea.hbm %s14220_s15, 512 }
 0xea8   : > { %p10469_p4 = scmp.ne.s32.totalorder %s14155_s26, %s10468_s4  ;;  %p10473_p9 = scmp.lt.u32.totalorder %s14155_s26, %s14220_s15 }
 0xea9   : > { %p10474_p10 = scmp.lt.u32.totalorder %s10472_s27, %s10468_s4  ;;  %p10476_p12 = scmp.lt.u32.totalorder %s10468_s4, %s14155_s26 }
 0xeaa   : > { %p10470_p7 = pnand %p10469_p4, %p10651_p5 }
 0xeab   : > { %p10475_p11 = por %p10474_p10, %p10473_p9 }
 0xeac   : > { %p10471_p8 = pneg %p10470_p7 }
 0xead   : > { %p10477_p13 = por %p10476_p12, %p10475_p11 }
 0xeaf   : > { %p10478_p0 = pnand %p10477_p13, %p10471_p8 }
 0xeb1   : > { %10481 = shalt.err (!%p10478_p0)
}
 0xeb2   : > { %s10528_s14 = smov 128   ;;  %s10529_s24 = smov 8  }
 0xeb3   : > { %9293 = dma.vmem_to_hbm [thread:$0]  (%p10651_p5), %s14157_s18, 256, %s14155_s26, %s14164_s17, %s10528_s14, %s10528_s14, %s10529_s24  }
 0xeb4 PF: > { %p9299_p1 = scmp.ge.s32.totalorder %s10516_s23, 2  ;;  %s8249_s0 = sand.u32 1, %s10504_s20  }
 0xeb5   : > { %s8250_s1 = scalar_lea.sflag [#allocation7], %s8249_s0 }
 0xeb6   : > { %p9296_p2 = pnand %p9299_p1, %p10655_p6 }
 0xeb8   : > { %10499 = dma.done.wait (!%p9296_p2), %s8250_s1, 256  }
 0xeb9   : > { %10501 = vsyncadd (!%p9296_p2), %s8250_s1, 4294967040  ;;  %p27_p3 = scmp.ge.s32.totalorder %s10638_s25, 4   ;;  %s14249_s20 = smov %s10508_s21 }
 0xeba   : > { %s14250_s21 = smov %s10512_s22  ;;  %s14251_s22 = smov %s10649_s28 }
 0xebb   : > { %s14252_s23 = smov %s10638_s25  ;;  %29 = sbr.rel (!%p27_p3) target bundleno = 11 (0xb), region = 134 }
 0xec2   :  { %8255 = vsyncpa [#allocation7], 1 }
 0xec3   :  { %8257 = vsyncpa [#allocation7 + $0x1], 1 }

</bundles_post_ra>
